<compile_context>
chip_gen: v5e
topology: v5e:2x2
jax: 0.10.0
libtpu: 0.0.40
codegen_flags: <defaults>
</compile_context>

<pallas_src>
import numpy as np
import jax
import jax.numpy as jnp
from jax.experimental import pallas as pl
from jax.experimental.pallas import tpu as pltpu

# Channel counts implied by the layer types.
C_IN, C_MID, C_OUT, N_CLASSES = 1, 20, 64, 8
# Spatial sizes through the net (16^3 -> pool -> 8^3 -> pool -> 4^3).
D1 = H1 = W1 = 16
D2 = H2 = W2 = 8
D3 = H3 = W3 = 4


# ----------------------------------------------------------------------------
# Host-side constant construction (numpy): conv taps / pooling as matrices.
# ----------------------------------------------------------------------------
def _shift_matrices(h_dim, w_dim):
    """(9, HW, HW): xs = x @ S_g reads x at (h+dh, w+dw) with zero padding."""
    hw = h_dim * w_dim
    h_out = np.arange(hw) // w_dim
    w_out = np.arange(hw) % w_dim
    mats = []
    for dh in (-1, 0, 1):
        for dw in (-1, 0, 1):
            hi = h_out + dh
            wi = w_out + dw
            valid = (hi >= 0) & (hi < h_dim) & (wi >= 0) & (wi < w_dim)
            s = np.zeros((hw, hw), np.float32)
            s[(hi * w_dim + wi)[valid], np.arange(hw)[valid]] = 1.0
            mats.append(s)
    return np.stack(mats)


def _grouped_conv_weight(w, d_dim):
    """w: (Cout, Cin, 3, 3, 3) torch-layout conv weight ->
    (Cout*D, 9*Cin*D): per-(kh,kw) group, d-axis taps folded in via shifted
    identities (kron), groups concatenated along K to match the im2col scratch."""
    cout, cin = w.shape[:2]
    idx = np.arange(d_dim)
    shifted_eyes = []
    for kd in range(3):
        sh = np.zeros((d_dim, d_dim), np.float32)
        di = idx + (kd - 1)
        ok = (di >= 0) & (di < d_dim)
        sh[idx[ok], di[ok]] = 1.0
        shifted_eyes.append(sh)
    groups = []
    for kh in range(3):          # same (kh, kw) order as _shift_matrices
        for kw in range(3):
            wg = np.zeros((cout * d_dim, cin * d_dim), np.float32)
            for kd in range(3):
                wg += np.kron(w[:, :, kd, kh, kw].astype(np.float32),
                              shifted_eyes[kd])
            groups.append(wg)
    return np.concatenate(groups, axis=1)


def _pool_hw_matrix(h_dim, w_dim):
    """(HW, HW/4): right matmul = 2x2 average pooling over (h, w)."""
    p = np.zeros((h_dim * w_dim, (h_dim // 2) * (w_dim // 2)), np.float32)
    for h in range(h_dim):
        for w in range(w_dim):
            p[h * w_dim + w, (h // 2) * (w_dim // 2) + (w // 2)] = 0.25
    return p


def _pool_d_matrix(c_dim, d_dim):
    """(C*D/2, C*D): left matmul = 2x average pooling over d (rows are (c,d))."""
    p = np.zeros((c_dim * (d_dim // 2), c_dim * d_dim), np.float32)
    for c in range(c_dim):
        for d in range(d_dim):
            p[c * (d_dim // 2) + d // 2, c * d_dim + d] = 0.5
    return p


def init_raw_params(key):
    """Plain conv weights in the standard (Cout, Cin, 3, 3, 3) layout."""
    ks = jax.random.split(key, 8)

    def cw(k, cout, cin):
        fan_in = cin * 27
        return (jax.random.normal(k, (cout, cin, 3, 3, 3), jnp.float32)
                * np.sqrt(2.0 / fan_in))

    return {
        "w1": cw(ks[0], C_MID, C_IN),
        "b1": 0.01 * jax.random.normal(ks[1], (C_MID,), jnp.float32),
        "w2": cw(ks[2], C_MID, C_MID),
        "b2": 0.01 * jax.random.normal(ks[3], (C_MID,), jnp.float32),
        "w3": cw(ks[4], C_OUT, C_MID),
        "b3": 0.01 * jax.random.normal(ks[5], (C_OUT,), jnp.float32),
        "wl": jax.random.normal(ks[6], (N_CLASSES, C_OUT), jnp.float32)
        * np.sqrt(1.0 / C_OUT),
        "bl": 0.01 * jax.random.normal(ks[7], (N_CLASSES,), jnp.float32),
    }


def build_kernel_constants(raw):
    w1 = np.asarray(raw["w1"]); b1 = np.asarray(raw["b1"])
    w2 = np.asarray(raw["w2"]); b2 = np.asarray(raw["b2"])
    w3 = np.asarray(raw["w3"]); b3 = np.asarray(raw["b3"])
    wl = np.asarray(raw["wl"]); bl = np.asarray(raw["bl"])
    consts = {
        "w1": _grouped_conv_weight(w1, D1),          # (320, 144)
        "s1": _shift_matrices(H1, W1),               # (9, 256, 256)
        "b1": np.repeat(b1, D1)[:, None],            # (320, 1)
        "phw1": _pool_hw_matrix(H1, W1),             # (256, 64)
        "pd1": _pool_d_matrix(C_MID, D1),            # (160, 320)
        "w2": _grouped_conv_weight(w2, D2),          # (160, 1440)
        "s2": _shift_matrices(H2, W2),               # (9, 64, 64)
        "b2": np.repeat(b2, D2)[:, None],            # (160, 1)
        "phw2": _pool_hw_matrix(H2, W2),             # (64, 16)
        "pd2": _pool_d_matrix(C_MID, D2),            # (80, 160)
        "w3": _grouped_conv_weight(w3, D3),          # (256, 720)
        "s3": _shift_matrices(H3, W3),               # (9, 16, 16)
        "b3": np.repeat(b3, D3)[:, None],            # (256, 1)
        # AvgSpacial + Linear folded: kron(Wl, 1_D3)/|spatial|
        "wlr": np.kron(wl, np.ones((1, D3), np.float32)) / float(D3 * H3 * W3),
        "bl": bl[:, None],                           # (8, 1)
    }
    return {k: jnp.asarray(v, jnp.float32) for k, v in consts.items()}


# ----------------------------------------------------------------------------
# Fused Pallas kernel: whole network, one sample per grid step.
# ----------------------------------------------------------------------------
def s4a4_fused_kernel(
    x_ref,
    w1_ref, s1_ref, b1_ref, phw1_ref, pd1_ref,
    w2_ref, s2_ref, b2_ref, phw2_ref, pd2_ref,
    w3_ref, s3_ref, b3_ref,
    wlr_ref, bl_ref,
    o_ref,
    xs1_ref, xs2_ref, xs3_ref,
):
    def conv_relu(x, wcat_ref, s_ref, b_ref, xs_ref):
        # x: (Cin*D, HW).  In-kernel im2col: 9 shifted copies staged into VMEM
        # scratch, then a single MXU matmul with the grouped conv weights.
        cin_d = x.shape[0]
        for g in range(9):
            xs_ref[g * cin_d:(g + 1) * cin_d, :] = jnp.dot(
                x, s_ref[g], preferred_element_type=jnp.float32)
        y = jnp.dot(wcat_ref[...], xs_ref[...],
                    preferred_element_type=jnp.float32)
        return jnp.maximum(y + b_ref[...], 0.0)

    def pool222(a, phw_ref, pd_ref):
        # AvgPool3d(2): pool (h, w) with a right matmul, pool d with a left one.
        ahw = jnp.dot(a, phw_ref[...], preferred_element_type=jnp.float32)
        return jnp.dot(pd_ref[...], ahw, preferred_element_type=jnp.float32)

    x0 = x_ref[0]                                             # (16, 256)
    a1 = conv_relu(x0, w1_ref, s1_ref, b1_ref, xs1_ref)       # (320, 256)
    p1 = pool222(a1, phw1_ref, pd1_ref)                       # (160, 64)
    a2 = conv_relu(p1, w2_ref, s2_ref, b2_ref, xs2_ref)       # (160, 64)
    p2 = pool222(a2, phw2_ref, pd2_ref)                       # (80, 16)
    a3 = conv_relu(p2, w3_ref, s3_ref, b3_ref, xs3_ref)       # (256, 16)
    # AvgSpacial + Linear: (8, 256) @ (256, 16) then lane-sum.
    h = jnp.dot(wlr_ref[...], a3, preferred_element_type=jnp.float32)  # (8, 16)
    o_ref[0] = jnp.sum(h, axis=1, keepdims=True) + bl_ref[...]         # (8, 1)


def s4_a4_net_forward(x, consts):
    n = x.shape[0]
    # (N, C, D, H, W) -> (N, C*D, H*W): rows (c, d), lanes (h, w).
    x2 = x.astype(jnp.float32).reshape(n, C_IN * D1, H1 * W1)

    const_args = (
        consts["w1"], consts["s1"], consts["b1"], consts["phw1"], consts["pd1"],
        consts["w2"], consts["s2"], consts["b2"], consts["phw2"], consts["pd2"],
        consts["w3"], consts["s3"], consts["b3"],
        consts["wlr"], consts["bl"],
    )

    def const_spec(a):
        nd = a.ndim
        return pl.BlockSpec(a.shape, lambda i: (0,) * nd)

    in_specs = [pl.BlockSpec((1, C_IN * D1, H1 * W1), lambda i: (i, 0, 0))]
    in_specs += [const_spec(a) for a in const_args]

    out = pl.pallas_call(
        s4a4_fused_kernel,
        out_shape=jax.ShapeDtypeStruct((n, N_CLASSES, 1), jnp.float32),
        grid=(n,),
        in_specs=in_specs,
        out_specs=pl.BlockSpec((1, N_CLASSES, 1), lambda i: (i, 0, 0)),
        scratch_shapes=[
            pltpu.VMEM((9 * C_IN * D1, H1 * W1), jnp.float32),   # (144, 256)
            pltpu.VMEM((9 * C_MID * D2, H2 * W2), jnp.float32),  # (1440, 64)
            pltpu.VMEM((9 * C_MID * D3, H3 * W3), jnp.float32),  # (720, 16)
        ],
        compiler_params=pltpu.CompilerParams(
            dimension_semantics=("parallel",),
            vmem_limit_bytes=32 * 1024 * 1024,
        ),
        cost_estimate=pl.CostEstimate(
            flops=108_000_000 * n, transcendentals=0, bytes_accessed=5_000_000),
    )(x2, *const_args)
    return out.reshape(n, N_CLASSES)


s4_a4_net_forward = jax.jit(s4_a4_net_forward)


# ----------------------------------------------------------------------------
# Pure-JAX reference (f32, HIGHEST precision) for a correctness check.
# ----------------------------------------------------------------------------
def ref_forward(x, raw):
    def conv3d(x, w, b):
        nb, c, d, h, wd = x.shape
        xp = jnp.pad(x, ((0, 0), (0, 0), (1, 1), (1, 1), (1, 1)))
        out = None
        for kd in range(3):
            for kh in range(3):
                for kw in range(3):
                    win = xp[:, :, kd:kd + d, kh:kh + h, kw:kw + wd]
                    t = jnp.einsum("ncdhw,oc->nodhw", win, w[:, :, kd, kh, kw],
                                   precision=jax.lax.Precision.HIGHEST)
                    out = t if out is None else out + t
        return out + b[None, :, None, None, None]

    def pool(x):
        nb, c, d, h, wd = x.shape
        return x.reshape(nb, c, d // 2, 2, h // 2, 2, wd // 2, 2).mean(
            axis=(3, 5, 7))

    a = jax.nn.relu(conv3d(x, raw["w1"], raw["b1"]))
    a = pool(a)
    a = jax.nn.relu(conv3d(a, raw["w2"], raw["b2"]))
    a = pool(a)
    a = jax.nn.relu(conv3d(a, raw["w3"], raw["b3"]))
    pooled = a.reshape(a.shape[0], C_OUT, -1).mean(-1)
    return jnp.einsum("nc,oc->no", pooled, raw["wl"],
                      precision=jax.lax.Precision.HIGHEST) + raw["bl"][None, :]


ref_forward = jax.jit(ref_forward)


# ----------------------------------------------------------------------------
if __name__ == "__main__":
    x = jax.random.normal(jax.random.PRNGKey(0), (2, 1, 16, 16, 16),
                          jnp.float32)  # NCDHW, C=1
    raw = init_raw_params(jax.random.PRNGKey(42))
    consts = build_kernel_constants(raw)

    out = jax.block_until_ready(s4_a4_net_forward(x, consts))
    assert out.shape == (2, N_CLASSES), out.shape
    assert bool(jnp.all(jnp.isfinite(out)))

    ref = jax.block_until_ready(ref_forward(x, raw))
    np.testing.assert_allclose(np.asarray(out), np.asarray(ref),
                               rtol=1e-2, atol=1e-2)
    print("KERNEL_OK")
</pallas_src>

<mosaic_0001>
module attributes {stable_mosaic.version = 11 : i64} {
  func.func @s4a4_fused_kernel(%arg0: i32, %arg1: memref<1x16x256xf32, #tpu.memory_space<vmem>>, %arg2: memref<320x144xf32, #tpu.memory_space<vmem>>, %arg3: memref<9x256x256xf32, #tpu.memory_space<vmem>>, %arg4: memref<320x1xf32, #tpu.memory_space<vmem>>, %arg5: memref<256x64xf32, #tpu.memory_space<vmem>>, %arg6: memref<160x320xf32, #tpu.memory_space<vmem>>, %arg7: memref<160x1440xf32, #tpu.memory_space<vmem>>, %arg8: memref<9x64x64xf32, #tpu.memory_space<vmem>>, %arg9: memref<160x1xf32, #tpu.memory_space<vmem>>, %arg10: memref<64x16xf32, #tpu.memory_space<vmem>>, %arg11: memref<80x160xf32, #tpu.memory_space<vmem>>, %arg12: memref<256x720xf32, #tpu.memory_space<vmem>>, %arg13: memref<9x16x16xf32, #tpu.memory_space<vmem>>, %arg14: memref<256x1xf32, #tpu.memory_space<vmem>>, %arg15: memref<8x256xf32, #tpu.memory_space<vmem>>, %arg16: memref<8x1xf32, #tpu.memory_space<vmem>>, %arg17: memref<1x8x1xf32, #tpu.memory_space<vmem>>, %arg18: memref<144x256xf32, #tpu.memory_space<vmem>>, %arg19: memref<1440x64xf32, #tpu.memory_space<vmem>>, %arg20: memref<720x16xf32, #tpu.memory_space<vmem>>) attributes {dimension_semantics = [#tpu.dimension_semantics<parallel>], iteration_bounds = array<i64: 2>, scalar_prefetch = 0 : i64, scratch_operands = 3 : i64, tpu.core_type = #tpu.core_type<tc>, window_params = [{transform_indices = @transform_0, window_bounds = array<i64: 1, 16, 256>}, {pipeline_mode = #tpu.pipeline_mode<synchronous>, transform_indices = @transform_1, window_bounds = array<i64: 320, 144>}, {pipeline_mode = #tpu.pipeline_mode<synchronous>, transform_indices = @transform_2, window_bounds = array<i64: 9, 256, 256>}, {pipeline_mode = #tpu.pipeline_mode<synchronous>, transform_indices = @transform_3, window_bounds = array<i64: 320, 1>}, {pipeline_mode = #tpu.pipeline_mode<synchronous>, transform_indices = @transform_4, window_bounds = array<i64: 256, 64>}, {pipeline_mode = #tpu.pipeline_mode<synchronous>, transform_indices = @transform_5, window_bounds = array<i64: 160, 320>}, {pipeline_mode = #tpu.pipeline_mode<synchronous>, transform_indices = @transform_6, window_bounds = array<i64: 160, 1440>}, {pipeline_mode = #tpu.pipeline_mode<synchronous>, transform_indices = @transform_7, window_bounds = array<i64: 9, 64, 64>}, {pipeline_mode = #tpu.pipeline_mode<synchronous>, transform_indices = @transform_8, window_bounds = array<i64: 160, 1>}, {pipeline_mode = #tpu.pipeline_mode<synchronous>, transform_indices = @transform_9, window_bounds = array<i64: 64, 16>}, {pipeline_mode = #tpu.pipeline_mode<synchronous>, transform_indices = @transform_10, window_bounds = array<i64: 80, 160>}, {pipeline_mode = #tpu.pipeline_mode<synchronous>, transform_indices = @transform_11, window_bounds = array<i64: 256, 720>}, {pipeline_mode = #tpu.pipeline_mode<synchronous>, transform_indices = @transform_12, window_bounds = array<i64: 9, 16, 16>}, {pipeline_mode = #tpu.pipeline_mode<synchronous>, transform_indices = @transform_13, window_bounds = array<i64: 256, 1>}, {pipeline_mode = #tpu.pipeline_mode<synchronous>, transform_indices = @transform_14, window_bounds = array<i64: 8, 256>}, {pipeline_mode = #tpu.pipeline_mode<synchronous>, transform_indices = @transform_15, window_bounds = array<i64: 8, 1>}, {transform_indices = @transform_16, window_bounds = array<i64: 1, 8, 1>}]} {
    %c0 = arith.constant 0 : index
    %c0_0 = arith.constant 0 : index
    %c0_1 = arith.constant 0 : index
    %0 = vector.load %arg1[%c0, %c0_0, %c0_1] : memref<1x16x256xf32, #tpu.memory_space<vmem>>, vector<1x16x256xf32>
    %1 = vector.shape_cast %0 : vector<1x16x256xf32> to vector<16x256xf32>
    %c0_2 = arith.constant 0 : index
    %c0_3 = arith.constant 0 : index
    %c0_4 = arith.constant 0 : index
    %2 = vector.load %arg3[%c0_2, %c0_3, %c0_4] : memref<9x256x256xf32, #tpu.memory_space<vmem>>, vector<1x256x256xf32>
    %3 = vector.shape_cast %2 : vector<1x256x256xf32> to vector<256x256xf32>
    %cst = arith.constant dense<0.000000e+00> : vector<16x256xf32>
    %4 = tpu.matmul %1, %3, %cst {dimension_numbers = #tpu.dot_dimension_numbers<[1], [0], [0], [1], [0, 0, 1, 1], [], []>} : vector<16x256xf32>, vector<256x256xf32>, vector<16x256xf32> -> vector<16x256xf32>
    %c0_5 = arith.constant 0 : index
    %c0_6 = arith.constant 0 : index
    %5 = vector.load %arg18[%c0_5, %c0_6] : memref<144x256xf32, #tpu.memory_space<vmem>>, vector<16x256xf32>
    tpu.vector_store %arg18[%c0_5, %c0_6], %4 {strides = array<i32>} : memref<144x256xf32, #tpu.memory_space<vmem>>, vector<16x256xf32>,
    %c1 = arith.constant 1 : index
    %c0_7 = arith.constant 0 : index
    %c0_8 = arith.constant 0 : index
    %6 = vector.load %arg3[%c1, %c0_7, %c0_8] : memref<9x256x256xf32, #tpu.memory_space<vmem>>, vector<1x256x256xf32>
    %7 = vector.shape_cast %6 : vector<1x256x256xf32> to vector<256x256xf32>
    %cst_9 = arith.constant dense<0.000000e+00> : vector<16x256xf32>
    %8 = tpu.matmul %1, %7, %cst_9 {dimension_numbers = #tpu.dot_dimension_numbers<[1], [0], [0], [1], [0, 0, 1, 1], [], []>} : vector<16x256xf32>, vector<256x256xf32>, vector<16x256xf32> -> vector<16x256xf32>
    %c16 = arith.constant 16 : index
    %c0_10 = arith.constant 0 : index
    %9 = vector.load %arg18[%c16, %c0_10] : memref<144x256xf32, #tpu.memory_space<vmem>>, vector<16x256xf32>
    tpu.vector_store %arg18[%c16, %c0_10], %8 {strides = array<i32>} : memref<144x256xf32, #tpu.memory_space<vmem>>, vector<16x256xf32>,
    %c2 = arith.constant 2 : index
    %c0_11 = arith.constant 0 : index
    %c0_12 = arith.constant 0 : index
    %10 = vector.load %arg3[%c2, %c0_11, %c0_12] : memref<9x256x256xf32, #tpu.memory_space<vmem>>, vector<1x256x256xf32>
    %11 = vector.shape_cast %10 : vector<1x256x256xf32> to vector<256x256xf32>
    %cst_13 = arith.constant dense<0.000000e+00> : vector<16x256xf32>
    %12 = tpu.matmul %1, %11, %cst_13 {dimension_numbers = #tpu.dot_dimension_numbers<[1], [0], [0], [1], [0, 0, 1, 1], [], []>} : vector<16x256xf32>, vector<256x256xf32>, vector<16x256xf32> -> vector<16x256xf32>
    %c32 = arith.constant 32 : index
    %c0_14 = arith.constant 0 : index
    %13 = vector.load %arg18[%c32, %c0_14] : memref<144x256xf32, #tpu.memory_space<vmem>>, vector<16x256xf32>
    tpu.vector_store %arg18[%c32, %c0_14], %12 {strides = array<i32>} : memref<144x256xf32, #tpu.memory_space<vmem>>, vector<16x256xf32>,
    %c3 = arith.constant 3 : index
    %c0_15 = arith.constant 0 : index
    %c0_16 = arith.constant 0 : index
    %14 = vector.load %arg3[%c3, %c0_15, %c0_16] : memref<9x256x256xf32, #tpu.memory_space<vmem>>, vector<1x256x256xf32>
    %15 = vector.shape_cast %14 : vector<1x256x256xf32> to vector<256x256xf32>
    %cst_17 = arith.constant dense<0.000000e+00> : vector<16x256xf32>
    %16 = tpu.matmul %1, %15, %cst_17 {dimension_numbers = #tpu.dot_dimension_numbers<[1], [0], [0], [1], [0, 0, 1, 1], [], []>} : vector<16x256xf32>, vector<256x256xf32>, vector<16x256xf32> -> vector<16x256xf32>
    %c48 = arith.constant 48 : index
    %c0_18 = arith.constant 0 : index
    %17 = vector.load %arg18[%c48, %c0_18] : memref<144x256xf32, #tpu.memory_space<vmem>>, vector<16x256xf32>
    tpu.vector_store %arg18[%c48, %c0_18], %16 {strides = array<i32>} : memref<144x256xf32, #tpu.memory_space<vmem>>, vector<16x256xf32>,
    %c4 = arith.constant 4 : index
    %c0_19 = arith.constant 0 : index
    %c0_20 = arith.constant 0 : index
    %18 = vector.load %arg3[%c4, %c0_19, %c0_20] : memref<9x256x256xf32, #tpu.memory_space<vmem>>, vector<1x256x256xf32>
    %19 = vector.shape_cast %18 : vector<1x256x256xf32> to vector<256x256xf32>
    %cst_21 = arith.constant dense<0.000000e+00> : vector<16x256xf32>
    %20 = tpu.matmul %1, %19, %cst_21 {dimension_numbers = #tpu.dot_dimension_numbers<[1], [0], [0], [1], [0, 0, 1, 1], [], []>} : vector<16x256xf32>, vector<256x256xf32>, vector<16x256xf32> -> vector<16x256xf32>
    %c64 = arith.constant 64 : index
    %c0_22 = arith.constant 0 : index
    %21 = vector.load %arg18[%c64, %c0_22] : memref<144x256xf32, #tpu.memory_space<vmem>>, vector<16x256xf32>
    tpu.vector_store %arg18[%c64, %c0_22], %20 {strides = array<i32>} : memref<144x256xf32, #tpu.memory_space<vmem>>, vector<16x256xf32>,
    %c5 = arith.constant 5 : index
    %c0_23 = arith.constant 0 : index
    %c0_24 = arith.constant 0 : index
    %22 = vector.load %arg3[%c5, %c0_23, %c0_24] : memref<9x256x256xf32, #tpu.memory_space<vmem>>, vector<1x256x256xf32>
    %23 = vector.shape_cast %22 : vector<1x256x256xf32> to vector<256x256xf32>
    %cst_25 = arith.constant dense<0.000000e+00> : vector<16x256xf32>
    %24 = tpu.matmul %1, %23, %cst_25 {dimension_numbers = #tpu.dot_dimension_numbers<[1], [0], [0], [1], [0, 0, 1, 1], [], []>} : vector<16x256xf32>, vector<256x256xf32>, vector<16x256xf32> -> vector<16x256xf32>
    %c80 = arith.constant 80 : index
    %c0_26 = arith.constant 0 : index
    %25 = vector.load %arg18[%c80, %c0_26] : memref<144x256xf32, #tpu.memory_space<vmem>>, vector<16x256xf32>
    tpu.vector_store %arg18[%c80, %c0_26], %24 {strides = array<i32>} : memref<144x256xf32, #tpu.memory_space<vmem>>, vector<16x256xf32>,
    %c6 = arith.constant 6 : index
    %c0_27 = arith.constant 0 : index
    %c0_28 = arith.constant 0 : index
    %26 = vector.load %arg3[%c6, %c0_27, %c0_28] : memref<9x256x256xf32, #tpu.memory_space<vmem>>, vector<1x256x256xf32>
    %27 = vector.shape_cast %26 : vector<1x256x256xf32> to vector<256x256xf32>
    %cst_29 = arith.constant dense<0.000000e+00> : vector<16x256xf32>
    %28 = tpu.matmul %1, %27, %cst_29 {dimension_numbers = #tpu.dot_dimension_numbers<[1], [0], [0], [1], [0, 0, 1, 1], [], []>} : vector<16x256xf32>, vector<256x256xf32>, vector<16x256xf32> -> vector<16x256xf32>
    %c96 = arith.constant 96 : index
    %c0_30 = arith.constant 0 : index
    %29 = vector.load %arg18[%c96, %c0_30] : memref<144x256xf32, #tpu.memory_space<vmem>>, vector<16x256xf32>
    tpu.vector_store %arg18[%c96, %c0_30], %28 {strides = array<i32>} : memref<144x256xf32, #tpu.memory_space<vmem>>, vector<16x256xf32>,
    %c7 = arith.constant 7 : index
    %c0_31 = arith.constant 0 : index
    %c0_32 = arith.constant 0 : index
    %30 = vector.load %arg3[%c7, %c0_31, %c0_32] : memref<9x256x256xf32, #tpu.memory_space<vmem>>, vector<1x256x256xf32>
    %31 = vector.shape_cast %30 : vector<1x256x256xf32> to vector<256x256xf32>
    %cst_33 = arith.constant dense<0.000000e+00> : vector<16x256xf32>
    %32 = tpu.matmul %1, %31, %cst_33 {dimension_numbers = #tpu.dot_dimension_numbers<[1], [0], [0], [1], [0, 0, 1, 1], [], []>} : vector<16x256xf32>, vector<256x256xf32>, vector<16x256xf32> -> vector<16x256xf32>
    %c112 = arith.constant 112 : index
    %c0_34 = arith.constant 0 : index
    %33 = vector.load %arg18[%c112, %c0_34] : memref<144x256xf32, #tpu.memory_space<vmem>>, vector<16x256xf32>
    tpu.vector_store %arg18[%c112, %c0_34], %32 {strides = array<i32>} : memref<144x256xf32, #tpu.memory_space<vmem>>, vector<16x256xf32>,
    %c8 = arith.constant 8 : index
    %c0_35 = arith.constant 0 : index
    %c0_36 = arith.constant 0 : index
    %34 = vector.load %arg3[%c8, %c0_35, %c0_36] : memref<9x256x256xf32, #tpu.memory_space<vmem>>, vector<1x256x256xf32>
    %35 = vector.shape_cast %34 : vector<1x256x256xf32> to vector<256x256xf32>
    %cst_37 = arith.constant dense<0.000000e+00> : vector<16x256xf32>
    %36 = tpu.matmul %1, %35, %cst_37 {dimension_numbers = #tpu.dot_dimension_numbers<[1], [0], [0], [1], [0, 0, 1, 1], [], []>} : vector<16x256xf32>, vector<256x256xf32>, vector<16x256xf32> -> vector<16x256xf32>
    %c128 = arith.constant 128 : index
    %c0_38 = arith.constant 0 : index
    %37 = vector.load %arg18[%c128, %c0_38] : memref<144x256xf32, #tpu.memory_space<vmem>>, vector<16x256xf32>
    tpu.vector_store %arg18[%c128, %c0_38], %36 {strides = array<i32>} : memref<144x256xf32, #tpu.memory_space<vmem>>, vector<16x256xf32>,
    %c0_39 = arith.constant 0 : index
    %c0_40 = arith.constant 0 : index
    %38 = vector.load %arg2[%c0_39, %c0_40] : memref<320x144xf32, #tpu.memory_space<vmem>>, vector<320x144xf32>
    %c0_41 = arith.constant 0 : index
    %c0_42 = arith.constant 0 : index
    %39 = vector.load %arg18[%c0_41, %c0_42] : memref<144x256xf32, #tpu.memory_space<vmem>>, vector<144x256xf32>
    %cst_43 = arith.constant dense<0.000000e+00> : vector<320x256xf32>
    %40 = tpu.matmul %38, %39, %cst_43 {dimension_numbers = #tpu.dot_dimension_numbers<[1], [0], [0], [1], [0, 0, 1, 1], [], []>} : vector<320x144xf32>, vector<144x256xf32>, vector<320x256xf32> -> vector<320x256xf32>
    %c0_44 = arith.constant 0 : index
    %c0_45 = arith.constant 0 : index
    %41 = vector.load %arg4[%c0_44, %c0_45] : memref<320x1xf32, #tpu.memory_space<vmem>>, vector<320x1xf32>
    %42 = vector.broadcast %41 : vector<320x1xf32> to vector<320x256xf32>
    %43 = arith.addf %40, %42 : vector<320x256xf32>
    %cst_46 = arith.constant 0.000000e+00 : f32
    %44 = vector.broadcast %cst_46 : f32 to vector<320x256xf32>
    %45 = arith.maximumf %43, %44 : vector<320x256xf32>
    %c0_47 = arith.constant 0 : index
    %c0_48 = arith.constant 0 : index
    %46 = vector.load %arg5[%c0_47, %c0_48] : memref<256x64xf32, #tpu.memory_space<vmem>>, vector<256x64xf32>
    %cst_49 = arith.constant dense<0.000000e+00> : vector<320x64xf32>
    %47 = tpu.matmul %45, %46, %cst_49 {dimension_numbers = #tpu.dot_dimension_numbers<[1], [0], [0], [1], [0, 0, 1, 1], [], []>} : vector<320x256xf32>, vector<256x64xf32>, vector<320x64xf32> -> vector<320x64xf32>
    %c0_50 = arith.constant 0 : index
    %c0_51 = arith.constant 0 : index
    %48 = vector.load %arg6[%c0_50, %c0_51] : memref<160x320xf32, #tpu.memory_space<vmem>>, vector<160x320xf32>
    %cst_52 = arith.constant dense<0.000000e+00> : vector<160x64xf32>
    %49 = tpu.matmul %48, %47, %cst_52 {dimension_numbers = #tpu.dot_dimension_numbers<[1], [0], [0], [1], [0, 0, 1, 1], [], []>} : vector<160x320xf32>, vector<320x64xf32>, vector<160x64xf32> -> vector<160x64xf32>
    %c0_53 = arith.constant 0 : index
    %c0_54 = arith.constant 0 : index
    %c0_55 = arith.constant 0 : index
    %50 = vector.load %arg8[%c0_53, %c0_54, %c0_55] : memref<9x64x64xf32, #tpu.memory_space<vmem>>, vector<1x64x64xf32>
    %51 = vector.shape_cast %50 : vector<1x64x64xf32> to vector<64x64xf32>
    %cst_56 = arith.constant dense<0.000000e+00> : vector<160x64xf32>
    %52 = tpu.matmul %49, %51, %cst_56 {dimension_numbers = #tpu.dot_dimension_numbers<[1], [0], [0], [1], [0, 0, 1, 1], [], []>} : vector<160x64xf32>, vector<64x64xf32>, vector<160x64xf32> -> vector<160x64xf32>
    %c0_57 = arith.constant 0 : index
    %c0_58 = arith.constant 0 : index
    %53 = vector.load %arg19[%c0_57, %c0_58] : memref<1440x64xf32, #tpu.memory_space<vmem>>, vector<160x64xf32>
    tpu.vector_store %arg19[%c0_57, %c0_58], %52 {strides = array<i32>} : memref<1440x64xf32, #tpu.memory_space<vmem>>, vector<160x64xf32>,
    %c1_59 = arith.constant 1 : index
    %c0_60 = arith.constant 0 : index
    %c0_61 = arith.constant 0 : index
    %54 = vector.load %arg8[%c1_59, %c0_60, %c0_61] : memref<9x64x64xf32, #tpu.memory_space<vmem>>, vector<1x64x64xf32>
    %55 = vector.shape_cast %54 : vector<1x64x64xf32> to vector<64x64xf32>
    %cst_62 = arith.constant dense<0.000000e+00> : vector<160x64xf32>
    %56 = tpu.matmul %49, %55, %cst_62 {dimension_numbers = #tpu.dot_dimension_numbers<[1], [0], [0], [1], [0, 0, 1, 1], [], []>} : vector<160x64xf32>, vector<64x64xf32>, vector<160x64xf32> -> vector<160x64xf32>
    %c160 = arith.constant 160 : index
    %c0_63 = arith.constant 0 : index
    %57 = vector.load %arg19[%c160, %c0_63] : memref<1440x64xf32, #tpu.memory_space<vmem>>, vector<160x64xf32>
    tpu.vector_store %arg19[%c160, %c0_63], %56 {strides = array<i32>} : memref<1440x64xf32, #tpu.memory_space<vmem>>, vector<160x64xf32>,
    %c2_64 = arith.constant 2 : index
    %c0_65 = arith.constant 0 : index
    %c0_66 = arith.constant 0 : index
    %58 = vector.load %arg8[%c2_64, %c0_65, %c0_66] : memref<9x64x64xf32, #tpu.memory_space<vmem>>, vector<1x64x64xf32>
    %59 = vector.shape_cast %58 : vector<1x64x64xf32> to vector<64x64xf32>
    %cst_67 = arith.constant dense<0.000000e+00> : vector<160x64xf32>
    %60 = tpu.matmul %49, %59, %cst_67 {dimension_numbers = #tpu.dot_dimension_numbers<[1], [0], [0], [1], [0, 0, 1, 1], [], []>} : vector<160x64xf32>, vector<64x64xf32>, vector<160x64xf32> -> vector<160x64xf32>
    %c320 = arith.constant 320 : index
    %c0_68 = arith.constant 0 : index
    %61 = vector.load %arg19[%c320, %c0_68] : memref<1440x64xf32, #tpu.memory_space<vmem>>, vector<160x64xf32>
    tpu.vector_store %arg19[%c320, %c0_68], %60 {strides = array<i32>} : memref<1440x64xf32, #tpu.memory_space<vmem>>, vector<160x64xf32>,
    %c3_69 = arith.constant 3 : index
    %c0_70 = arith.constant 0 : index
    %c0_71 = arith.constant 0 : index
    %62 = vector.load %arg8[%c3_69, %c0_70, %c0_71] : memref<9x64x64xf32, #tpu.memory_space<vmem>>, vector<1x64x64xf32>
    %63 = vector.shape_cast %62 : vector<1x64x64xf32> to vector<64x64xf32>
    %cst_72 = arith.constant dense<0.000000e+00> : vector<160x64xf32>
    %64 = tpu.matmul %49, %63, %cst_72 {dimension_numbers = #tpu.dot_dimension_numbers<[1], [0], [0], [1], [0, 0, 1, 1], [], []>} : vector<160x64xf32>, vector<64x64xf32>, vector<160x64xf32> -> vector<160x64xf32>
    %c480 = arith.constant 480 : index
    %c0_73 = arith.constant 0 : index
    %65 = vector.load %arg19[%c480, %c0_73] : memref<1440x64xf32, #tpu.memory_space<vmem>>, vector<160x64xf32>
    tpu.vector_store %arg19[%c480, %c0_73], %64 {strides = array<i32>} : memref<1440x64xf32, #tpu.memory_space<vmem>>, vector<160x64xf32>,
    %c4_74 = arith.constant 4 : index
    %c0_75 = arith.constant 0 : index
    %c0_76 = arith.constant 0 : index
    %66 = vector.load %arg8[%c4_74, %c0_75, %c0_76] : memref<9x64x64xf32, #tpu.memory_space<vmem>>, vector<1x64x64xf32>
    %67 = vector.shape_cast %66 : vector<1x64x64xf32> to vector<64x64xf32>
    %cst_77 = arith.constant dense<0.000000e+00> : vector<160x64xf32>
    %68 = tpu.matmul %49, %67, %cst_77 {dimension_numbers = #tpu.dot_dimension_numbers<[1], [0], [0], [1], [0, 0, 1, 1], [], []>} : vector<160x64xf32>, vector<64x64xf32>, vector<160x64xf32> -> vector<160x64xf32>
    %c640 = arith.constant 640 : index
    %c0_78 = arith.constant 0 : index
    %69 = vector.load %arg19[%c640, %c0_78] : memref<1440x64xf32, #tpu.memory_space<vmem>>, vector<160x64xf32>
    tpu.vector_store %arg19[%c640, %c0_78], %68 {strides = array<i32>} : memref<1440x64xf32, #tpu.memory_space<vmem>>, vector<160x64xf32>,
    %c5_79 = arith.constant 5 : index
    %c0_80 = arith.constant 0 : index
    %c0_81 = arith.constant 0 : index
    %70 = vector.load %arg8[%c5_79, %c0_80, %c0_81] : memref<9x64x64xf32, #tpu.memory_space<vmem>>, vector<1x64x64xf32>
    %71 = vector.shape_cast %70 : vector<1x64x64xf32> to vector<64x64xf32>
    %cst_82 = arith.constant dense<0.000000e+00> : vector<160x64xf32>
    %72 = tpu.matmul %49, %71, %cst_82 {dimension_numbers = #tpu.dot_dimension_numbers<[1], [0], [0], [1], [0, 0, 1, 1], [], []>} : vector<160x64xf32>, vector<64x64xf32>, vector<160x64xf32> -> vector<160x64xf32>
    %c800 = arith.constant 800 : index
    %c0_83 = arith.constant 0 : index
    %73 = vector.load %arg19[%c800, %c0_83] : memref<1440x64xf32, #tpu.memory_space<vmem>>, vector<160x64xf32>
    tpu.vector_store %arg19[%c800, %c0_83], %72 {strides = array<i32>} : memref<1440x64xf32, #tpu.memory_space<vmem>>, vector<160x64xf32>,
    %c6_84 = arith.constant 6 : index
    %c0_85 = arith.constant 0 : index
    %c0_86 = arith.constant 0 : index
    %74 = vector.load %arg8[%c6_84, %c0_85, %c0_86] : memref<9x64x64xf32, #tpu.memory_space<vmem>>, vector<1x64x64xf32>
    %75 = vector.shape_cast %74 : vector<1x64x64xf32> to vector<64x64xf32>
    %cst_87 = arith.constant dense<0.000000e+00> : vector<160x64xf32>
    %76 = tpu.matmul %49, %75, %cst_87 {dimension_numbers = #tpu.dot_dimension_numbers<[1], [0], [0], [1], [0, 0, 1, 1], [], []>} : vector<160x64xf32>, vector<64x64xf32>, vector<160x64xf32> -> vector<160x64xf32>
    %c960 = arith.constant 960 : index
    %c0_88 = arith.constant 0 : index
    %77 = vector.load %arg19[%c960, %c0_88] : memref<1440x64xf32, #tpu.memory_space<vmem>>, vector<160x64xf32>
    tpu.vector_store %arg19[%c960, %c0_88], %76 {strides = array<i32>} : memref<1440x64xf32, #tpu.memory_space<vmem>>, vector<160x64xf32>,
    %c7_89 = arith.constant 7 : index
    %c0_90 = arith.constant 0 : index
    %c0_91 = arith.constant 0 : index
    %78 = vector.load %arg8[%c7_89, %c0_90, %c0_91] : memref<9x64x64xf32, #tpu.memory_space<vmem>>, vector<1x64x64xf32>
    %79 = vector.shape_cast %78 : vector<1x64x64xf32> to vector<64x64xf32>
    %cst_92 = arith.constant dense<0.000000e+00> : vector<160x64xf32>
    %80 = tpu.matmul %49, %79, %cst_92 {dimension_numbers = #tpu.dot_dimension_numbers<[1], [0], [0], [1], [0, 0, 1, 1], [], []>} : vector<160x64xf32>, vector<64x64xf32>, vector<160x64xf32> -> vector<160x64xf32>
    %c1120 = arith.constant 1120 : index
    %c0_93 = arith.constant 0 : index
    %81 = vector.load %arg19[%c1120, %c0_93] : memref<1440x64xf32, #tpu.memory_space<vmem>>, vector<160x64xf32>
    tpu.vector_store %arg19[%c1120, %c0_93], %80 {strides = array<i32>} : memref<1440x64xf32, #tpu.memory_space<vmem>>, vector<160x64xf32>,
    %c8_94 = arith.constant 8 : index
    %c0_95 = arith.constant 0 : index
    %c0_96 = arith.constant 0 : index
    %82 = vector.load %arg8[%c8_94, %c0_95, %c0_96] : memref<9x64x64xf32, #tpu.memory_space<vmem>>, vector<1x64x64xf32>
    %83 = vector.shape_cast %82 : vector<1x64x64xf32> to vector<64x64xf32>
    %cst_97 = arith.constant dense<0.000000e+00> : vector<160x64xf32>
    %84 = tpu.matmul %49, %83, %cst_97 {dimension_numbers = #tpu.dot_dimension_numbers<[1], [0], [0], [1], [0, 0, 1, 1], [], []>} : vector<160x64xf32>, vector<64x64xf32>, vector<160x64xf32> -> vector<160x64xf32>
    %c1280 = arith.constant 1280 : index
    %c0_98 = arith.constant 0 : index
    %85 = vector.load %arg19[%c1280, %c0_98] : memref<1440x64xf32, #tpu.memory_space<vmem>>, vector<160x64xf32>
    tpu.vector_store %arg19[%c1280, %c0_98], %84 {strides = array<i32>} : memref<1440x64xf32, #tpu.memory_space<vmem>>, vector<160x64xf32>,
    %c0_99 = arith.constant 0 : index
    %c0_100 = arith.constant 0 : index
    %86 = vector.load %arg7[%c0_99, %c0_100] : memref<160x1440xf32, #tpu.memory_space<vmem>>, vector<160x1440xf32>
    %c0_101 = arith.constant 0 : index
    %c0_102 = arith.constant 0 : index
    %87 = vector.load %arg19[%c0_101, %c0_102] : memref<1440x64xf32, #tpu.memory_space<vmem>>, vector<1440x64xf32>
    %cst_103 = arith.constant dense<0.000000e+00> : vector<160x64xf32>
    %88 = tpu.matmul %86, %87, %cst_103 {dimension_numbers = #tpu.dot_dimension_numbers<[1], [0], [0], [1], [0, 0, 1, 1], [], []>} : vector<160x1440xf32>, vector<1440x64xf32>, vector<160x64xf32> -> vector<160x64xf32>
    %c0_104 = arith.constant 0 : index
    %c0_105 = arith.constant 0 : index
    %89 = vector.load %arg9[%c0_104, %c0_105] : memref<160x1xf32, #tpu.memory_space<vmem>>, vector<160x1xf32>
    %90 = vector.broadcast %89 : vector<160x1xf32> to vector<160x64xf32>
    %91 = arith.addf %88, %90 : vector<160x64xf32>
    %cst_106 = arith.constant 0.000000e+00 : f32
    %92 = vector.broadcast %cst_106 : f32 to vector<160x64xf32>
    %93 = arith.maximumf %91, %92 : vector<160x64xf32>
    %c0_107 = arith.constant 0 : index
    %c0_108 = arith.constant 0 : index
    %94 = vector.load %arg10[%c0_107, %c0_108] : memref<64x16xf32, #tpu.memory_space<vmem>>, vector<64x16xf32>
    %cst_109 = arith.constant dense<0.000000e+00> : vector<160x16xf32>
    %95 = tpu.matmul %93, %94, %cst_109 {dimension_numbers = #tpu.dot_dimension_numbers<[1], [0], [0], [1], [0, 0, 1, 1], [], []>} : vector<160x64xf32>, vector<64x16xf32>, vector<160x16xf32> -> vector<160x16xf32>
    %c0_110 = arith.constant 0 : index
    %c0_111 = arith.constant 0 : index
    %96 = vector.load %arg11[%c0_110, %c0_111] : memref<80x160xf32, #tpu.memory_space<vmem>>, vector<80x160xf32>
    %cst_112 = arith.constant dense<0.000000e+00> : vector<80x16xf32>
    %97 = tpu.matmul %96, %95, %cst_112 {dimension_numbers = #tpu.dot_dimension_numbers<[1], [0], [0], [1], [0, 0, 1, 1], [], []>} : vector<80x160xf32>, vector<160x16xf32>, vector<80x16xf32> -> vector<80x16xf32>
    %c0_113 = arith.constant 0 : index
    %c0_114 = arith.constant 0 : index
    %c0_115 = arith.constant 0 : index
    %98 = vector.load %arg13[%c0_113, %c0_114, %c0_115] : memref<9x16x16xf32, #tpu.memory_space<vmem>>, vector<1x16x16xf32>
    %99 = vector.shape_cast %98 : vector<1x16x16xf32> to vector<16x16xf32>
    %cst_116 = arith.constant dense<0.000000e+00> : vector<80x16xf32>
    %100 = tpu.matmul %97, %99, %cst_116 {dimension_numbers = #tpu.dot_dimension_numbers<[1], [0], [0], [1], [0, 0, 1, 1], [], []>} : vector<80x16xf32>, vector<16x16xf32>, vector<80x16xf32> -> vector<80x16xf32>
    %c0_117 = arith.constant 0 : index
    %c0_118 = arith.constant 0 : index
    %101 = vector.load %arg20[%c0_117, %c0_118] : memref<720x16xf32, #tpu.memory_space<vmem>>, vector<80x16xf32>
    tpu.vector_store %arg20[%c0_117, %c0_118], %100 {strides = array<i32>} : memref<720x16xf32, #tpu.memory_space<vmem>>, vector<80x16xf32>,
    %c1_119 = arith.constant 1 : index
    %c0_120 = arith.constant 0 : index
    %c0_121 = arith.constant 0 : index
    %102 = vector.load %arg13[%c1_119, %c0_120, %c0_121] : memref<9x16x16xf32, #tpu.memory_space<vmem>>, vector<1x16x16xf32>
    %103 = vector.shape_cast %102 : vector<1x16x16xf32> to vector<16x16xf32>
    %cst_122 = arith.constant dense<0.000000e+00> : vector<80x16xf32>
    %104 = tpu.matmul %97, %103, %cst_122 {dimension_numbers = #tpu.dot_dimension_numbers<[1], [0], [0], [1], [0, 0, 1, 1], [], []>} : vector<80x16xf32>, vector<16x16xf32>, vector<80x16xf32> -> vector<80x16xf32>
    %c80_123 = arith.constant 80 : index
    %c0_124 = arith.constant 0 : index
    %105 = vector.load %arg20[%c80_123, %c0_124] : memref<720x16xf32, #tpu.memory_space<vmem>>, vector<80x16xf32>
    tpu.vector_store %arg20[%c80_123, %c0_124], %104 {strides = array<i32>} : memref<720x16xf32, #tpu.memory_space<vmem>>, vector<80x16xf32>,
    %c2_125 = arith.constant 2 : index
    %c0_126 = arith.constant 0 : index
    %c0_127 = arith.constant 0 : index
    %106 = vector.load %arg13[%c2_125, %c0_126, %c0_127] : memref<9x16x16xf32, #tpu.memory_space<vmem>>, vector<1x16x16xf32>
    %107 = vector.shape_cast %106 : vector<1x16x16xf32> to vector<16x16xf32>
    %cst_128 = arith.constant dense<0.000000e+00> : vector<80x16xf32>
    %108 = tpu.matmul %97, %107, %cst_128 {dimension_numbers = #tpu.dot_dimension_numbers<[1], [0], [0], [1], [0, 0, 1, 1], [], []>} : vector<80x16xf32>, vector<16x16xf32>, vector<80x16xf32> -> vector<80x16xf32>
    %c160_129 = arith.constant 160 : index
    %c0_130 = arith.constant 0 : index
    %109 = vector.load %arg20[%c160_129, %c0_130] : memref<720x16xf32, #tpu.memory_space<vmem>>, vector<80x16xf32>
    tpu.vector_store %arg20[%c160_129, %c0_130], %108 {strides = array<i32>} : memref<720x16xf32, #tpu.memory_space<vmem>>, vector<80x16xf32>,
    %c3_131 = arith.constant 3 : index
    %c0_132 = arith.constant 0 : index
    %c0_133 = arith.constant 0 : index
    %110 = vector.load %arg13[%c3_131, %c0_132, %c0_133] : memref<9x16x16xf32, #tpu.memory_space<vmem>>, vector<1x16x16xf32>
    %111 = vector.shape_cast %110 : vector<1x16x16xf32> to vector<16x16xf32>
    %cst_134 = arith.constant dense<0.000000e+00> : vector<80x16xf32>
    %112 = tpu.matmul %97, %111, %cst_134 {dimension_numbers = #tpu.dot_dimension_numbers<[1], [0], [0], [1], [0, 0, 1, 1], [], []>} : vector<80x16xf32>, vector<16x16xf32>, vector<80x16xf32> -> vector<80x16xf32>
    %c240 = arith.constant 240 : index
    %c0_135 = arith.constant 0 : index
    %113 = vector.load %arg20[%c240, %c0_135] : memref<720x16xf32, #tpu.memory_space<vmem>>, vector<80x16xf32>
    tpu.vector_store %arg20[%c240, %c0_135], %112 {strides = array<i32>} : memref<720x16xf32, #tpu.memory_space<vmem>>, vector<80x16xf32>,
    %c4_136 = arith.constant 4 : index
    %c0_137 = arith.constant 0 : index
    %c0_138 = arith.constant 0 : index
    %114 = vector.load %arg13[%c4_136, %c0_137, %c0_138] : memref<9x16x16xf32, #tpu.memory_space<vmem>>, vector<1x16x16xf32>
    %115 = vector.shape_cast %114 : vector<1x16x16xf32> to vector<16x16xf32>
    %cst_139 = arith.constant dense<0.000000e+00> : vector<80x16xf32>
    %116 = tpu.matmul %97, %115, %cst_139 {dimension_numbers = #tpu.dot_dimension_numbers<[1], [0], [0], [1], [0, 0, 1, 1], [], []>} : vector<80x16xf32>, vector<16x16xf32>, vector<80x16xf32> -> vector<80x16xf32>
    %c320_140 = arith.constant 320 : index
    %c0_141 = arith.constant 0 : index
    %117 = vector.load %arg20[%c320_140, %c0_141] : memref<720x16xf32, #tpu.memory_space<vmem>>, vector<80x16xf32>
    tpu.vector_store %arg20[%c320_140, %c0_141], %116 {strides = array<i32>} : memref<720x16xf32, #tpu.memory_space<vmem>>, vector<80x16xf32>,
    %c5_142 = arith.constant 5 : index
    %c0_143 = arith.constant 0 : index
    %c0_144 = arith.constant 0 : index
    %118 = vector.load %arg13[%c5_142, %c0_143, %c0_144] : memref<9x16x16xf32, #tpu.memory_space<vmem>>, vector<1x16x16xf32>
    %119 = vector.shape_cast %118 : vector<1x16x16xf32> to vector<16x16xf32>
    %cst_145 = arith.constant dense<0.000000e+00> : vector<80x16xf32>
    %120 = tpu.matmul %97, %119, %cst_145 {dimension_numbers = #tpu.dot_dimension_numbers<[1], [0], [0], [1], [0, 0, 1, 1], [], []>} : vector<80x16xf32>, vector<16x16xf32>, vector<80x16xf32> -> vector<80x16xf32>
    %c400 = arith.constant 400 : index
    %c0_146 = arith.constant 0 : index
    %121 = vector.load %arg20[%c400, %c0_146] : memref<720x16xf32, #tpu.memory_space<vmem>>, vector<80x16xf32>
    tpu.vector_store %arg20[%c400, %c0_146], %120 {strides = array<i32>} : memref<720x16xf32, #tpu.memory_space<vmem>>, vector<80x16xf32>,
    %c6_147 = arith.constant 6 : index
    %c0_148 = arith.constant 0 : index
    %c0_149 = arith.constant 0 : index
    %122 = vector.load %arg13[%c6_147, %c0_148, %c0_149] : memref<9x16x16xf32, #tpu.memory_space<vmem>>, vector<1x16x16xf32>
    %123 = vector.shape_cast %122 : vector<1x16x16xf32> to vector<16x16xf32>
    %cst_150 = arith.constant dense<0.000000e+00> : vector<80x16xf32>
    %124 = tpu.matmul %97, %123, %cst_150 {dimension_numbers = #tpu.dot_dimension_numbers<[1], [0], [0], [1], [0, 0, 1, 1], [], []>} : vector<80x16xf32>, vector<16x16xf32>, vector<80x16xf32> -> vector<80x16xf32>
    %c480_151 = arith.constant 480 : index
    %c0_152 = arith.constant 0 : index
    %125 = vector.load %arg20[%c480_151, %c0_152] : memref<720x16xf32, #tpu.memory_space<vmem>>, vector<80x16xf32>
    tpu.vector_store %arg20[%c480_151, %c0_152], %124 {strides = array<i32>} : memref<720x16xf32, #tpu.memory_space<vmem>>, vector<80x16xf32>,
    %c7_153 = arith.constant 7 : index
    %c0_154 = arith.constant 0 : index
    %c0_155 = arith.constant 0 : index
    %126 = vector.load %arg13[%c7_153, %c0_154, %c0_155] : memref<9x16x16xf32, #tpu.memory_space<vmem>>, vector<1x16x16xf32>
    %127 = vector.shape_cast %126 : vector<1x16x16xf32> to vector<16x16xf32>
    %cst_156 = arith.constant dense<0.000000e+00> : vector<80x16xf32>
    %128 = tpu.matmul %97, %127, %cst_156 {dimension_numbers = #tpu.dot_dimension_numbers<[1], [0], [0], [1], [0, 0, 1, 1], [], []>} : vector<80x16xf32>, vector<16x16xf32>, vector<80x16xf32> -> vector<80x16xf32>
    %c560 = arith.constant 560 : index
    %c0_157 = arith.constant 0 : index
    %129 = vector.load %arg20[%c560, %c0_157] : memref<720x16xf32, #tpu.memory_space<vmem>>, vector<80x16xf32>
    tpu.vector_store %arg20[%c560, %c0_157], %128 {strides = array<i32>} : memref<720x16xf32, #tpu.memory_space<vmem>>, vector<80x16xf32>,
    %c8_158 = arith.constant 8 : index
    %c0_159 = arith.constant 0 : index
    %c0_160 = arith.constant 0 : index
    %130 = vector.load %arg13[%c8_158, %c0_159, %c0_160] : memref<9x16x16xf32, #tpu.memory_space<vmem>>, vector<1x16x16xf32>
    %131 = vector.shape_cast %130 : vector<1x16x16xf32> to vector<16x16xf32>
    %cst_161 = arith.constant dense<0.000000e+00> : vector<80x16xf32>
    %132 = tpu.matmul %97, %131, %cst_161 {dimension_numbers = #tpu.dot_dimension_numbers<[1], [0], [0], [1], [0, 0, 1, 1], [], []>} : vector<80x16xf32>, vector<16x16xf32>, vector<80x16xf32> -> vector<80x16xf32>
    %c640_162 = arith.constant 640 : index
    %c0_163 = arith.constant 0 : index
    %133 = vector.load %arg20[%c640_162, %c0_163] : memref<720x16xf32, #tpu.memory_space<vmem>>, vector<80x16xf32>
    tpu.vector_store %arg20[%c640_162, %c0_163], %132 {strides = array<i32>} : memref<720x16xf32, #tpu.memory_space<vmem>>, vector<80x16xf32>,
    %c0_164 = arith.constant 0 : index
    %c0_165 = arith.constant 0 : index
    %134 = vector.load %arg12[%c0_164, %c0_165] : memref<256x720xf32, #tpu.memory_space<vmem>>, vector<256x720xf32>
    %c0_166 = arith.constant 0 : index
    %c0_167 = arith.constant 0 : index
    %135 = vector.load %arg20[%c0_166, %c0_167] : memref<720x16xf32, #tpu.memory_space<vmem>>, vector<720x16xf32>
    %cst_168 = arith.constant dense<0.000000e+00> : vector<256x16xf32>
    %136 = tpu.matmul %134, %135, %cst_168 {dimension_numbers = #tpu.dot_dimension_numbers<[1], [0], [0], [1], [0, 0, 1, 1], [], []>} : vector<256x720xf32>, vector<720x16xf32>, vector<256x16xf32> -> vector<256x16xf32>
    %c0_169 = arith.constant 0 : index
    %c0_170 = arith.constant 0 : index
    %137 = vector.load %arg14[%c0_169, %c0_170] : memref<256x1xf32, #tpu.memory_space<vmem>>, vector<256x1xf32>
    %138 = vector.broadcast %137 : vector<256x1xf32> to vector<256x16xf32>
    %139 = arith.addf %136, %138 : vector<256x16xf32>
    %cst_171 = arith.constant 0.000000e+00 : f32
    %140 = vector.broadcast %cst_171 : f32 to vector<256x16xf32>
    %141 = arith.maximumf %139, %140 : vector<256x16xf32>
    %c0_172 = arith.constant 0 : index
    %c0_173 = arith.constant 0 : index
    %142 = vector.load %arg15[%c0_172, %c0_173] : memref<8x256xf32, #tpu.memory_space<vmem>>, vector<8x256xf32>
    %cst_174 = arith.constant dense<0.000000e+00> : vector<8x16xf32>
    %143 = tpu.matmul %142, %141, %cst_174 {dimension_numbers = #tpu.dot_dimension_numbers<[1], [0], [0], [1], [0, 0, 1, 1], [], []>} : vector<8x256xf32>, vector<256x16xf32>, vector<8x16xf32> -> vector<8x16xf32>
    %cst_175 = arith.constant dense<0.000000e+00> : vector<8xf32>
    %144 = vector.multi_reduction <add>, %143, %cst_175 [1] : vector<8x16xf32> to vector<8xf32>
    %145 = vector.shape_cast %144 : vector<8xf32> to vector<8x1xf32>
    %c0_176 = arith.constant 0 : index
    %c0_177 = arith.constant 0 : index
    %146 = vector.load %arg16[%c0_176, %c0_177] : memref<8x1xf32, #tpu.memory_space<vmem>>, vector<8x1xf32>
    %147 = arith.addf %145, %146 : vector<8x1xf32>
    %c0_178 = arith.constant 0 : index
    %c0_179 = arith.constant 0 : index
    %c0_180 = arith.constant 0 : index
    %148 = vector.load %arg17[%c0_178, %c0_179, %c0_180] : memref<1x8x1xf32, #tpu.memory_space<vmem>>, vector<1x8x1xf32>
    %149 = vector.shape_cast %148 : vector<1x8x1xf32> to vector<8x1xf32>
    %150 = vector.shape_cast %147 : vector<8x1xf32> to vector<1x8x1xf32>
    tpu.vector_store %arg17[%c0_178, %c0_179, %c0_180], %150 {strides = array<i32>} : memref<1x8x1xf32, #tpu.memory_space<vmem>>, vector<1x8x1xf32>,
    return
  }
  func.func @transform_0(%arg0: i32) -> (i32, i32, i32) {
    %c0_i32 = arith.constant 0 : i32
    %c0_i32_0 = arith.constant 0 : i32
    %c0_i32_1 = arith.constant 0 : i32
    return %arg0, %c0_i32, %c0_i32_0 : i32, i32, i32
  }
  func.func @transform_1(%arg0: i32) -> (i32, i32) {
    %c0_i32 = arith.constant 0 : i32
    %c0_i32_0 = arith.constant 0 : i32
    %c0_i32_1 = arith.constant 0 : i32
    return %c0_i32, %c0_i32_0 : i32, i32
  }
  func.func @transform_2(%arg0: i32) -> (i32, i32, i32) {
    %c0_i32 = arith.constant 0 : i32
    %c0_i32_0 = arith.constant 0 : i32
    %c0_i32_1 = arith.constant 0 : i32
    %c0_i32_2 = arith.constant 0 : i32
    return %c0_i32, %c0_i32_0, %c0_i32_1 : i32, i32, i32
  }
  func.func @transform_3(%arg0: i32) -> (i32, i32) {
    %c0_i32 = arith.constant 0 : i32
    %c0_i32_0 = arith.constant 0 : i32
    %c0_i32_1 = arith.constant 0 : i32
    return %c0_i32, %c0_i32_0 : i32, i32
  }
  func.func @transform_4(%arg0: i32) -> (i32, i32) {
    %c0_i32 = arith.constant 0 : i32
    %c0_i32_0 = arith.constant 0 : i32
    %c0_i32_1 = arith.constant 0 : i32
    return %c0_i32, %c0_i32_0 : i32, i32
  }
  func.func @transform_5(%arg0: i32) -> (i32, i32) {
    %c0_i32 = arith.constant 0 : i32
    %c0_i32_0 = arith.constant 0 : i32
    %c0_i32_1 = arith.constant 0 : i32
    return %c0_i32, %c0_i32_0 : i32, i32
  }
  func.func @transform_6(%arg0: i32) -> (i32, i32) {
    %c0_i32 = arith.constant 0 : i32
    %c0_i32_0 = arith.constant 0 : i32
    %c0_i32_1 = arith.constant 0 : i32
    return %c0_i32, %c0_i32_0 : i32, i32
  }
  func.func @transform_7(%arg0: i32) -> (i32, i32, i32) {
    %c0_i32 = arith.constant 0 : i32
    %c0_i32_0 = arith.constant 0 : i32
    %c0_i32_1 = arith.constant 0 : i32
    %c0_i32_2 = arith.constant 0 : i32
    return %c0_i32, %c0_i32_0, %c0_i32_1 : i32, i32, i32
  }
  func.func @transform_8(%arg0: i32) -> (i32, i32) {
    %c0_i32 = arith.constant 0 : i32
    %c0_i32_0 = arith.constant 0 : i32
    %c0_i32_1 = arith.constant 0 : i32
    return %c0_i32, %c0_i32_0 : i32, i32
  }
  func.func @transform_9(%arg0: i32) -> (i32, i32) {
    %c0_i32 = arith.constant 0 : i32
    %c0_i32_0 = arith.constant 0 : i32
    %c0_i32_1 = arith.constant 0 : i32
    return %c0_i32, %c0_i32_0 : i32, i32
  }
  func.func @transform_10(%arg0: i32) -> (i32, i32) {
    %c0_i32 = arith.constant 0 : i32
    %c0_i32_0 = arith.constant 0 : i32
    %c0_i32_1 = arith.constant 0 : i32
    return %c0_i32, %c0_i32_0 : i32, i32
  }
  func.func @transform_11(%arg0: i32) -> (i32, i32) {
    %c0_i32 = arith.constant 0 : i32
    %c0_i32_0 = arith.constant 0 : i32
    %c0_i32_1 = arith.constant 0 : i32
    return %c0_i32, %c0_i32_0 : i32, i32
  }
  func.func @transform_12(%arg0: i32) -> (i32, i32, i32) {
    %c0_i32 = arith.constant 0 : i32
    %c0_i32_0 = arith.constant 0 : i32
    %c0_i32_1 = arith.constant 0 : i32
    %c0_i32_2 = arith.constant 0 : i32
    return %c0_i32, %c0_i32_0, %c0_i32_1 : i32, i32, i32
  }
  func.func @transform_13(%arg0: i32) -> (i32, i32) {
    %c0_i32 = arith.constant 0 : i32
    %c0_i32_0 = arith.constant 0 : i32
    %c0_i32_1 = arith.constant 0 : i32
    return %c0_i32, %c0_i32_0 : i32, i32
  }
  func.func @transform_14(%arg0: i32) -> (i32, i32) {
    %c0_i32 = arith.constant 0 : i32
    %c0_i32_0 = arith.constant 0 : i32
    %c0_i32_1 = arith.constant 0 : i32
    return %c0_i32, %c0_i32_0 : i32, i32
  }
  func.func @transform_15(%arg0: i32) -> (i32, i32) {
    %c0_i32 = arith.constant 0 : i32
    %c0_i32_0 = arith.constant 0 : i32
    %c0_i32_1 = arith.constant 0 : i32
    return %c0_i32, %c0_i32_0 : i32, i32
  }
  func.func @transform_16(%arg0: i32) -> (i32, i32, i32) {
    %c0_i32 = arith.constant 0 : i32
    %c0_i32_0 = arith.constant 0 : i32
    %c0_i32_1 = arith.constant 0 : i32
    return %arg0, %c0_i32, %c0_i32_0 : i32, i32, i32
  }
}

</mosaic_0001>

<bundles_post_ra>
// kernel: s4_a4_net_forward.1
= control target key start
LH: loop header
LB: loop body
LE: loop exit
PB: predicated region body
PF: predicated region fallthrough
CT: control target
= control target key end

     0   :  { %s16520_s0 = inlined_call_operand.vmem [shape: f32[2,16,256], index: 0, kind: input, shape index: {}]   ;;  %s16521_s1 = inlined_call_operand.vmem [shape: f32[320,144], index: 1, kind: input, shape index: {}]   ;;  %s16522_s2 = inlined_call_operand.vmem [shape: f32[9,256,256], index: 2, kind: input, shape index: {}]   ;;  %s16523_s3 = inlined_call_operand.vmem [shape: f32[320,1], index: 3, kind: input, shape index: {}]   ;;  %s16524_s4 = inlined_call_operand.vmem [shape: f32[256,64], index: 4, kind: input, shape index: {}]   ;;  %s16525_s5 = inlined_call_operand.vmem [shape: f32[160,320], index: 5, kind: input, shape index: {}]   ;;  %s16526_s6 = inlined_call_operand.hbm [shape: f32[160,1440], index: 6, kind: input, shape index: {}]   ;;  %s16527_s7 = inlined_call_operand.vmem [shape: f32[9,64,64], index: 7, kind: input, shape index: {}]   ;;  %s16528_s8 = inlined_call_operand.vmem [shape: f32[160,1], index: 8, kind: input, shape index: {}]   ;;  %s16529_s9 = inlined_call_operand.vmem [shape: f32[64,16], index: 9, kind: input, shape index: {}]   ;;  %s16530_s10 = inlined_call_operand.vmem [shape: f32[80,160], index: 10, kind: input, shape index: {}]   ;;  %s16531_s11 = inlined_call_operand.vmem [shape: f32[256,720], index: 11, kind: input, shape index: {}]   ;;  %s16532_s12 = inlined_call_operand.hbm [shape: f32[9,16,16], index: 12, kind: input, shape index: {}]   ;;  %s16533_s13 = inlined_call_operand.vmem [shape: f32[256,1], index: 13, kind: input, shape index: {}]   ;;  %s16534_s14 = inlined_call_operand.vmem [shape: f32[8,256], index: 14, kind: input, shape index: {}]   ;;  %s16535_s15 = inlined_call_operand.vmem [shape: f32[8,1], index: 15, kind: input, shape index: {}]   ;;  %s16536_s16 = inlined_call_operand.vmem [shape: f32[2,8,1], index: 16, kind: output, shape index: {}]  }
   0x1   :  { %16539 = sst [smem:[#allocation57_spill]] %s16520_s0 }
   0x2   :  { %21 = vsyncpa [#allocation6], 0 }
   0x3   :  { %22 = vsyncpa [#allocation8], 0  ;;  %s9863_s21 = smov 0  }
   0x4 LB: > { %s426_s24 = sshll.u32 %s16526_s6, 4  ;;  %s9872_s25 = sadd.s32 4294967295, %s9769_s21   ;;  %s9769_s21 = sphi %s9863_s21, %s28_s21   ;;  %s427_s24 = int_to_ptr.hbm [resolvable:$true] %s426_s24 }
   0x5   : > { %p8592_p0 = scmp.ge.s32.totalorder %s9769_s21, 1  ;;  %p400_p1 = scmp.lt.s32.totalorder %s9769_s21, 3 }
   0x6   : > { %p9666_p2 = scmp.eq.s32.totalorder %s9872_s25, 0  ;;  %s9771_s27 = smov [#allocation5]  }
   0x7   : > { %p9877_p3 = pnand %p8592_p0, %p400_p1  ;;  %s428_s28 = sshll.u32 %s9771_s27, 4  ;;  %s429_s28 = int_to_ptr.vmem [resolvable:$true] %s428_s28 }
   0x8   : > { %s455_s0 = sshll.u32 %s16532_s12, 4  ;;  %s9772_s17 = smov [#allocation7]   ;;  %s456_s0 = int_to_ptr.hbm [resolvable:$true] %s455_s0 }
   0x9   : > { %p9659_p4 = pneg %p9877_p3  ;;  %s457_s18 = sshll.u32 %s9772_s17, 4  ;;  %s458_s18 = int_to_ptr.vmem [resolvable:$true] %s457_s18 }
   0xa   : > { %s9773_s19 = smov 1536   ;;  %s9774_s20 = smov 96  }
   0xb   : > { %p9660_p5 = pnand %p9666_p2, %p9659_p4  ;;  %s9775_s22 = smov 128  }
   0xc   : > { %s9776_s23 = smov 8   ;;  %490 = sbr.rel (%p9877_p3) target bundleno = 4034 (0xfc2), region = 84 }
   0xd   : > { %9662 = dma.hbm_to_vmem [thread:$0]  (!%p9660_p5), %s427_s24, 30720, %s429_s28, [#allocation6], %s9773_s19, %s9773_s19, %s9774_s20  }
   0xe   : > { %9665 = dma.hbm_to_vmem [thread:$0]  (!%p9660_p5), %s456_s0, 2304, %s458_s18, [#allocation8], %s9775_s22, %s9775_s22, %s9776_s23  }
  0x11   : > { %9760 = dma.done.wait (%p9666_p2), [#allocation6], 30720  }
  0x12   : > { %9762 = vsyncadd (%p9666_p2), [#allocation6], 4294936576 }
  0x13   : > { %9764 = dma.done.wait (%p9666_p2), [#allocation8], 2304  }
  0x14   : > { %9766 = vsyncadd (%p9666_p2), [#allocation8], 4294964992  ;;  %v588_v0 = vld [vmem:[%s16522_s2 + $0xf0] sm:$0xff]  ;;  %v586_v2 = vld [vmem:[%s16522_s2 + $0xe0] sm:$0xff]  ;;  %p545_p6 = scmp.lt.s32.totalorder %s9872_s25, 1  ;;  %s16541_s29 = sld [smem:[#allocation57_spill]] }
  0x15   : > { %v620_v1 = vld [vmem:[%s16522_s2 + $0x1f0] sm:$0xff]  ;;  %622 = vmatpush.msra.mxu0 %v588_v0  ;;  %v618_v3 = vld [vmem:[%s16522_s2 + $0x1e0] sm:$0xff]  ;;  %v589_v12 = vld [vmem:[%s16522_s2 + $0xf8] sm:$0xff]  ;;  %vm2362_vm0 = vcmask 130048   ;;  %vm3477_vm1 = vcmask 523264   ;;  %vm5322_vm2 = vcmask 261120  }
  0x16   : > { %645 = vmatpush.msra.mxu1 %v620_v1  ;;  %v584_v4 = vld [vmem:[%s16522_s2 + $0xd0] sm:$0xff]  ;;  %v582_v6 = vld [vmem:[%s16522_s2 + $0xc0] sm:$0xff]  ;;  %v621_v14 = vld [vmem:[%s16522_s2 + $0x1f8] sm:$0xff]  ;;  %668 = vmatpush.msra.mxu2 %v589_v12  ;;  %s16747_s25 = smov (!%p545_p6, %s9872_s25), 1  ;;  %vm7659_vm3 = vcmask 654336   ;;  %vm8513_vm4 = vcmask 7168  }
  0x17   : > { %v616_v5 = vld [vmem:[%s16522_s2 + $0x1d0] sm:$0xff]  ;;  %623 = vmatpush.msra.mxu0 %v586_v2  ;;  %v614_v7 = vld [vmem:[%s16522_s2 + $0x1c0] sm:$0xff]  ;;  %691 = vmatpush.msra.mxu3 %v621_v14  ;;  %v587_v16 = vld [vmem:[%s16522_s2 + $0xe8] sm:$0xff]  ;;  %s9632_s27 = sshll.u32 %s16747_s25, 5  ;;  %s8601_s18 = sshll.u32 %s16747_s25, 3 }
  0x18   : > { %646 = vmatpush.msra.mxu1 %v618_v3  ;;  %v580_v8 = vld [vmem:[%s16522_s2 + $0xb0] sm:$0xff]  ;;  %v578_v10 = vld [vmem:[%s16522_s2 + $0xa0] sm:$0xff]  ;;  %v619_v17 = vld [vmem:[%s16522_s2 + $0x1e8] sm:$0xff]  ;;  %669 = vmatpush.msra.mxu2 %v587_v16 }
  0x19   : > { %624 = vmatpush.msra.mxu0 %v584_v4  ;;  %v612_v9 = vld [vmem:[%s16522_s2 + $0x1b0] sm:$0xff]  ;;  %v610_v11 = vld [vmem:[%s16522_s2 + $0x1a0] sm:$0xff]  ;;  %v585_v18 = vld [vmem:[%s16522_s2 + $0xd8] sm:$0xff]  ;;  %692 = vmatpush.msra.mxu3 %v619_v17 }
  0x1a   : > { %647 = vmatpush.msra.mxu1 %v616_v5  ;;  %v576_v13 = vld [vmem:[%s16522_s2 + $0x90] sm:$0xff]  ;;  %v617_v19 = vld [vmem:[%s16522_s2 + $0x1d8] sm:$0xff]  ;;  %v574_v20 = vld [vmem:[%s16522_s2 + $0x80] sm:$0xff]  ;;  %670 = vmatpush.msra.mxu2 %v585_v18  ;;  %s10160_s26 = scalar_lea.vmem %s16541_s29, %s9632_s27  ;;  %s553_s27 = scalar_lea.vmem %s16536_s16, %s8601_s18 }
  0x1b   : > { %625 = vmatpush.msra.mxu0 %v582_v6  ;;  %v608_v15 = vld [vmem:[%s16522_s2 + $0x190] sm:$0xff]  ;;  %v606_v21 = vld [vmem:[%s16522_s2 + $0x180] sm:$0xff]  ;;  %v583_v22 = vld [vmem:[%s16522_s2 + $0xc8] sm:$0xff]  ;;  %693 = vmatpush.msra.mxu3 %v617_v19 }
  0x1c   : > { %648 = vmatpush.msra.mxu1 %v614_v7  ;;  %v615_v23 = vld [vmem:[%s16522_s2 + $0x1c8] sm:$0xff]  ;;  %v572_v24 = vld [vmem:[%s16522_s2 + $0x70] sm:$0xff]  ;;  %v581_v26 = vld [vmem:[%s16522_s2 + $0xb8] sm:$0xff]  ;;  %671 = vmatpush.msra.mxu2 %v583_v22 }
  0x1d   : > { %626 = vmatpush.msra.mxu0 %v580_v8  ;;  %v604_v25 = vld [vmem:[%s16522_s2 + $0x170] sm:$0xff]  ;;  %v613_v27 = vld [vmem:[%s16522_s2 + $0x1b8] sm:$0xff]  ;;  %v570_v28 = vld [vmem:[%s16522_s2 + $0x60] sm:$0xff]  ;;  %694 = vmatpush.msra.mxu3 %v615_v23 }
  0x1e   : > { %649 = vmatpush.msra.mxu1 %v612_v9  ;;  %v602_v29 = vld [vmem:[%s16522_s2 + $0x160] sm:$0xff]  ;;  %v579_v30 = vld [vmem:[%s16522_s2 + $0xa8] sm:$0xff]  ;;  %v568_v32 = vld [vmem:[%s16522_s2 + $0x50] sm:$0xff]  ;;  %672 = vmatpush.msra.mxu2 %v581_v26 }
  0x1f   : > { %627 = vmatpush.msra.mxu0 %v578_v10  ;;  %v611_v31 = vld [vmem:[%s16522_s2 + $0x1a8] sm:$0xff]  ;;  %v600_v33 = vld [vmem:[%s16522_s2 + $0x150] sm:$0xff]  ;;  %695 = vmatpush.msra.mxu3 %v613_v27  ;;  %v577_v34 = vld [vmem:[%s16522_s2 + $0x98] sm:$0xff] }
  0x20   : > { %650 = vmatpush.msra.mxu1 %v610_v11  ;;  %v609_v35 = vld [vmem:[%s16522_s2 + $0x198] sm:$0xff]  ;;  %v566_v36 = vld [vmem:[%s16522_s2 + $0x40] sm:$0xff]  ;;  %673 = vmatpush.msra.mxu2 %v579_v30  ;;  %v575_v38 = vld [vmem:[%s16522_s2 + $0x88] sm:$0xff] }
  0x21   : > { %628 = vmatpush.msra.mxu0 %v576_v13  ;;  %v598_v37 = vld [vmem:[%s16522_s2 + $0x140] sm:$0xff]  ;;  %696 = vmatpush.msra.mxu3 %v611_v31  ;;  %v607_v39 = vld [vmem:[%s16522_s2 + $0x188] sm:$0xff]  ;;  %v564_v40 = vld [vmem:[%s16522_s2 + $0x30] sm:$0xff] }
  0x22   : > { %651 = vmatpush.msra.mxu1 %v608_v15  ;;  %v596_v41 = vld [vmem:[%s16522_s2 + $0x130] sm:$0xff]  ;;  %674 = vmatpush.msra.mxu2 %v577_v34  ;;  %v573_v42 = vld [vmem:[%s16522_s2 + $0x78] sm:$0xff]  ;;  %v562_v44 = vld [vmem:[%s16522_s2 + $0x20] sm:$0xff] }
  0x23   : > { %629 = vmatpush.msra.mxu0 %v574_v20  ;;  %697 = vmatpush.msra.mxu3 %v609_v35  ;;  %v605_v43 = vld [vmem:[%s16522_s2 + $0x178] sm:$0xff]  ;;  %v594_v45 = vld [vmem:[%s16522_s2 + $0x120] sm:$0xff]  ;;  %v571_v46 = vld [vmem:[%s16522_s2 + $0x68] sm:$0xff] }
  0x24   : > { %652 = vmatpush.msra.mxu1 %v606_v21  ;;  %675 = vmatpush.msra.mxu2 %v575_v38  ;;  %v603_v47 = vld [vmem:[%s16522_s2 + $0x168] sm:$0xff]  ;;  %v560_v48 = vld [vmem:[%s16522_s2 + $0x10] sm:$0xff]  ;;  %v569_v50 = vld [vmem:[%s16522_s2 + $0x58] sm:$0xff] }
  0x25   : > { %630 = vmatpush.msra.mxu0 %v572_v24  ;;  %698 = vmatpush.msra.mxu3 %v607_v39  ;;  %v592_v49 = vld [vmem:[%s16522_s2 + $0x110] sm:$0xff]  ;;  %v601_v51 = vld [vmem:[%s16522_s2 + $0x158] sm:$0xff]  ;;  %v558_v52 = vld [vmem:[%s16522_s2] sm:$0xff] }
  0x26   : > { %653 = vmatpush.msra.mxu1 %v604_v25  ;;  %676 = vmatpush.msra.mxu2 %v573_v42  ;;  %v590_v53 = vld [vmem:[%s16522_s2 + $0x100] sm:$0xff]  ;;  %v8632_v54 = vld [vmem:[%s16522_s2 + $0x2f0] sm:$0xff]  ;;  %v567_v56 = vld [vmem:[%s16522_s2 + $0x48] sm:$0xff] }
  0x27   : > { %631 = vmatpush.msra.mxu0 %v570_v28  ;;  %699 = vmatpush.msra.mxu3 %v605_v43  ;;  %v8664_v55 = vld [vmem:[%s16522_s2 + $0x3f0] sm:$0xff]  ;;  %v599_v57 = vld [vmem:[%s16522_s2 + $0x148] sm:$0xff]  ;;  %v8630_v58 = vld [vmem:[%s16522_s2 + $0x2e0] sm:$0xff] }
  0x28   : > { %654 = vmatpush.msra.mxu1 %v602_v29  ;;  %677 = vmatpush.msra.mxu2 %v571_v46  ;;  %v8662_v59 = vld [vmem:[%s16522_s2 + $0x3e0] sm:$0xff]  ;;  %v565_v60 = vld [vmem:[%s16522_s2 + $0x38] sm:$0xff]  ;;  %v8628_v62 = vld [vmem:[%s16522_s2 + $0x2d0] sm:$0xff] }
  0x29   : > { %632 = vmatpush.msra.mxu0 %v568_v32  ;;  %700 = vmatpush.msra.mxu3 %v603_v47  ;;  %v597_v61 = vld [vmem:[%s16522_s2 + $0x138] sm:$0xff]  ;;  %v8660_v63 = vld [vmem:[%s16522_s2 + $0x3d0] sm:$0xff]  ;;  %v563_v0 = vld [vmem:[%s16522_s2 + $0x28] sm:$0xff] }
  0x2a   : > { %655 = vmatpush.msra.mxu1 %v600_v33  ;;  %678 = vmatpush.msra.mxu2 %v569_v50  ;;  %v595_v1 = vld [vmem:[%s16522_s2 + $0x128] sm:$0xff]  ;;  %v8626_v2 = vld [vmem:[%s16522_s2 + $0x2c0] sm:$0xff]  ;;  %v561_v4 = vld [vmem:[%s16522_s2 + $0x18] sm:$0xff] }
  0x2b   : > { %633 = vmatpush.msra.mxu0 %v566_v36  ;;  %701 = vmatpush.msra.mxu3 %v601_v51  ;;  %v8658_v3 = vld [vmem:[%s16522_s2 + $0x3c0] sm:$0xff]  ;;  %v593_v5 = vld [vmem:[%s16522_s2 + $0x118] sm:$0xff]  ;;  %v8624_v6 = vld [vmem:[%s16522_s2 + $0x2b0] sm:$0xff] }
  0x2c   : > { %656 = vmatpush.msra.mxu1 %v598_v37  ;;  %679 = vmatpush.msra.mxu2 %v567_v56  ;;  %v8656_v7 = vld [vmem:[%s16522_s2 + $0x3b0] sm:$0xff]  ;;  %v559_v8 = vld [vmem:[%s16522_s2 + $0x8] sm:$0xff]  ;;  %v8622_v10 = vld [vmem:[%s16522_s2 + $0x2a0] sm:$0xff] }
  0x2d   : > { %634 = vmatpush.msra.mxu0 %v564_v40  ;;  %702 = vmatpush.msra.mxu3 %v599_v57  ;;  %v591_v9 = vld [vmem:[%s16522_s2 + $0x108] sm:$0xff]  ;;  %v8654_v11 = vld [vmem:[%s16522_s2 + $0x3a0] sm:$0xff]  ;;  %v8633_v12 = vld [vmem:[%s16522_s2 + $0x2f8] sm:$0xff] }
  0x2e   : > { %657 = vmatpush.msra.mxu1 %v596_v41  ;;  %680 = vmatpush.msra.mxu2 %v565_v60  ;;  %v8665_v13 = vld [vmem:[%s16522_s2 + $0x3f8] sm:$0xff]  ;;  %v8620_v14 = vld [vmem:[%s16522_s2 + $0x290] sm:$0xff]  ;;  %v8631_v16 = vld [vmem:[%s16522_s2 + $0x2e8] sm:$0xff] }
  0x2f   : > { %635 = vmatpush.msra.mxu0 %v562_v44  ;;  %703 = vmatpush.msra.mxu3 %v597_v61  ;;  %v8652_v15 = vld [vmem:[%s16522_s2 + $0x390] sm:$0xff]  ;;  %v8663_v17 = vld [vmem:[%s16522_s2 + $0x3e8] sm:$0xff]  ;;  %v8618_v18 = vld [vmem:[%s16522_s2 + $0x280] sm:$0xff] }
  0x30   : > { %658 = vmatpush.msra.mxu1 %v594_v45  ;;  %681 = vmatpush.msra.mxu2 %v563_v0  ;;  %v8650_v19 = vld [vmem:[%s16522_s2 + $0x380] sm:$0xff]  ;;  %v8629_v20 = vld [vmem:[%s16522_s2 + $0x2d8] sm:$0xff]  ;;  %v8616_v22 = vld [vmem:[%s16522_s2 + $0x270] sm:$0xff] }
  0x31   : > { %636 = vmatpush.msra.mxu0 %v560_v48  ;;  %704 = vmatpush.msra.mxu3 %v595_v1  ;;  %v8661_v21 = vld [vmem:[%s16522_s2 + $0x3d8] sm:$0xff]  ;;  %v8648_v23 = vld [vmem:[%s16522_s2 + $0x370] sm:$0xff]  ;;  %v10175_v24 = vld [vmem:[%s10160_s26] sm:$0xff] }
  0x32   : > { %659 = vmatpush.msra.mxu1 %v592_v49  ;;  %682 = vmatpush.msra.mxu2 %v561_v4  ;;  %v10178_v25 = vld [vmem:[%s10160_s26 + $0x8] sm:$0xff]  ;;  %v8614_v26 = vld [vmem:[%s16522_s2 + $0x260] sm:$0xff]  ;;  %v8612_v30 = vld [vmem:[%s16522_s2 + $0x250] sm:$0xff] }
  0x33   : > { %637 = vmatpush.msra.mxu0 %v558_v52  ;;  %705 = vmatpush.msra.mxu3 %v593_v5  ;;  %v8646_v27 = vld [vmem:[%s16522_s2 + $0x360] sm:$0xff]  ;;  %v8627_v28 = vld [vmem:[%s16522_s2 + $0x2c8] sm:$0xff]  ;;  %v8644_v31 = vld [vmem:[%s16522_s2 + $0x350] sm:$0xff] }
  0x34   : > { %660 = vmatpush.msra.mxu1 %v590_v53  ;;  %683 = vmatpush.msra.mxu2 %v559_v8  ;;  %v8659_v29 = vld [vmem:[%s16522_s2 + $0x3c8] sm:$0xff]  ;;  %v8625_v32 = vld [vmem:[%s16522_s2 + $0x2b8] sm:$0xff]  ;;  %v8610_v34 = vld [vmem:[%s16522_s2 + $0x240] sm:$0xff] }
  0x35   : > { %783 = vmatpush.msrb.mxu0 %v8632_v54  ;;  %706 = vmatpush.msra.mxu3 %v591_v9  ;;  %v8657_v33 = vld [vmem:[%s16522_s2 + $0x3b8] sm:$0xff]  ;;  %v8642_v35 = vld [vmem:[%s16522_s2 + $0x340] sm:$0xff]  ;;  %v8623_v36 = vld [vmem:[%s16522_s2 + $0x2a8] sm:$0xff] }
  0x36   : > { %806 = vmatpush.msrb.mxu1 %v8664_v55  ;;  %829 = vmatpush.msrb.mxu2 %v8633_v12  ;;  %v8655_v37 = vld [vmem:[%s16522_s2 + $0x3a8] sm:$0xff]  ;;  %v8608_v38 = vld [vmem:[%s16522_s2 + $0x230] sm:$0xff]  ;;  %v8621_v40 = vld [vmem:[%s16522_s2 + $0x298] sm:$0xff] }
  0x37   : > { %784 = vmatpush.msrb.mxu0 %v8630_v58  ;;  %852 = vmatpush.msrb.mxu3 %v8665_v13  ;;  %v8640_v39 = vld [vmem:[%s16522_s2 + $0x330] sm:$0xff]  ;;  %v8653_v41 = vld [vmem:[%s16522_s2 + $0x398] sm:$0xff]  ;;  %v8606_v42 = vld [vmem:[%s16522_s2 + $0x220] sm:$0xff] }
  0x38   : > { %807 = vmatpush.msrb.mxu1 %v8662_v59  ;;  %830 = vmatpush.msrb.mxu2 %v8631_v16  ;;  %v8638_v43 = vld [vmem:[%s16522_s2 + $0x320] sm:$0xff]  ;;  %v8619_v44 = vld [vmem:[%s16522_s2 + $0x288] sm:$0xff]  ;;  %v8604_v46 = vld [vmem:[%s16522_s2 + $0x210] sm:$0xff] }
  0x39   : > { %785 = vmatpush.msrb.mxu0 %v8628_v62  ;;  %853 = vmatpush.msrb.mxu3 %v8663_v17  ;;  %v8651_v45 = vld [vmem:[%s16522_s2 + $0x388] sm:$0xff]  ;;  %v8636_v47 = vld [vmem:[%s16522_s2 + $0x310] sm:$0xff]  ;;  %v8617_v48 = vld [vmem:[%s16522_s2 + $0x278] sm:$0xff] }
  0x3a   : > { %808 = vmatpush.msrb.mxu1 %v8660_v63  ;;  %831 = vmatpush.msrb.mxu2 %v8629_v20  ;;  %v8649_v49 = vld [vmem:[%s16522_s2 + $0x378] sm:$0xff]  ;;  %v8602_v50 = vld [vmem:[%s16522_s2 + $0x200] sm:$0xff]  ;;  %v8696_v52 = vld [vmem:[%s16522_s2 + $0x4f0] sm:$0xff] }
  0x3b   : > { %786 = vmatpush.msrb.mxu0 %v8626_v2  ;;  %854 = vmatpush.msrb.mxu3 %v8661_v21  ;;  %v8634_v51 = vld [vmem:[%s16522_s2 + $0x300] sm:$0xff]  ;;  %v8728_v53 = vld [vmem:[%s16522_s2 + $0x5f0] sm:$0xff]  ;;  %v8615_v54 = vld [vmem:[%s16522_s2 + $0x268] sm:$0xff] }
  0x3c   : > { %809 = vmatpush.msrb.mxu1 %v8658_v3  ;;  %638 = vmatmul.f32.vlgmr.msra.gmra.mxu0 %v10175_v24  ;;  %v8647_v55 = vld [vmem:[%s16522_s2 + $0x368] sm:$0xff]  ;;  %v8694_v56 = vld [vmem:[%s16522_s2 + $0x4e0] sm:$0xff]  ;;  %v8613_v58 = vld [vmem:[%s16522_s2 + $0x258] sm:$0xff] }
  0x3d   : > { %787 = vmatpush.msrb.mxu0 %v8624_v6  ;;  %661 = vmatmul.f32.vlgmr.msra.gmra.mxu1 %v10178_v25  ;;  %v8726_v57 = vld [vmem:[%s16522_s2 + $0x5e0] sm:$0xff]  ;;  %v8645_v59 = vld [vmem:[%s16522_s2 + $0x358] sm:$0xff]  ;;  %v8692_v60 = vld [vmem:[%s16522_s2 + $0x4d0] sm:$0xff] }
  0x3e   : > { %810 = vmatpush.msrb.mxu1 %v8656_v7  ;;  %832 = vmatpush.msrb.mxu2 %v8627_v28  ;;  %v8724_v61 = vld [vmem:[%s16522_s2 + $0x5d0] sm:$0xff]  ;;  %v8611_v62 = vld [vmem:[%s16522_s2 + $0x248] sm:$0xff]  ;;  %v8690_v0 = vld [vmem:[%s16522_s2 + $0x4c0] sm:$0xff] }
  0x3f   : > { %788 = vmatpush.msrb.mxu0 %v8622_v10  ;;  %855 = vmatpush.msrb.mxu3 %v8659_v29  ;;  %v8643_v63 = vld [vmem:[%s16522_s2 + $0x348] sm:$0xff]  ;;  %v8722_v1 = vld [vmem:[%s16522_s2 + $0x5c0] sm:$0xff]  ;;  %v8609_v2 = vld [vmem:[%s16522_s2 + $0x238] sm:$0xff] }
  0x40   : > { %811 = vmatpush.msrb.mxu1 %v8654_v11  ;;  %833 = vmatpush.msrb.mxu2 %v8625_v32  ;;  %v8641_v3 = vld [vmem:[%s16522_s2 + $0x338] sm:$0xff]  ;;  %v8688_v4 = vld [vmem:[%s16522_s2 + $0x4b0] sm:$0xff]  ;;  %v8607_v6 = vld [vmem:[%s16522_s2 + $0x228] sm:$0xff] }
  0x41   : > { %789 = vmatpush.msrb.mxu0 %v8620_v14  ;;  %856 = vmatpush.msrb.mxu3 %v8657_v33  ;;  %v8720_v5 = vld [vmem:[%s16522_s2 + $0x5b0] sm:$0xff]  ;;  %v8639_v7 = vld [vmem:[%s16522_s2 + $0x328] sm:$0xff]  ;;  %v8686_v8 = vld [vmem:[%s16522_s2 + $0x4a0] sm:$0xff] }
  0x42   : > { %812 = vmatpush.msrb.mxu1 %v8652_v15  ;;  %834 = vmatpush.msrb.mxu2 %v8623_v36  ;;  %v8718_v9 = vld [vmem:[%s16522_s2 + $0x5a0] sm:$0xff]  ;;  %v8605_v10 = vld [vmem:[%s16522_s2 + $0x218] sm:$0xff]  ;;  %v8684_v12 = vld [vmem:[%s16522_s2 + $0x490] sm:$0xff] }
  0x43   : > { %790 = vmatpush.msrb.mxu0 %v8618_v18  ;;  %857 = vmatpush.msrb.mxu3 %v8655_v37  ;;  %v8637_v11 = vld [vmem:[%s16522_s2 + $0x318] sm:$0xff]  ;;  %v8716_v13 = vld [vmem:[%s16522_s2 + $0x590] sm:$0xff]  ;;  %v8682_v16 = vld [vmem:[%s16522_s2 + $0x480] sm:$0xff] }
  0x44   : > { %813 = vmatpush.msrb.mxu1 %v8650_v19  ;;  %835 = vmatpush.msrb.mxu2 %v8621_v40  ;;  %v10339_v14 = vld [vmem:[%s10160_s26 + $0x10] sm:$0xff]  ;;  %v10342_v15 = vld [vmem:[%s10160_s26 + $0x18] sm:$0xff]  ;;  %v8714_v17 = vld [vmem:[%s16522_s2 + $0x580] sm:$0xff] }
  0x45   : > { %791 = vmatpush.msrb.mxu0 %v8616_v22  ;;  %858 = vmatpush.msrb.mxu3 %v8653_v41  ;;  %v8603_v18 = vld [vmem:[%s16522_s2 + $0x208] sm:$0xff]  ;;  %v8680_v20 = vld [vmem:[%s16522_s2 + $0x470] sm:$0xff]  ;;  %v8678_v22 = vld [vmem:[%s16522_s2 + $0x460] sm:$0xff] }
  0x46   : > { %814 = vmatpush.msrb.mxu1 %v8648_v23  ;;  %836 = vmatpush.msrb.mxu2 %v8619_v44  ;;  %v8635_v19 = vld [vmem:[%s16522_s2 + $0x308] sm:$0xff]  ;;  %v8712_v21 = vld [vmem:[%s16522_s2 + $0x570] sm:$0xff]  ;;  %v8710_v23 = vld [vmem:[%s16522_s2 + $0x560] sm:$0xff] }
  0x47   : > { %792 = vmatpush.msrb.mxu0 %v8614_v26  ;;  %859 = vmatpush.msrb.mxu3 %v8651_v45  ;;  %v8697_v26 = vld [vmem:[%s16522_s2 + $0x4f8] sm:$0xff]  ;;  %v8676_v28 = vld [vmem:[%s16522_s2 + $0x450] sm:$0xff]  ;;  %v8674_v32 = vld [vmem:[%s16522_s2 + $0x440] sm:$0xff] }
  0x48   : > { %815 = vmatpush.msrb.mxu1 %v8646_v27  ;;  %837 = vmatpush.msrb.mxu2 %v8617_v48  ;;  %v8729_v27 = vld [vmem:[%s16522_s2 + $0x5f8] sm:$0xff]  ;;  %v8708_v29 = vld [vmem:[%s16522_s2 + $0x550] sm:$0xff]  ;;  %v8706_v33 = vld [vmem:[%s16522_s2 + $0x540] sm:$0xff] }
  0x49   : > { %793 = vmatpush.msrb.mxu0 %v8612_v30  ;;  %860 = vmatpush.msrb.mxu3 %v8649_v49  ;;  %v8695_v30 = vld [vmem:[%s16522_s2 + $0x4e8] sm:$0xff]  ;;  %v8672_v36 = vld [vmem:[%s16522_s2 + $0x430] sm:$0xff]  ;;  %v8689_v44 = vld [vmem:[%s16522_s2 + $0x4b8] sm:$0xff] }
  0x4a   : > { %816 = vmatpush.msrb.mxu1 %v8644_v31  ;;  %838 = vmatpush.msrb.mxu2 %v8615_v54  ;;  %v8727_v31 = vld [vmem:[%s16522_s2 + $0x5e8] sm:$0xff]  ;;  %v8704_v37 = vld [vmem:[%s16522_s2 + $0x530] sm:$0xff]  ;;  %v8721_v45 = vld [vmem:[%s16522_s2 + $0x5b8] sm:$0xff] }
  0x4b   : > { %794 = vmatpush.msrb.mxu0 %v8610_v34  ;;  %861 = vmatpush.msrb.mxu3 %v8647_v55  ;;  %v8693_v34 = vld [vmem:[%s16522_s2 + $0x4d8] sm:$0xff]  ;;  %v8691_v40 = vld [vmem:[%s16522_s2 + $0x4c8] sm:$0xff]  ;;  %v8760_v48 = vld [vmem:[%s16522_s2 + $0x6f0] sm:$0xff] }
  0x4c   : > { %817 = vmatpush.msrb.mxu1 %v8642_v35  ;;  %839 = vmatpush.msrb.mxu2 %v8613_v58  ;;  %v8725_v35 = vld [vmem:[%s16522_s2 + $0x5d8] sm:$0xff]  ;;  %v8723_v41 = vld [vmem:[%s16522_s2 + $0x5c8] sm:$0xff]  ;;  %v8792_v49 = vld [vmem:[%s16522_s2 + $0x7f0] sm:$0xff] }
  0x4d   : > { %795 = vmatpush.msrb.mxu0 %v8608_v38  ;;  %862 = vmatpush.msrb.mxu3 %v8645_v59  ;;  %v8670_v38 = vld [vmem:[%s16522_s2 + $0x420] sm:$0xff]  ;;  %v8685_v54 = vld [vmem:[%s16522_s2 + $0x498] sm:$0xff]  ;;  %v8683_v58 = vld [vmem:[%s16522_s2 + $0x488] sm:$0xff] }
  0x4e   : > { %818 = vmatpush.msrb.mxu1 %v8640_v39  ;;  %840 = vmatpush.msrb.mxu2 %v8611_v62  ;;  %v8702_v39 = vld [vmem:[%s16522_s2 + $0x520] sm:$0xff]  ;;  %v8717_v55 = vld [vmem:[%s16522_s2 + $0x598] sm:$0xff]  ;;  %v8715_v59 = vld [vmem:[%s16522_s2 + $0x588] sm:$0xff] }
  0x4f   : > { %796 = vmatpush.msrb.mxu0 %v8606_v42  ;;  %863 = vmatpush.msrb.mxu3 %v8643_v63  ;;  %v8668_v42 = vld [vmem:[%s16522_s2 + $0x410] sm:$0xff]  ;;  %v8681_v62 = vld [vmem:[%s16522_s2 + $0x478] sm:$0xff] }
  0x50   : > { %819 = vmatpush.msrb.mxu1 %v8638_v43  ;;  %841 = vmatpush.msrb.mxu2 %v8609_v2  ;;  %v8700_v43 = vld [vmem:[%s16522_s2 + $0x510] sm:$0xff]  ;;  %v8713_v63 = vld [vmem:[%s16522_s2 + $0x578] sm:$0xff]  ;;  %v8679_v2 = vld [vmem:[%s16522_s2 + $0x468] sm:$0xff] }
  0x51   : > { %797 = vmatpush.msrb.mxu0 %v8604_v46  ;;  %864 = vmatpush.msrb.mxu3 %v8641_v3  ;;  %v8666_v46 = vld [vmem:[%s16522_s2 + $0x400] sm:$0xff]  ;;  %v8711_v3 = vld [vmem:[%s16522_s2 + $0x568] sm:$0xff] }
  0x52   : > { %820 = vmatpush.msrb.mxu1 %v8636_v47  ;;  %842 = vmatpush.msrb.mxu2 %v8607_v6  ;;  %v8698_v47 = vld [vmem:[%s16522_s2 + $0x500] sm:$0xff]  ;;  %v8677_v6 = vld [vmem:[%s16522_s2 + $0x458] sm:$0xff] }
  0x53   : > { %798 = vmatpush.msrb.mxu0 %v8602_v50  ;;  %865 = vmatpush.msrb.mxu3 %v8639_v7  ;;  %v8687_v50 = vld [vmem:[%s16522_s2 + $0x4a8] sm:$0xff]  ;;  %v8709_v7 = vld [vmem:[%s16522_s2 + $0x558] sm:$0xff] }
  0x54   : > { %821 = vmatpush.msrb.mxu1 %v8634_v51  ;;  %843 = vmatpush.msrb.mxu2 %v8605_v10  ;;  %v8719_v51 = vld [vmem:[%s16522_s2 + $0x5a8] sm:$0xff] }
  0x55   : > { %944 = vmatpush.msra.mxu0 %v8696_v52  ;;  %866 = vmatpush.msrb.mxu3 %v8637_v11  ;;  %v8758_v52 = vld [vmem:[%s16522_s2 + $0x6e0] sm:$0xff]  ;;  %v8675_v10 = vld [vmem:[%s16522_s2 + $0x448] sm:$0xff] }
  0x56   : > { %967 = vmatpush.msra.mxu1 %v8728_v53  ;;  %641 = vmatmul.f32.gmra.mxu0 %v10339_v14  ;;  %v8790_v53 = vld [vmem:[%s16522_s2 + $0x7e0] sm:$0xff]  ;;  %v8707_v11 = vld [vmem:[%s16522_s2 + $0x548] sm:$0xff] }
  0x57   : > { %945 = vmatpush.msra.mxu0 %v8694_v56  ;;  %664 = vmatmul.f32.gmra.mxu1 %v10342_v15  ;;  %v8756_v56 = vld [vmem:[%s16522_s2 + $0x6d0] sm:$0xff] }
  0x58   : > { %968 = vmatpush.msra.mxu1 %v8726_v57  ;;  %844 = vmatpush.msrb.mxu2 %v8603_v18  ;;  %v8788_v57 = vld [vmem:[%s16522_s2 + $0x7d0] sm:$0xff]  ;;  %v8673_v18 = vld [vmem:[%s16522_s2 + $0x438] sm:$0xff] }
  0x59   : > { %946 = vmatpush.msra.mxu0 %v8692_v60  ;;  %867 = vmatpush.msrb.mxu3 %v8635_v19  ;;  %v8754_v60 = vld [vmem:[%s16522_s2 + $0x6c0] sm:$0xff]  ;;  %v8705_v19 = vld [vmem:[%s16522_s2 + $0x538] sm:$0xff] }
  0x5a   : > { %969 = vmatpush.msra.mxu1 %v8724_v61  ;;  %684 = vmatmul.f32.vlgmr.msra.gmra.mxu2 %v10175_v24  ;;  %v8786_v61 = vld [vmem:[%s16522_s2 + $0x7c0] sm:$0xff] }
  0x5b   : > { %947 = vmatpush.msra.mxu0 %v8690_v0  ;;  %707 = vmatmul.f32.vlgmr.msra.gmra.mxu3 %v10178_v25  ;;  %v8752_v0 = vld [vmem:[%s16522_s2 + $0x6b0] sm:$0xff] }
  0x5c   : > { %970 = vmatpush.msra.mxu1 %v8722_v1  ;;  %990 = vmatpush.msra.mxu2 %v8697_v26  ;;  %v8784_v1 = vld [vmem:[%s16522_s2 + $0x7b0] sm:$0xff] }
  0x5d   : > { %948 = vmatpush.msra.mxu0 %v8688_v4  ;;  %1013 = vmatpush.msra.mxu3 %v8729_v27  ;;  %v8750_v4 = vld [vmem:[%s16522_s2 + $0x6a0] sm:$0xff]  ;;  %v8740_v26 = vld [vmem:[%s16522_s2 + $0x650] sm:$0xff] }
  0x5e   : > { %971 = vmatpush.msra.mxu1 %v8720_v5  ;;  %991 = vmatpush.msra.mxu2 %v8695_v30  ;;  %v8782_v5 = vld [vmem:[%s16522_s2 + $0x7a0] sm:$0xff]  ;;  %v8772_v27 = vld [vmem:[%s16522_s2 + $0x750] sm:$0xff] }
  0x5f   : > { %949 = vmatpush.msra.mxu0 %v8686_v8  ;;  %1014 = vmatpush.msra.mxu3 %v8727_v31  ;;  %v8748_v8 = vld [vmem:[%s16522_s2 + $0x690] sm:$0xff]  ;;  %v8738_v30 = vld [vmem:[%s16522_s2 + $0x640] sm:$0xff] }
  0x60   : > { %972 = vmatpush.msra.mxu1 %v8718_v9  ;;  %992 = vmatpush.msra.mxu2 %v8693_v34  ;;  %v8780_v9 = vld [vmem:[%s16522_s2 + $0x790] sm:$0xff]  ;;  %v8770_v31 = vld [vmem:[%s16522_s2 + $0x740] sm:$0xff] }
  0x61   : > { %950 = vmatpush.msra.mxu0 %v8684_v12  ;;  %1015 = vmatpush.msra.mxu3 %v8725_v35  ;;  %v8746_v12 = vld [vmem:[%s16522_s2 + $0x680] sm:$0xff]  ;;  %v8736_v34 = vld [vmem:[%s16522_s2 + $0x630] sm:$0xff] }
  0x62   : > { %973 = vmatpush.msra.mxu1 %v8716_v13  ;;  %799 = vmatmul.f32.vlgmr.msrb.gmra.mxu0 %v10175_v24  ;;  %v8778_v13 = vld [vmem:[%s16522_s2 + $0x780] sm:$0xff]  ;;  %v8768_v35 = vld [vmem:[%s16522_s2 + $0x730] sm:$0xff] }
  0x63   : > { %951 = vmatpush.msra.mxu0 %v8682_v16  ;;  %822 = vmatmul.f32.vlgmr.msrb.gmra.mxu1 %v10178_v25  ;;  %v8744_v16 = vld [vmem:[%s16522_s2 + $0x670] sm:$0xff] }
  0x64   : > { %974 = vmatpush.msra.mxu1 %v8714_v17  ;;  %993 = vmatpush.msra.mxu2 %v8691_v40  ;;  %v8776_v17 = vld [vmem:[%s16522_s2 + $0x770] sm:$0xff]  ;;  %v8759_v40 = vld [vmem:[%s16522_s2 + $0x6e8] sm:$0xff] }
  0x65   : > { %952 = vmatpush.msra.mxu0 %v8680_v20  ;;  %1016 = vmatpush.msra.mxu3 %v8723_v41  ;;  %v8742_v20 = vld [vmem:[%s16522_s2 + $0x660] sm:$0xff]  ;;  %v8791_v41 = vld [vmem:[%s16522_s2 + $0x7e8] sm:$0xff] }
  0x66   : > { %975 = vmatpush.msra.mxu1 %v8712_v21  ;;  %994 = vmatpush.msra.mxu2 %v8689_v44  ;;  %v8774_v21 = vld [vmem:[%s16522_s2 + $0x760] sm:$0xff]  ;;  %v8757_v44 = vld [vmem:[%s16522_s2 + $0x6d8] sm:$0xff] }
  0x67   : > { %953 = vmatpush.msra.mxu0 %v8678_v22  ;;  %1017 = vmatpush.msra.mxu3 %v8721_v45  ;;  %v8671_v22 = vld [vmem:[%s16522_s2 + $0x428] sm:$0xff]  ;;  %v8789_v45 = vld [vmem:[%s16522_s2 + $0x7d8] sm:$0xff] }
  0x68   : > { %976 = vmatpush.msra.mxu1 %v8710_v23  ;;  %995 = vmatpush.msra.mxu2 %v8687_v50  ;;  %v8703_v23 = vld [vmem:[%s16522_s2 + $0x528] sm:$0xff]  ;;  %v8824_v50 = vld [vmem:[%s16522_s2 + $0x8f0] sm:$0xff] }
  0x69   : > { %954 = vmatpush.msra.mxu0 %v8676_v28  ;;  %1018 = vmatpush.msra.mxu3 %v8719_v51  ;;  %v8669_v28 = vld [vmem:[%s16522_s2 + $0x418] sm:$0xff]  ;;  %v8856_v51 = vld [vmem:[%s16522_s2 + $0x9f0] sm:$0xff] }
  0x6a   : > { %977 = vmatpush.msra.mxu1 %v8708_v29  ;;  %996 = vmatpush.msra.mxu2 %v8685_v54  ;;  %v8701_v29 = vld [vmem:[%s16522_s2 + $0x518] sm:$0xff]  ;;  %v8822_v54 = vld [vmem:[%s16522_s2 + $0x8e0] sm:$0xff] }
  0x6b   : > { %955 = vmatpush.msra.mxu0 %v8674_v32  ;;  %1019 = vmatpush.msra.mxu3 %v8717_v55  ;;  %v8667_v32 = vld [vmem:[%s16522_s2 + $0x408] sm:$0xff]  ;;  %v8854_v55 = vld [vmem:[%s16522_s2 + $0x9e0] sm:$0xff] }
  0x6c   : > { %978 = vmatpush.msra.mxu1 %v8706_v33  ;;  %997 = vmatpush.msra.mxu2 %v8683_v58  ;;  %v8699_v33 = vld [vmem:[%s16522_s2 + $0x508] sm:$0xff]  ;;  %v8820_v58 = vld [vmem:[%s16522_s2 + $0x8d0] sm:$0xff] }
  0x6d   : > { %956 = vmatpush.msra.mxu0 %v8672_v36  ;;  %1020 = vmatpush.msra.mxu3 %v8715_v59  ;;  %v8761_v36 = vld [vmem:[%s16522_s2 + $0x6f8] sm:$0xff]  ;;  %v8852_v59 = vld [vmem:[%s16522_s2 + $0x9d0] sm:$0xff] }
  0x6e   : > { %979 = vmatpush.msra.mxu1 %v8704_v37  ;;  %998 = vmatpush.msra.mxu2 %v8681_v62  ;;  %v8793_v37 = vld [vmem:[%s16522_s2 + $0x7f8] sm:$0xff]  ;;  %v8818_v62 = vld [vmem:[%s16522_s2 + $0x8c0] sm:$0xff] }
  0x6f   : > { %957 = vmatpush.msra.mxu0 %v8670_v38  ;;  %1021 = vmatpush.msra.mxu3 %v8713_v63  ;;  %v8734_v38 = vld [vmem:[%s16522_s2 + $0x620] sm:$0xff] }
  0x70   : > { %980 = vmatpush.msra.mxu1 %v8702_v39  ;;  %999 = vmatpush.msra.mxu2 %v8679_v2  ;;  %v8766_v39 = vld [vmem:[%s16522_s2 + $0x720] sm:$0xff]  ;;  %v8816_v2 = vld [vmem:[%s16522_s2 + $0x8b0] sm:$0xff] }
  0x71   : > { %958 = vmatpush.msra.mxu0 %v8668_v42  ;;  %1022 = vmatpush.msra.mxu3 %v8711_v3  ;;  %v8732_v42 = vld [vmem:[%s16522_s2 + $0x610] sm:$0xff]  ;;  %v8850_v63 = vld [vmem:[%s16522_s2 + $0x9c0] sm:$0xff] }
  0x72   : > { %981 = vmatpush.msra.mxu1 %v8700_v43  ;;  %1000 = vmatpush.msra.mxu2 %v8677_v6  ;;  %v8764_v43 = vld [vmem:[%s16522_s2 + $0x710] sm:$0xff]  ;;  %v8814_v6 = vld [vmem:[%s16522_s2 + $0x8a0] sm:$0xff] }
  0x73   : > { %959 = vmatpush.msra.mxu0 %v8666_v46  ;;  %1023 = vmatpush.msra.mxu3 %v8709_v7  ;;  %v8730_v46 = vld [vmem:[%s16522_s2 + $0x600] sm:$0xff]  ;;  %v8848_v3 = vld [vmem:[%s16522_s2 + $0x9b0] sm:$0xff] }
  0x74   : > { %982 = vmatpush.msra.mxu1 %v8698_v47  ;;  %1001 = vmatpush.msra.mxu2 %v8675_v10  ;;  %v8762_v47 = vld [vmem:[%s16522_s2 + $0x700] sm:$0xff]  ;;  %v8812_v10 = vld [vmem:[%s16522_s2 + $0x890] sm:$0xff] }
  0x75   : > { %1105 = vmatpush.msrb.mxu0 %v8760_v48  ;;  %1024 = vmatpush.msra.mxu3 %v8707_v11  ;;  %v8755_v48 = vld [vmem:[%s16522_s2 + $0x6c8] sm:$0xff]  ;;  %v8846_v7 = vld [vmem:[%s16522_s2 + $0x9a0] sm:$0xff]  ;;  %v8844_v11 = vld [vmem:[%s16522_s2 + $0x990] sm:$0xff] }
  0x76   : > { %1128 = vmatpush.msrb.mxu1 %v8792_v49  ;;  %687 = vmatmul.f32.gmra.mxu2 %v10339_v14  ;;  %v8787_v49 = vld [vmem:[%s16522_s2 + $0x7c8] sm:$0xff] }
  0x77   : > { %1106 = vmatpush.msrb.mxu0 %v8758_v52  ;;  %710 = vmatmul.f32.gmra.mxu3 %v10342_v15  ;;  %v8753_v52 = vld [vmem:[%s16522_s2 + $0x6b8] sm:$0xff] }
  0x78   : > { %1129 = vmatpush.msrb.mxu1 %v8790_v53  ;;  %1002 = vmatpush.msra.mxu2 %v8673_v18  ;;  %v8785_v53 = vld [vmem:[%s16522_s2 + $0x7b8] sm:$0xff]  ;;  %v8739_v18 = vld [vmem:[%s16522_s2 + $0x648] sm:$0xff] }
  0x79   : > { %1107 = vmatpush.msrb.mxu0 %v8756_v56  ;;  %1025 = vmatpush.msra.mxu3 %v8705_v19  ;;  %v8751_v56 = vld [vmem:[%s16522_s2 + $0x6a8] sm:$0xff] }
  0x7a   : > { %1130 = vmatpush.msrb.mxu1 %v8788_v57  ;;  %1003 = vmatpush.msra.mxu2 %v8671_v22  ;;  %v8783_v57 = vld [vmem:[%s16522_s2 + $0x7a8] sm:$0xff]  ;;  %v8737_v22 = vld [vmem:[%s16522_s2 + $0x638] sm:$0xff] }
  0x7b   : > { %1108 = vmatpush.msrb.mxu0 %v8754_v60  ;;  %1026 = vmatpush.msra.mxu3 %v8703_v23  ;;  %v8749_v60 = vld [vmem:[%s16522_s2 + $0x698] sm:$0xff]  ;;  %v8771_v19 = vld [vmem:[%s16522_s2 + $0x748] sm:$0xff] }
  0x7c   : > { %1131 = vmatpush.msrb.mxu1 %v8786_v61  ;;  %1004 = vmatpush.msra.mxu2 %v8669_v28  ;;  %v8781_v61 = vld [vmem:[%s16522_s2 + $0x798] sm:$0xff]  ;;  %v8735_v28 = vld [vmem:[%s16522_s2 + $0x628] sm:$0xff] }
  0x7d   : > { %1109 = vmatpush.msrb.mxu0 %v8752_v0  ;;  %1027 = vmatpush.msra.mxu3 %v8701_v29  ;;  %v8747_v0 = vld [vmem:[%s16522_s2 + $0x688] sm:$0xff]  ;;  %v8769_v23 = vld [vmem:[%s16522_s2 + $0x738] sm:$0xff] }
  0x7e   : > { %1132 = vmatpush.msrb.mxu1 %v8784_v1  ;;  %802 = vmatmul.f32.gmra.mxu0 %v10339_v14  ;;  %v8779_v1 = vld [vmem:[%s16522_s2 + $0x788] sm:$0xff] }
  0x7f   : > { %1110 = vmatpush.msrb.mxu0 %v8750_v4  ;;  %825 = vmatmul.f32.gmra.mxu1 %v10342_v15  ;;  %v8745_v4 = vld [vmem:[%s16522_s2 + $0x678] sm:$0xff]  ;;  %v8767_v29 = vld [vmem:[%s16522_s2 + $0x728] sm:$0xff] }
  0x80   : > { %1133 = vmatpush.msrb.mxu1 %v8782_v5  ;;  %1005 = vmatpush.msra.mxu2 %v8667_v32  ;;  %v8777_v5 = vld [vmem:[%s16522_s2 + $0x778] sm:$0xff] }
  0x81   : > { %1111 = vmatpush.msrb.mxu0 %v8748_v8  ;;  %1028 = vmatpush.msra.mxu3 %v8699_v33  ;;  %v8743_v8 = vld [vmem:[%s16522_s2 + $0x668] sm:$0xff]  ;;  %v8733_v32 = vld [vmem:[%s16522_s2 + $0x618] sm:$0xff] }
  0x82   : > { %1134 = vmatpush.msrb.mxu1 %v8780_v9  ;;  %845 = vmatmul.f32.vlgmr.msrb.gmra.mxu2 %v10175_v24  ;;  %v8775_v9 = vld [vmem:[%s16522_s2 + $0x768] sm:$0xff]  ;;  %v8765_v33 = vld [vmem:[%s16522_s2 + $0x718] sm:$0xff] }
  0x83   : > { %1112 = vmatpush.msrb.mxu0 %v8746_v12  ;;  %868 = vmatmul.f32.vlgmr.msrb.gmra.mxu3 %v10178_v25  ;;  %v8741_v12 = vld [vmem:[%s16522_s2 + $0x658] sm:$0xff] }
  0x84   : > { %1135 = vmatpush.msrb.mxu1 %v8778_v13  ;;  %1151 = vmatpush.msrb.mxu2 %v8761_v36  ;;  %v8773_v13 = vld [vmem:[%s16522_s2 + $0x758] sm:$0xff]  ;;  %v8731_v36 = vld [vmem:[%s16522_s2 + $0x608] sm:$0xff] }
  0x85   : > { %1113 = vmatpush.msrb.mxu0 %v8744_v16  ;;  %1174 = vmatpush.msrb.mxu3 %v8793_v37  ;;  %v8810_v16 = vld [vmem:[%s16522_s2 + $0x880] sm:$0xff]  ;;  %v8763_v37 = vld [vmem:[%s16522_s2 + $0x708] sm:$0xff] }
  0x86   : > { %1136 = vmatpush.msrb.mxu1 %v8776_v17  ;;  %1152 = vmatpush.msrb.mxu2 %v8759_v40  ;;  %v8842_v17 = vld [vmem:[%s16522_s2 + $0x980] sm:$0xff]  ;;  %v8825_v40 = vld [vmem:[%s16522_s2 + $0x8f8] sm:$0xff] }
  0x87   : > { %1114 = vmatpush.msrb.mxu0 %v8742_v20  ;;  %1175 = vmatpush.msrb.mxu3 %v8791_v41  ;;  %v8808_v20 = vld [vmem:[%s16522_s2 + $0x870] sm:$0xff]  ;;  %v8857_v41 = vld [vmem:[%s16522_s2 + $0x9f8] sm:$0xff] }
  0x88   : > { %1137 = vmatpush.msrb.mxu1 %v8774_v21  ;;  %1153 = vmatpush.msrb.mxu2 %v8757_v44  ;;  %v8840_v21 = vld [vmem:[%s16522_s2 + $0x970] sm:$0xff]  ;;  %v8823_v44 = vld [vmem:[%s16522_s2 + $0x8e8] sm:$0xff] }
  0x89   : > { %1115 = vmatpush.msrb.mxu0 %v8740_v26  ;;  %1176 = vmatpush.msrb.mxu3 %v8789_v45  ;;  %v8806_v26 = vld [vmem:[%s16522_s2 + $0x860] sm:$0xff]  ;;  %v8855_v45 = vld [vmem:[%s16522_s2 + $0x9e8] sm:$0xff] }
  0x8a   : > { %1138 = vmatpush.msrb.mxu1 %v8772_v27  ;;  %960 = vmatmul.f32.vlgmr.msra.gmra.mxu0 %v10175_v24  ;;  %v8838_v27 = vld [vmem:[%s16522_s2 + $0x960] sm:$0xff] }
  0x8b   : > { %1116 = vmatpush.msrb.mxu0 %v8738_v30  ;;  %983 = vmatmul.f32.vlgmr.msra.gmra.mxu1 %v10178_v25  ;;  %v8804_v30 = vld [vmem:[%s16522_s2 + $0x850] sm:$0xff] }
  0x8c   : > { %1139 = vmatpush.msrb.mxu1 %v8770_v31  ;;  %1154 = vmatpush.msrb.mxu2 %v8755_v48  ;;  %v8836_v31 = vld [vmem:[%s16522_s2 + $0x950] sm:$0xff]  ;;  %v8821_v48 = vld [vmem:[%s16522_s2 + $0x8d8] sm:$0xff] }
  0x8d   : > { %1117 = vmatpush.msrb.mxu0 %v8736_v34  ;;  %1177 = vmatpush.msrb.mxu3 %v8787_v49  ;;  %v8802_v34 = vld [vmem:[%s16522_s2 + $0x840] sm:$0xff]  ;;  %v8853_v49 = vld [vmem:[%s16522_s2 + $0x9d8] sm:$0xff] }
  0x8e   : > { %1140 = vmatpush.msrb.mxu1 %v8768_v35  ;;  %1155 = vmatpush.msrb.mxu2 %v8753_v52  ;;  %v8834_v35 = vld [vmem:[%s16522_s2 + $0x940] sm:$0xff]  ;;  %v8819_v52 = vld [vmem:[%s16522_s2 + $0x8c8] sm:$0xff] }
  0x8f   : > { %1118 = vmatpush.msrb.mxu0 %v8734_v38  ;;  %1178 = vmatpush.msrb.mxu3 %v8785_v53  ;;  %v8800_v38 = vld [vmem:[%s16522_s2 + $0x830] sm:$0xff]  ;;  %v8851_v53 = vld [vmem:[%s16522_s2 + $0x9c8] sm:$0xff] }
  0x90   : > { %1141 = vmatpush.msrb.mxu1 %v8766_v39  ;;  %1156 = vmatpush.msrb.mxu2 %v8751_v56  ;;  %v8832_v39 = vld [vmem:[%s16522_s2 + $0x930] sm:$0xff]  ;;  %v8817_v56 = vld [vmem:[%s16522_s2 + $0x8b8] sm:$0xff] }
  0x91   : > { %1119 = vmatpush.msrb.mxu0 %v8732_v42  ;;  %1179 = vmatpush.msrb.mxu3 %v8783_v57  ;;  %v8798_v42 = vld [vmem:[%s16522_s2 + $0x820] sm:$0xff]  ;;  %v8849_v57 = vld [vmem:[%s16522_s2 + $0x9b8] sm:$0xff] }
  0x92   : > { %1142 = vmatpush.msrb.mxu1 %v8764_v43  ;;  %1157 = vmatpush.msrb.mxu2 %v8749_v60  ;;  %v8830_v43 = vld [vmem:[%s16522_s2 + $0x920] sm:$0xff]  ;;  %v8884_v60 = vld [vmem:[%s16522_s2 + $0xad0] sm:$0xff] }
  0x93   : > { %1120 = vmatpush.msrb.mxu0 %v8730_v46  ;;  %1180 = vmatpush.msrb.mxu3 %v8781_v61  ;;  %v8796_v46 = vld [vmem:[%s16522_s2 + $0x810] sm:$0xff] }
  0x94   : > { %1143 = vmatpush.msrb.mxu1 %v8762_v47  ;;  %1158 = vmatpush.msrb.mxu2 %v8747_v0  ;;  %v8828_v47 = vld [vmem:[%s16522_s2 + $0x910] sm:$0xff]  ;;  %v8882_v0 = vld [vmem:[%s16522_s2 + $0xac0] sm:$0xff] }
  0x95   : > { %1266 = vmatpush.msra.mxu0 %v8824_v50  ;;  %1181 = vmatpush.msrb.mxu3 %v8779_v1  ;;  %v8794_v50 = vld [vmem:[%s16522_s2 + $0x800] sm:$0xff]  ;;  %v8916_v61 = vld [vmem:[%s16522_s2 + $0xbd0] sm:$0xff] }
  0x96   : > { %1289 = vmatpush.msra.mxu1 %v8856_v51  ;;  %1159 = vmatpush.msrb.mxu2 %v8745_v4  ;;  %v8826_v51 = vld [vmem:[%s16522_s2 + $0x900] sm:$0xff]  ;;  %v8880_v4 = vld [vmem:[%s16522_s2 + $0xab0] sm:$0xff] }
  0x97   : > { %1267 = vmatpush.msra.mxu0 %v8822_v54  ;;  %1182 = vmatpush.msrb.mxu3 %v8777_v5  ;;  %v8888_v54 = vld [vmem:[%s16522_s2 + $0xaf0] sm:$0xff]  ;;  %v8914_v1 = vld [vmem:[%s16522_s2 + $0xbc0] sm:$0xff] }
  0x98   : > { %1290 = vmatpush.msra.mxu1 %v8854_v55  ;;  %1160 = vmatpush.msrb.mxu2 %v8743_v8  ;;  %v8920_v55 = vld [vmem:[%s16522_s2 + $0xbf0] sm:$0xff]  ;;  %v8878_v8 = vld [vmem:[%s16522_s2 + $0xaa0] sm:$0xff] }
  0x99   : > { %1268 = vmatpush.msra.mxu0 %v8820_v58  ;;  %1183 = vmatpush.msrb.mxu3 %v8775_v9  ;;  %v8886_v58 = vld [vmem:[%s16522_s2 + $0xae0] sm:$0xff]  ;;  %v8912_v5 = vld [vmem:[%s16522_s2 + $0xbb0] sm:$0xff] }
  0x9a   : > { %1291 = vmatpush.msra.mxu1 %v8852_v59  ;;  %1161 = vmatpush.msrb.mxu2 %v8741_v12  ;;  %v8847_v59 = vld [vmem:[%s16522_s2 + $0x9a8] sm:$0xff]  ;;  %v8910_v9 = vld [vmem:[%s16522_s2 + $0xba0] sm:$0xff]  ;;  %v8876_v12 = vld [vmem:[%s16522_s2 + $0xa90] sm:$0xff] }
  0x9b   : > { %1269 = vmatpush.msra.mxu0 %v8818_v62  ;;  %1184 = vmatpush.msrb.mxu3 %v8773_v13  ;;  %v8813_v62 = vld [vmem:[%s16522_s2 + $0x898] sm:$0xff]  ;;  %v8908_v13 = vld [vmem:[%s16522_s2 + $0xb90] sm:$0xff] }
  0x9c   : > { %1292 = vmatpush.msra.mxu1 %v8850_v63  ;;  %1162 = vmatpush.msrb.mxu2 %v8739_v18  ;;  %v8845_v63 = vld [vmem:[%s16522_s2 + $0x998] sm:$0xff]  ;;  %v8874_v18 = vld [vmem:[%s16522_s2 + $0xa80] sm:$0xff] }
  0x9d   : > { %1270 = vmatpush.msra.mxu0 %v8816_v2  ;;  %1185 = vmatpush.msrb.mxu3 %v8771_v19  ;;  %v8811_v2 = vld [vmem:[%s16522_s2 + $0x888] sm:$0xff]  ;;  %v8906_v19 = vld [vmem:[%s16522_s2 + $0xb80] sm:$0xff] }
  0x9e   : > { %1293 = vmatpush.msra.mxu1 %v8848_v3  ;;  %848 = vmatmul.f32.gmra.mxu2 %v10339_v14  ;;  %v8843_v3 = vld [vmem:[%s16522_s2 + $0x988] sm:$0xff] }
  0x9f   : > { %1271 = vmatpush.msra.mxu0 %v8814_v6  ;;  %871 = vmatmul.f32.gmra.mxu3 %v10342_v15  ;;  %v8809_v6 = vld [vmem:[%s16522_s2 + $0x878] sm:$0xff] }
  0xa0   : > { %1294 = vmatpush.msra.mxu1 %v8846_v7  ;;  %1163 = vmatpush.msrb.mxu2 %v8737_v22  ;;  %v8841_v7 = vld [vmem:[%s16522_s2 + $0x978] sm:$0xff]  ;;  %v8872_v22 = vld [vmem:[%s16522_s2 + $0xa70] sm:$0xff] }
  0xa1   : > { %1272 = vmatpush.msra.mxu0 %v8812_v10  ;;  %1186 = vmatpush.msrb.mxu3 %v8769_v23  ;;  %v8807_v10 = vld [vmem:[%s16522_s2 + $0x868] sm:$0xff]  ;;  %v8904_v23 = vld [vmem:[%s16522_s2 + $0xb70] sm:$0xff] }
  0xa2   : > { %1295 = vmatpush.msra.mxu1 %v8844_v11  ;;  %1164 = vmatpush.msrb.mxu2 %v8735_v28  ;;  %v8839_v11 = vld [vmem:[%s16522_s2 + $0x968] sm:$0xff]  ;;  %v8870_v28 = vld [vmem:[%s16522_s2 + $0xa60] sm:$0xff] }
  0xa3   : > { %1273 = vmatpush.msra.mxu0 %v8810_v16  ;;  %1187 = vmatpush.msrb.mxu3 %v8767_v29  ;;  %v8805_v16 = vld [vmem:[%s16522_s2 + $0x858] sm:$0xff]  ;;  %v8902_v29 = vld [vmem:[%s16522_s2 + $0xb60] sm:$0xff] }
  0xa4   : > { %1296 = vmatpush.msra.mxu1 %v8842_v17  ;;  %1165 = vmatpush.msrb.mxu2 %v8733_v32  ;;  %v8837_v17 = vld [vmem:[%s16522_s2 + $0x958] sm:$0xff]  ;;  %v8868_v32 = vld [vmem:[%s16522_s2 + $0xa50] sm:$0xff] }
  0xa5   : > { %1274 = vmatpush.msra.mxu0 %v8808_v20  ;;  %1188 = vmatpush.msrb.mxu3 %v8765_v33  ;;  %v8803_v20 = vld [vmem:[%s16522_s2 + $0x848] sm:$0xff]  ;;  %v8900_v33 = vld [vmem:[%s16522_s2 + $0xb50] sm:$0xff] }
  0xa6   : > { %1297 = vmatpush.msra.mxu1 %v8840_v21  ;;  %963 = vmatmul.f32.gmra.mxu0 %v10339_v14  ;;  %v8835_v21 = vld [vmem:[%s16522_s2 + $0x948] sm:$0xff] }
  0xa7   : > { %1275 = vmatpush.msra.mxu0 %v8806_v26  ;;  %986 = vmatmul.f32.gmra.mxu1 %v10342_v15  ;;  %v8801_v26 = vld [vmem:[%s16522_s2 + $0x838] sm:$0xff] }
  0xa8   : > { %1298 = vmatpush.msra.mxu1 %v8838_v27  ;;  %1166 = vmatpush.msrb.mxu2 %v8731_v36  ;;  %v8833_v27 = vld [vmem:[%s16522_s2 + $0x938] sm:$0xff]  ;;  %v8866_v36 = vld [vmem:[%s16522_s2 + $0xa40] sm:$0xff] }
  0xa9   : > { %1276 = vmatpush.msra.mxu0 %v8804_v30  ;;  %1189 = vmatpush.msrb.mxu3 %v8763_v37  ;;  %v8799_v30 = vld [vmem:[%s16522_s2 + $0x828] sm:$0xff]  ;;  %v8898_v37 = vld [vmem:[%s16522_s2 + $0xb40] sm:$0xff] }
  0xaa   : > { %1299 = vmatpush.msra.mxu1 %v8836_v31  ;;  %1006 = vmatmul.f32.vlgmr.msra.gmra.mxu2 %v10175_v24  ;;  %v8831_v31 = vld [vmem:[%s16522_s2 + $0x928] sm:$0xff] }
  0xab   : > { %1277 = vmatpush.msra.mxu0 %v8802_v34  ;;  %1029 = vmatmul.f32.vlgmr.msra.gmra.mxu3 %v10178_v25  ;;  %v8797_v34 = vld [vmem:[%s16522_s2 + $0x818] sm:$0xff] }
  0xac   : > { %1300 = vmatpush.msra.mxu1 %v8834_v35  ;;  %1312 = vmatpush.msra.mxu2 %v8825_v40  ;;  %v8829_v35 = vld [vmem:[%s16522_s2 + $0x918] sm:$0xff]  ;;  %v8864_v40 = vld [vmem:[%s16522_s2 + $0xa30] sm:$0xff] }
  0xad   : > { %1278 = vmatpush.msra.mxu0 %v8800_v38  ;;  %1335 = vmatpush.msra.mxu3 %v8857_v41  ;;  %v8795_v38 = vld [vmem:[%s16522_s2 + $0x808] sm:$0xff]  ;;  %v8896_v41 = vld [vmem:[%s16522_s2 + $0xb30] sm:$0xff] }
  0xae   : > { %1301 = vmatpush.msra.mxu1 %v8832_v39  ;;  %1313 = vmatpush.msra.mxu2 %v8823_v44  ;;  %v8827_v39 = vld [vmem:[%s16522_s2 + $0x908] sm:$0xff]  ;;  %v8862_v44 = vld [vmem:[%s16522_s2 + $0xa20] sm:$0xff] }
  0xaf   : > { %1279 = vmatpush.msra.mxu0 %v8798_v42  ;;  %1336 = vmatpush.msra.mxu3 %v8855_v45  ;;  %v8889_v42 = vld [vmem:[%s16522_s2 + $0xaf8] sm:$0xff]  ;;  %v11005_v45 = vld [vmem:[%s10160_s26 + $0x8] sm:$0xff] }
  0xb0   : > { %1302 = vmatpush.msra.mxu1 %v8830_v43  ;;  %1314 = vmatpush.msra.mxu2 %v8821_v48  ;;  %v8921_v43 = vld [vmem:[%s16522_s2 + $0xbf8] sm:$0xff]  ;;  %v8860_v48 = vld [vmem:[%s16522_s2 + $0xa10] sm:$0xff] }
  0xb1   : > { %1280 = vmatpush.msra.mxu0 %v8796_v46  ;;  %1337 = vmatpush.msra.mxu3 %v8853_v49  ;;  %v8887_v46 = vld [vmem:[%s16522_s2 + $0xae8] sm:$0xff]  ;;  %v8892_v49 = vld [vmem:[%s16522_s2 + $0xb10] sm:$0xff] }
  0xb2   : > { %1303 = vmatpush.msra.mxu1 %v8828_v47  ;;  %1121 = vmatmul.f32.vlgmr.msrb.gmra.mxu0 %v10175_v24  ;;  %v8918_v24 = vld [vmem:[%s16522_s2 + $0xbe0] sm:$0xff]  ;;  %v8919_v47 = vld [vmem:[%s16522_s2 + $0xbe8] sm:$0xff] }
  0xb3   : > { %1281 = vmatpush.msra.mxu0 %v8794_v50  ;;  %1144 = vmatmul.f32.vlgmr.msrb.gmra.mxu1 %v10178_v25  ;;  %v8815_v25 = vld [vmem:[%s16522_s2 + $0x8a8] sm:$0xff]  ;;  %v8885_v50 = vld [vmem:[%s16522_s2 + $0xad8] sm:$0xff] }
  0xb4   : > { %1304 = vmatpush.msra.mxu1 %v8826_v51  ;;  %1315 = vmatpush.msra.mxu2 %v8819_v52  ;;  %v8917_v51 = vld [vmem:[%s16522_s2 + $0xbd8] sm:$0xff]  ;;  %v8858_v52 = vld [vmem:[%s16522_s2 + $0xa00] sm:$0xff] }
  0xb5   : > { %1338 = vmatpush.msra.mxu3 %v8851_v53  ;;  %1427 = vmatpush.msrb.mxu0 %v8888_v54  ;;  %v8890_v53 = vld [vmem:[%s16522_s2 + $0xb00] sm:$0xff]  ;;  %v8883_v54 = vld [vmem:[%s16522_s2 + $0xac8] sm:$0xff] }
  0xb6   : > { %1450 = vmatpush.msrb.mxu1 %v8920_v55  ;;  %1316 = vmatpush.msra.mxu2 %v8817_v56  ;;  %v8915_v55 = vld [vmem:[%s16522_s2 + $0xbc8] sm:$0xff]  ;;  %v8952_v56 = vld [vmem:[%s16522_s2 + $0xcf0] sm:$0xff] }
  0xb7   : > { %1339 = vmatpush.msra.mxu3 %v8849_v57  ;;  %1428 = vmatpush.msrb.mxu0 %v8886_v58  ;;  %v8984_v57 = vld [vmem:[%s16522_s2 + $0xdf0] sm:$0xff]  ;;  %v8881_v58 = vld [vmem:[%s16522_s2 + $0xab8] sm:$0xff] }
  0xb8   : > { %1451 = vmatpush.msrb.mxu1 %v8918_v24  ;;  %1317 = vmatpush.msra.mxu2 %v8815_v25  ;;  %v8913_v24 = vld [vmem:[%s16522_s2 + $0xbb8] sm:$0xff]  ;;  %v8950_v25 = vld [vmem:[%s16522_s2 + $0xce0] sm:$0xff] }
  0xb9   : > { %1340 = vmatpush.msra.mxu3 %v8847_v59  ;;  %1429 = vmatpush.msrb.mxu0 %v8884_v60  ;;  %v8982_v59 = vld [vmem:[%s16522_s2 + $0xde0] sm:$0xff]  ;;  %v8879_v60 = vld [vmem:[%s16522_s2 + $0xaa8] sm:$0xff] }
  0xba   : > { %1452 = vmatpush.msrb.mxu1 %v8916_v61  ;;  %1318 = vmatpush.msra.mxu2 %v8813_v62  ;;  %v8911_v61 = vld [vmem:[%s16522_s2 + $0xba8] sm:$0xff]  ;;  %v8948_v62 = vld [vmem:[%s16522_s2 + $0xcd0] sm:$0xff] }
  0xbb   : > { %1341 = vmatpush.msra.mxu3 %v8845_v63  ;;  %1430 = vmatpush.msrb.mxu0 %v8882_v0  ;;  %v8980_v63 = vld [vmem:[%s16522_s2 + $0xdd0] sm:$0xff]  ;;  %v8877_v0 = vld [vmem:[%s16522_s2 + $0xa98] sm:$0xff] }
  0xbc   : > { %1453 = vmatpush.msrb.mxu1 %v8914_v1  ;;  %1319 = vmatpush.msra.mxu2 %v8811_v2  ;;  %v8909_v1 = vld [vmem:[%s16522_s2 + $0xb98] sm:$0xff]  ;;  %v8946_v2 = vld [vmem:[%s16522_s2 + $0xcc0] sm:$0xff] }
  0xbd   : > { %1342 = vmatpush.msra.mxu3 %v8843_v3  ;;  %1431 = vmatpush.msrb.mxu0 %v8880_v4  ;;  %v8978_v3 = vld [vmem:[%s16522_s2 + $0xdc0] sm:$0xff]  ;;  %v8875_v4 = vld [vmem:[%s16522_s2 + $0xa88] sm:$0xff] }
  0xbe   : > { %1454 = vmatpush.msrb.mxu1 %v8912_v5  ;;  %1320 = vmatpush.msra.mxu2 %v8809_v6  ;;  %v8907_v5 = vld [vmem:[%s16522_s2 + $0xb88] sm:$0xff]  ;;  %v8944_v6 = vld [vmem:[%s16522_s2 + $0xcb0] sm:$0xff] }
  0xbf   : > { %1343 = vmatpush.msra.mxu3 %v8841_v7  ;;  %1432 = vmatpush.msrb.mxu0 %v8878_v8  ;;  %v8976_v7 = vld [vmem:[%s16522_s2 + $0xdb0] sm:$0xff]  ;;  %v8873_v8 = vld [vmem:[%s16522_s2 + $0xa78] sm:$0xff] }
  0xc0   : > { %1455 = vmatpush.msrb.mxu1 %v8910_v9  ;;  %1321 = vmatpush.msra.mxu2 %v8807_v10  ;;  %v8905_v9 = vld [vmem:[%s16522_s2 + $0xb78] sm:$0xff]  ;;  %v8942_v10 = vld [vmem:[%s16522_s2 + $0xca0] sm:$0xff] }
  0xc1   : > { %1344 = vmatpush.msra.mxu3 %v8839_v11  ;;  %1433 = vmatpush.msrb.mxu0 %v8876_v12  ;;  %v8974_v11 = vld [vmem:[%s16522_s2 + $0xda0] sm:$0xff]  ;;  %v8871_v12 = vld [vmem:[%s16522_s2 + $0xa68] sm:$0xff] }
  0xc2   : > { %1456 = vmatpush.msrb.mxu1 %v8908_v13  ;;  %1322 = vmatpush.msra.mxu2 %v8805_v16  ;;  %v8903_v13 = vld [vmem:[%s16522_s2 + $0xb68] sm:$0xff]  ;;  %v8940_v16 = vld [vmem:[%s16522_s2 + $0xc90] sm:$0xff] }
  0xc3   : > { %1345 = vmatpush.msra.mxu3 %v8837_v17  ;;  %1434 = vmatpush.msrb.mxu0 %v8874_v18  ;;  %v8972_v17 = vld [vmem:[%s16522_s2 + $0xd90] sm:$0xff]  ;;  %v8869_v18 = vld [vmem:[%s16522_s2 + $0xa58] sm:$0xff] }
  0xc4   : > { %1457 = vmatpush.msrb.mxu1 %v8906_v19  ;;  %1323 = vmatpush.msra.mxu2 %v8803_v20  ;;  %v8901_v19 = vld [vmem:[%s16522_s2 + $0xb58] sm:$0xff]  ;;  %v8938_v20 = vld [vmem:[%s16522_s2 + $0xc80] sm:$0xff] }
  0xc5   : > { %1346 = vmatpush.msra.mxu3 %v8835_v21  ;;  %1435 = vmatpush.msrb.mxu0 %v8872_v22  ;;  %v8970_v21 = vld [vmem:[%s16522_s2 + $0xd80] sm:$0xff]  ;;  %v8867_v22 = vld [vmem:[%s16522_s2 + $0xa48] sm:$0xff] }
  0xc6   : > { %1458 = vmatpush.msrb.mxu1 %v8904_v23  ;;  %1009 = vmatmul.f32.gmra.mxu2 %v10339_v14  ;;  %v8899_v23 = vld [vmem:[%s16522_s2 + $0xb48] sm:$0xff] }
  0xc7   : > { %1032 = vmatmul.f32.gmra.mxu3 %v10342_v15  ;;  %1324 = vmatpush.msra.mxu2 %v8801_v26  ;;  %v8936_v26 = vld [vmem:[%s16522_s2 + $0xc70] sm:$0xff] }
  0xc8   : > { %1347 = vmatpush.msra.mxu3 %v8833_v27  ;;  %1436 = vmatpush.msrb.mxu0 %v8870_v28  ;;  %v8968_v27 = vld [vmem:[%s16522_s2 + $0xd70] sm:$0xff]  ;;  %v8865_v28 = vld [vmem:[%s16522_s2 + $0xa38] sm:$0xff] }
  0xc9   : > { %1459 = vmatpush.msrb.mxu1 %v8902_v29  ;;  %1325 = vmatpush.msra.mxu2 %v8799_v30  ;;  %v8897_v29 = vld [vmem:[%s16522_s2 + $0xb38] sm:$0xff]  ;;  %v8934_v30 = vld [vmem:[%s16522_s2 + $0xc60] sm:$0xff] }
  0xca   : > { %1348 = vmatpush.msra.mxu3 %v8831_v31  ;;  %1437 = vmatpush.msrb.mxu0 %v8868_v32  ;;  %v8966_v31 = vld [vmem:[%s16522_s2 + $0xd60] sm:$0xff]  ;;  %v11155_v32 = vld [vmem:[%s10160_s26 + $0x10] sm:$0xff] }
  0xcb   : > { %1460 = vmatpush.msrb.mxu1 %v8900_v33  ;;  %1326 = vmatpush.msra.mxu2 %v8797_v34  ;;  %v11159_v33 = vld [vmem:[%s10160_s26 + $0x18] sm:$0xff]  ;;  %v8863_v34 = vld [vmem:[%s16522_s2 + $0xa28] sm:$0xff] }
  0xcc   : > { %1349 = vmatpush.msra.mxu3 %v8829_v35  ;;  %1438 = vmatpush.msrb.mxu0 %v8866_v36  ;;  %v8895_v35 = vld [vmem:[%s16522_s2 + $0xb28] sm:$0xff]  ;;  %v8932_v36 = vld [vmem:[%s16522_s2 + $0xc50] sm:$0xff] }
  0xcd   : > { %1461 = vmatpush.msrb.mxu1 %v8898_v37  ;;  %1124 = vmatmul.f32.gmra.mxu0 %v10339_v14  ;;  %v8894_v14 = vld [vmem:[%s16522_s2 + $0xb20] sm:$0xff]  ;;  %v8964_v37 = vld [vmem:[%s16522_s2 + $0xd50] sm:$0xff] }
  0xce   : > { %1147 = vmatmul.f32.gmra.mxu1 %v10342_v15  ;;  %1327 = vmatpush.msra.mxu2 %v8795_v38  ;;  %v11001_v15 = vld [vmem:[%s10160_s26] sm:$0xff]  ;;  %v8861_v38 = vld [vmem:[%s16522_s2 + $0xa18] sm:$0xff] }
  0xcf   : > { %1350 = vmatpush.msra.mxu3 %v8827_v39  ;;  %1439 = vmatpush.msrb.mxu0 %v8864_v40  ;;  %v8893_v39 = vld [vmem:[%s16522_s2 + $0xb18] sm:$0xff]  ;;  %v8930_v40 = vld [vmem:[%s16522_s2 + $0xc40] sm:$0xff] }
  0xd0   : > { %1462 = vmatpush.msrb.mxu1 %v8896_v41  ;;  %1167 = vmatmul.f32.vlgmr.msrb.gmra.mxu2 %v11001_v15  ;;  %v8962_v41 = vld [vmem:[%s16522_s2 + $0xd40] sm:$0xff] }
  0xd1   : > { %1190 = vmatmul.f32.vlgmr.msrb.gmra.mxu3 %v11005_v45  ;;  %1473 = vmatpush.msrb.mxu2 %v8889_v42  ;;  %v8859_v42 = vld [vmem:[%s16522_s2 + $0xa08] sm:$0xff] }
  0xd2   : > { %1496 = vmatpush.msrb.mxu3 %v8921_v43  ;;  %1440 = vmatpush.msrb.mxu0 %v8862_v44  ;;  %v8891_v43 = vld [vmem:[%s16522_s2 + $0xb08] sm:$0xff]  ;;  %v8928_v44 = vld [vmem:[%s16522_s2 + $0xc30] sm:$0xff] }
  0xd3   : > { %1463 = vmatpush.msrb.mxu1 %v8894_v14  ;;  %1474 = vmatpush.msrb.mxu2 %v8887_v46  ;;  %v8960_v14 = vld [vmem:[%s16522_s2 + $0xd30] sm:$0xff]  ;;  %v8953_v46 = vld [vmem:[%s16522_s2 + $0xcf8] sm:$0xff] }
  0xd4   : > { %1497 = vmatpush.msrb.mxu3 %v8919_v47  ;;  %1441 = vmatpush.msrb.mxu0 %v8860_v48  ;;  %v8985_v47 = vld [vmem:[%s16522_s2 + $0xdf8] sm:$0xff]  ;;  %v8926_v48 = vld [vmem:[%s16522_s2 + $0xc20] sm:$0xff] }
  0xd5   : > { %1464 = vmatpush.msrb.mxu1 %v8892_v49  ;;  %1475 = vmatpush.msrb.mxu2 %v8885_v50  ;;  %v8958_v49 = vld [vmem:[%s16522_s2 + $0xd20] sm:$0xff]  ;;  %v8951_v50 = vld [vmem:[%s16522_s2 + $0xce8] sm:$0xff] }
  0xd6   : > { %1498 = vmatpush.msrb.mxu3 %v8917_v51  ;;  %1442 = vmatpush.msrb.mxu0 %v8858_v52  ;;  %v8983_v51 = vld [vmem:[%s16522_s2 + $0xde8] sm:$0xff]  ;;  %v8924_v52 = vld [vmem:[%s16522_s2 + $0xc10] sm:$0xff] }
  0xd7   : > { %1465 = vmatpush.msrb.mxu1 %v8890_v53  ;;  %1282 = vmatmul.f32.vlgmr.msra.gmra.mxu0 %v11001_v15  ;;  %v8956_v53 = vld [vmem:[%s16522_s2 + $0xd10] sm:$0xff] }
  0xd8   : > { %1305 = vmatmul.f32.vlgmr.msra.gmra.mxu1 %v11005_v45  ;;  %1476 = vmatpush.msrb.mxu2 %v8883_v54  ;;  %v8949_v54 = vld [vmem:[%s16522_s2 + $0xcd8] sm:$0xff] }
  0xd9   : > { %1499 = vmatpush.msrb.mxu3 %v8915_v55  ;;  %1588 = vmatpush.msra.mxu0 %v8952_v56  ;;  %v8981_v55 = vld [vmem:[%s16522_s2 + $0xdd8] sm:$0xff]  ;;  %v8922_v56 = vld [vmem:[%s16522_s2 + $0xc00] sm:$0xff] }
  0xda   : > { %1611 = vmatpush.msra.mxu1 %v8984_v57  ;;  %1477 = vmatpush.msrb.mxu2 %v8881_v58  ;;  %v8954_v57 = vld [vmem:[%s16522_s2 + $0xd00] sm:$0xff]  ;;  %v8947_v58 = vld [vmem:[%s16522_s2 + $0xcc8] sm:$0xff] }
  0xdb   : > { %1500 = vmatpush.msrb.mxu3 %v8913_v24  ;;  %1589 = vmatpush.msra.mxu0 %v8950_v25  ;;  %v8979_v24 = vld [vmem:[%s16522_s2 + $0xdc8] sm:$0xff]  ;;  %v9016_v25 = vld [vmem:[%s16522_s2 + $0xef0] sm:$0xff] }
  0xdc   : > { %1612 = vmatpush.msra.mxu1 %v8982_v59  ;;  %1478 = vmatpush.msrb.mxu2 %v8879_v60  ;;  %v9048_v59 = vld [vmem:[%s16522_s2 + $0xff0] sm:$0xff]  ;;  %v8945_v60 = vld [vmem:[%s16522_s2 + $0xcb8] sm:$0xff] }
  0xdd   : > { %1501 = vmatpush.msrb.mxu3 %v8911_v61  ;;  %1590 = vmatpush.msra.mxu0 %v8948_v62  ;;  %v8977_v61 = vld [vmem:[%s16522_s2 + $0xdb8] sm:$0xff]  ;;  %v9014_v62 = vld [vmem:[%s16522_s2 + $0xee0] sm:$0xff] }
  0xde   : > { %1613 = vmatpush.msra.mxu1 %v8980_v63  ;;  %1479 = vmatpush.msrb.mxu2 %v8877_v0  ;;  %v9046_v63 = vld [vmem:[%s16522_s2 + $0xfe0] sm:$0xff]  ;;  %v8943_v0 = vld [vmem:[%s16522_s2 + $0xca8] sm:$0xff] }
  0xdf   : > { %1502 = vmatpush.msrb.mxu3 %v8909_v1  ;;  %1591 = vmatpush.msra.mxu0 %v8946_v2  ;;  %v8975_v1 = vld [vmem:[%s16522_s2 + $0xda8] sm:$0xff]  ;;  %v9012_v2 = vld [vmem:[%s16522_s2 + $0xed0] sm:$0xff] }
  0xe0   : > { %1614 = vmatpush.msra.mxu1 %v8978_v3  ;;  %1480 = vmatpush.msrb.mxu2 %v8875_v4  ;;  %v9044_v3 = vld [vmem:[%s16522_s2 + $0xfd0] sm:$0xff]  ;;  %v8941_v4 = vld [vmem:[%s16522_s2 + $0xc98] sm:$0xff] }
  0xe1   : > { %1503 = vmatpush.msrb.mxu3 %v8907_v5  ;;  %1592 = vmatpush.msra.mxu0 %v8944_v6  ;;  %v8973_v5 = vld [vmem:[%s16522_s2 + $0xd98] sm:$0xff]  ;;  %v9010_v6 = vld [vmem:[%s16522_s2 + $0xec0] sm:$0xff] }
  0xe2   : > { %1615 = vmatpush.msra.mxu1 %v8976_v7  ;;  %1481 = vmatpush.msrb.mxu2 %v8873_v8  ;;  %v9042_v7 = vld [vmem:[%s16522_s2 + $0xfc0] sm:$0xff]  ;;  %v8939_v8 = vld [vmem:[%s16522_s2 + $0xc88] sm:$0xff] }
  0xe3   : > { %1504 = vmatpush.msrb.mxu3 %v8905_v9  ;;  %1593 = vmatpush.msra.mxu0 %v8942_v10  ;;  %v8971_v9 = vld [vmem:[%s16522_s2 + $0xd88] sm:$0xff]  ;;  %v9008_v10 = vld [vmem:[%s16522_s2 + $0xeb0] sm:$0xff] }
  0xe4   : > { %1616 = vmatpush.msra.mxu1 %v8974_v11  ;;  %1482 = vmatpush.msrb.mxu2 %v8871_v12  ;;  %v9040_v11 = vld [vmem:[%s16522_s2 + $0xfb0] sm:$0xff]  ;;  %v8937_v12 = vld [vmem:[%s16522_s2 + $0xc78] sm:$0xff] }
  0xe5   : > { %1505 = vmatpush.msrb.mxu3 %v8903_v13  ;;  %1594 = vmatpush.msra.mxu0 %v8940_v16  ;;  %v8969_v13 = vld [vmem:[%s16522_s2 + $0xd78] sm:$0xff]  ;;  %v9006_v16 = vld [vmem:[%s16522_s2 + $0xea0] sm:$0xff] }
  0xe6   : > { %1617 = vmatpush.msra.mxu1 %v8972_v17  ;;  %1483 = vmatpush.msrb.mxu2 %v8869_v18  ;;  %v9038_v17 = vld [vmem:[%s16522_s2 + $0xfa0] sm:$0xff]  ;;  %v8935_v18 = vld [vmem:[%s16522_s2 + $0xc68] sm:$0xff] }
  0xe7   : > { %1506 = vmatpush.msrb.mxu3 %v8901_v19  ;;  %1595 = vmatpush.msra.mxu0 %v8938_v20  ;;  %v8967_v19 = vld [vmem:[%s16522_s2 + $0xd68] sm:$0xff]  ;;  %v9004_v20 = vld [vmem:[%s16522_s2 + $0xe90] sm:$0xff] }
  0xe8   : > { %1618 = vmatpush.msra.mxu1 %v8970_v21  ;;  %1484 = vmatpush.msrb.mxu2 %v8867_v22  ;;  %v9036_v21 = vld [vmem:[%s16522_s2 + $0xf90] sm:$0xff]  ;;  %v8933_v22 = vld [vmem:[%s16522_s2 + $0xc58] sm:$0xff] }
  0xe9   : > { %1507 = vmatpush.msrb.mxu3 %v8899_v23  ;;  %1596 = vmatpush.msra.mxu0 %v8936_v26  ;;  %v8965_v23 = vld [vmem:[%s16522_s2 + $0xd58] sm:$0xff]  ;;  %v9002_v26 = vld [vmem:[%s16522_s2 + $0xe80] sm:$0xff] }
  0xea   : > { %1619 = vmatpush.msra.mxu1 %v8968_v27  ;;  %1170 = vmatmul.f32.gmra.mxu2 %v11155_v32  ;;  %v9034_v27 = vld [vmem:[%s16522_s2 + $0xf80] sm:$0xff] }
  0xeb   : > { %1193 = vmatmul.f32.gmra.mxu3 %v11159_v33  ;;  %1485 = vmatpush.msrb.mxu2 %v8865_v28  ;;  %v8931_v28 = vld [vmem:[%s16522_s2 + $0xc48] sm:$0xff] }
  0xec   : > { %1508 = vmatpush.msrb.mxu3 %v8897_v29  ;;  %1597 = vmatpush.msra.mxu0 %v8934_v30  ;;  %v8963_v29 = vld [vmem:[%s16522_s2 + $0xd48] sm:$0xff]  ;;  %v9000_v30 = vld [vmem:[%s16522_s2 + $0xe70] sm:$0xff] }
  0xed   : > { %1620 = vmatpush.msra.mxu1 %v8966_v31  ;;  %1486 = vmatpush.msrb.mxu2 %v8863_v34  ;;  %v9032_v31 = vld [vmem:[%s16522_s2 + $0xf70] sm:$0xff]  ;;  %v8929_v34 = vld [vmem:[%s16522_s2 + $0xc38] sm:$0xff] }
  0xee   : > { %1509 = vmatpush.msrb.mxu3 %v8895_v35  ;;  %1598 = vmatpush.msra.mxu0 %v8932_v36  ;;  %v8961_v35 = vld [vmem:[%s16522_s2 + $0xd38] sm:$0xff]  ;;  %v8998_v36 = vld [vmem:[%s16522_s2 + $0xe60] sm:$0xff] }
  0xef   : > { %1621 = vmatpush.msra.mxu1 %v8964_v37  ;;  %1285 = vmatmul.f32.gmra.mxu0 %v11155_v32  ;;  %v9030_v37 = vld [vmem:[%s16522_s2 + $0xf60] sm:$0xff] }
  0xf0   : > { %1308 = vmatmul.f32.gmra.mxu1 %v11159_v33  ;;  %1487 = vmatpush.msrb.mxu2 %v8861_v38  ;;  %v8927_v38 = vld [vmem:[%s16522_s2 + $0xc28] sm:$0xff] }
  0xf1   : > { %1510 = vmatpush.msrb.mxu3 %v8893_v39  ;;  %1599 = vmatpush.msra.mxu0 %v8930_v40  ;;  %v8959_v39 = vld [vmem:[%s16522_s2 + $0xd28] sm:$0xff]  ;;  %v8996_v40 = vld [vmem:[%s16522_s2 + $0xe50] sm:$0xff] }
  0xf2   : > { %1622 = vmatpush.msra.mxu1 %v8962_v41  ;;  %1488 = vmatpush.msrb.mxu2 %v8859_v42  ;;  %v9028_v41 = vld [vmem:[%s16522_s2 + $0xf50] sm:$0xff]  ;;  %v8925_v42 = vld [vmem:[%s16522_s2 + $0xc18] sm:$0xff] }
  0xf3   : > { %1511 = vmatpush.msrb.mxu3 %v8891_v43  ;;  %1600 = vmatpush.msra.mxu0 %v8928_v44  ;;  %v8957_v43 = vld [vmem:[%s16522_s2 + $0xd18] sm:$0xff]  ;;  %v8994_v44 = vld [vmem:[%s16522_s2 + $0xe40] sm:$0xff] }
  0xf4   : > { %1623 = vmatpush.msra.mxu1 %v8960_v14  ;;  %1328 = vmatmul.f32.vlgmr.msra.gmra.mxu2 %v11001_v15  ;;  %v9026_v14 = vld [vmem:[%s16522_s2 + $0xf40] sm:$0xff] }
  0xf5   : > { %1351 = vmatmul.f32.vlgmr.msra.gmra.mxu3 %v11005_v45  ;;  %1634 = vmatpush.msra.mxu2 %v8953_v46  ;;  %v8923_v46 = vld [vmem:[%s16522_s2 + $0xc08] sm:$0xff] }
  0xf6   : > { %1657 = vmatpush.msra.mxu3 %v8985_v47  ;;  %1601 = vmatpush.msra.mxu0 %v8926_v48  ;;  %v8955_v47 = vld [vmem:[%s16522_s2 + $0xd08] sm:$0xff]  ;;  %v8992_v48 = vld [vmem:[%s16522_s2 + $0xe30] sm:$0xff] }
  0xf7   : > { %1624 = vmatpush.msra.mxu1 %v8958_v49  ;;  %1635 = vmatpush.msra.mxu2 %v8951_v50  ;;  %v9024_v49 = vld [vmem:[%s16522_s2 + $0xf30] sm:$0xff]  ;;  %v9017_v50 = vld [vmem:[%s16522_s2 + $0xef8] sm:$0xff] }
  0xf8   : > { %1658 = vmatpush.msra.mxu3 %v8983_v51  ;;  %1602 = vmatpush.msra.mxu0 %v8924_v52  ;;  %v9049_v51 = vld [vmem:[%s16522_s2 + $0xff8] sm:$0xff]  ;;  %v8990_v52 = vld [vmem:[%s16522_s2 + $0xe20] sm:$0xff] }
  0xf9   : > { %1625 = vmatpush.msra.mxu1 %v8956_v53  ;;  %1636 = vmatpush.msra.mxu2 %v8949_v54  ;;  %v9022_v53 = vld [vmem:[%s16522_s2 + $0xf20] sm:$0xff]  ;;  %v9015_v54 = vld [vmem:[%s16522_s2 + $0xee8] sm:$0xff] }
  0xfa   : > { %1659 = vmatpush.msra.mxu3 %v8981_v55  ;;  %1443 = vmatmul.f32.vlgmr.msrb.gmra.mxu0 %v11001_v15  ;;  %v9047_v55 = vld [vmem:[%s16522_s2 + $0xfe8] sm:$0xff] }
  0xfb   : > { %1466 = vmatmul.f32.vlgmr.msrb.gmra.mxu1 %v11005_v45  ;;  %1603 = vmatpush.msra.mxu0 %v8922_v56  ;;  %v8988_v56 = vld [vmem:[%s16522_s2 + $0xe10] sm:$0xff] }
  0xfc   : > { %1626 = vmatpush.msra.mxu1 %v8954_v57  ;;  %1637 = vmatpush.msra.mxu2 %v8947_v58  ;;  %v9020_v57 = vld [vmem:[%s16522_s2 + $0xf10] sm:$0xff]  ;;  %v9013_v58 = vld [vmem:[%s16522_s2 + $0xed8] sm:$0xff] }
  0xfd   : > { %1660 = vmatpush.msra.mxu3 %v8979_v24  ;;  %1749 = vmatpush.msrb.mxu0 %v9016_v25  ;;  %v9045_v24 = vld [vmem:[%s16522_s2 + $0xfd8] sm:$0xff]  ;;  %v11436_v25 = vpop.f32.mrf.mxu0 }
  0xfe   : > { %1772 = vmatpush.msrb.mxu1 %v9048_v59  ;;  %1638 = vmatpush.msra.mxu2 %v8945_v60  ;;  %v11438_v59 = vpop.f32.mrf.mxu1  ;;  %v8986_v60 = vld [vmem:[%s16522_s2 + $0xe00] sm:$0xff] }
  0xff   : > { %1661 = vmatpush.msra.mxu3 %v8977_v61  ;;  %1750 = vmatpush.msrb.mxu0 %v9014_v62  ;;  %v9018_v61 = vld [vmem:[%s16522_s2 + $0xf00] sm:$0xff]  ;;  %v9011_v62 = vld [vmem:[%s16522_s2 + $0xec8] sm:$0xff] }
 0x100   : > { %1773 = vmatpush.msrb.mxu1 %v9046_v63  ;;  %1639 = vmatpush.msra.mxu2 %v8943_v0  ;;  %v9043_v63 = vld [vmem:[%s16522_s2 + $0xfc8] sm:$0xff]  ;;  %v9080_v0 = vld [vmem:[%s16522_s2 + $0x10f0] sm:$0xff] }
 0x101   : > { %1662 = vmatpush.msra.mxu3 %v8975_v1  ;;  %1751 = vmatpush.msrb.mxu0 %v9012_v2  ;;  %v9112_v1 = vld [vmem:[%s16522_s2 + $0x11f0] sm:$0xff]  ;;  %v9009_v2 = vld [vmem:[%s16522_s2 + $0xeb8] sm:$0xff] }
 0x102   : > { %1774 = vmatpush.msrb.mxu1 %v9044_v3  ;;  %1640 = vmatpush.msra.mxu2 %v8941_v4  ;;  %v9041_v3 = vld [vmem:[%s16522_s2 + $0xfb8] sm:$0xff]  ;;  %v9078_v4 = vld [vmem:[%s16522_s2 + $0x10e0] sm:$0xff] }
 0x103   : > { %1663 = vmatpush.msra.mxu3 %v8973_v5  ;;  %1752 = vmatpush.msrb.mxu0 %v9010_v6  ;;  %v9110_v5 = vld [vmem:[%s16522_s2 + $0x11e0] sm:$0xff]  ;;  %v9007_v6 = vld [vmem:[%s16522_s2 + $0xea8] sm:$0xff] }
 0x104   : > { %1775 = vmatpush.msrb.mxu1 %v9042_v7  ;;  %1446 = vmatmul.f32.gmra.mxu0 %v11155_v32  ;;  %v9039_v7 = vld [vmem:[%s16522_s2 + $0xfa8] sm:$0xff] }
 0x105   : > { %1469 = vmatmul.f32.gmra.mxu1 %v11159_v33  ;;  %1641 = vmatpush.msra.mxu2 %v8939_v8  ;;  %v11480_v8 = vpop.f32.mrf.mxu0 }
 0x106   : > { %1664 = vmatpush.msra.mxu3 %v8971_v9  ;;  %1753 = vmatpush.msrb.mxu0 %v9008_v10  ;;  %v11482_v9 = vpop.f32.mrf.mxu1  ;;  %v9076_v10 = vld [vmem:[%s16522_s2 + $0x10d0] sm:$0xff] }
 0x107   : > { %1776 = vmatpush.msrb.mxu1 %v9040_v11  ;;  %1642 = vmatpush.msra.mxu2 %v8937_v12  ;;  %v9108_v11 = vld [vmem:[%s16522_s2 + $0x11d0] sm:$0xff]  ;;  %v9005_v12 = vld [vmem:[%s16522_s2 + $0xe98] sm:$0xff] }
 0x108   : > { %1665 = vmatpush.msra.mxu3 %v8969_v13  ;;  %1754 = vmatpush.msrb.mxu0 %v9006_v16  ;;  %v9037_v13 = vld [vmem:[%s16522_s2 + $0xf98] sm:$0xff]  ;;  %v9074_v16 = vld [vmem:[%s16522_s2 + $0x10c0] sm:$0xff] }
 0x109   : > { %1777 = vmatpush.msrb.mxu1 %v9038_v17  ;;  %1643 = vmatpush.msra.mxu2 %v8935_v18  ;;  %v9106_v17 = vld [vmem:[%s16522_s2 + $0x11c0] sm:$0xff]  ;;  %v9003_v18 = vld [vmem:[%s16522_s2 + $0xe88] sm:$0xff] }
 0x10a   : > { %1666 = vmatpush.msra.mxu3 %v8967_v19  ;;  %1755 = vmatpush.msrb.mxu0 %v9004_v20  ;;  %v9035_v19 = vld [vmem:[%s16522_s2 + $0xf88] sm:$0xff]  ;;  %v9072_v20 = vld [vmem:[%s16522_s2 + $0x10b0] sm:$0xff] }
 0x10b   : > { %1778 = vmatpush.msrb.mxu1 %v9036_v21  ;;  %1644 = vmatpush.msra.mxu2 %v8933_v22  ;;  %v9104_v21 = vld [vmem:[%s16522_s2 + $0x11b0] sm:$0xff]  ;;  %v9001_v22 = vld [vmem:[%s16522_s2 + $0xe78] sm:$0xff] }
 0x10c   : > { %1667 = vmatpush.msra.mxu3 %v8965_v23  ;;  %1756 = vmatpush.msrb.mxu0 %v9002_v26  ;;  %v9033_v23 = vld [vmem:[%s16522_s2 + $0xf78] sm:$0xff]  ;;  %v9070_v26 = vld [vmem:[%s16522_s2 + $0x10a0] sm:$0xff] }
 0x10d   : > { %1779 = vmatpush.msrb.mxu1 %v9034_v27  ;;  %1604 = vmatmul.f32.vlgmr.msra.gmra.mxu0 %v11001_v15  ;;  %v9102_v27 = vld [vmem:[%s16522_s2 + $0x11a0] sm:$0xff] }
 0x10e   : > { %1627 = vmatmul.f32.vlgmr.msra.gmra.mxu1 %v11005_v45  ;;  %1331 = vmatmul.f32.gmra.mxu2 %v11155_v32 }
 0x10f   : > { %1354 = vmatmul.f32.gmra.mxu3 %v11159_v33  ;;  %1645 = vmatpush.msra.mxu2 %v8931_v28  ;;  %v8999_v28 = vld [vmem:[%s16522_s2 + $0xe68] sm:$0xff] }
 0x110   : > { %1668 = vmatpush.msra.mxu3 %v8963_v29  ;;  %1757 = vmatpush.msrb.mxu0 %v9000_v30  ;;  %v9031_v29 = vld [vmem:[%s16522_s2 + $0xf68] sm:$0xff]  ;;  %v11536_v30 = vpop.f32.mrf.mxu0 }
 0x111   : > { %1780 = vmatpush.msrb.mxu1 %v9032_v31  ;;  %1646 = vmatpush.msra.mxu2 %v8929_v34  ;;  %v11538_v31 = vpop.f32.mrf.mxu1  ;;  %v9068_v34 = vld [vmem:[%s16522_s2 + $0x1090] sm:$0xff] }
 0x112   : > { %1669 = vmatpush.msra.mxu3 %v8961_v35  ;;  %1758 = vmatpush.msrb.mxu0 %v8998_v36  ;;  %v9100_v35 = vld [vmem:[%s16522_s2 + $0x1190] sm:$0xff]  ;;  %v8997_v36 = vld [vmem:[%s16522_s2 + $0xe58] sm:$0xff] }
 0x113   : > { %1781 = vmatpush.msrb.mxu1 %v9030_v37  ;;  %1647 = vmatpush.msra.mxu2 %v8927_v38  ;;  %v9029_v37 = vld [vmem:[%s16522_s2 + $0xf58] sm:$0xff]  ;;  %v9066_v38 = vld [vmem:[%s16522_s2 + $0x1080] sm:$0xff] }
 0x114   : > { %1670 = vmatpush.msra.mxu3 %v8959_v39  ;;  %1759 = vmatpush.msrb.mxu0 %v8996_v40  ;;  %v9098_v39 = vld [vmem:[%s16522_s2 + $0x1180] sm:$0xff]  ;;  %v8995_v40 = vld [vmem:[%s16522_s2 + $0xe48] sm:$0xff] }
 0x115   : > { %1782 = vmatpush.msrb.mxu1 %v9028_v41  ;;  %1648 = vmatpush.msra.mxu2 %v8925_v42  ;;  %v9027_v41 = vld [vmem:[%s16522_s2 + $0xf48] sm:$0xff]  ;;  %v9064_v42 = vld [vmem:[%s16522_s2 + $0x1070] sm:$0xff] }
 0x116   : > { %1671 = vmatpush.msra.mxu3 %v8957_v43  ;;  %1760 = vmatpush.msrb.mxu0 %v8994_v44  ;;  %v9096_v43 = vld [vmem:[%s16522_s2 + $0x1170] sm:$0xff]  ;;  %v8993_v44 = vld [vmem:[%s16522_s2 + $0xe38] sm:$0xff] }
 0x117   : > { %1783 = vmatpush.msrb.mxu1 %v9026_v14  ;;  %1607 = vmatmul.f32.gmra.mxu0 %v11155_v32  ;;  %v9025_v14 = vld [vmem:[%s16522_s2 + $0xf38] sm:$0xff] }
 0x118   : > { %1630 = vmatmul.f32.gmra.mxu1 %v11159_v33  ;;  %1489 = vmatmul.f32.vlgmr.msrb.gmra.mxu2 %v11001_v15 }
 0x119   : > { %1512 = vmatmul.f32.vlgmr.msrb.gmra.mxu3 %v11005_v45  ;;  %1649 = vmatpush.msra.mxu2 %v8923_v46  ;;  %v9062_v46 = vld [vmem:[%s16522_s2 + $0x1060] sm:$0xff] }
 0x11a   : > { %1672 = vmatpush.msra.mxu3 %v8955_v47  ;;  %1761 = vmatpush.msrb.mxu0 %v8992_v48  ;;  %v9094_v47 = vld [vmem:[%s16522_s2 + $0x1160] sm:$0xff]  ;;  %v11582_v48 = vpop.f32.mrf.mxu0 }
 0x11b   : > { %1784 = vmatpush.msrb.mxu1 %v9024_v49  ;;  %1795 = vmatpush.msrb.mxu2 %v9017_v50  ;;  %v11584_v49 = vpop.f32.mrf.mxu1  ;;  %v8991_v50 = vld [vmem:[%s16522_s2 + $0xe28] sm:$0xff] }
 0x11c   : > { %1818 = vmatpush.msrb.mxu3 %v9049_v51  ;;  %1762 = vmatpush.msrb.mxu0 %v8990_v52  ;;  %v9023_v51 = vld [vmem:[%s16522_s2 + $0xf28] sm:$0xff]  ;;  %v9060_v52 = vld [vmem:[%s16522_s2 + $0x1050] sm:$0xff] }
 0x11d   : > { %1785 = vmatpush.msrb.mxu1 %v9022_v53  ;;  %1796 = vmatpush.msrb.mxu2 %v9015_v54  ;;  %v9092_v53 = vld [vmem:[%s16522_s2 + $0x1150] sm:$0xff]  ;;  %v8989_v54 = vld [vmem:[%s16522_s2 + $0xe18] sm:$0xff] }
 0x11e   : > { %1819 = vmatpush.msrb.mxu3 %v9047_v55  ;;  %1763 = vmatpush.msrb.mxu0 %v8988_v56  ;;  %v9021_v55 = vld [vmem:[%s16522_s2 + $0xf18] sm:$0xff]  ;;  %v11606_v56 = vpop.f32.mrf.mxu2 }
 0x11f   : > { %1786 = vmatpush.msrb.mxu1 %v9020_v57  ;;  %1797 = vmatpush.msrb.mxu2 %v9013_v58  ;;  %v11608_v57 = vpop.f32.mrf.mxu3  ;;  %v9058_v58 = vld [vmem:[%s16522_s2 + $0x1040] sm:$0xff] }
 0x120   : > { %1820 = vmatpush.msrb.mxu3 %v9045_v24  ;;  %1764 = vmatpush.msrb.mxu0 %v8986_v60  ;;  %v9090_v24 = vld [vmem:[%s16522_s2 + $0x1140] sm:$0xff]  ;;  %v8987_v60 = vld [vmem:[%s16522_s2 + $0xe08] sm:$0xff] }
 0x121   : > { %1787 = vmatpush.msrb.mxu1 %v9018_v61  ;;  %1765 = vmatmul.f32.vlgmr.msrb.gmra.mxu0 %v11001_v15  ;;  %v9019_v61 = vld [vmem:[%s16522_s2 + $0xf08] sm:$0xff] }
 0x122   : > { %1788 = vmatmul.f32.vlgmr.msrb.gmra.mxu1 %v11005_v45  ;;  %1798 = vmatpush.msrb.mxu2 %v9011_v62  ;;  %v9056_v62 = vld [vmem:[%s16522_s2 + $0x1030] sm:$0xff] }
 0x123   : > { %1821 = vmatpush.msrb.mxu3 %v9043_v63  ;;  %1910 = vmatpush.msra.mxu0 %v9080_v0  ;;  %v9088_v63 = vld [vmem:[%s16522_s2 + $0x1130] sm:$0xff]  ;;  %v9054_v0 = vld [vmem:[%s16522_s2 + $0x1020] sm:$0xff] }
 0x124   : > { %1933 = vmatpush.msra.mxu1 %v9112_v1  ;;  %1492 = vmatmul.f32.gmra.mxu2 %v11155_v32  ;;  %v9086_v1 = vld [vmem:[%s16522_s2 + $0x1120] sm:$0xff] }
 0x125   : > { %1515 = vmatmul.f32.gmra.mxu3 %v11159_v33  ;;  %1799 = vmatpush.msrb.mxu2 %v9009_v2  ;;  %v9052_v2 = vld [vmem:[%s16522_s2 + $0x1010] sm:$0xff] }
 0x126   : > { %1822 = vmatpush.msrb.mxu3 %v9041_v3  ;;  %1911 = vmatpush.msra.mxu0 %v9078_v4  ;;  %v9084_v3 = vld [vmem:[%s16522_s2 + $0x1110] sm:$0xff]  ;;  %v11642_v4 = vpop.f32.mrf.mxu0 }
 0x127   : > { %1934 = vmatpush.msra.mxu1 %v9110_v5  ;;  %1800 = vmatpush.msrb.mxu2 %v9007_v6  ;;  %v11644_v5 = vpop.f32.mrf.mxu1  ;;  %v9050_v6 = vld [vmem:[%s16522_s2 + $0x1000] sm:$0xff] }
 0x128   : > { %1823 = vmatpush.msrb.mxu3 %v9039_v7  ;;  %1912 = vmatpush.msra.mxu0 %v9076_v10  ;;  %v9082_v7 = vld [vmem:[%s16522_s2 + $0x1100] sm:$0xff]  ;;  %v11652_v10 = vpop.f32.mrf.mxu2 }
 0x129   : > { %1935 = vmatpush.msra.mxu1 %v9108_v11  ;;  %1801 = vmatpush.msrb.mxu2 %v9005_v12  ;;  %v11654_v11 = vpop.f32.mrf.mxu3 }
 0x12a   : > { %1824 = vmatpush.msrb.mxu3 %v9037_v13  ;;  %1913 = vmatpush.msra.mxu0 %v9074_v16 }
 0x12b   : > { %1936 = vmatpush.msra.mxu1 %v9106_v17  ;;  %1768 = vmatmul.f32.gmra.mxu0 %v11155_v32 }
 0x12c   : > { %1791 = vmatmul.f32.gmra.mxu1 %v11159_v33  ;;  %1802 = vmatpush.msrb.mxu2 %v9003_v18 }
 0x12d   : > { %1825 = vmatpush.msrb.mxu3 %v9035_v19  ;;  %1914 = vmatpush.msra.mxu0 %v9072_v20 }
 0x12e   : > { %1937 = vmatpush.msra.mxu1 %v9104_v21  ;;  %1650 = vmatmul.f32.vlgmr.msra.gmra.mxu2 %v11001_v15  ;;  %v11660_v12 = vpop.f32.mrf.mxu0 }
 0x12f   : > { %1673 = vmatmul.f32.vlgmr.msra.gmra.mxu3 %v11005_v45  ;;  %1803 = vmatpush.msrb.mxu2 %v9001_v22  ;;  %v11662_v13 = vpop.f32.mrf.mxu1 }
 0x130   : > { %1826 = vmatpush.msrb.mxu3 %v9033_v23  ;;  %1915 = vmatpush.msra.mxu0 %v9070_v26  ;;  %v11664_v16 = vpop.f32.mrf.mxu2 }
 0x131   : > { %1938 = vmatpush.msra.mxu1 %v9102_v27  ;;  %1804 = vmatpush.msrb.mxu2 %v8999_v28  ;;  %v11666_v17 = vpop.f32.mrf.mxu3  ;;  %v9079_v27 = vld [vmem:[%s16522_s2 + $0x10e8] sm:$0xff] }
 0x132   : > { %1827 = vmatpush.msrb.mxu3 %v9031_v29  ;;  %1916 = vmatpush.msra.mxu0 %v9068_v34 }
 0x133   : > { %1939 = vmatpush.msra.mxu1 %v9100_v35  ;;  %1805 = vmatpush.msrb.mxu2 %v8997_v36  ;;  %v9077_v36 = vld [vmem:[%s16522_s2 + $0x10d8] sm:$0xff] }
 0x134   : > { %1828 = vmatpush.msrb.mxu3 %v9029_v37  ;;  %1917 = vmatpush.msra.mxu0 %v9066_v38  ;;  %v9075_v37 = vld [vmem:[%s16522_s2 + $0x10c8] sm:$0xff] }
 0x135   : > { %1940 = vmatpush.msra.mxu1 %v9098_v39  ;;  %1806 = vmatpush.msrb.mxu2 %v8995_v40  ;;  %v9073_v40 = vld [vmem:[%s16522_s2 + $0x10b8] sm:$0xff] }
 0x136   : > { %1829 = vmatpush.msrb.mxu3 %v9027_v41  ;;  %1918 = vmatpush.msra.mxu0 %v9064_v42  ;;  %v11670_v18 = vpop.f32.mrf.mxu0  ;;  %v9071_v41 = vld [vmem:[%s16522_s2 + $0x10a8] sm:$0xff] }
 0x137   : > { %1941 = vmatpush.msra.mxu1 %v9096_v43  ;;  %1653 = vmatmul.f32.gmra.mxu2 %v11155_v32  ;;  %v11672_v19 = vpop.f32.mrf.mxu1 }
 0x138   : > { %1676 = vmatmul.f32.gmra.mxu3 %v11159_v33  ;;  %1807 = vmatpush.msrb.mxu2 %v8993_v44  ;;  %v9069_v44 = vld [vmem:[%s16522_s2 + $0x1098] sm:$0xff] }
 0x139   : > { %1830 = vmatpush.msrb.mxu3 %v9025_v14  ;;  %1919 = vmatpush.msra.mxu0 %v9062_v46  ;;  %v11676_v20 = vpop.f32.mrf.mxu3  ;;  %v9067_v14 = vld [vmem:[%s16522_s2 + $0x1088] sm:$0xff] }
 0x13a   : > { %1942 = vmatpush.msra.mxu1 %v9094_v47  ;;  %1808 = vmatpush.msrb.mxu2 %v8991_v50  ;;  %v9065_v50 = vld [vmem:[%s16522_s2 + $0x1078] sm:$0xff] }
 0x13b   : > { %1831 = vmatpush.msrb.mxu3 %v9023_v51  ;;  %1920 = vmatpush.msra.mxu0 %v9060_v52  ;;  %v9063_v51 = vld [vmem:[%s16522_s2 + $0x1068] sm:$0xff] }
 0x13c   : > { %1943 = vmatpush.msra.mxu1 %v9092_v53  ;;  %1809 = vmatpush.msrb.mxu2 %v8989_v54  ;;  %v9061_v54 = vld [vmem:[%s16522_s2 + $0x1058] sm:$0xff] }
 0x13d   : > { %1832 = vmatpush.msrb.mxu3 %v9021_v55  ;;  %1921 = vmatpush.msra.mxu0 %v9058_v58  ;;  %v9059_v55 = vld [vmem:[%s16522_s2 + $0x1048] sm:$0xff] }
 0x13e   : > { %1944 = vmatpush.msra.mxu1 %v9090_v24  ;;  %1810 = vmatpush.msrb.mxu2 %v8987_v60  ;;  %v9057_v60 = vld [vmem:[%s16522_s2 + $0x1038] sm:$0xff] }
 0x13f   : > { %1833 = vmatpush.msrb.mxu3 %v9019_v61  ;;  %1922 = vmatpush.msra.mxu0 %v9056_v62  ;;  %v9055_v61 = vld [vmem:[%s16522_s2 + $0x1028] sm:$0xff] }
 0x140   : > { %1945 = vmatpush.msra.mxu1 %v9088_v63  ;;  %1811 = vmatmul.f32.vlgmr.msrb.gmra.mxu2 %v11001_v15 }
 0x141   : > { %1834 = vmatmul.f32.vlgmr.msrb.gmra.mxu3 %v11005_v45  ;;  %1923 = vmatpush.msra.mxu0 %v9054_v0  ;;  %v11684_v26 = vpop.f32.mrf.mxu3  ;;  %v9053_v0 = vld [vmem:[%s16522_s2 + $0x1018] sm:$0xff] }
 0x142   : > { %1946 = vmatpush.msra.mxu1 %v9086_v1  ;;  %v9051_v1 = vld [vmem:[%s16522_s2 + $0x1008] sm:$0xff] }
 0x143   : > { %1924 = vmatpush.msra.mxu0 %v9052_v2 }
 0x144   : > { %1947 = vmatpush.msra.mxu1 %v9084_v3 }
 0x145   : > { %1925 = vmatpush.msra.mxu0 %v9050_v6 }
 0x146   : > { %1948 = vmatpush.msra.mxu1 %v9082_v7  ;;  %1926 = vmatmul.f32.vlgmr.msra.gmra.mxu0 %v11001_v15 }
 0x147   : > { %1949 = vmatmul.f32.vlgmr.msra.gmra.mxu1 %v11005_v45  ;;  %v11674_v45 = vpop.f32.mrf.mxu2 }
 0x148   : > { %1814 = vmatmul.f32.gmra.mxu2 %v11155_v32 }
 0x149   : > { %1837 = vmatmul.f32.gmra.mxu3 %v11159_v33 }
 0x14a   : > { %v11678_v21 = vpop.f32.mrf.mxu0  ;;  %v11698_v35 = vpop.f32.mrf.mxu3 }
 0x14b   : > { %v11680_v22 = vpop.f32.mrf.mxu1 }
 0x14e   : > { %1929 = vmatmul.f32.gmra.mxu0 %v11155_v32 }
 0x14f   : > { %1952 = vmatmul.f32.gmra.mxu1 %v11159_v33  ;;  %v11682_v23 = vpop.f32.mrf.mxu2  ;;  %v9081_v33 = vld [vmem:[%s16522_s2 + $0x10f8] sm:$0xff] }
 0x150   : > { %1956 = vmatpush.msra.mxu2 %v9081_v33 }
 0x152   : > { %1957 = vmatpush.msra.mxu2 %v9079_v27 }
 0x154   : > { %v11692_v28 = vpop.f32.mrf.mxu0  ;;  %1958 = vmatpush.msra.mxu2 %v9077_v36  ;;  %v11718_v43 = vpop.f32.mrf.mxu3 }
 0x155   : > { %v11694_v29 = vpop.f32.mrf.mxu1 }
 0x156   : > { %1959 = vmatpush.msra.mxu2 %v9075_v37 }
 0x157   : > { %v11696_v34 = vpop.f32.mrf.mxu2 }
 0x158   : > { %1960 = vmatpush.msra.mxu2 %v9073_v40 }
 0x15a   : > { %1961 = vmatpush.msra.mxu2 %v9071_v41 }
 0x15c   : > { %1962 = vmatpush.msra.mxu2 %v9069_v44 }
 0x15e   : > { %1963 = vmatpush.msra.mxu2 %v9067_v14 }
 0x15f   : > { %v11716_v42 = vpop.f32.mrf.mxu2 }
 0x160   : > { %1964 = vmatpush.msra.mxu2 %v9065_v50 }
 0x162   : > { %1965 = vmatpush.msra.mxu2 %v9063_v51 }
 0x164   : > { %1966 = vmatpush.msra.mxu2 %v9061_v54 }
 0x166   : > { %1967 = vmatpush.msra.mxu2 %v9059_v55 }
 0x168   : > { %1968 = vmatpush.msra.mxu2 %v9057_v60 }
 0x16a   : > { %1969 = vmatpush.msra.mxu2 %v9055_v61 }
 0x16c   : > { %v11706_v38 = vpop.f32.mrf.mxu0  ;;  %1970 = vmatpush.msra.mxu2 %v9053_v0 }
 0x16d   : > { %v11708_v39 = vpop.f32.mrf.mxu1  ;;  %v11732_v52 = vpop.f32.mrf.mxu2 }
 0x16e   : > { %v11734_v53 = vpop.f32.mrf.mxu3  ;;  %1971 = vmatpush.msra.mxu2 %v9051_v1 }
 0x16f   : > { %1972 = vmatmul.f32.vlgmr.msra.gmra.mxu2 %v11001_v15 }
 0x177   : > { %v1444_v46 = vpop.f32.mrf.mxu0  ;;  %v11748_v62 = vpop.f32.mrf.mxu2  ;;  %1975 = vmatmul.f32.gmra.mxu2 %v11155_v32 }
 0x178   : > { %v1467_v47 = vpop.f32.mrf.mxu1  ;;  %v11750_v63 = vpop.f32.mrf.mxu3 }
 0x179   : > { %v1468_v1 = vadd.f32 %v1467_v47, %v1444_v46  ;;  %v9777_v47 = vmov 0  }
 0x17a   : > { %9685 = vset.pattern.permute.xlu0 %v9777_v47  ;;  %9686 = vset.pattern.permute.xlu1 %v9777_v47 }
 0x17b   : > { %9687 = vset.pattern.permute.xlu2 %v9777_v47  ;;  %v9097_v47 = vld [vmem:[%s16522_s2 + $0x1178] sm:$0xff] }
 0x181   : > { %v1447_v58 = vpop.f32.mrf.mxu0 }
 0x182   : > { %v1470_v24 = vpop.f32.mrf.mxu1 }
 0x183   : > { %v1471_v60 = vadd.f32 %v1470_v24, %v1447_v58  ;;  %v1149_v58 = vadd.f32 %v11680_v22, %v11678_v21  ;;  %v988_v21 = vadd.f32 %v11662_v13, %v11660_v12  ;;  %v9113_v22 = vld [vmem:[%s16522_s2 + $0x11f8] sm:$0xff]  ;;  %v2123_v12 = vld [vmem:[%s16523_s3 + $0x8] sm:$0xff] }
 0x184   : > { %1979 = vmatpush.msra.mxu3 %v9113_v22  ;;  %v9111_v13 = vld [vmem:[%s16522_s2 + $0x11e8] sm:$0xff]  ;;  %v1195_v22 = vadd.f32 %v11734_v53, %v11732_v52  ;;  %v1034_v53 = vadd.f32 %v11698_v35, %v11696_v34  ;;  %v11931_v34 = vld [vmem:[%s16521_s1 + $0x30] sm:$0xff]  ;;  %v9085_v35 = vld [vmem:[%s16522_s2 + $0x1118] sm:$0xff] }
 0x185   : > { %v9087_v52 = vld [vmem:[%s16522_s2 + $0x1128] sm:$0xff] }
 0x186   : > { %1980 = vmatpush.msra.mxu3 %v9111_v13  ;;  %v11958_v13 = vld [vmem:[%s16521_s1 + $0x1f0] sm:$0xff] }
 0x18a   : > { %v1605_v2 = vpop.f32.mrf.mxu0 }
 0x18b   : > { %v1628_v3 = vpop.f32.mrf.mxu1 }
 0x18c   : > { %v1629_v32 = vadd.f32 %v1628_v3, %v1605_v2  ;;  %v1307_v2 = vadd.f32 %v11694_v29, %v11692_v28  ;;  %v1146_v28 = vadd.f32 %v11672_v19, %v11670_v18  ;;  %v985_v29 = vadd.f32 %v11644_v5, %v11642_v4 }
 0x18d   : > { %v827_v18 = vadd.f32 %v11584_v49, %v11582_v48  ;;  %v824_v19 = vadd.f32 %v11538_v31, %v11536_v30  ;;  %v9109_v48 = vld [vmem:[%s16522_s2 + $0x11d8] sm:$0xff]  ;;  %v666_v3 = vadd.f32 %v11482_v9, %v11480_v8  ;;  %v9107_v30 = vld [vmem:[%s16522_s2 + $0x11c8] sm:$0xff]  ;;  %v663_v31 = vadd.f32 %v11438_v59, %v11436_v25  ;;  %v11822_v8 = vld [vmem:[%s16521_s1] sm:$0xff] }
 0x18e   : > { %1981 = vmatpush.msra.mxu3 %v9109_v48  ;;  %v9105_v9 = vld [vmem:[%s16522_s2 + $0x11b8] sm:$0xff]  ;;  %v2124_v25 = vld [vmem:[%s16523_s3 + $0x10] sm:$0xff]  ;;  %v9103_v59 = vld [vmem:[%s16522_s2 + $0x11a8] sm:$0xff] }
 0x18f   : > { %2174 = vperm.xlu1 %9686, %v2124_v25   ;;  %v12003_v48 = vld [vmem:[%s16521_s1 + $0x58] sm:$0xff] }
 0x190   : > { %1982 = vmatpush.msra.mxu3 %v9107_v30  ;;  %v12025_v30 = vld [vmem:[%s16521_s1 + $0x68] sm:$0xff]  ;;  %v12047_v25 = vld [vmem:[%s16521_s1 + $0x78] sm:$0xff] }
 0x191   : > { %v11759_v6 = vpop.f32.mrf.mxu2 }
 0x192   : > { %v11761_v7 = vpop.f32.mrf.mxu3  ;;  %1983 = vmatpush.msra.mxu3 %v9105_v9  ;;  %v2131_v9 = vld [vmem:[%s16523_s3 + $0x48] sm:$0xff] }
 0x194   : > { %v1608_v33 = vpop.f32.mrf.mxu0  ;;  %1984 = vmatpush.msra.mxu3 %v9103_v59  ;;  %v12052_v59 = vld [vmem:[%s16521_s1 + $0x230] sm:$0xff] }
 0x195   : > { %v1631_v27 = vpop.f32.mrf.mxu1 }
 0x196   : > { %v1632_v55 = vadd.f32 %v1631_v27, %v1608_v33  ;;  %v2060_v33 = vld [vmem:[%s16521_s1 + $0x1b0] sm:$0xff] }
 0x19b   : > { %v11764_v36 = vpop.f32.mrf.mxu2 }
 0x19c   : > { %v11766_v37 = vpop.f32.mrf.mxu3 }
 0x19e   : > { %v1766_v40 = vpop.f32.mrf.mxu0 }
 0x19f   : > { %v1789_v41 = vpop.f32.mrf.mxu1 }
 0x1a0   : > { %v1790_v51 = vadd.f32 %v1789_v41, %v1766_v40  ;;  %v1310_v40 = vadd.f32 %v11708_v39, %v11706_v38  ;;  %v2122_v38 = vld [vmem:[%s16523_s3] sm:$0xff] }
 0x1a1   : > { %2164 = vperm.xlu0 %9685, %v2122_v38   ;;  %v9095_v38 = vld [vmem:[%s16522_s2 + $0x1168] sm:$0xff] }
 0x1a7   : > { %v11768_v44 = vpop.f32.mrf.mxu2 }
 0x1a8   : > { %v11770_v14 = vpop.f32.mrf.mxu3  ;;  %v1769_v50 = vpop.f32.mrf.mxu0 }
 0x1a9   : > { %v1792_v15 = vpop.f32.mrf.mxu1  ;;  %2169 = vperm.xlu0 %9685, %v2123_v12   ;;  %v712_v12 = vadd.f32 %v11654_v11, %v11652_v10  ;;  %v2128_v10 = vld [vmem:[%s16523_s3 + $0x30] sm:$0xff]  ;;  %v11977_v11 = vld [vmem:[%s16521_s1 + $0x48] sm:$0xff] }
 0x1aa   : > { %v1793_v54 = vadd.f32 %v1792_v15, %v1769_v50 }
 0x1ac   : > { %2483 = vmatpush.msrb.mxu0 %v1793_v54  ;;  %9633 = vmatpush.msrb.mxu2 %v1793_v54 }
 0x1ae   : > { %2484 = vmatpush.msrb.mxu0 %v1790_v51  ;;  %9634 = vmatpush.msrb.mxu2 %v1790_v51 }
 0x1b0   : > { %2485 = vmatpush.msrb.mxu0 %v1632_v55  ;;  %9635 = vmatpush.msrb.mxu2 %v1632_v55  ;;  %v9101_v55 = vld [vmem:[%s16522_s2 + $0x1198] sm:$0xff] }
 0x1b1   : > { %v11772_v61 = vpop.f32.mrf.mxu2  ;;  %1985 = vmatpush.msra.mxu3 %v9101_v55  ;;  %2194 = vperm.xlu0 %9685, %v2128_v10   ;;  %v12091_v55 = vld [vmem:[%s16521_s1 + $0x98] sm:$0xff]  ;;  %v12242_v10 = vld [vmem:[%s16521_s1 + $0x108] sm:$0xff] }
 0x1b2   : > { %v11774_v0 = vpop.f32.mrf.mxu3  ;;  %2486 = vmatpush.msrb.mxu0 %v1629_v32  ;;  %9636 = vmatpush.msrb.mxu2 %v1629_v32 }
 0x1b4   : > { %2487 = vmatpush.msrb.mxu0 %v1471_v60  ;;  %9637 = vmatpush.msrb.mxu2 %v1471_v60 }
 0x1b6   : > { %2488 = vmatpush.msrb.mxu0 %v1468_v1  ;;  %9638 = vmatpush.msrb.mxu2 %v1468_v1  ;;  %v9099_v1 = vld [vmem:[%s16522_s2 + $0x1188] sm:$0xff] }
 0x1b7   : > { %1986 = vmatpush.msra.mxu3 %v9099_v1  ;;  %v2134_v1 = vld [vmem:[%s16523_s3 + $0x60] sm:$0xff] }
 0x1b8   : > { %2489 = vmatpush.msrb.mxu0 %v1310_v40  ;;  %9639 = vmatpush.msrb.mxu2 %v1310_v40 }
 0x1b9   : > { %1987 = vmatpush.msra.mxu3 %v9097_v47  ;;  %2209 = vperm.xlu0 %9685, %v2131_v9   ;;  %v12123_v47 = vld [vmem:[%s16521_s1 + $0xb0] sm:$0xff]  ;;  %v12266_v9 = vld [vmem:[%s16521_s1 + $0x118] sm:$0xff] }
 0x1ba   : > { %2490 = vmatpush.msrb.mxu0 %v1307_v2  ;;  %9640 = vmatpush.msrb.mxu2 %v1307_v2  ;;  %v11782_v24 = vpop.f32.mrf.mxu2  ;;  %v11844_v2 = vld [vmem:[%s16521_s1 + $0x8] sm:$0xff] }
 0x1bb   : > { %v1677_v46 = vpop.f32.mrf.mxu3  ;;  %1988 = vmatpush.msra.mxu3 %v9095_v38  ;;  %v12140_v38 = vld [vmem:[%s16521_s1 + $0x270] sm:$0xff] }
 0x1bc   : > { %2491 = vmatpush.msrb.mxu0 %v1149_v58  ;;  %9641 = vmatpush.msrb.mxu2 %v1149_v58  ;;  %v1678_v60 = vadd.f32 %v1677_v46, %v11782_v24  ;;  %v1675_v58 = vadd.f32 %v11774_v0, %v11772_v61  ;;  %v11851_v24 = vld [vmem:[%s16521_s1 + $0x1c0] sm:$0xff]  ;;  %v11856_v46 = vld [vmem:[%s16521_s1 + $0x10] sm:$0xff]  ;;  %v1517_v61 = vadd.f32 %v11770_v14, %v11768_v44  ;;  %v2125_v0 = vld [vmem:[%s16523_s3 + $0x18] sm:$0xff] }
 0x1bd   : > { %2179 = vperm.xlu1 %9686, %v2125_v0   ;;  %v9093_v44 = vld [vmem:[%s16522_s2 + $0x1158] sm:$0xff]  ;;  %v1356_v14 = vadd.f32 %v11761_v7, %v11759_v6  ;;  %v11895_v6 = vld [vmem:[%s16521_s1 + $0x20] sm:$0xff]  ;;  %v9091_v7 = vld [vmem:[%s16522_s2 + $0x1148] sm:$0xff] }
 0x1be   : > { %2492 = vmatpush.msrb.mxu0 %v1146_v28  ;;  %9642 = vmatpush.msrb.mxu2 %v1146_v28  ;;  %v1514_v28 = vadd.f32 %v11766_v37, %v11764_v36  ;;  %v1353_v36 = vadd.f32 %v11750_v63, %v11748_v62  ;;  %v11890_v37 = vld [vmem:[%s16521_s1 + $0x1d0] sm:$0xff]  ;;  %v9089_v62 = vld [vmem:[%s16522_s2 + $0x1138] sm:$0xff]  ;;  %v1192_v63 = vadd.f32 %v11718_v43, %v11716_v42  ;;  %v11926_v42 = vld [vmem:[%s16521_s1 + $0x1e0] sm:$0xff] }
 0x1bf   : > { %1989 = vmatpush.msra.mxu3 %v9093_v44  ;;  %v870_v43 = vadd.f32 %v11666_v17, %v11664_v16  ;;  %v11963_v16 = vld [vmem:[%s16521_s1 + $0x40] sm:$0xff]  ;;  %v709_v17 = vadd.f32 %v11608_v57, %v11606_v56  ;;  %v9693_v56 = vld [vmem:[%s10160_s26 + $0x18] sm:$0xff] }
 0x1c0   : > { %2493 = vmatpush.msrb.mxu0 %v988_v21  ;;  %9643 = vmatpush.msrb.mxu2 %v988_v21  ;;  %v11883_v21 = vld [vmem:[%s16521_s1 + $0x18] sm:$0xff]  ;;  %v11983_v57 = vld [vmem:[%s16521_s1 + $0x200] sm:$0xff] }
 0x1c1   : > { %1990 = vmatpush.msra.mxu3 %v9091_v7  ;;  %2224 = vperm.xlu0 %9685, %v2134_v1   ;;  %v12135_v0 = vld [vmem:[%s16521_s1 + $0xb8] sm:$0xff]  ;;  %v2152_v1 = vld [vmem:[%s16523_s3 + $0xf0] sm:$0xff] }
 0x1c2   : > { %2494 = vmatpush.msrb.mxu0 %v985_v29  ;;  %9644 = vmatpush.msrb.mxu2 %v985_v29  ;;  %v11919_v29 = vld [vmem:[%s16521_s1 + $0x28] sm:$0xff]  ;;  %v2133_v44 = vld [vmem:[%s16523_s3 + $0x58] sm:$0xff] }
 0x1c3   : > { %v1812_v4 = vpop.f32.mrf.mxu2  ;;  %v1927_v49 = vpop.f32.mrf.mxu0  ;;  %1991 = vmatpush.msra.mxu3 %v9089_v62  ;;  %v2137_v7 = vld [vmem:[%s16523_s3 + $0x78] sm:$0xff]  ;;  %v12179_v62 = vld [vmem:[%s16521_s1 + $0xe0] sm:$0xff] }
 0x1c4   : > { %v1835_v5 = vpop.f32.mrf.mxu3  ;;  %2495 = vmatpush.msrb.mxu0 %v827_v18  ;;  %9645 = vmatpush.msrb.mxu2 %v827_v18  ;;  %v1950_v39 = vpop.f32.mrf.mxu1  ;;  %v1031_v18 = vadd.f32 %v11684_v26, %v11682_v23  ;;  %v873_v23 = vadd.f32 %v11676_v20, %v11674_v45  ;;  %v9083_v26 = vld [vmem:[%s16522_s2 + $0x1108] sm:$0xff]  ;;  %v11950_v45 = vld [vmem:[%s16521_s1 + $0x38] sm:$0xff] }
 0x1c5   : > { %v1836_v50 = vadd.f32 %v1835_v5, %v1812_v4  ;;  %v1951_v40 = vadd.f32 %v1950_v39, %v1927_v49  ;;  %1992 = vmatpush.msra.mxu3 %v9087_v52  ;;  %v9692_v20 = vld [vmem:[%s10160_s26 + $0x8] sm:$0xff]  ;;  %v2126_v4 = vld [vmem:[%s16523_s3 + $0x20] sm:$0xff]  ;;  %v2129_v5 = vld [vmem:[%s16523_s3 + $0x38] sm:$0xff] }
 0x1c6   : > { %2496 = vmatpush.msrb.mxu0 %v824_v19  ;;  %9646 = vmatpush.msrb.mxu2 %v824_v19  ;;  %v11988_v19 = vld [vmem:[%s16521_s1 + $0x50] sm:$0xff]  ;;  %v12013_v39 = vld [vmem:[%s16521_s1 + $0x60] sm:$0xff] }
 0x1c7   : > { %1993 = vmatpush.msra.mxu3 %v9085_v35  ;;  %2184 = vperm.xlu2 %9687, %v2126_v4   ;;  %v12008_v49 = vld [vmem:[%s16521_s1 + $0x210] sm:$0xff]  ;;  %v2143_v35 = vld [vmem:[%s16523_s3 + $0xa8] sm:$0xff]  ;;  %v2149_v4 = vld [vmem:[%s16523_s3 + $0xd8] sm:$0xff] }
 0x1c8   : > { %2497 = vmatpush.msrb.mxu0 %v666_v3  ;;  %9647 = vmatpush.msrb.mxu2 %v666_v3  ;;  %v2127_v3 = vld [vmem:[%s16523_s3 + $0x28] sm:$0xff]  ;;  %v2140_v52 = vld [vmem:[%s16523_s3 + $0x90] sm:$0xff] }
 0x1c9   : > { %1994 = vmatpush.msra.mxu3 %v9083_v26  ;;  %2199 = vperm.xlu1 %9686, %v2129_v5   ;;  %v12218_v26 = vld [vmem:[%s16521_s1 + $0xf8] sm:$0xff] }
 0x1ca   : > { %2498 = vmatpush.msrb.mxu0 %v663_v31  ;;  %9648 = vmatpush.msrb.mxu2 %v663_v31  ;;  %v12030_v31 = vld [vmem:[%s16521_s1 + $0x220] sm:$0xff] }
 0x1cb   : > { %2580 = vmatmul.f32.vlgmr.msrb.gmra.mxu2 %v2060_v33  ;;  %2499 = vmatmul.f32.vlgmr.msrb.gmra.mxu0 %v11822_v8  ;;  %v1815_v27 = vpop.f32.mrf.mxu2  ;;  %v1930_v51 = vpop.f32.mrf.mxu0  ;;  %v12035_v33 = vld [vmem:[%s16521_s1 + $0x70] sm:$0xff] }
 0x1cc   : > { %v1838_v41 = vpop.f32.mrf.mxu3  ;;  %v1953_v54 = vpop.f32.mrf.mxu1  ;;  %1995 = vmatmul.f32.vlgmr.msra.gmra.mxu3 %v9692_v20  ;;  %2239 = vperm.xlu0 %9685, %v2137_v7   ;;  %v2146_v20 = vld [vmem:[%s16523_s3 + $0xc0] sm:$0xff]  ;;  %v12293_v7 = vld [vmem:[%s16521_s1 + $0x128] sm:$0xff] }
 0x1cd   : > { %v1839_v15 = vadd.f32 %v1838_v41, %v1815_v27  ;;  %v1954_v32 = vadd.f32 %v1953_v54, %v1930_v51  ;;  %v12057_v27 = vld [vmem:[%s16521_s1 + $0x80] sm:$0xff]  ;;  %v2132_v41 = vld [vmem:[%s16523_s3 + $0x50] sm:$0xff] }
 0x1ce   : > { %v12079_v51 = vld [vmem:[%s16521_s1 + $0x90] sm:$0xff]  ;;  %v2130_v54 = vld [vmem:[%s16523_s3 + $0x40] sm:$0xff] }
 0x1cf   : > { %2757 = vmatpush.msra.mxu2 %v1839_v15  ;;  %2634 = vmatpush.msrb.mxu1 %v1954_v32  ;;  %v12074_v15 = vld [vmem:[%s16521_s1 + $0x240] sm:$0xff]  ;;  %v12096_v32 = vld [vmem:[%s16521_s1 + $0x250] sm:$0xff] }
 0x1d0   : > { %2189 = vperm.xlu2 %9687, %v2127_v3  }
 0x1d1   : > { %2758 = vmatpush.msra.mxu2 %v1836_v50  ;;  %2635 = vmatpush.msrb.mxu1 %v1951_v40  ;;  %v12069_v50 = vld [vmem:[%s16521_s1 + $0x88] sm:$0xff] }
 0x1d2   : > { %9114 = vmatmul.msk.f32.vlgmr.msrb.gmra.mxu1 %vm2362_vm0, %v11844_v2  ;;  %2214 = vperm.xlu1 %9686, %v2132_v41   ;;  %v12113_v40 = vld [vmem:[%s16521_s1 + $0xa8] sm:$0xff]  ;;  %v12271_v41 = vld [vmem:[%s16521_s1 + $0x120] sm:$0xff] }
 0x1d3   : > { %2759 = vmatpush.msra.mxu2 %v1678_v60  ;;  %2502 = vmatmul.f32.gmra.mxu0 %v11856_v46  ;;  %v12101_v60 = vld [vmem:[%s16521_s1 + $0xa0] sm:$0xff] }
 0x1d4   : > { %2583 = vmatmul.f32.gmra.mxu2 %v11851_v24  ;;  %1998 = vmatmul.f32.gmra.mxu3 %v9693_v56  ;;  %v12247_v56 = vld [vmem:[%s16521_s1 + $0x110] sm:$0xff] }
 0x1d5   : > { %2760 = vmatpush.msra.mxu2 %v1675_v58  ;;  %v12118_v58 = vld [vmem:[%s16521_s1 + $0x260] sm:$0xff]  ;;  %2254 = vperm.xlu0 %9685, %v2140_v52   ;;  %v2155_v52 = vld [vmem:[%s16523_s3 + $0x108] sm:$0xff] }
 0x1d7   : > { %2761 = vmatpush.msra.mxu2 %v1517_v61  ;;  %v2135_v61 = vld [vmem:[%s16523_s3 + $0x68] sm:$0xff] }
 0x1d8   : > { %2204 = vperm.xlu2 %9687, %v2130_v54   ;;  %v2147_v54 = vld [vmem:[%s16523_s3 + $0xc8] sm:$0xff] }
 0x1d9   : > { %2762 = vmatpush.msra.mxu2 %v1514_v28  ;;  %v12145_v28 = vld [vmem:[%s16521_s1 + $0xc0] sm:$0xff] }
 0x1da   : > { %9115 = vmatmul.msk.f32.gmra.mxu1 %vm2362_vm0, %v11883_v21  ;;  %2229 = vperm.xlu1 %9686, %v2135_v61  }
 0x1db   : > { %2763 = vmatpush.msra.mxu2 %v1356_v14  ;;  %2505 = vmatmul.f32.gmra.mxu0 %v11895_v6  ;;  %v12157_v14 = vld [vmem:[%s16521_s1 + $0xc8] sm:$0xff] }
 0x1dc   : > { %2586 = vmatmul.f32.gmra.mxu2 %v11890_v37 }
 0x1dd   : > { %2764 = vmatpush.msra.mxu2 %v1353_v36  ;;  %v12162_v36 = vld [vmem:[%s16521_s1 + $0xd0] sm:$0xff]  ;;  %2269 = vperm.xlu0 %9685, %v2143_v35  }
 0x1df   : > { %2765 = vmatpush.msra.mxu2 %v1195_v22  ;;  %v12174_v22 = vld [vmem:[%s16521_s1 + $0xd8] sm:$0xff] }
 0x1e0   : > { %2219 = vperm.xlu2 %9687, %v2133_v44  }
 0x1e1   : > { %2766 = vmatpush.msra.mxu2 %v1192_v63 }
 0x1e2   : > { %9116 = vmatmul.msk.f32.gmra.mxu1 %vm2362_vm0, %v11919_v29 }
 0x1e3   : > { %2767 = vmatpush.msra.mxu2 %v1034_v53  ;;  %2508 = vmatmul.f32.gmra.mxu0 %v11931_v34  ;;  %v12196_v53 = vld [vmem:[%s16521_s1 + $0xe8] sm:$0xff] }
 0x1e4   : > { %2589 = vmatmul.f32.gmra.mxu2 %v11926_v42 }
 0x1e5   : > { %2768 = vmatpush.msra.mxu2 %v1031_v18  ;;  %v12201_v18 = vld [vmem:[%s16521_s1 + $0xf0] sm:$0xff]  ;;  %2284 = vperm.xlu0 %9685, %v2146_v20   ;;  %v12322_v20 = vld [vmem:[%s16521_s1 + $0x140] sm:$0xff] }
 0x1e7   : > { %2769 = vmatpush.msra.mxu2 %v873_v23 }
 0x1e9   : > { %2770 = vmatpush.msra.mxu2 %v870_v43  ;;  %v12223_v43 = vld [vmem:[%s16521_s1 + $0x100] sm:$0xff] }
 0x1ea   : > { %9117 = vmatmul.msk.f32.gmra.mxu1 %vm2362_vm0, %v11950_v45 }
 0x1eb   : > { %2771 = vmatpush.msra.mxu2 %v712_v12  ;;  %2511 = vmatmul.f32.gmra.mxu0 %v11963_v16 }
 0x1ec   : > { %2592 = vmatmul.f32.gmra.mxu2 %v11958_v13 }
 0x1ed   : > { %2772 = vmatpush.msra.mxu2 %v709_v17  ;;  %2299 = vperm.xlu0 %9685, %v2149_v4   ;;  %v2158_v4 = vld [vmem:[%s16523_s3 + $0x120] sm:$0xff] }
 0x1f2   : > { %9118 = vmatmul.msk.f32.gmra.mxu1 %vm2362_vm0, %v11977_v11  ;;  %v12181_v63 = vpop.f32.mrf.mxu2 }
 0x1f3   : > { %2514 = vmatmul.f32.gmra.mxu0 %v11988_v19 }
 0x1f4   : > { %2595 = vmatmul.f32.gmra.mxu2 %v11983_v57 }
 0x1f5   : > { %2314 = vperm.xlu0 %9685, %v2152_v1   ;;  %v12341_v1 = vld [vmem:[%s16521_s1 + $0x148] sm:$0xff] }
 0x1fa   : > { %9119 = vmatmul.msk.f32.gmra.mxu1 %vm2362_vm0, %v12003_v48  ;;  %v12213_v23 = vpop.f32.mrf.mxu2 }
 0x1fb   : > { %2517 = vmatmul.f32.gmra.mxu0 %v12013_v39 }
 0x1fc   : > { %2598 = vmatmul.f32.gmra.mxu2 %v12008_v49 }
 0x1fd   : > { %2329 = vperm.xlu0 %9685, %v2155_v52   ;;  %v2142_v52 = vld [vmem:[%s16523_s3 + $0xa0] sm:$0xff] }
 0x202   : > { %9120 = vmatmul.msk.f32.gmra.mxu1 %vm2362_vm0, %v12025_v30 }
 0x203   : > { %2520 = vmatmul.f32.gmra.mxu0 %v12035_v33 }
 0x204   : > { %2601 = vmatmul.f32.gmra.mxu2 %v12030_v31 }
 0x205   : > { %2344 = vperm.xlu0 %9685, %v2158_v4   ;;  %v2161_v4 = vld [vmem:[%s16523_s3 + $0x138] sm:$0xff] }
 0x20a   : > { %9121 = vmatmul.msk.f32.gmra.mxu1 %vm2362_vm0, %v12047_v25 }
 0x20b   : > { %2523 = vmatmul.f32.gmra.mxu0 %v12057_v27 }
 0x20c   : > { %2604 = vmatmul.f32.gmra.mxu2 %v12052_v59 }
 0x20d   : > { %2359 = vperm.xlu0 %9685, %v2161_v4  }
 0x212   : > { %9122 = vmatmul.msk.f32.gmra.mxu1 %vm2362_vm0, %v12069_v50 }
 0x213   : > { %2526 = vmatmul.f32.gmra.mxu0 %v12079_v51 }
 0x214   : > { %2607 = vmatmul.f32.gmra.mxu2 %v12074_v15 }
 0x21a   : > { %9123 = vmatmul.msk.f32.gmra.mxu1 %vm2362_vm0, %v12091_v55 }
 0x21b   : > { %2529 = vmatmul.f32.gmra.mxu0 %v12101_v60 }
 0x21c   : > { %2610 = vmatmul.f32.gmra.mxu2 %v12096_v32 }
 0x222   : > { %9124 = vmatmul.msk.f32.gmra.mxu1 %vm2362_vm0, %v12113_v40 }
 0x223   : > { %2532 = vmatmul.f32.gmra.mxu0 %v12123_v47 }
 0x224   : > { %2613 = vmatmul.f32.gmra.mxu2 %v12118_v58 }
 0x22a   : > { %9125 = vmatmul.msk.f32.gmra.mxu1 %vm2362_vm0, %v12135_v0 }
 0x22b   : > { %2535 = vmatmul.f32.gmra.mxu0 %v12145_v28 }
 0x22c   : > { %2616 = vmatmul.f32.gmra.mxu2 %v12140_v38 }
 0x232   : > { %9126 = vmatmul.msk.f32.gmra.mxu1 %vm2362_vm0, %v12157_v14 }
 0x233   : > { %2538 = vmatmul.f32.gmra.mxu0 %v12162_v36 }
 0x234   : > { %2773 = vmatmul.f32.vlgmr.msra.gmra.mxu2 %v11822_v8  ;;  %v2138_v8 = vld [vmem:[%s16523_s3 + $0x80] sm:$0xff] }
 0x235   : > { %2244 = vperm.xlu1 %9686, %v2138_v8   ;;  %v12298_v8 = vld [vmem:[%s16521_s1 + $0x130] sm:$0xff] }
 0x23a   : > { %9127 = vmatmul.msk.f32.gmra.mxu1 %vm2362_vm0, %v12174_v22 }
 0x23b   : > { %2541 = vmatmul.f32.gmra.mxu0 %v12179_v62 }
 0x23c   : > { %2776 = vmatmul.f32.gmra.mxu2 %v11856_v46  ;;  %v2136_v46 = vld [vmem:[%s16523_s3 + $0x70] sm:$0xff] }
 0x23d   : > { %2234 = vperm.xlu2 %9687, %v2136_v46  }
 0x242   : > { %9128 = vmatmul.msk.f32.gmra.mxu1 %vm2362_vm0, %v12196_v53 }
 0x243   : > { %2544 = vmatmul.f32.gmra.mxu0 %v12201_v18 }
 0x244   : > { %2779 = vmatmul.f32.gmra.mxu2 %v11895_v6  ;;  %v2141_v6 = vld [vmem:[%s16523_s3 + $0x98] sm:$0xff] }
 0x245   : > { %2259 = vperm.xlu1 %9686, %v2141_v6   ;;  %v12317_v6 = vld [vmem:[%s16521_s1 + $0x138] sm:$0xff] }
 0x24a   : > { %9129 = vmatmul.msk.f32.gmra.mxu1 %vm2362_vm0, %v12218_v26 }
 0x24b   : > { %2547 = vmatmul.f32.gmra.mxu0 %v12223_v43 }
 0x24c   : > { %2782 = vmatmul.f32.gmra.mxu2 %v11931_v34  ;;  %v2144_v34 = vld [vmem:[%s16523_s3 + $0xb0] sm:$0xff] }
 0x24d   : > { %2274 = vperm.xlu1 %9686, %v2144_v34   ;;  %v2153_v34 = vld [vmem:[%s16523_s3 + $0xf8] sm:$0xff] }
 0x24e   : > { %v12235_v12 = vpop.f32.mrf.mxu2 }
 0x24f   : > { %16542 = vst [vmem:[#allocation11_spill] sm:$0xff] %v12235_v12  ;;  %v12237_v17 = vpop.f32.mrf.mxu1  ;;  %v12370_v12 = vld [vmem:[%s16521_s1 + $0x158] sm:$0xff] }
 0x252   : > { %9130 = vmatmul.msk.f32.gmra.mxu1 %vm2362_vm0, %v12242_v10 }
 0x253   : > { %2550 = vmatmul.f32.gmra.mxu0 %v12247_v56 }
 0x254   : > { %2785 = vmatmul.f32.gmra.mxu2 %v11963_v16  ;;  %v2139_v16 = vld [vmem:[%s16523_s3 + $0x88] sm:$0xff] }
 0x255   : > { %2249 = vperm.xlu2 %9687, %v2139_v16   ;;  %2289 = vperm.xlu1 %9686, %v2147_v54  }
 0x257   : > { %v12259_v5 = vpop.f32.mrf.mxu2  ;;  %v12261_v3 = vpop.f32.mrf.mxu1 }
 0x258   : > { %16543 = vst [vmem:[#allocation12_spill] sm:$0xff] %v12259_v5 }
 0x25a   : > { %9131 = vmatmul.msk.f32.gmra.mxu1 %vm2362_vm0, %v12266_v9 }
 0x25b   : > { %2553 = vmatmul.f32.gmra.mxu0 %v12271_v41 }
 0x25c   : > { %2788 = vmatmul.f32.gmra.mxu2 %v11988_v19  ;;  %v2150_v19 = vld [vmem:[%s16523_s3 + $0xe0] sm:$0xff] }
 0x25d   : > { %2304 = vperm.xlu1 %9686, %v2150_v19   ;;  %v12346_v19 = vld [vmem:[%s16521_s1 + $0x150] sm:$0xff]  ;;  %2264 = vperm.xlu2 %9687, %v2142_v52   ;;  %v5207_v52 = vld [vmem:[%s16528_s8 + $0x28] sm:$0xff] }
 0x25f   : > { %v12286_v61 = vpop.f32.mrf.mxu2  ;;  %v12288_v44 = vpop.f32.mrf.mxu1 }
 0x260   : > { %16544 = vst [vmem:[#allocation13_spill] sm:$0xff] %v12286_v61 }
 0x262   : > { %9132 = vmatmul.msk.f32.gmra.mxu1 %vm2362_vm0, %v12293_v7 }
 0x263   : > { %2556 = vmatmul.f32.gmra.mxu0 %v12298_v8 }
 0x264   : > { %2791 = vmatmul.f32.gmra.mxu2 %v12013_v39  ;;  %v1996_v39 = vpop.f32.mrf.mxu3 }
 0x265   : > { %2319 = vperm.xlu1 %9686, %v2153_v34   ;;  %v2156_v34 = vld [vmem:[%s16523_s3 + $0x110] sm:$0xff] }
 0x267   : > { %v12310_v46 = vpop.f32.mrf.mxu2  ;;  %v12312_v35 = vpop.f32.mrf.mxu1 }
 0x268   : > { %16545 = vst [vmem:[#allocation14_spill] sm:$0xff] %v12310_v46 }
 0x26a   : > { %9133 = vmatmul.msk.f32.gmra.mxu1 %vm2362_vm0, %v12317_v6 }
 0x26b   : > { %2559 = vmatmul.f32.gmra.mxu0 %v12322_v20 }
 0x26c   : > { %2794 = vmatmul.f32.gmra.mxu2 %v12035_v33  ;;  %v1999_v33 = vpop.f32.mrf.mxu3 }
 0x26d   : > { %v2000_v46 = vadd.f32 %v1999_v33, %v12213_v23  ;;  %2334 = vperm.xlu1 %9686, %v2156_v34   ;;  %v5204_v23 = vld [vmem:[%s16528_s8 + $0x10] sm:$0xff]  ;;  %v5202_v33 = vld [vmem:[%s16528_s8] sm:$0xff]  ;;  %v12420_v34 = vpop.f32.mrf.mxu0 }
 0x26e   : > { %5234 = vperm.xlu0 %9685, %v5204_v23   ;;  %v2148_v23 = vld [vmem:[%s16523_s3 + $0xd0] sm:$0xff] }
 0x26f   : > { %v12334_v16 = vpop.f32.mrf.mxu2  ;;  %v12336_v54 = vpop.f32.mrf.mxu1  ;;  %9649 = vmatpush.msrb.mxu3 %v2000_v46  ;;  %2908 = vmatpush.msra.mxu1 %v2000_v46 }
 0x270   : > { %16546 = vst [vmem:[#allocation15_spill] sm:$0xff] %v12334_v16  ;;  %v1997_v16 = vadd.f32 %v1996_v39, %v12181_v63  ;;  %v2159_v63 = vld [vmem:[%s16523_s3 + $0x128] sm:$0xff] }
 0x271   : > { %v12396_v39 = vld [vmem:[%s16521_s1 + $0x168] sm:$0xff] }
 0x272   : > { %9134 = vmatmul.msk.f32.gmra.mxu1 %vm2362_vm0, %v12341_v1  ;;  %9650 = vmatpush.msrb.mxu3 %v1997_v16 }
 0x273   : > { %2562 = vmatmul.f32.gmra.mxu0 %v12346_v19  ;;  %9165 = vmatmul.msk.f32.vlgmr.msrb.gmra.mxu3 %vm2362_vm0, %v12135_v0 }
 0x274   : > { %2797 = vmatmul.f32.gmra.mxu2 %v12057_v27  ;;  %v12375_v27 = vld [vmem:[%s16521_s1 + $0x160] sm:$0xff]  ;;  %2909 = vmatpush.msra.mxu1 %v1997_v16  ;;  %v12401_v16 = vld [vmem:[%s16521_s1 + $0x170] sm:$0xff] }
 0x275   : > { %2349 = vperm.xlu1 %9686, %v2159_v63   ;;  %v12427_v63 = vld [vmem:[%s16521_s1 + $0x178] sm:$0xff] }
 0x276   : > { %5249 = vperm.xlu0 %9685, %v5207_v52  }
 0x277   : > { %v12363_v61 = vpop.f32.mrf.mxu2  ;;  %v12365_v5 = vpop.f32.mrf.mxu1 }
 0x278   : > { %16547 = vst [vmem:[#allocation16_spill] sm:$0xff] %v12363_v61  ;;  %v12487_v61 = vld [vmem:[%s16521_s1 + $0x198] sm:$0xff] }
 0x27a   : > { %9135 = vmatmul.msk.f32.gmra.mxu1 %vm2362_vm0, %v12370_v12 }
 0x27b   : > { %2565 = vmatmul.f32.gmra.mxu0 %v12375_v27  ;;  %9166 = vmatmul.msk.f32.gmra.mxu3 %vm2362_vm0, %v12157_v14 }
 0x27c   : > { %2800 = vmatmul.f32.gmra.mxu2 %v12079_v51  ;;  %v2145_v51 = vld [vmem:[%s16523_s3 + $0xb8] sm:$0xff] }
 0x27d   : > { %2279 = vperm.xlu2 %9687, %v2145_v51   ;;  %5224 = vperm.xlu1 %9686, %v5202_v33   ;;  %v5205_v51 = vld [vmem:[%s16528_s8 + $0x18] sm:$0xff]  ;;  %v5210_v33 = vld [vmem:[%s16528_s8 + $0x40] sm:$0xff] }
 0x27e   : > { %5264 = vperm.xlu0 %9685, %v5210_v33   ;;  %v5213_v33 = vld [vmem:[%s16528_s8 + $0x58] sm:$0xff] }
 0x27f   : > { %v12389_v46 = vpop.f32.mrf.mxu2  ;;  %v12391_v0 = vpop.f32.mrf.mxu1 }
 0x280   : > { %16548 = vst [vmem:[#allocation17_spill] sm:$0xff] %v12389_v46  ;;  %v12461_v46 = vld [vmem:[%s16521_s1 + $0x190] sm:$0xff] }
 0x282   : > { %9136 = vmatmul.msk.f32.gmra.mxu1 %vm2362_vm0, %v12396_v39 }
 0x283   : > { %2568 = vmatmul.f32.gmra.mxu0 %v12401_v16  ;;  %9167 = vmatmul.msk.f32.gmra.mxu3 %vm2362_vm0, %v12174_v22 }
 0x284   : > { %2803 = vmatmul.f32.gmra.mxu2 %v12101_v60  ;;  %v12432_v60 = vld [vmem:[%s16521_s1 + $0x180] sm:$0xff] }
 0x285   : > { %2294 = vperm.xlu2 %9687, %v2148_v23   ;;  %5239 = vperm.xlu1 %9686, %v5205_v51   ;;  %v2151_v23 = vld [vmem:[%s16523_s3 + $0xe8] sm:$0xff]  ;;  %v5208_v51 = vld [vmem:[%s16528_s8 + $0x30] sm:$0xff] }
 0x286   : > { %5279 = vperm.xlu0 %9685, %v5213_v33  }
 0x287   : > { %v12418_v14 = vpop.f32.mrf.mxu2  ;;  %v12422_v4 = vpop.f32.mrf.mxu1 }
 0x288   : > { %16549 = vst [vmem:[#allocation18_spill] sm:$0xff] %v12418_v14  ;;  %v12456_v14 = vld [vmem:[%s16521_s1 + $0x188] sm:$0xff] }
 0x289   : > { %16550 = vst [vmem:[#allocation19_spill] sm:$0xff] %v12422_v4 }
 0x28a   : > { %9137 = vmatmul.msk.f32.gmra.mxu1 %vm2362_vm0, %v12427_v63 }
 0x28b   : > { %2571 = vmatmul.f32.gmra.mxu0 %v12432_v60  ;;  %9168 = vmatmul.msk.f32.gmra.mxu3 %vm2362_vm0, %v12196_v53 }
 0x28c   : > { %2806 = vmatmul.f32.gmra.mxu2 %v12123_v47  ;;  %v12465_v47 = vpop.f32.mrf.mxu0 }
 0x28d   : > { %2309 = vperm.xlu2 %9687, %v2151_v23   ;;  %5254 = vperm.xlu1 %9686, %v5208_v51   ;;  %v5211_v23 = vld [vmem:[%s16528_s8 + $0x48] sm:$0xff]  ;;  %v5216_v51 = vld [vmem:[%s16528_s8 + $0x70] sm:$0xff] }
 0x28e   : > { %5294 = vperm.xlu0 %9685, %v5216_v51  }
 0x28f   : > { %v12449_v22 = vpop.f32.mrf.mxu2  ;;  %v12451_v52 = vpop.f32.mrf.mxu1 }
 0x290   : > { %16551 = vst [vmem:[#allocation20_spill] sm:$0xff] %v12449_v22 }
 0x291   : > { %16552 = vst [vmem:[#allocation21_spill] sm:$0xff] %v12451_v52  ;;  %v12492_v52 = vld [vmem:[%s16521_s1 + $0x1a0] sm:$0xff] }
 0x292   : > { %9138 = vmatmul.msk.f32.gmra.mxu1 %vm2362_vm0, %v12456_v14 }
 0x293   : > { %2574 = vmatmul.f32.gmra.mxu0 %v12461_v46  ;;  %9169 = vmatmul.msk.f32.gmra.mxu3 %vm2362_vm0, %v12218_v26 }
 0x294   : > { %2809 = vmatmul.f32.gmra.mxu2 %v12145_v28  ;;  %v2154_v28 = vld [vmem:[%s16523_s3 + $0x100] sm:$0xff]  ;;  %v12507_v33 = vpop.f32.mrf.mxu0 }
 0x295   : > { %2324 = vperm.xlu2 %9687, %v2154_v28   ;;  %5269 = vperm.xlu1 %9686, %v5211_v23   ;;  %v5214_v28 = vld [vmem:[%s16528_s8 + $0x60] sm:$0xff]  ;;  %v5219_v23 = vld [vmem:[%s16528_s8 + $0x88] sm:$0xff] }
 0x296   : > { %5309 = vperm.xlu0 %9685, %v5219_v23  }
 0x297   : > { %v12480_v53 = vpop.f32.mrf.mxu2  ;;  %v12482_v22 = vpop.f32.mrf.mxu1 }
 0x298   : > { %16553 = vst [vmem:[#allocation22_spill] sm:$0xff] %v12480_v53 }
 0x299   : > { %16554 = vst [vmem:[#allocation23_spill] sm:$0xff] %v12482_v22  ;;  %v12518_v22 = vld [vmem:[%s16521_s1 + $0x1a8] sm:$0xff] }
 0x29a   : > { %9139 = vmatmul.msk.f32.gmra.mxu1 %vm2362_vm0, %v12487_v61 }
 0x29b   : > { %2577 = vmatmul.f32.gmra.mxu0 %v12492_v52  ;;  %9170 = vmatmul.msk.f32.gmra.mxu3 %vm2362_vm0, %v12242_v10 }
 0x29c   : > { %2812 = vmatmul.f32.gmra.mxu2 %v12162_v36  ;;  %v2157_v36 = vld [vmem:[%s16523_s3 + $0x118] sm:$0xff] }
 0x29d   : > { %2339 = vperm.xlu2 %9687, %v2157_v36   ;;  %5284 = vperm.xlu1 %9686, %v5214_v28   ;;  %v5217_v36 = vld [vmem:[%s16528_s8 + $0x78] sm:$0xff] }
 0x29e   : > { %v7482_v28 = vld [vmem:[%s16533_s13 + $0x78] sm:$0xff] }
 0x29f   : > { %v12511_v26 = vpop.f32.mrf.mxu2  ;;  %v12513_v53 = vpop.f32.mrf.mxu1  ;;  %7576 = vperm.xlu0 %9685, %v7482_v28  }
 0x2a0   : > { %16555 = vst [vmem:[#allocation24_spill] sm:$0xff] %v12511_v26  ;;  %v12541_v26 = vld [vmem:[%s16521_s1 + $0x1b8] sm:$0xff] }
 0x2a1   : > { %16556 = vst [vmem:[#allocation25_spill] sm:$0xff] %v12513_v53 }
 0x2a2   : > { %9140 = vmatmul.msk.f32.gmra.mxu1 %vm2362_vm0, %v12518_v22 }
 0x2a3   : > { %9171 = vmatmul.msk.f32.gmra.mxu3 %vm2362_vm0, %v12266_v9 }
 0x2a4   : > { %2815 = vmatmul.f32.gmra.mxu2 %v12179_v62  ;;  %v2160_v62 = vld [vmem:[%s16523_s3 + $0x130] sm:$0xff] }
 0x2a5   : > { %2354 = vperm.xlu2 %9687, %v2160_v62   ;;  %5299 = vperm.xlu1 %9686, %v5217_v36   ;;  %v5220_v62 = vld [vmem:[%s16528_s8 + $0x90] sm:$0xff]  ;;  %v7479_v36 = vld [vmem:[%s16533_s13 + $0x60] sm:$0xff] }
 0x2a7   : > { %v12534_v10 = vpop.f32.mrf.mxu2  ;;  %v12536_v51 = vpop.f32.mrf.mxu1  ;;  %7561 = vperm.xlu0 %9685, %v7479_v36  }
 0x2a8   : > { %16557 = vst [vmem:[#allocation26_spill] sm:$0xff] %v12534_v10  ;;  %v12564_v10 = vld [vmem:[%s16521_s1 + $0x1c8] sm:$0xff] }
 0x2a9   : > { %16558 = vst [vmem:[#allocation27_spill] sm:$0xff] %v12536_v51 }
 0x2aa   : > { %9141 = vmatmul.msk.f32.gmra.mxu1 %vm2362_vm0, %v12541_v26 }
 0x2ab   : > { %9172 = vmatmul.msk.f32.gmra.mxu3 %vm2362_vm0, %v12293_v7 }
 0x2ac   : > { %2818 = vmatmul.f32.gmra.mxu2 %v12201_v18  ;;  %v5203_v18 = vld [vmem:[%s16528_s8 + $0x8] sm:$0xff] }
 0x2ad   : > { %5229 = vperm.xlu2 %9687, %v5203_v18   ;;  %5314 = vperm.xlu1 %9686, %v5220_v62   ;;  %v7481_v18 = vld [vmem:[%s16533_s13 + $0x70] sm:$0xff] }
 0x2ae   : > { %v7477_v62 = vld [vmem:[%s16533_s13 + $0x50] sm:$0xff] }
 0x2af   : > { %v12557_v9 = vpop.f32.mrf.mxu2  ;;  %v12559_v23 = vpop.f32.mrf.mxu1  ;;  %7551 = vperm.xlu0 %9685, %v7477_v62  }
 0x2b0   : > { %16559 = vst [vmem:[#allocation28_spill] sm:$0xff] %v12557_v9  ;;  %v12587_v9 = vld [vmem:[%s16521_s1 + $0x1d8] sm:$0xff] }
 0x2b1   : > { %16560 = vst [vmem:[#allocation29_spill] sm:$0xff] %v12559_v23  ;;  %v12775_v23 = vld [vmem:[%s16521_s1 + $0x258] sm:$0xff] }
 0x2b2   : > { %9142 = vmatmul.msk.f32.gmra.mxu1 %vm2362_vm0, %v12564_v10 }
 0x2b3   : > { %9173 = vmatmul.msk.f32.gmra.mxu3 %vm2362_vm0, %v12317_v6 }
 0x2b4   : > { %2821 = vmatmul.f32.gmra.mxu2 %v12223_v43  ;;  %v5206_v43 = vld [vmem:[%s16528_s8 + $0x20] sm:$0xff] }
 0x2b5   : > { %5244 = vperm.xlu2 %9687, %v5206_v43   ;;  %7571 = vperm.xlu1 %9686, %v7481_v18   ;;  %v7478_v43 = vld [vmem:[%s16533_s13 + $0x58] sm:$0xff]  ;;  %v7496_v18 = vld [vmem:[%s16533_s13 + $0xe8] sm:$0xff] }
 0x2b7   : > { %v12580_v7 = vpop.f32.mrf.mxu2  ;;  %v12582_v28 = vpop.f32.mrf.mxu1  ;;  %7646 = vperm.xlu0 %9685, %v7496_v18  }
 0x2b8   : > { %16561 = vst [vmem:[#allocation30_spill] sm:$0xff] %v12582_v28  ;;  %v12610_v28 = vld [vmem:[%s16521_s1 + $0x1e8] sm:$0xff] }
 0x2ba   : > { %9143 = vmatmul.msk.f32.gmra.mxu1 %vm2362_vm0, %v12587_v9 }
 0x2bb   : > { %9174 = vmatmul.msk.f32.gmra.mxu3 %vm2362_vm0, %v12341_v1 }
 0x2bc   : > { %2824 = vmatmul.f32.gmra.mxu2 %v12247_v56  ;;  %v5209_v56 = vld [vmem:[%s16528_s8 + $0x38] sm:$0xff] }
 0x2bd   : > { %5259 = vperm.xlu2 %9687, %v5209_v56   ;;  %7556 = vperm.xlu1 %9686, %v7478_v43   ;;  %v7497_v56 = vld [vmem:[%s16533_s13 + $0xf0] sm:$0xff]  ;;  %v7474_v43 = vld [vmem:[%s16533_s13 + $0x38] sm:$0xff] }
 0x2bf   : > { %v12603_v6 = vpop.f32.mrf.mxu2  ;;  %v12605_v36 = vpop.f32.mrf.mxu1  ;;  %7536 = vperm.xlu0 %9685, %v7474_v43  }
 0x2c0   : > { %16562 = vst [vmem:[#allocation31_spill] sm:$0xff] %v12603_v6 }
 0x2c1   : > { %16563 = vst [vmem:[#allocation32_spill] sm:$0xff] %v12605_v36  ;;  %v12633_v36 = vld [vmem:[%s16521_s1 + $0x1f8] sm:$0xff] }
 0x2c2   : > { %9144 = vmatmul.msk.f32.gmra.mxu1 %vm2362_vm0, %v12610_v28 }
 0x2c3   : > { %9175 = vmatmul.msk.f32.gmra.mxu3 %vm2362_vm0, %v12370_v12 }
 0x2c4   : > { %2827 = vmatmul.f32.gmra.mxu2 %v12271_v41  ;;  %v5212_v41 = vld [vmem:[%s16528_s8 + $0x50] sm:$0xff] }
 0x2c5   : > { %5274 = vperm.xlu2 %9687, %v5212_v41   ;;  %7651 = vperm.xlu1 %9686, %v7497_v56   ;;  %v7475_v41 = vld [vmem:[%s16533_s13 + $0x40] sm:$0xff]  ;;  %v7493_v56 = vld [vmem:[%s16533_s13 + $0xd0] sm:$0xff] }
 0x2c7   : > { %v12626_v1 = vpop.f32.mrf.mxu2  ;;  %v12628_v62 = vpop.f32.mrf.mxu1  ;;  %7631 = vperm.xlu0 %9685, %v7493_v56  }
 0x2c8   : > { %16564 = vst [vmem:[#allocation33_spill] sm:$0xff] %v12626_v1 }
 0x2c9   : > { %16565 = vst [vmem:[#allocation34_spill] sm:$0xff] %v12628_v62  ;;  %v12656_v62 = vld [vmem:[%s16521_s1 + $0x208] sm:$0xff] }
 0x2ca   : > { %9145 = vmatmul.msk.f32.gmra.mxu1 %vm2362_vm0, %v12633_v36 }
 0x2cb   : > { %9176 = vmatmul.msk.f32.gmra.mxu3 %vm2362_vm0, %v12396_v39 }
 0x2cc   : > { %2830 = vmatmul.f32.gmra.mxu2 %v12298_v8  ;;  %v5215_v8 = vld [vmem:[%s16528_s8 + $0x68] sm:$0xff] }
 0x2cd   : > { %5289 = vperm.xlu2 %9687, %v5215_v8   ;;  %7541 = vperm.xlu1 %9686, %v7475_v41   ;;  %v7494_v8 = vld [vmem:[%s16533_s13 + $0xd8] sm:$0xff]  ;;  %v7471_v41 = vld [vmem:[%s16533_s13 + $0x20] sm:$0xff] }
 0x2cf   : > { %v12649_v12 = vpop.f32.mrf.mxu2  ;;  %v12651_v18 = vpop.f32.mrf.mxu1  ;;  %7521 = vperm.xlu0 %9685, %v7471_v41  }
 0x2d0   : > { %16566 = vst [vmem:[#allocation35_spill] sm:$0xff] %v12649_v12 }
 0x2d1   : > { %16567 = vst [vmem:[#allocation36_spill] sm:$0xff] %v12651_v18  ;;  %v12679_v18 = vld [vmem:[%s16521_s1 + $0x218] sm:$0xff] }
 0x2d2   : > { %9146 = vmatmul.msk.f32.gmra.mxu1 %vm2362_vm0, %v12656_v62 }
 0x2d3   : > { %9177 = vmatmul.msk.f32.gmra.mxu3 %vm2362_vm0, %v12427_v63 }
 0x2d4   : > { %2833 = vmatmul.f32.gmra.mxu2 %v12322_v20  ;;  %v5218_v20 = vld [vmem:[%s16528_s8 + $0x80] sm:$0xff] }
 0x2d5   : > { %5304 = vperm.xlu2 %9687, %v5218_v20   ;;  %7636 = vperm.xlu1 %9686, %v7494_v8   ;;  %v7472_v20 = vld [vmem:[%s16533_s13 + $0x28] sm:$0xff]  ;;  %v7490_v8 = vld [vmem:[%s16533_s13 + $0xb8] sm:$0xff] }
 0x2d7   : > { %v12672_v39 = vpop.f32.mrf.mxu2  ;;  %v12674_v43 = vpop.f32.mrf.mxu1  ;;  %7616 = vperm.xlu0 %9685, %v7490_v8  }
 0x2d8   : > { %16568 = vst [vmem:[#allocation37_spill] sm:$0xff] %v12672_v39  ;;  %v12830_v39 = vld [vmem:[%s16521_s1 + $0x278] sm:$0xff] }
 0x2d9   : > { %16569 = vst [vmem:[#allocation38_spill] sm:$0xff] %v12674_v43  ;;  %v12702_v43 = vld [vmem:[%s16521_s1 + $0x228] sm:$0xff] }
 0x2da   : > { %9147 = vmatmul.msk.f32.gmra.mxu1 %vm2362_vm0, %v12679_v18 }
 0x2db   : > { %9178 = vmatmul.msk.f32.gmra.mxu3 %vm2362_vm0, %v12456_v14 }
 0x2dc   : > { %2836 = vmatmul.f32.gmra.mxu2 %v12346_v19  ;;  %v5221_v19 = vld [vmem:[%s16528_s8 + $0x98] sm:$0xff] }
 0x2dd   : > { %5319 = vperm.xlu2 %9687, %v5221_v19   ;;  %7526 = vperm.xlu1 %9686, %v7472_v20   ;;  %v7491_v19 = vld [vmem:[%s16533_s13 + $0xc0] sm:$0xff]  ;;  %v7468_v20 = vld [vmem:[%s16533_s13 + $0x8] sm:$0xff] }
 0x2df   : > { %v12695_v63 = vpop.f32.mrf.mxu2  ;;  %v12697_v56 = vpop.f32.mrf.mxu1  ;;  %7506 = vperm.xlu0 %9685, %v7468_v20  }
 0x2e0   : > { %16570 = vst [vmem:[#allocation39_spill] sm:$0xff] %v12695_v63  ;;  %v12763_v20 = vpop.permute.xlu0 %2164  ;;  %v12804_v63 = vld [vmem:[%s16521_s1 + $0x268] sm:$0xff] }
 0x2e1   : > { %16571 = vst [vmem:[#allocation40_spill] sm:$0xff] %v12697_v56  ;;  %v12725_v56 = vld [vmem:[%s16521_s1 + $0x238] sm:$0xff] }
 0x2e2   : > { %9148 = vmatmul.msk.f32.gmra.mxu1 %vm2362_vm0, %v12702_v43 }
 0x2e3   : > { %9179 = vmatmul.msk.f32.gmra.mxu3 %vm2362_vm0, %v12487_v61 }
 0x2e4   : > { %2839 = vmatmul.f32.gmra.mxu2 %v12375_v27  ;;  %v7480_v27 = vld [vmem:[%s16533_s13 + $0x68] sm:$0xff] }
 0x2e5   : > { %7566 = vperm.xlu2 %9687, %v7480_v27   ;;  %7621 = vperm.xlu1 %9686, %v7491_v19   ;;  %v7469_v27 = vld [vmem:[%s16533_s13 + $0x10] sm:$0xff]  ;;  %v7487_v19 = vld [vmem:[%s16533_s13 + $0xa0] sm:$0xff] }
 0x2e7   : > { %v12718_v14 = vpop.f32.mrf.mxu2  ;;  %v12720_v41 = vpop.f32.mrf.mxu1  ;;  %7601 = vperm.xlu0 %9685, %v7487_v19  }
 0x2e8   : > { %16572 = vst [vmem:[#allocation41_spill] sm:$0xff] %v12718_v14  ;;  %v12790_v19 = vpop.permute.xlu1 %2174 }
 0x2e9   : > { %16573 = vst [vmem:[#allocation42_spill] sm:$0xff] %v12720_v41  ;;  %v12748_v41 = vld [vmem:[%s16521_s1 + $0x248] sm:$0xff] }
 0x2ea   : > { %9149 = vmatmul.msk.f32.gmra.mxu1 %vm2362_vm0, %v12725_v56 }
 0x2eb   : > { %9180 = vmatmul.msk.f32.gmra.mxu3 %vm2362_vm0, %v12518_v22  ;;  %v12766_v22 = vpop.permute.xlu2 %2184 }
 0x2ec   : > { %2842 = vmatmul.f32.gmra.mxu2 %v12401_v16  ;;  %v7498_v16 = vld [vmem:[%s16533_s13 + $0xf8] sm:$0xff] }
 0x2ed   : > { %7656 = vperm.xlu2 %9687, %v7498_v16   ;;  %7511 = vperm.xlu1 %9686, %v7469_v27   ;;  %v7488_v16 = vld [vmem:[%s16533_s13 + $0xa8] sm:$0xff] }
 0x2ee   : > { %v7484_v27 = vld [vmem:[%s16533_s13 + $0x88] sm:$0xff] }
 0x2ef   : > { %v12741_v61 = vpop.f32.mrf.mxu2  ;;  %v12743_v8 = vpop.f32.mrf.mxu1  ;;  %7586 = vperm.xlu0 %9685, %v7484_v27  }
 0x2f0   : > { %16574 = vst [vmem:[#allocation43_spill] sm:$0xff] %v12741_v61  ;;  %v12817_v27 = vpop.permute.xlu1 %2179 }
 0x2f1   : > { %16575 = vst [vmem:[#allocation44_spill] sm:$0xff] %v12743_v8 }
 0x2f2   : > { %9150 = vmatmul.msk.f32.gmra.mxu1 %vm2362_vm0, %v12748_v41 }
 0x2f3   : > { %9181 = vmatmul.msk.f32.gmra.mxu3 %vm2362_vm0, %v12541_v26 }
 0x2f4   : > { %2845 = vmatmul.f32.gmra.mxu2 %v12432_v60  ;;  %v7476_v60 = vld [vmem:[%s16533_s13 + $0x48] sm:$0xff] }
 0x2f5   : > { %7546 = vperm.xlu2 %9687, %v7476_v60   ;;  %7606 = vperm.xlu1 %9686, %v7488_v16   ;;  %v7486_v60 = vld [vmem:[%s16533_s13 + $0x98] sm:$0xff] }
 0x2f6   : > { %v2944_v26 = vpop.f32.mrf.mxu3 }
 0x2f7   : > { %v12768_v8 = vpop.f32.mrf.mxu2  ;;  %v12770_v61 = vpop.f32.mrf.mxu1 }
 0x2f8   : > { %16576 = vst [vmem:[#allocation45_spill] sm:$0xff] %v12768_v8  ;;  %v12795_v8 = vpop.permute.xlu2 %2189 }
 0x2f9   : > { %16577 = vst [vmem:[#allocation46_spill] sm:$0xff] %v12770_v61  ;;  %v12793_v61 = vpop.permute.xlu0 %2169 }
 0x2fa   : > { %9151 = vmatmul.msk.f32.gmra.mxu1 %vm2362_vm0, %v12775_v23 }
 0x2fb   : > { %9182 = vmatmul.msk.f32.gmra.mxu3 %vm2362_vm0, %v12564_v10 }
 0x2fc   : > { %2848 = vmatmul.f32.gmra.mxu2 %v12461_v46  ;;  %v7495_v46 = vld [vmem:[%s16533_s13 + $0xe0] sm:$0xff] }
 0x2fd   : > { %7641 = vperm.xlu2 %9687, %v7495_v46   ;;  %7596 = vperm.xlu1 %9686, %v7486_v60   ;;  %v7483_v46 = vld [vmem:[%s16533_s13 + $0x80] sm:$0xff]  ;;  %v9694_v60 = vld [vmem:[%s16521_s1 + $0x1b0] sm:$0xff] }
 0x2fe   : > { %v2947_v16 = vpop.f32.mrf.mxu3 }
 0x2ff   : > { %v12797_v14 = vpop.f32.mrf.mxu2  ;;  %v12799_v51 = vpop.f32.mrf.mxu1 }
 0x300   : > { %16578 = vst [vmem:[#allocation47_spill] sm:$0xff] %v12797_v14  ;;  %v12821_v10 = vpop.permute.xlu2 %2204 }
 0x301   : > { %16579 = vst [vmem:[#allocation48_spill] sm:$0xff] %v12799_v51  ;;  %v12819_v51 = vpop.permute.xlu0 %2194 }
 0x302   : > { %9152 = vmatmul.msk.f32.gmra.mxu1 %vm2362_vm0, %v12804_v63  ;;  %16580 = vst [vmem:[#allocation49_spill] sm:$0xff] %v12821_v10 }
 0x303   : > { %9183 = vmatmul.msk.f32.gmra.mxu3 %vm2362_vm0, %v12587_v9  ;;  %v12845_v9 = vpop.permute.xlu1 %2199 }
 0x304   : > { %2851 = vmatmul.f32.gmra.mxu2 %v12492_v52  ;;  %v7473_v52 = vld [vmem:[%s16533_s13 + $0x30] sm:$0xff] }
 0x305   : > { %7531 = vperm.xlu2 %9687, %v7473_v52   ;;  %7581 = vperm.xlu1 %9686, %v7483_v46   ;;  %v7492_v52 = vld [vmem:[%s16533_s13 + $0xc8] sm:$0xff] }
 0x307   : > { %v12823_v14 = vpop.f32.mrf.mxu2  ;;  %v12825_v53 = vpop.f32.mrf.mxu1 }
 0x308   : > { %16581 = vst [vmem:[#allocation50_spill] sm:$0xff] %v12823_v14  ;;  %v12849_v12 = vpop.permute.xlu2 %2219 }
 0x309   : > { %16582 = vst [vmem:[#allocation51_spill] sm:$0xff] %v12825_v53  ;;  %v2950_v53 = vpop.f32.mrf.mxu3  ;;  %v12847_v14 = vpop.permute.xlu0 %2209 }
 0x30a   : > { %9153 = vmatmul.msk.f32.gmra.mxu1 %vm2362_vm0, %v12830_v39  ;;  %16583 = vst [vmem:[#allocation52_spill] sm:$0xff] %v12849_v12 }
 0x30b   : > { %9184 = vmatmul.msk.f32.gmra.mxu3 %vm2362_vm0, %v12610_v28  ;;  %v12864_v46 = vpop.permute.xlu1 %2214 }
 0x30c   : > { %2854 = vmatmul.f32.gmra.mxu2 %v9694_v60 }
 0x30d   : > { %7626 = vperm.xlu2 %9687, %v7492_v52  }
 0x30f   : > { %v2807_v10 = vpop.f32.mrf.mxu2  ;;  %v12851_v1 = vpop.f32.mrf.mxu1 }
 0x310   : > { %16584 = vst [vmem:[#allocation53_spill] sm:$0xff] %v12851_v1  ;;  %v2808_v4 = vadd.f32 %v2807_v10, %v12849_v12 }
 0x311   : > { %v2953_v60 = vpop.f32.mrf.mxu3  ;;  %v12866_v1 = vpop.permute.xlu0 %2224 }
 0x312   : > { %v12856_v6 = vadd.f32 %v2944_v26, %v2808_v4  ;;  %9154 = vmatmul.msk.f32.vlgmr.msra.gmra.mxu1 %vm2362_vm0, %v11844_v2 }
 0x313   : > { %9185 = vmatmul.msk.f32.gmra.mxu3 %vm2362_vm0, %v12633_v36  ;;  %v12881_v28 = vpop.permute.xlu1 %2229 }
 0x314   : > { %2857 = vmatmul.f32.gmra.mxu2 %v11851_v24  ;;  %v7470_v24 = vld [vmem:[%s16533_s13 + $0x18] sm:$0xff] }
 0x315   : > { %7516 = vperm.xlu2 %9687, %v7470_v24  }
 0x317   : > { %v2810_v10 = vpop.f32.mrf.mxu2  ;;  %v12868_v12 = vpop.f32.mrf.mxu1 }
 0x318   : > { %v2811_v4 = vadd.f32 %v2810_v10, %v12866_v1 }
 0x319   : > { %v2956_v36 = vpop.f32.mrf.mxu3 }
 0x31a   : > { %v12873_v2 = vadd.f32 %v2947_v16, %v2811_v4  ;;  %9155 = vmatmul.msk.f32.gmra.mxu1 %vm2362_vm0, %v11883_v21  ;;  %v7489_v21 = vld [vmem:[%s16533_s13 + $0xb0] sm:$0xff] }
 0x31b   : > { %9186 = vmatmul.msk.f32.gmra.mxu3 %vm2362_vm0, %v12656_v62  ;;  %v3126_v62 = vld [vmem:[%s16524_s4 + $0x78] sm:$0xff] }
 0x31c   : > { %2860 = vmatmul.f32.gmra.mxu2 %v11890_v37  ;;  %v12896_v37 = vpop.permute.xlu2 %2234  ;;  %3143 = vmatpush.msrb.mxu1 %v3126_v62  ;;  %v3122_v62 = vld [vmem:[%s16524_s4 + $0x58] sm:$0xff] }
 0x31d   : > { %7611 = vperm.xlu2 %9687, %v7489_v21  }
 0x31f   : > { %v2813_v26 = vpop.f32.mrf.mxu2  ;;  %v12883_v52 = vpop.f32.mrf.mxu1 }
 0x320   : > { %v2814_v10 = vadd.f32 %v2813_v26, %v12881_v28 }
 0x322   : > { %v12888_v16 = vadd.f32 %v2950_v53, %v2814_v10  ;;  %9156 = vmatmul.msk.f32.gmra.mxu1 %vm2362_vm0, %v11919_v29  ;;  %v12905_v29 = vpop.f32.mrf.mxu3  ;;  %v3124_v10 = vld [vmem:[%s16524_s4 + $0x68] sm:$0xff] }
 0x323   : > { %9187 = vmatmul.msk.f32.gmra.mxu3 %vm2362_vm0, %v12679_v18  ;;  %v3125_v18 = vld [vmem:[%s16524_s4 + $0x70] sm:$0xff] }
 0x324   : > { %2863 = vmatmul.f32.gmra.mxu2 %v11926_v42  ;;  %v7467_v42 = vld [vmem:[%s16533_s13] sm:$0xff]  ;;  %3144 = vmatpush.msrb.mxu1 %v3125_v18 }
 0x325   : > { %7501 = vperm.xlu2 %9687, %v7467_v42   ;;  %v7485_v42 = vld [vmem:[%s16533_s13 + $0x90] sm:$0xff] }
 0x326   : > { %3145 = vmatpush.msrb.mxu1 %v3124_v10  ;;  %v3117_v10 = vld [vmem:[%s16524_s4 + $0x30] sm:$0xff] }
 0x327   : > { %v2816_v4 = vpop.f32.mrf.mxu2  ;;  %v12898_v24 = vpop.f32.mrf.mxu1 }
 0x328   : > { %v2817_v26 = vadd.f32 %v2816_v4, %v12896_v37 }
 0x32a   : > { %v12903_v53 = vadd.f32 %v2953_v60, %v2817_v26  ;;  %9157 = vmatmul.msk.f32.gmra.mxu1 %vm2362_vm0, %v11950_v45  ;;  %v12919_v60 = vpop.permute.xlu0 %2239 }
 0x32b   : > { %9188 = vmatmul.msk.f32.gmra.mxu3 %vm2362_vm0, %v12702_v43  ;;  %v12943_v43 = vpop.f32.mrf.mxu3 }
 0x32c   : > { %2866 = vmatmul.f32.gmra.mxu2 %v11958_v13  ;;  %v3123_v13 = vld [vmem:[%s16524_s4 + $0x60] sm:$0xff] }
 0x32d   : > { %3146 = vmatpush.msrb.mxu1 %v3123_v13  ;;  %7591 = vperm.xlu2 %9687, %v7485_v42   ;;  %v3113_v42 = vld [vmem:[%s16524_s4 + $0x10] sm:$0xff] }
 0x32f   : > { %v2819_v45 = vpop.f32.mrf.mxu2  ;;  %v12924_v21 = vpop.f32.mrf.mxu1  ;;  %3147 = vmatpush.msrb.mxu1 %v3122_v62  ;;  %v3112_v62 = vld [vmem:[%s16524_s4 + $0x8] sm:$0xff] }
 0x330   : > { %v2820_v4 = vadd.f32 %v2819_v45, %v12919_v60  ;;  %v3118_v45 = vld [vmem:[%s16524_s4 + $0x38] sm:$0xff] }
 0x332   : > { %v12932_v26 = vadd.f32 %v2956_v36, %v2820_v4  ;;  %9158 = vmatmul.msk.f32.gmra.mxu1 %vm2362_vm0, %v11977_v11  ;;  %v3121_v36 = vld [vmem:[%s16524_s4 + $0x50] sm:$0xff]  ;;  %v3120_v11 = vld [vmem:[%s16524_s4 + $0x48] sm:$0xff] }
 0x333   : > { %3148 = vmatpush.msrb.mxu1 %v3121_v36  ;;  %9189 = vmatmul.msk.f32.gmra.mxu3 %vm2362_vm0, %v12725_v56  ;;  %v12967_v56 = vpop.f32.mrf.mxu3  ;;  %v3116_v4 = vld [vmem:[%s16524_s4 + $0x28] sm:$0xff] }
 0x334   : > { %2869 = vmatmul.f32.gmra.mxu2 %v11983_v57  ;;  %v3119_v57 = vld [vmem:[%s16524_s4 + $0x40] sm:$0xff] }
 0x335   : > { %3149 = vmatpush.msrb.mxu1 %v3120_v11 }
 0x337   : > { %v12951_v18 = vpop.f32.mrf.mxu1  ;;  %3150 = vmatpush.msrb.mxu1 %v3119_v57 }
 0x339   : > { %3151 = vmatpush.msrb.mxu1 %v3118_v45 }
 0x33a   : > { %9159 = vmatmul.msk.f32.gmra.mxu1 %vm2362_vm0, %v12003_v48  ;;  %v3115_v48 = vld [vmem:[%s16524_s4 + $0x20] sm:$0xff] }
 0x33b   : > { %3152 = vmatpush.msrb.mxu1 %v3117_v10  ;;  %9190 = vmatmul.msk.f32.gmra.mxu3 %vm2362_vm0, %v12748_v41  ;;  %v12988_v41 = vpop.f32.mrf.mxu0 }
 0x33c   : > { %2872 = vmatmul.f32.gmra.mxu2 %v12008_v49  ;;  %v3114_v49 = vld [vmem:[%s16524_s4 + $0x18] sm:$0xff] }
 0x33d   : > { %3153 = vmatpush.msrb.mxu1 %v3116_v4  ;;  %v3137_v4 = vld [vmem:[%s16524_s4 + $0xd0] sm:$0xff] }
 0x33f   : > { %v12972_v13 = vpop.f32.mrf.mxu1  ;;  %3154 = vmatpush.msrb.mxu1 %v3115_v48 }
 0x341   : > { %3155 = vmatpush.msrb.mxu1 %v3114_v49  ;;  %v3135_v49 = vld [vmem:[%s16524_s4 + $0xc0] sm:$0xff] }
 0x342   : > { %9160 = vmatmul.msk.f32.gmra.mxu1 %vm2362_vm0, %v12025_v30  ;;  %v12995_v30 = vpop.f32.mrf.mxu3 }
 0x343   : > { %3156 = vmatpush.msrb.mxu1 %v3113_v42  ;;  %9191 = vmatmul.msk.f32.gmra.mxu3 %vm2362_vm0, %v12775_v23  ;;  %v13007_v57 = vpop.f32.mrf.mxu0  ;;  %v3134_v42 = vld [vmem:[%s16524_s4 + $0xb8] sm:$0xff] }
 0x344   : > { %2875 = vmatmul.f32.gmra.mxu2 %v12030_v31  ;;  %v3111_v31 = vld [vmem:[%s16524_s4] sm:$0xff] }
 0x345   : > { %3157 = vmatpush.msrb.mxu1 %v3112_v62 }
 0x347   : > { %v12993_v36 = vpop.f32.mrf.mxu1  ;;  %3158 = vmatpush.msrb.mxu1 %v3111_v31 }
 0x34a   : > { %9161 = vmatmul.msk.f32.gmra.mxu1 %vm2362_vm0, %v12047_v25  ;;  %v13011_v45 = vpop.f32.mrf.mxu3  ;;  %v3142_v25 = vld [vmem:[%s16524_s4 + $0xf8] sm:$0xff] }
 0x34b   : > { %9192 = vmatmul.msk.f32.gmra.mxu3 %vm2362_vm0, %v12804_v63  ;;  %v3139_v63 = vld [vmem:[%s16524_s4 + $0xe0] sm:$0xff] }
 0x34c   : > { %2878 = vmatmul.f32.gmra.mxu2 %v12052_v59  ;;  %3280 = vmatpush.msra.mxu3 %v3142_v25  ;;  %v3141_v59 = vld [vmem:[%s16524_s4 + $0xf0] sm:$0xff] }
 0x34e   : > { %3281 = vmatpush.msra.mxu3 %v3141_v59 }
 0x34f   : > { %v13005_v11 = vpop.f32.mrf.mxu1 }
 0x352   : > { %9162 = vmatmul.msk.f32.gmra.mxu1 %vm2362_vm0, %v12069_v50  ;;  %v3140_v50 = vld [vmem:[%s16524_s4 + $0xe8] sm:$0xff]  ;;  %v13037_v10 = vpop.f32.mrf.mxu3 }
 0x353   : > { %9193 = vmatmul.msk.f32.gmra.mxu3 %vm2362_vm0, %v12830_v39  ;;  %v3138_v39 = vld [vmem:[%s16524_s4 + $0xd8] sm:$0xff] }
 0x354   : > { %2881 = vmatmul.f32.gmra.mxu2 %v12074_v15  ;;  %3282 = vmatpush.msra.mxu3 %v3140_v50  ;;  %v13029_v15 = vpop.f32.mrf.mxu0  ;;  %v3132_v50 = vld [vmem:[%s16524_s4 + $0xa8] sm:$0xff] }
 0x356   : > { %3283 = vmatpush.msra.mxu3 %v3139_v63  ;;  %v3130_v63 = vld [vmem:[%s16524_s4 + $0x98] sm:$0xff] }
 0x357   : > { %v13022_v23 = vpop.f32.mrf.mxu1 }
 0x358   : > { %3284 = vmatpush.msra.mxu3 %v3138_v39 }
 0x35a   : > { %9163 = vmatmul.msk.f32.gmra.mxu1 %vm2362_vm0, %v12091_v55  ;;  %3285 = vmatpush.msra.mxu3 %v3137_v4  ;;  %v2501_v55 = vadd.f32 %v12420_v34, %v12763_v20  ;;  %v13062_v31 = vpop.f32.mrf.mxu3  ;;  %v3129_v4 = vld [vmem:[%s16524_s4 + $0x90] sm:$0xff] }
 0x35c   : > { %2884 = vmatmul.f32.gmra.mxu2 %v12096_v32  ;;  %v3136_v32 = vld [vmem:[%s16524_s4 + $0xc8] sm:$0xff]  ;;  %v2638_v34 = vadd.f32 %v12237_v17, %v2501_v55  ;;  %v2518_v62 = vpop.f32.mrf.mxu0  ;;  %v3131_v17 = vld [vmem:[%s16524_s4 + $0xa0] sm:$0xff] }
 0x35d   : > { %3286 = vmatpush.msra.mxu3 %v3136_v32 }
 0x35e   : > { %v3031_v59 = vmax.f32 %v2638_v34, 0.0 }
 0x35f   : > { %v13045_v48 = vpop.f32.mrf.mxu1  ;;  %3287 = vmatpush.msra.mxu3 %v3135_v49 }
 0x361   : > { %3288 = vmatpush.msra.mxu3 %v3134_v42  ;;  %v3128_v42 = vld [vmem:[%s16524_s4 + $0x88] sm:$0xff] }
 0x362   : > { %9164 = vmatmul.msk.f32.gmra.mxu1 %vm2362_vm0, %v12113_v40  ;;  %v3133_v40 = vld [vmem:[%s16524_s4 + $0xb0] sm:$0xff]  ;;  %v13087_v32 = vpop.f32.mrf.mxu3 }
 0x363   : > { %3289 = vmatpush.msra.mxu3 %v3133_v40 }
 0x364   : > { %2887 = vmatmul.f32.gmra.mxu2 %v12118_v58  ;;  %v2504_v58 = vadd.f32 %v12465_v47, %v12793_v61  ;;  %v2521_v47 = vpop.f32.mrf.mxu0 }
 0x365   : > { %3290 = vmatpush.msra.mxu3 %v3132_v50 }
 0x366   : > { %v2641_v39 = vadd.f32 %v12261_v3, %v2504_v58  ;;  %v3127_v3 = vld [vmem:[%s16524_s4 + $0x80] sm:$0xff]  ;;  %v2510_v58 = vadd.f32 %v12988_v41, %v12817_v27 }
 0x367   : > { %v13067_v25 = vpop.f32.mrf.mxu1  ;;  %3291 = vmatpush.msra.mxu3 %v3131_v17 }
 0x368   : > { %v3033_v49 = vmax.f32 %v2641_v39, 0.0  ;;  %v2647_v17 = vadd.f32 %v12312_v35, %v2510_v58 }
 0x369   : > { %3292 = vmatpush.msra.mxu3 %v3130_v63 }
 0x36a   : > { %3159 = vmatmul.f32.vlgmr.msrb.gmra.mxu1 %v3031_v59  ;;  %v13102_v50 = vpop.f32.mrf.mxu3  ;;  %v3037_v39 = vmax.f32 %v2647_v17, 0.0 }
 0x36b   : > { %3293 = vmatpush.msra.mxu3 %v3129_v4  ;;  %v2513_v4 = vadd.f32 %v13007_v57, %v12766_v22 }
 0x36c   : > { %2890 = vmatmul.f32.gmra.mxu2 %v12140_v38  ;;  %v2507_v38 = vadd.f32 %v12507_v33, %v12790_v19  ;;  %v2524_v33 = vpop.f32.mrf.mxu0 }
 0x36d   : > { %3294 = vmatpush.msra.mxu3 %v3128_v42 }
 0x36e   : > { %v2644_v34 = vadd.f32 %v12288_v44, %v2507_v38  ;;  %v2650_v38 = vadd.f32 %v12336_v54, %v2513_v4 }
 0x36f   : > { %v13085_v55 = vpop.f32.mrf.mxu1  ;;  %3295 = vmatpush.msra.mxu3 %v3127_v3  ;;  %v2516_v3 = vadd.f32 %v13029_v15, %v12795_v8 }
 0x370   : > { %v3035_v59 = vmax.f32 %v2644_v34, 0.0  ;;  %v3039_v41 = vmax.f32 %v2650_v38, 0.0 }
 0x371   : > { %v2653_v35 = vadd.f32 %v12365_v5, %v2516_v3 }
 0x372   : > { %3162 = vmatmul.f32.gmra.mxu1 %v3033_v49  ;;  %v13109_v44 = vpop.f32.mrf.mxu3 }
 0x373   : > { %v3041_v17 = vmax.f32 %v2653_v35, 0.0 }
 0x374   : > { %v2527_v49 = vpop.f32.mrf.mxu0 }
 0x377   : > { %v13098_v40 = vpop.f32.mrf.mxu1 }
 0x378   : > { %16585 = vst [vmem:[#allocation54_spill] sm:$0xff] %v13098_v40 }
 0x37a   : > { %3165 = vmatmul.f32.gmra.mxu1 %v3035_v59  ;;  %v2775_v59 = vadd.f32 %v12580_v7, %v12763_v20  ;;  %v13119_v57 = vpop.f32.mrf.mxu3  ;;  %v2522_v20 = vadd.f32 %v2521_v47, %v12845_v9  ;;  %v16592_v47 = vld [vmem:[#allocation21_spill] sm:$0xff] }
 0x37c   : > { %v2530_v34 = vpop.f32.mrf.mxu0 }
 0x37f   : > { %v13105_v63 = vpop.f32.mrf.mxu1 }
 0x380   : > { %16586 = vst [vmem:[#allocation55_spill] sm:$0xff] %v13105_v63 }
 0x382   : > { %3168 = vmatmul.f32.gmra.mxu1 %v3037_v39  ;;  %v2519_v39 = vadd.f32 %v2518_v62, %v12819_v51  ;;  %v13125_v3 = vpop.f32.mrf.mxu3  ;;  %v16589_v62 = vld [vmem:[#allocation19_spill] sm:$0xff] }
 0x384   : > { %v2656_v38 = vadd.f32 %v12391_v0, %v2519_v39  ;;  %v2533_v15 = vpop.f32.mrf.mxu0 }
 0x386   : > { %v3043_v7 = vmax.f32 %v2656_v38, 0.0 }
 0x387   : > { %v13112_v42 = vpop.f32.mrf.mxu1 }
 0x388   : > { %16587 = vst [vmem:[#allocation56_spill] sm:$0xff] %v13112_v42 }
 0x38a   : > { %3171 = vmatmul.f32.gmra.mxu1 %v3039_v41  ;;  %v16588_v41 = vld [vmem:[#allocation31_spill] sm:$0xff]  ;;  %v13132_v40 = vpop.f32.mrf.mxu3 }
 0x38b   : > { %v2778_v5 = vadd.f32 %v16588_v41, %v12793_v61 }
 0x38c   : > { %v2536_v61 = vpop.f32.mrf.mxu0 }
 0x38f   : > { %v2911_v58 = vpop.f32.mrf.mxu1 }
 0x390   : > { %v2912_v54 = vadd.f32 %v2911_v58, %v2775_v59  ;;  %v2659_v59 = vadd.f32 %v16589_v62, %v2522_v20  ;;  %v16590_v58 = vld [vmem:[#allocation33_spill] sm:$0xff] }
 0x392   : > { %v3032_v4 = vmax.f32 %v2912_v54, 0.0  ;;  %3174 = vmatmul.f32.gmra.mxu1 %v3041_v17  ;;  %v2781_v17 = vadd.f32 %v16590_v58, %v12790_v19  ;;  %v3045_v39 = vmax.f32 %v2659_v59, 0.0  ;;  %v16591_v54 = vld [vmem:[#allocation49_spill] sm:$0xff]  ;;  %v2528_v19 = vadd.f32 %v2527_v49, %v12847_v14  ;;  %v16594_v58 = vld [vmem:[#allocation23_spill] sm:$0xff] }
 0x393   : > { %v16596_v49 = vld [vmem:[#allocation25_spill] sm:$0xff] }
 0x394   : > { %3296 = vmatmul.f32.vlgmr.msra.gmra.mxu3 %v3032_v4  ;;  %v2525_v4 = vadd.f32 %v2524_v33, %v16591_v54  ;;  %v2539_v62 = vpop.f32.mrf.mxu0  ;;  %v13138_v33 = vpop.f32.mrf.mxu3 }
 0x397   : > { %v2914_v42 = vpop.f32.mrf.mxu1 }
 0x398   : > { %v2915_v63 = vadd.f32 %v2914_v42, %v2778_v5  ;;  %v2662_v42 = vadd.f32 %v16592_v47, %v2525_v4 }
 0x39a   : > { %v3034_v35 = vmax.f32 %v2915_v63, 0.0  ;;  %3177 = vmatmul.f32.gmra.mxu1 %v3043_v7  ;;  %v16593_v63 = vld [vmem:[#allocation35_spill] sm:$0xff]  ;;  %v3047_v20 = vmax.f32 %v2662_v42, 0.0 }
 0x39b   : > { %v2784_v5 = vadd.f32 %v16593_v63, %v12817_v27  ;;  %v2531_v27 = vadd.f32 %v2530_v34, %v12864_v46  ;;  %v16599_v34 = vld [vmem:[#allocation27_spill] sm:$0xff] }
 0x39c   : > { %3299 = vmatmul.f32.gmra.mxu3 %v3034_v35  ;;  %v2542_v63 = vpop.f32.mrf.mxu0 }
 0x39d   : > { %v2668_v42 = vadd.f32 %v16596_v49, %v2531_v27 }
 0x39f   : > { %v2917_v0 = vpop.f32.mrf.mxu1 }
 0x3a0   : > { %v2918_v41 = vadd.f32 %v2917_v0, %v2781_v17  ;;  %v2665_v17 = vadd.f32 %v16594_v58, %v2528_v19  ;;  %v16595_v0 = vld [vmem:[#allocation37_spill] sm:$0xff] }
 0x3a2   : > { %v3036_v38 = vmax.f32 %v2918_v41, 0.0  ;;  %3180 = vmatmul.f32.gmra.mxu1 %v3045_v39  ;;  %v2787_v39 = vadd.f32 %v16595_v0, %v12766_v22  ;;  %v3049_v41 = vmax.f32 %v2665_v17, 0.0  ;;  %v16598_v22 = vld [vmem:[#allocation52_spill] sm:$0xff] }
 0x3a4   : > { %3302 = vmatmul.f32.gmra.mxu3 %v3036_v38 }
 0x3a7   : > { %v2920_v7 = vpop.f32.mrf.mxu1 }
 0x3a8   : > { %v2921_v35 = vadd.f32 %v2920_v7, %v2784_v5  ;;  %v13145_v5 = vpop.f32.mrf.mxu3  ;;  %v16597_v7 = vld [vmem:[#allocation39_spill] sm:$0xff] }
 0x3aa   : > { %v3038_v59 = vmax.f32 %v2921_v35, 0.0  ;;  %3183 = vmatmul.f32.gmra.mxu1 %v3047_v20  ;;  %v2790_v20 = vadd.f32 %v16597_v7, %v12795_v8  ;;  %v3051_v35 = vmax.f32 %v2668_v42, 0.0  ;;  %v2537_v8 = vadd.f32 %v2536_v61, %v12866_v1  ;;  %v16603_v1 = vld [vmem:[#allocation30_spill] sm:$0xff] }
 0x3ac   : > { %3305 = vmatmul.f32.gmra.mxu3 %v3038_v59  ;;  %v2534_v59 = vadd.f32 %v2533_v15, %v16598_v22  ;;  %v16601_v15 = vld [vmem:[#allocation29_spill] sm:$0xff] }
 0x3ad   : > { %v2674_v7 = vadd.f32 %v16601_v15, %v2537_v8  ;;  %v16606_v15 = vld [vmem:[#allocation47_spill] sm:$0xff] }
 0x3ae   : > { %v2671_v0 = vadd.f32 %v16599_v34, %v2534_v59  ;;  %v2540_v59 = vadd.f32 %v2539_v62, %v12881_v28  ;;  %v16605_v62 = vld [vmem:[#allocation32_spill] sm:$0xff] }
 0x3af   : > { %v2923_v4 = vpop.f32.mrf.mxu1  ;;  %v3055_v22 = vmax.f32 %v2674_v7, 0.0  ;;  %v2802_v7 = vadd.f32 %v16606_v15, %v12847_v14 }
 0x3b0   : > { %v2924_v38 = vadd.f32 %v2923_v4, %v2787_v39  ;;  %v2545_v39 = vpop.f32.mrf.mxu0  ;;  %v16600_v4 = vld [vmem:[#allocation41_spill] sm:$0xff]  ;;  %v13153_v27 = vpop.f32.mrf.mxu3  ;;  %v2677_v61 = vadd.f32 %v16603_v1, %v2540_v59 }
 0x3b2   : > { %v3040_v47 = vmax.f32 %v2924_v38, 0.0  ;;  %3186 = vmatmul.f32.gmra.mxu1 %v3049_v41  ;;  %v2793_v41 = vadd.f32 %v16600_v4, %v12819_v51 }
 0x3b4   : > { %3308 = vmatmul.f32.gmra.mxu3 %v3040_v47  ;;  %v3053_v47 = vmax.f32 %v2671_v0, 0.0  ;;  %v16604_v0 = vld [vmem:[#allocation45_spill] sm:$0xff] }
 0x3b5   : > { %v2799_v4 = vadd.f32 %v16604_v0, %v16591_v54  ;;  %v2546_v54 = vadd.f32 %v2545_v39, %v12919_v60 }
 0x3b7   : > { %v2926_v19 = vpop.f32.mrf.mxu1 }
 0x3b8   : > { %v2927_v58 = vadd.f32 %v2926_v19, %v2790_v20  ;;  %v16602_v20 = vld [vmem:[#allocation43_spill] sm:$0xff]  ;;  %v2548_v51 = vpop.f32.mrf.mxu0 }
 0x3b9   : > { %v2796_v19 = vadd.f32 %v16602_v20, %v12845_v9  ;;  %v2543_v9 = vadd.f32 %v2542_v63, %v12896_v37  ;;  %v16607_v63 = vld [vmem:[#allocation34_spill] sm:$0xff] }
 0x3ba   : > { %v3042_v17 = vmax.f32 %v2927_v58, 0.0  ;;  %3189 = vmatmul.f32.gmra.mxu1 %v3051_v35  ;;  %v2683_v59 = vadd.f32 %v16607_v63, %v2546_v54 }
 0x3bc   : > { %3311 = vmatmul.f32.gmra.mxu3 %v3042_v17  ;;  %v13160_v17 = vpop.f32.mrf.mxu3 }
 0x3bf   : > { %v2929_v38 = vpop.f32.mrf.mxu1 }
 0x3c0   : > { %v2930_v49 = vadd.f32 %v2929_v38, %v2793_v41  ;;  %v3057_v38 = vmax.f32 %v2677_v61, 0.0  ;;  %v2551_v8 = vpop.f32.mrf.mxu0  ;;  %v16608_v61 = vld [vmem:[#allocation50_spill] sm:$0xff] }
 0x3c1   : > { %v2805_v0 = vadd.f32 %v16608_v61, %v12864_v46  ;;  %v3054_v46 = vmax.f32 %v12856_v6, 0.0  ;;  %v16612_v6 = vld [vmem:[#allocation40_spill] sm:$0xff] }
 0x3c2   : > { %v3044_v42 = vmax.f32 %v2930_v49, 0.0  ;;  %3192 = vmatmul.f32.gmra.mxu1 %v3053_v47 }
 0x3c4   : > { %3314 = vmatmul.f32.gmra.mxu3 %v3044_v42  ;;  %v13166_v28 = vpop.f32.mrf.mxu3  ;;  %v2680_v42 = vadd.f32 %v16605_v62, %v2543_v9  ;;  %v16609_v9 = vld [vmem:[#allocation36_spill] sm:$0xff] }
 0x3c7   : > { %v2932_v35 = vpop.f32.mrf.mxu1 }
 0x3c8   : > { %v2933_v58 = vadd.f32 %v2932_v35, %v2796_v19  ;;  %v3059_v19 = vmax.f32 %v2680_v42, 0.0  ;;  %v13172_v35 = vpop.f32.mrf.mxu2 }
 0x3ca   : > { %v3046_v34 = vmax.f32 %v2933_v58, 0.0  ;;  %3195 = vmatmul.f32.gmra.mxu1 %v3055_v22  ;;  %v2554_v58 = vpop.f32.mrf.mxu0 }
 0x3cc   : > { %3317 = vmatmul.f32.gmra.mxu3 %v3046_v34  ;;  %v2245_v34 = vpop.permute.xlu1 %2244  ;;  %v13175_v1 = vpop.f32.mrf.mxu3 }
 0x3cf   : > { %v2935_v41 = vpop.f32.mrf.mxu1 }
 0x3d0   : > { %v2936_v47 = vadd.f32 %v2935_v41, %v2799_v4  ;;  %v3061_v4 = vmax.f32 %v2683_v59, 0.0  ;;  %v2549_v41 = vadd.f32 %v2548_v51, %v2245_v34  ;;  %v13179_v60 = vpop.f32.mrf.mxu2  ;;  %v16610_v51 = vld [vmem:[#allocation38_spill] sm:$0xff] }
 0x3d2   : > { %v3048_v49 = vmax.f32 %v2936_v47, 0.0  ;;  %3198 = vmatmul.f32.gmra.mxu1 %v3057_v38  ;;  %v2686_v47 = vadd.f32 %v16609_v9, %v2549_v41  ;;  %v2557_v62 = vpop.f32.mrf.mxu0 }
 0x3d4   : > { %3320 = vmatmul.f32.gmra.mxu3 %v3048_v49  ;;  %v2250_v49 = vpop.permute.xlu2 %2249  ;;  %v13182_v42 = vpop.f32.mrf.mxu3 }
 0x3d5   : > { %v13201_v41 = vpop.permute.xlu1 %2259 }
 0x3d6   : > { %v2558_v9 = vadd.f32 %v2557_v62, %v13201_v41  ;;  %v3060_v62 = vmax.f32 %v12903_v53, 0.0  ;;  %v16617_v53 = vld [vmem:[#allocation46_spill] sm:$0xff] }
 0x3d7   : > { %v2938_v20 = vpop.f32.mrf.mxu1 }
 0x3d8   : > { %v2939_v22 = vadd.f32 %v2938_v20, %v2802_v7  ;;  %v3063_v7 = vmax.f32 %v2686_v47, 0.0  ;;  %v2552_v20 = vadd.f32 %v2551_v8, %v2250_v49  ;;  %v13188_v54 = vpop.f32.mrf.mxu2  ;;  %v3056_v8 = vmax.f32 %v12873_v2, 0.0  ;;  %v16614_v2 = vld [vmem:[#allocation42_spill] sm:$0xff] }
 0x3da   : > { %v3050_v37 = vmax.f32 %v2939_v22, 0.0  ;;  %3201 = vmatmul.f32.gmra.mxu1 %v3059_v19  ;;  %v2689_v19 = vadd.f32 %v16610_v51, %v2552_v20  ;;  %v13190_v22 = vpop.permute.xlu0 %2254  ;;  %v2560_v61 = vpop.f32.mrf.mxu0  ;;  %v2695_v20 = vadd.f32 %v16614_v2, %v2558_v9 }
 0x3db   : > { %v2555_v59 = vadd.f32 %v2554_v58, %v13190_v22  ;;  %v3058_v58 = vmax.f32 %v12888_v16, 0.0 }
 0x3dc   : > { %3323 = vmatmul.f32.gmra.mxu3 %v3050_v37  ;;  %v3065_v63 = vmax.f32 %v2689_v19, 0.0  ;;  %v3069_v19 = vmax.f32 %v2695_v20, 0.0  ;;  %v2823_v20 = vadd.f32 %v13172_v35, %v2245_v34  ;;  %v2826_v35 = vadd.f32 %v13179_v60, %v2250_v49  ;;  %v16619_v34 = vld [vmem:[#allocation48_spill] sm:$0xff] }
 0x3df   : > { %v2941_v14 = vpop.f32.mrf.mxu1 }
 0x3e0   : > { %v2942_v38 = vadd.f32 %v2941_v14, %v2805_v0  ;;  %v13195_v0 = vpop.f32.mrf.mxu3  ;;  %v2692_v14 = vadd.f32 %v16612_v6, %v2555_v59 }
 0x3e1   : > { %16611 = vst [vmem:[#allocation31_spill] sm:$0xff] %v13195_v0 }
 0x3e2   : > { %v3052_v39 = vmax.f32 %v2942_v38, 0.0  ;;  %3204 = vmatmul.f32.gmra.mxu1 %v3061_v4  ;;  %v13199_v4 = vpop.f32.mrf.mxu2  ;;  %v2563_v47 = vpop.f32.mrf.mxu0 }
 0x3e4   : > { %3326 = vmatmul.f32.gmra.mxu3 %v3052_v39  ;;  %v3067_v39 = vmax.f32 %v2692_v14, 0.0 }
 0x3e7   : > { %v13184_v15 = vpop.f32.mrf.mxu1 }
 0x3ea   : > { %3207 = vmatmul.f32.gmra.mxu1 %v3063_v7  ;;  %v13207_v7 = vpop.f32.mrf.mxu3  ;;  %v13215_v59 = vpop.f32.mrf.mxu2 }
 0x3eb   : > { %16613 = vst [vmem:[#allocation19_spill] sm:$0xff] %v13207_v7  ;;  %v2566_v6 = vpop.f32.mrf.mxu0 }
 0x3ec   : > { %3329 = vmatmul.f32.gmra.mxu3 %v3054_v46  ;;  %v13210_v46 = vpop.permute.xlu2 %2264 }
 0x3ef   : > { %v13192_v37 = vpop.f32.mrf.mxu1 }
 0x3f2   : > { %3210 = vmatmul.f32.gmra.mxu1 %v3065_v63  ;;  %v2561_v63 = vadd.f32 %v2560_v61, %v13210_v46  ;;  %v13219_v14 = vpop.f32.mrf.mxu3  ;;  %v3062_v61 = vmax.f32 %v12932_v26, 0.0  ;;  %v13228_v7 = vpop.f32.mrf.mxu2 }
 0x3f3   : > { %16616 = vst [vmem:[#allocation33_spill] sm:$0xff] %v13219_v14 }
 0x3f4   : > { %3332 = vmatmul.f32.gmra.mxu3 %v3056_v8  ;;  %v16615_v8 = vld [vmem:[#allocation44_spill] sm:$0xff] }
 0x3f5   : > { %v2698_v16 = vadd.f32 %v16615_v8, %v2561_v63  ;;  %v13231_v63 = vpop.permute.xlu1 %2274  ;;  %v2960_v8 = vadd.f32 %v12905_v29, %v2823_v20  ;;  %v2963_v29 = vadd.f32 %v12943_v43, %v2826_v35 }
 0x3f6   : > { %v2567_v26 = vadd.f32 %v2566_v6, %v13231_v63 }
 0x3f7   : > { %v13203_v38 = vpop.f32.mrf.mxu1  ;;  %v3064_v0 = vmax.f32 %v2960_v8, 0.0  ;;  %v3066_v49 = vmax.f32 %v2963_v29, 0.0  ;;  %v2829_v8 = vadd.f32 %v13188_v54, %v13190_v22  ;;  %v2832_v54 = vadd.f32 %v13199_v4, %v13201_v41 }
 0x3f8   : > { %v2835_v41 = vadd.f32 %v13215_v59, %v13210_v46 }
 0x3f9   : > { %v2966_v43 = vadd.f32 %v12967_v56, %v2829_v8 }
 0x3fa   : > { %3213 = vmatmul.f32.gmra.mxu1 %v3067_v39  ;;  %v13221_v39 = vpop.permute.xlu0 %2269  ;;  %v13234_v14 = vpop.f32.mrf.mxu3 }
 0x3fb   : > { %v2564_v2 = vadd.f32 %v2563_v47, %v13221_v39  ;;  %16618 = vst [vmem:[#allocation49_spill] sm:$0xff] %v13234_v14  ;;  %v2838_v46 = vadd.f32 %v13228_v7, %v13221_v39 }
 0x3fc   : > { %3335 = vmatmul.f32.gmra.mxu3 %v3058_v58  ;;  %v3071_v58 = vmax.f32 %v2698_v16, 0.0 }
 0x3fd   : > { %v13267_v56 = vpop.permute.xlu1 %2289 }
 0x3ff   : > { %v13212_v51 = vpop.f32.mrf.mxu1 }
 0x402   : > { %3216 = vmatmul.f32.gmra.mxu1 %v3069_v19  ;;  %v2701_v19 = vadd.f32 %v16617_v53, %v2564_v2  ;;  %v13241_v2 = vpop.f32.mrf.mxu2 }
 0x403   : > { %v2841_v39 = vadd.f32 %v13241_v2, %v13231_v63 }
 0x404   : > { %3338 = vmatmul.f32.gmra.mxu3 %v3060_v62  ;;  %v2569_v62 = vpop.f32.mrf.mxu0  ;;  %v3073_v47 = vmax.f32 %v2701_v19, 0.0 }
 0x407   : > { %v13223_v9 = vpop.f32.mrf.mxu1 }
 0x40a   : > { %3219 = vmatmul.f32.gmra.mxu1 %v3071_v58  ;;  %v2704_v58 = vadd.f32 %v16619_v34, %v2567_v26  ;;  %v13255_v26 = vpop.permute.xlu0 %2284  ;;  %v2843_v35 = vpop.f32.mrf.mxu2 }
 0x40c   : > { %3341 = vmatmul.f32.gmra.mxu3 %v3062_v61  ;;  %v13243_v61 = vpop.permute.xlu2 %2279  ;;  %v3075_v14 = vmax.f32 %v2704_v58, 0.0  ;;  %v2572_v60 = vpop.f32.mrf.mxu0 }
 0x40d   : > { %v2570_v19 = vadd.f32 %v2569_v62, %v13243_v61  ;;  %v2844_v2 = vadd.f32 %v2843_v35, %v13243_v61 }
 0x40f   : > { %v13236_v16 = vpop.f32.mrf.mxu1 }
 0x412   : > { %3222 = vmatmul.f32.gmra.mxu1 %v3073_v47 }
 0x414   : > { %3344 = vmatmul.f32.gmra.mxu3 %v3064_v0  ;;  %v16620_v0 = vld [vmem:[#allocation51_spill] sm:$0xff]  ;;  %v2575_v22 = vpop.f32.mrf.mxu0 }
 0x415   : > { %v2707_v47 = vadd.f32 %v16620_v0, %v2570_v19 }
 0x417   : > { %v13246_v20 = vpop.f32.mrf.mxu1  ;;  %v3297_v53 = vpop.f32.mrf.mxu3  ;;  %v3077_v58 = vmax.f32 %v2707_v47, 0.0 }
 0x418   : > { %v13250_v6 = vadd.f32 %v3297_v53, %v13184_v15  ;;  %v2573_v15 = vadd.f32 %v2572_v60, %v13255_v26  ;;  %v3068_v53 = vmax.f32 %v2966_v43, 0.0  ;;  %v2846_v47 = vpop.f32.mrf.mxu2 }
 0x419   : > { %v2847_v35 = vadd.f32 %v2846_v47, %v13255_v26 }
 0x41a   : > { %3225 = vmatmul.f32.gmra.mxu1 %v3075_v14  ;;  %v16621_v14 = vld [vmem:[#allocation53_spill] sm:$0xff] }
 0x41b   : > { %v2710_v19 = vadd.f32 %v16621_v14, %v2573_v15  ;;  %v2972_v15 = vadd.f32 %v13011_v45, %v2835_v41  ;;  %v2975_v45 = vadd.f32 %v13037_v10, %v2838_v46  ;;  %v13304_v10 = vpop.permute.xlu1 %2304 }
 0x41c   : > { %3347 = vmatmul.f32.gmra.mxu3 %v3066_v49  ;;  %v2969_v49 = vadd.f32 %v12995_v30, %v2832_v54  ;;  %v13279_v30 = vpop.permute.xlu2 %2294 }
 0x41d   : > { %v3079_v60 = vmax.f32 %v2710_v19, 0.0  ;;  %v3072_v19 = vmax.f32 %v2972_v15, 0.0  ;;  %v3074_v7 = vmax.f32 %v2975_v45, 0.0 }
 0x41e   : > { %v3070_v4 = vmax.f32 %v2969_v49, 0.0  ;;  %v13291_v49 = vpop.permute.xlu0 %2299 }
 0x41f   : > { %v13258_v34 = vpop.f32.mrf.mxu1  ;;  %v3300_v62 = vpop.f32.mrf.mxu3 }
 0x420   : > { %v13262_v29 = vadd.f32 %v3300_v62, %v13192_v37  ;;  %v2576_v37 = vadd.f32 %v2575_v22, %v13267_v56 }
 0x422   : > { %3228 = vmatmul.f32.gmra.mxu1 %v3077_v58  ;;  %v2713_v62 = vadd.f32 %v12868_v12, %v2576_v37  ;;  %v2578_v58 = vpop.f32.mrf.mxu0  ;;  %v2849_v12 = vpop.f32.mrf.mxu2  ;;  %v16622_v37 = vld [vmem:[#allocation11_spill] sm:$0xff] }
 0x423   : > { %v2850_v47 = vadd.f32 %v2849_v12, %v13267_v56 }
 0x424   : > { %3350 = vmatmul.f32.gmra.mxu3 %v3068_v53  ;;  %v3081_v22 = vmax.f32 %v2713_v62, 0.0  ;;  %v13316_v46 = vpop.permute.xlu2 %2309 }
 0x427   : > { %v13270_v8 = vpop.f32.mrf.mxu1  ;;  %v3303_v0 = vpop.f32.mrf.mxu3 }
 0x428   : > { %v13274_v43 = vadd.f32 %v3303_v0, %v13203_v38  ;;  %v2579_v38 = vadd.f32 %v2578_v58, %v13279_v30  ;;  %v2978_v58 = vadd.f32 %v13062_v31, %v2841_v39  ;;  %v2981_v31 = vadd.f32 %v13087_v32, %v2844_v2 }
 0x429   : > { %v2984_v32 = vadd.f32 %v13102_v50, %v2847_v35  ;;  %v2987_v50 = vadd.f32 %v13109_v44, %v2850_v47  ;;  %v16627_v35 = vld [vmem:[#allocation16_spill] sm:$0xff] }
 0x42a   : > { %3231 = vmatmul.f32.gmra.mxu1 %v3079_v60  ;;  %v2716_v59 = vadd.f32 %v12883_v52, %v2579_v38  ;;  %v2852_v62 = vpop.f32.mrf.mxu2  ;;  %v3076_v63 = vmax.f32 %v2978_v58, 0.0  ;;  %v3078_v61 = vmax.f32 %v2981_v31, 0.0  ;;  %v16625_v58 = vld [vmem:[#allocation14_spill] sm:$0xff] }
 0x42b   : > { %v3080_v26 = vmax.f32 %v2984_v32, 0.0  ;;  %v2853_v56 = vadd.f32 %v2852_v62, %v13279_v30 }
 0x42c   : > { %3353 = vmatmul.f32.gmra.mxu3 %v3070_v4  ;;  %v3083_v4 = vmax.f32 %v2716_v59, 0.0 }
 0x42d   : > { %v2990_v44 = vadd.f32 %v13119_v57, %v2853_v56 }
 0x42f   : > { %v13282_v53 = vpop.f32.mrf.mxu1  ;;  %v3306_v54 = vpop.f32.mrf.mxu3  ;;  %v3084_v32 = vmax.f32 %v2990_v44, 0.0  ;;  %v16630_v44 = vld [vmem:[#allocation20_spill] sm:$0xff] }
 0x430   : > { %v13286_v14 = vadd.f32 %v3306_v54, %v13212_v51  ;;  %v2582_v51 = vadd.f32 %v16622_v37, %v13291_v49  ;;  %v16624_v37 = vld [vmem:[#allocation13_spill] sm:$0xff] }
 0x432   : > { %3234 = vmatmul.f32.gmra.mxu1 %v3081_v22  ;;  %v2719_v52 = vadd.f32 %v12898_v24, %v2582_v51  ;;  %v16623_v22 = vld [vmem:[#allocation12_spill] sm:$0xff]  ;;  %v2855_v59 = vpop.f32.mrf.mxu2  ;;  %v2588_v51 = vadd.f32 %v16624_v37, %v13316_v46  ;;  %v3082_v37 = vmax.f32 %v2987_v50, 0.0 }
 0x433   : > { %v2856_v30 = vadd.f32 %v2855_v59, %v13291_v49 }
 0x434   : > { %3356 = vmatmul.f32.gmra.mxu3 %v3072_v19  ;;  %v3085_v38 = vmax.f32 %v2719_v52, 0.0 }
 0x437   : > { %v13294_v0 = vpop.f32.mrf.mxu1  ;;  %v3309_v60 = vpop.f32.mrf.mxu3 }
 0x438   : > { %v13299_v41 = vadd.f32 %v3309_v60, %v13223_v9  ;;  %v2585_v9 = vadd.f32 %v16623_v22, %v13304_v10 }
 0x43a   : > { %3237 = vmatmul.f32.gmra.mxu1 %v3083_v4  ;;  %v2722_v24 = vadd.f32 %v12924_v21, %v2585_v9  ;;  %v2725_v21 = vadd.f32 %v12951_v18, %v2588_v51  ;;  %v2858_v9 = vpop.f32.mrf.mxu2  ;;  %v13352_v51 = vpop.permute.xlu2 %2324 }
 0x43b   : > { %v2859_v49 = vadd.f32 %v2858_v9, %v13304_v10 }
 0x43c   : > { %3359 = vmatmul.f32.gmra.mxu3 %v3074_v7  ;;  %v13328_v7 = vpop.permute.xlu0 %2314  ;;  %v3089_v22 = vmax.f32 %v2725_v21, 0.0 }
 0x43f   : > { %v13307_v15 = vpop.f32.mrf.mxu1  ;;  %v3312_v54 = vpop.f32.mrf.mxu3 }
 0x440   : > { %v13312_v19 = vadd.f32 %v3312_v54, %v13236_v16  ;;  %v3087_v16 = vmax.f32 %v2722_v24, 0.0  ;;  %v2591_v54 = vadd.f32 %v16625_v58, %v13328_v7  ;;  %v16626_v24 = vld [vmem:[#allocation15_spill] sm:$0xff] }
 0x442   : > { %3240 = vmatmul.f32.gmra.mxu1 %v3085_v38  ;;  %v2728_v18 = vadd.f32 %v12972_v13, %v2591_v54  ;;  %v13340_v38 = vpop.permute.xlu1 %2319  ;;  %v2861_v13 = vpop.f32.mrf.mxu2  ;;  %v16628_v54 = vld [vmem:[#allocation17_spill] sm:$0xff] }
 0x443   : > { %v2594_v31 = vadd.f32 %v16626_v24, %v13340_v38  ;;  %v16629_v24 = vld [vmem:[#allocation18_spill] sm:$0xff]  ;;  %v2862_v56 = vadd.f32 %v2861_v13, %v13316_v46 }
 0x444   : > { %3362 = vmatmul.f32.gmra.mxu3 %v3076_v63  ;;  %v13364_v58 = vpop.permute.xlu0 %2329 }
 0x445   : > { %v2731_v12 = vadd.f32 %v12993_v36, %v2594_v31  ;;  %v2999_v9 = vadd.f32 %v13138_v33, %v2862_v56 }
 0x447   : > { %v13319_v45 = vpop.f32.mrf.mxu1  ;;  %v3315_v60 = vpop.f32.mrf.mxu3  ;;  %v3093_v21 = vmax.f32 %v2731_v12, 0.0 }
 0x448   : > { %v13324_v4 = vadd.f32 %v3315_v60, %v13246_v20  ;;  %v13386_v12 = vpop.permute.xlu2 %2339 }
 0x44a   : > { %3243 = vmatmul.f32.gmra.mxu1 %v3087_v16  ;;  %v2864_v36 = vpop.f32.mrf.mxu2  ;;  %v13374_v59 = vpop.permute.xlu1 %2334 }
 0x44b   : > { %v2603_v31 = vadd.f32 %v16629_v24, %v13374_v59 }
 0x44c   : > { %3365 = vmatmul.f32.gmra.mxu3 %v3078_v61  ;;  %v13395_v33 = vpop.permute.xlu0 %2344 }
 0x44f   : > { %v13331_v39 = vpop.f32.mrf.mxu1  ;;  %v3318_v52 = vpop.f32.mrf.mxu3 }
 0x450   : > { %v13336_v20 = vadd.f32 %v3318_v52, %v13258_v34  ;;  %v3091_v34 = vmax.f32 %v2728_v18, 0.0  ;;  %v2993_v52 = vadd.f32 %v13125_v3, %v2856_v30  ;;  %v2996_v3 = vadd.f32 %v13132_v40, %v2859_v49 }
 0x451   : > { %v2865_v30 = vadd.f32 %v2864_v36, %v13328_v7 }
 0x452   : > { %3246 = vmatmul.f32.gmra.mxu1 %v3089_v22  ;;  %v2600_v22 = vadd.f32 %v16628_v54, %v13364_v58  ;;  %v3086_v18 = vmax.f32 %v2993_v52, 0.0  ;;  %v2867_v50 = vpop.f32.mrf.mxu2  ;;  %v16631_v52 = vld [vmem:[#allocation22_spill] sm:$0xff] }
 0x453   : > { %v2609_v54 = vadd.f32 %v16631_v52, %v13395_v33 }
 0x454   : > { %3368 = vmatmul.f32.gmra.mxu3 %v3080_v26  ;;  %v13422_v52 = vpop.permute.xlu0 %2359 }
 0x455   : > { %v2746_v36 = vadd.f32 %v13085_v55, %v2609_v54 }
 0x457   : > { %v13343_v63 = vpop.f32.mrf.mxu1  ;;  %v3321_v2 = vpop.f32.mrf.mxu3 }
 0x458   : > { %v13348_v60 = vadd.f32 %v3321_v2, %v13270_v8  ;;  %v2597_v8 = vadd.f32 %v16627_v35, %v13352_v51  ;;  %v2606_v35 = vadd.f32 %v16630_v44, %v13386_v12 }
 0x45a   : > { %3249 = vmatmul.f32.gmra.mxu1 %v3091_v34  ;;  %v2734_v62 = vadd.f32 %v13005_v11, %v2597_v8  ;;  %v2737_v11 = vadd.f32 %v13022_v23, %v2600_v22  ;;  %v2740_v23 = vadd.f32 %v13045_v48, %v2603_v31  ;;  %v2743_v46 = vadd.f32 %v13067_v25, %v2606_v35  ;;  %v13401_v25 = vpop.permute.xlu1 %2349 }
 0x45b   : > { %v3002_v48 = vadd.f32 %v13145_v5, %v2865_v30  ;;  %v3103_v31 = vmax.f32 %v2746_v36, 0.0 }
 0x45c   : > { %3371 = vmatmul.f32.gmra.mxu3 %v3082_v37  ;;  %v3095_v26 = vmax.f32 %v2734_v62, 0.0  ;;  %v3097_v34 = vmax.f32 %v2737_v11, 0.0  ;;  %v3088_v37 = vmax.f32 %v2996_v3, 0.0  ;;  %v3099_v8 = vmax.f32 %v2740_v23, 0.0  ;;  %v16632_v3 = vld [vmem:[#allocation24_spill] sm:$0xff]  ;;  %v13411_v23 = vpop.permute.xlu2 %2354 }
 0x45d   : > { %v3101_v22 = vmax.f32 %v2743_v46, 0.0  ;;  %v2612_v24 = vadd.f32 %v16632_v3, %v13401_v25  ;;  %v16635_v46 = vld [vmem:[#allocation55_spill] sm:$0xff] }
 0x45f   : > { %v13355_v16 = vpop.f32.mrf.mxu1  ;;  %v13357_v61 = vpop.f32.mrf.mxu3 }
 0x462   : > { %3252 = vmatmul.f32.gmra.mxu1 %v3093_v21  ;;  %v2870_v21 = vpop.f32.mrf.mxu2 }
 0x464   : > { %3374 = vmatmul.f32.gmra.mxu3 %v3084_v32  ;;  %v3090_v32 = vmax.f32 %v2999_v9, 0.0  ;;  %v16634_v9 = vld [vmem:[#allocation26_spill] sm:$0xff] }
 0x465   : > { %v2615_v44 = vadd.f32 %v16634_v9, %v13411_v23 }
 0x467   : > { %v13366_v57 = vpop.f32.mrf.mxu3  ;;  %v13370_v47 = vpop.f32.mrf.mxu1 }
 0x46a   : > { %3255 = vmatmul.f32.gmra.mxu1 %v3095_v26  ;;  %v3092_v26 = vmax.f32 %v3002_v48, 0.0  ;;  %v2873_v7 = vpop.f32.mrf.mxu2 }
 0x46c   : > { %3377 = vmatmul.f32.gmra.mxu3 %v3086_v18  ;;  %v2868_v18 = vadd.f32 %v2867_v50, %v13340_v38  ;;  %v16633_v38 = vld [vmem:[#allocation54_spill] sm:$0xff] }
 0x46d   : > { %v2749_v50 = vadd.f32 %v16633_v38, %v2612_v24  ;;  %v16639_v24 = vld [vmem:[#allocation19_spill] sm:$0xff] }
 0x46e   : > { %v3005_v49 = vadd.f32 %v13153_v27, %v2868_v18 }
 0x46f   : > { %v13377_v2 = vpop.f32.mrf.mxu3  ;;  %v13382_v10 = vpop.f32.mrf.mxu1  ;;  %v3105_v35 = vmax.f32 %v2749_v50, 0.0  ;;  %v16640_v50 = vld [vmem:[#allocation33_spill] sm:$0xff] }
 0x472   : > { %3258 = vmatmul.f32.gmra.mxu1 %v3097_v34  ;;  %v3094_v34 = vmax.f32 %v3005_v49, 0.0  ;;  %v2876_v55 = vpop.f32.mrf.mxu2  ;;  %v3325_v49 = vadd.f32 %v13357_v61, %v13282_v53 }
 0x474   : > { %3380 = vmatmul.f32.gmra.mxu3 %v3088_v37  ;;  %v2871_v37 = vadd.f32 %v2870_v21, %v13352_v51  ;;  %v2874_v51 = vadd.f32 %v2873_v7, %v13364_v58  ;;  %v3331_v7 = vadd.f32 %v13377_v2, %v13307_v15 }
 0x476   : > { %v3008_v56 = vadd.f32 %v13160_v17, %v2871_v37  ;;  %v2752_v17 = vadd.f32 %v16635_v46, %v2615_v44  ;;  %v3011_v54 = vadd.f32 %v13166_v28, %v2874_v51  ;;  %v3328_v28 = vadd.f32 %v13366_v57, %v13294_v0 }
 0x477   : > { %v3333_v40 = vpop.f32.mrf.mxu3  ;;  %v13392_v13 = vpop.f32.mrf.mxu1 }
 0x478   : > { %v3096_v30 = vmax.f32 %v3008_v56, 0.0  ;;  %v3107_v18 = vmax.f32 %v2752_v17, 0.0  ;;  %v3429_v17 = vld [vmem:[%s16525_s5 + $0x60] sm:$0xff] }
 0x47a   : > { %3261 = vmatmul.f32.gmra.mxu1 %v3099_v8 }
 0x47c   : > { %3383 = vmatmul.f32.gmra.mxu3 %v3090_v32 }
 0x47f   : > { %v3336_v62 = vpop.f32.mrf.mxu3  ;;  %v13404_v5 = vpop.f32.mrf.mxu1 }
 0x480   : > { %v3337_v48 = vadd.f32 %v3336_v62, %v13331_v39  ;;  %v3098_v39 = vmax.f32 %v3011_v54, 0.0  ;;  %v2877_v62 = vadd.f32 %v2876_v55, %v13374_v59 }
 0x482   : > { %3264 = vmatmul.f32.gmra.mxu1 %v3101_v22  ;;  %v2879_v22 = vpop.f32.mrf.mxu2  ;;  %v3014_v15 = vadd.f32 %v13175_v1, %v2877_v62  ;;  %v3441_v62 = vld [vmem:[%s16525_s5 + $0xc0] sm:$0xff] }
 0x484   : > { %3386 = vmatmul.f32.gmra.mxu3 %v3092_v26  ;;  %v3100_v57 = vmax.f32 %v3014_v15, 0.0  ;;  %v3447_v15 = vld [vmem:[%s16525_s5 + $0xf0] sm:$0xff] }
 0x487   : > { %v3339_v11 = vpop.f32.mrf.mxu3  ;;  %v13416_v32 = vpop.f32.mrf.mxu1 }
 0x488   : > { %v3340_v21 = vadd.f32 %v3339_v11, %v13343_v63  ;;  %v16636_v63 = vld [vmem:[#allocation28_spill] sm:$0xff]  ;;  %v2880_v11 = vadd.f32 %v2879_v22, %v13386_v12  ;;  %v3435_v22 = vld [vmem:[%s16525_s5 + $0x90] sm:$0xff] }
 0x489   : > { %v2618_v58 = vadd.f32 %v16636_v63, %v13422_v52 }
 0x48a   : > { %3267 = vmatmul.f32.gmra.mxu1 %v3103_v31  ;;  %v2882_v0 = vpop.f32.mrf.mxu2  ;;  %v3017_v1 = vadd.f32 %v13182_v42, %v2880_v11  ;;  %v3417_v42 = vld [vmem:[%s16525_s5] sm:$0xff] }
 0x48b   : > { %v2883_v3 = vadd.f32 %v2882_v0, %v13395_v33 }
 0x48c   : > { %3389 = vmatmul.f32.gmra.mxu3 %v3094_v34 }
 0x48f   : > { %v3342_v27 = vpop.f32.mrf.mxu3 }
 0x490   : > { %v3343_v8 = vadd.f32 %v3342_v27, %v13355_v16  ;;  %v3334_v16 = vadd.f32 %v3333_v40, %v13319_v45  ;;  %v13435_v45 = vpop.f32.mrf.mxu1  ;;  %v16637_v40 = vld [vmem:[#allocation56_spill] sm:$0xff] }
 0x491   : > { %v2755_v36 = vadd.f32 %v16637_v40, %v2618_v58 }
 0x492   : > { %3270 = vmatmul.f32.gmra.mxu1 %v3105_v35  ;;  %3538 = vmatpush.msra.mxu0 %v3343_v8  ;;  %v2885_v12 = vpop.f32.mrf.mxu2  ;;  %v16641_v8 = vld [vmem:[#allocation49_spill] sm:$0xff] }
 0x493   : > { %v3109_v59 = vmax.f32 %v2755_v36, 0.0  ;;  %v2886_v33 = vadd.f32 %v2885_v12, %v13401_v25  ;;  %v3423_v25 = vld [vmem:[%s16525_s5 + $0x30] sm:$0xff]  ;;  %v3444_v36 = vld [vmem:[%s16525_s5 + $0xd8] sm:$0xff] }
 0x494   : > { %3392 = vmatmul.f32.gmra.mxu3 %v3096_v30  ;;  %3539 = vmatpush.msra.mxu0 %v3340_v21 }
 0x495   : > { %v3023_v31 = vadd.f32 %v16639_v24, %v2886_v33  ;;  %v3456_v33 = vld [vmem:[%s16525_s5 + $0x138] sm:$0xff] }
 0x496   : > { %3540 = vmatpush.msra.mxu0 %v3337_v48 }
 0x497   : > { %v13426_v26 = vpop.f32.mrf.mxu3  ;;  %v3106_v38 = vmax.f32 %v3023_v31, 0.0 }
 0x498   : > { %3541 = vmatpush.msra.mxu0 %v3334_v16  ;;  %v13447_v53 = vpop.f32.mrf.mxu1 }
 0x49a   : > { %3273 = vmatmul.f32.gmra.mxu1 %v3107_v18  ;;  %3542 = vmatpush.msra.mxu0 %v3331_v7  ;;  %v3438_v18 = vld [vmem:[%s16525_s5 + $0xa8] sm:$0xff] }
 0x49c   : > { %3395 = vmatmul.f32.gmra.mxu3 %v3098_v39  ;;  %3543 = vmatpush.msra.mxu0 %v3328_v28 }
 0x49e   : > { %3544 = vmatpush.msra.mxu0 %v3325_v49 }
 0x49f   : > { %v13441_v2 = vpop.f32.mrf.mxu3 }
 0x4a0   : > { %3545 = vmatpush.msra.mxu0 %v13348_v60  ;;  %v3102_v60 = vmax.f32 %v3017_v1, 0.0 }
 0x4a2   : > { %3276 = vmatmul.f32.gmra.mxu1 %v3109_v59  ;;  %3546 = vmatpush.msra.mxu0 %v13336_v20 }
 0x4a4   : > { %3398 = vmatmul.f32.gmra.mxu3 %v3100_v57  ;;  %3547 = vmatpush.msra.mxu0 %v13324_v4  ;;  %v16638_v4 = vld [vmem:[#allocation31_spill] sm:$0xff]  ;;  %v3450_v57 = vld [vmem:[%s16525_s5 + $0x108] sm:$0xff] }
 0x4a5   : > { %v3020_v20 = vadd.f32 %v16638_v4, %v2883_v3 }
 0x4a6   : > { %3548 = vmatpush.msra.mxu0 %v13312_v19  ;;  %v13462_v19 = vpop.f32.mrf.mxu1 }
 0x4a7   : > { %v13451_v61 = vpop.f32.mrf.mxu3 }
 0x4a8   : > { %3549 = vmatpush.msra.mxu0 %v13299_v41 }
 0x4aa   : > { %3550 = vmatpush.msra.mxu0 %v13286_v14  ;;  %v3104_v14 = vmax.f32 %v3020_v20, 0.0 }
 0x4ac   : > { %3401 = vmatmul.f32.gmra.mxu3 %v3102_v60  ;;  %3551 = vmatpush.msra.mxu0 %v13274_v43  ;;  %v2888_v43 = vpop.f32.mrf.mxu2  ;;  %v3453_v60 = vld [vmem:[%s16525_s5 + $0x120] sm:$0xff] }
 0x4ae   : > { %3552 = vmatpush.msra.mxu0 %v13262_v29  ;;  %v3420_v29 = vld [vmem:[%s16525_s5 + $0x18] sm:$0xff]  ;;  %v13474_v37 = vpop.f32.mrf.mxu1 }
 0x4af   : > { %v13464_v41 = vpop.f32.mrf.mxu3 }
 0x4b0   : > { %3553 = vmatpush.msra.mxu0 %v13250_v6  ;;  %v2889_v6 = vadd.f32 %v2888_v43, %v13411_v23  ;;  %v3426_v23 = vld [vmem:[%s16525_s5 + $0x48] sm:$0xff] }
 0x4b1   : > { %3554 = vmatmul.f32.vlgmr.msra.gmra.mxu0 %v3417_v42 }
 0x4b2   : > { %v3026_v55 = vadd.f32 %v16640_v50, %v2889_v6  ;;  %v3459_v50 = vld [vmem:[%s16525_s5 + $0x150] sm:$0xff] }
 0x4b4   : > { %3404 = vmatmul.f32.gmra.mxu3 %v3104_v14  ;;  %v2891_v56 = vpop.f32.mrf.mxu2  ;;  %v3108_v9 = vmax.f32 %v3026_v55, 0.0 }
 0x4b5   : > { %v2892_v44 = vadd.f32 %v2891_v56, %v13422_v52  ;;  %v3432_v52 = vld [vmem:[%s16525_s5 + $0x78] sm:$0xff] }
 0x4b6   : > { %v3235_v35 = vpop.f32.mrf.mxu1 }
 0x4b7   : > { %v13472_v34 = vpop.f32.mrf.mxu3  ;;  %v3029_v30 = vadd.f32 %v16641_v8, %v2892_v44  ;;  %v3462_v44 = vld [vmem:[%s16525_s5 + $0x168] sm:$0xff]  ;;  %v3355_v8 = vadd.f32 %v13464_v41, %v13404_v5  ;;  %v3465_v5 = vld [vmem:[%s16525_s5 + $0x180] sm:$0xff] }
 0x4b9   : > { %3557 = vmatmul.f32.gmra.mxu0 %v3420_v29  ;;  %v3110_v21 = vmax.f32 %v3029_v30, 0.0  ;;  %v3424_v30 = vld [vmem:[%s16525_s5 + $0x38] sm:$0xff] }
 0x4bc   : > { %3407 = vmatmul.f32.gmra.mxu3 %v3106_v38 }
 0x4be   : > { %v3238_v46 = vpop.f32.mrf.mxu1 }
 0x4bf   : > { %v13481_v27 = vpop.f32.mrf.mxu3 }
 0x4c1   : > { %3560 = vmatmul.f32.gmra.mxu0 %v3423_v25 }
 0x4c4   : > { %3410 = vmatmul.f32.gmra.mxu3 %v3108_v9  ;;  %v3361_v9 = vadd.f32 %v13481_v27, %v13435_v45  ;;  %v3349_v45 = vadd.f32 %v13441_v2, %v13382_v10 }
 0x4c6   : > { %v3241_v54 = vpop.f32.mrf.mxu1 }
 0x4c7   : > { %v13488_v51 = vpop.f32.mrf.mxu3 }
 0x4c8   : > { %v3364_v56 = vadd.f32 %v13488_v51, %v13447_v53  ;;  %v3352_v53 = vadd.f32 %v13451_v61, %v13392_v13  ;;  %v3471_v51 = vld [vmem:[%s16525_s5 + $0x1b0] sm:$0xff] }
 0x4c9   : > { %3563 = vmatmul.f32.gmra.mxu0 %v3426_v23 }
 0x4cc   : > { %3413 = vmatmul.f32.gmra.mxu3 %v3110_v21 }
 0x4ce   : > { %v3244_v58 = vpop.f32.mrf.mxu1 }
 0x4cf   : > { %v3366_v48 = vpop.f32.mrf.mxu3 }
 0x4d0   : > { %v3367_v25 = vadd.f32 %v3366_v48, %v13462_v19 }
 0x4d1   : > { %3566 = vmatmul.f32.gmra.mxu0 %v3429_v17  ;;  %v3427_v17 = vld [vmem:[%s16525_s5 + $0x50] sm:$0xff] }
 0x4d6   : > { %v3247_v39 = vpop.f32.mrf.mxu1 }
 0x4d7   : > { %v3369_v16 = vpop.f32.mrf.mxu3 }
 0x4d8   : > { %v3370_v6 = vadd.f32 %v3369_v16, %v13474_v37  ;;  %v3358_v37 = vadd.f32 %v13472_v34, %v13416_v32  ;;  %v3346_v32 = vadd.f32 %v13426_v26, %v13370_v47  ;;  %v3418_v34 = vld [vmem:[%s16525_s5 + $0x8] sm:$0xff]  ;;  %v3421_v47 = vld [vmem:[%s16525_s5 + $0x20] sm:$0xff]  ;;  %v3468_v26 = vld [vmem:[%s16525_s5 + $0x198] sm:$0xff] }
 0x4d9   : > { %3569 = vmatmul.f32.gmra.mxu0 %v3432_v52  ;;  %v3474_v52 = vld [vmem:[%s16525_s5 + $0x1c8] sm:$0xff] }
 0x4da   : > { %v3430_v16 = vld [vmem:[%s16525_s5 + $0x68] sm:$0xff] }
 0x4de   : > { %v3250_v40 = vpop.f32.mrf.mxu1 }
 0x4df   : > { %v3372_v63 = vpop.f32.mrf.mxu3 }
 0x4e0   : > { %v3373_v29 = vadd.f32 %v3372_v63, %v3235_v35 }
 0x4e1   : > { %3572 = vmatmul.f32.gmra.mxu0 %v3435_v22 }
 0x4e6   : > { %v3253_v59 = vpop.f32.mrf.mxu1 }
 0x4e7   : > { %v3375_v7 = vpop.f32.mrf.mxu3 }
 0x4e8   : > { %v3376_v31 = vadd.f32 %v3375_v7, %v3238_v46 }
 0x4e9   : > { %3575 = vmatmul.f32.gmra.mxu0 %v3438_v18 }
 0x4ee   : > { %v13514_v1 = vpop.f32.mrf.mxu1 }
 0x4ef   : > { %v3378_v28 = vpop.f32.mrf.mxu3 }
 0x4f0   : > { %v3379_v24 = vadd.f32 %v3378_v28, %v3241_v54  ;;  %v3433_v28 = vld [vmem:[%s16525_s5 + $0x80] sm:$0xff] }
 0x4f1   : > { %3578 = vmatmul.f32.gmra.mxu0 %v3441_v62 }
 0x4f6   : > { %v13519_v20 = vpop.f32.mrf.mxu1 }
 0x4f7   : > { %v3381_v49 = vpop.f32.mrf.mxu3 }
 0x4f8   : > { %v3382_v14 = vadd.f32 %v3381_v49, %v3244_v58 }
 0x4f9   : > { %3581 = vmatmul.f32.gmra.mxu0 %v3444_v36 }
 0x4fe   : > { %v13526_v38 = vpop.f32.mrf.mxu1 }
 0x4ff   : > { %v3384_v0 = vpop.f32.mrf.mxu3 }
 0x500   : > { %v3385_v42 = vadd.f32 %v3384_v0, %v3247_v39  ;;  %v3419_v0 = vld [vmem:[%s16525_s5 + $0x10] sm:$0xff] }
 0x501   : > { %3584 = vmatmul.f32.gmra.mxu0 %v3447_v15 }
 0x506   : > { %v3265_v35 = vpop.f32.mrf.mxu1 }
 0x507   : > { %v3387_v11 = vpop.f32.mrf.mxu3 }
 0x508   : > { %v3388_v4 = vadd.f32 %v3387_v11, %v3250_v40 }
 0x509   : > { %3587 = vmatmul.f32.gmra.mxu0 %v3450_v57  ;;  %v3436_v57 = vld [vmem:[%s16525_s5 + $0x98] sm:$0xff] }
 0x50e   : > { %v3268_v61 = vpop.f32.mrf.mxu1 }
 0x50f   : > { %v3390_v3 = vpop.f32.mrf.mxu3 }
 0x510   : > { %v3391_v12 = vadd.f32 %v3390_v3, %v3253_v59 }
 0x511   : > { %3590 = vmatmul.f32.gmra.mxu0 %v3453_v60  ;;  %v3439_v60 = vld [vmem:[%s16525_s5 + $0xb0] sm:$0xff] }
 0x512   : > { %3615 = vmatpush.msrb.mxu2 %v3391_v12  ;;  %v3425_v12 = vld [vmem:[%s16525_s5 + $0x40] sm:$0xff] }
 0x514   : > { %3616 = vmatpush.msrb.mxu2 %v3388_v4  ;;  %v3442_v4 = vld [vmem:[%s16525_s5 + $0xc8] sm:$0xff] }
 0x516   : > { %3617 = vmatpush.msrb.mxu2 %v3385_v42  ;;  %v3271_v41 = vpop.f32.mrf.mxu1  ;;  %v3428_v42 = vld [vmem:[%s16525_s5 + $0x58] sm:$0xff] }
 0x517   : > { %v13524_v43 = vpop.f32.mrf.mxu3 }
 0x518   : > { %3618 = vmatpush.msrb.mxu2 %v3382_v14  ;;  %v3394_v59 = vadd.f32 %v13524_v43, %v13514_v1  ;;  %v3422_v1 = vld [vmem:[%s16525_s5 + $0x28] sm:$0xff]  ;;  %v3445_v14 = vld [vmem:[%s16525_s5 + $0xe0] sm:$0xff]  ;;  %v3431_v43 = vld [vmem:[%s16525_s5 + $0x70] sm:$0xff] }
 0x519   : > { %3593 = vmatmul.f32.gmra.mxu0 %v3456_v33 }
 0x51a   : > { %3619 = vmatpush.msrb.mxu2 %v3379_v24  ;;  %v3448_v24 = vld [vmem:[%s16525_s5 + $0xf8] sm:$0xff] }
 0x51c   : > { %3620 = vmatpush.msrb.mxu2 %v3376_v31 }
 0x51e   : > { %3621 = vmatpush.msrb.mxu2 %v3373_v29  ;;  %v3274_v46 = vpop.f32.mrf.mxu1  ;;  %v3434_v29 = vld [vmem:[%s16525_s5 + $0x88] sm:$0xff] }
 0x51f   : > { %v13532_v55 = vpop.f32.mrf.mxu3 }
 0x520   : > { %3622 = vmatpush.msrb.mxu2 %v3370_v6  ;;  %v3397_v15 = vadd.f32 %v13532_v55, %v13519_v20  ;;  %v3454_v55 = vld [vmem:[%s16525_s5 + $0x128] sm:$0xff] }
 0x521   : > { %3596 = vmatmul.f32.gmra.mxu0 %v3459_v50  ;;  %v3437_v50 = vld [vmem:[%s16525_s5 + $0xa0] sm:$0xff] }
 0x522   : > { %3623 = vmatpush.msrb.mxu2 %v3367_v25 }
 0x524   : > { %3624 = vmatpush.msrb.mxu2 %v3364_v56  ;;  %v3440_v56 = vld [vmem:[%s16525_s5 + $0xb8] sm:$0xff] }
 0x526   : > { %3625 = vmatpush.msrb.mxu2 %v3361_v9  ;;  %v3277_v63 = vpop.f32.mrf.mxu1  ;;  %v3457_v9 = vld [vmem:[%s16525_s5 + $0x140] sm:$0xff] }
 0x527   : > { %v3399_v19 = vpop.f32.mrf.mxu3 }
 0x528   : > { %3626 = vmatpush.msrb.mxu2 %v3358_v37  ;;  %v3400_v49 = vadd.f32 %v3399_v19, %v13526_v38  ;;  %v3451_v38 = vld [vmem:[%s16525_s5 + $0x110] sm:$0xff] }
 0x529   : > { %3599 = vmatmul.f32.gmra.mxu0 %v3462_v44  ;;  %v3443_v44 = vld [vmem:[%s16525_s5 + $0xd0] sm:$0xff] }
 0x52a   : > { %3627 = vmatpush.msrb.mxu2 %v3355_v8  ;;  %v3446_v8 = vld [vmem:[%s16525_s5 + $0xe8] sm:$0xff] }
 0x52c   : > { %3628 = vmatpush.msrb.mxu2 %v3352_v53  ;;  %v3463_v53 = vld [vmem:[%s16525_s5 + $0x170] sm:$0xff] }
 0x52e   : > { %3629 = vmatpush.msrb.mxu2 %v3349_v45  ;;  %v13555_v27 = vpop.f32.mrf.mxu0 }
 0x52f   : > { %v3402_v13 = vpop.f32.mrf.mxu3 }
 0x530   : > { %3630 = vmatpush.msrb.mxu2 %v3346_v32  ;;  %v3403_v36 = vadd.f32 %v3402_v13, %v3265_v35  ;;  %v3460_v35 = vld [vmem:[%s16525_s5 + $0x158] sm:$0xff]  ;;  %v3449_v32 = vld [vmem:[%s16525_s5 + $0x100] sm:$0xff] }
 0x531   : > { %3631 = vmatmul.f32.vlgmr.msrb.gmra.mxu2 %v3418_v34  ;;  %3602 = vmatmul.f32.gmra.mxu0 %v3465_v5  ;;  %v3466_v34 = vld [vmem:[%s16525_s5 + $0x188] sm:$0xff]  ;;  %v3776_v5 = vld [vmem:[%s16527_s7 + $0x38] sm:$0xff] }
 0x532   : > { %v9241_v13 = vld [vmem:[%s16527_s7 + $0x78] sm:$0xff]  ;;  %3845 = vmatpush.msra.mxu2 %v3776_v5 }
 0x533   : > { %3951 = vmatpush.msra.mxu1 %v9241_v13 }
 0x536   : > { %v13563_v10 = vpop.f32.mrf.mxu0 }
 0x537   : > { %v3405_v2 = vpop.f32.mrf.mxu3 }
 0x538   : > { %v3406_v62 = vadd.f32 %v3405_v2, %v3268_v61  ;;  %v9269_v61 = vld [vmem:[%s16527_s7 + $0xb8] sm:$0xff]  ;;  %v9268_v2 = vld [vmem:[%s16527_s7 + $0xb0] sm:$0xff] }
 0x539   : > { %3634 = vmatmul.f32.gmra.mxu2 %v3421_v47  ;;  %3605 = vmatmul.f32.gmra.mxu0 %v3468_v26  ;;  %v3775_v47 = vld [vmem:[%s16527_s7 + $0x30] sm:$0xff] }
 0x53a   : > { %v9240_v26 = vld [vmem:[%s16527_s7 + $0x70] sm:$0xff]  ;;  %4057 = vmatpush.msrb.mxu3 %v9269_v61  ;;  %3846 = vmatpush.msra.mxu2 %v3775_v47  ;;  %v9291_v47 = vld [vmem:[%s16527_s7 + $0xc8] sm:$0xff] }
 0x53b   : > { %3952 = vmatpush.msra.mxu1 %v9240_v26  ;;  %v3467_v61 = vld [vmem:[%s16525_s5 + $0x190] sm:$0xff] }
 0x53c   : > { %4058 = vmatpush.msrb.mxu3 %v9268_v2  ;;  %v9290_v2 = vld [vmem:[%s16527_s7 + $0xc0] sm:$0xff] }
 0x53e   : > { %v13571_v23 = vpop.f32.mrf.mxu0 }
 0x53f   : > { %v3408_v21 = vpop.f32.mrf.mxu3 }
 0x540   : > { %v3409_v39 = vadd.f32 %v3408_v21, %v3271_v41  ;;  %v9239_v21 = vld [vmem:[%s16527_s7 + $0x68] sm:$0xff] }
 0x541   : > { %3637 = vmatmul.f32.gmra.mxu2 %v3424_v30  ;;  %3608 = vmatmul.f32.gmra.mxu0 %v3471_v51  ;;  %v3452_v30 = vld [vmem:[%s16525_s5 + $0x118] sm:$0xff]  ;;  %v3774_v51 = vld [vmem:[%s16527_s7 + $0x28] sm:$0xff] }
 0x542   : > { %3847 = vmatpush.msra.mxu2 %v3774_v51  ;;  %3953 = vmatpush.msra.mxu1 %v9239_v21  ;;  %v3470_v51 = vld [vmem:[%s16525_s5 + $0x1a8] sm:$0xff] }
 0x546   : > { %v13579_v48 = vpop.f32.mrf.mxu0 }
 0x547   : > { %v3411_v54 = vpop.f32.mrf.mxu3 }
 0x548   : > { %v3412_v7 = vadd.f32 %v3411_v54, %v3274_v46  ;;  %v9267_v46 = vld [vmem:[%s16527_s7 + $0xa8] sm:$0xff]  ;;  %v3773_v54 = vld [vmem:[%s16527_s7 + $0x20] sm:$0xff] }
 0x549   : > { %3640 = vmatmul.f32.gmra.mxu2 %v3427_v17  ;;  %3611 = vmatmul.f32.gmra.mxu0 %v3474_v52  ;;  %v3469_v17 = vld [vmem:[%s16525_s5 + $0x1a0] sm:$0xff] }
 0x54a   : > { %4059 = vmatpush.msrb.mxu3 %v9267_v46  ;;  %3848 = vmatpush.msra.mxu2 %v3773_v54  ;;  %v3473_v54 = vld [vmem:[%s16525_s5 + $0x1c0] sm:$0xff] }
 0x54e   : > { %v13587_v22 = vpop.f32.mrf.mxu0 }
 0x54f   : > { %v3414_v58 = vpop.f32.mrf.mxu3 }
 0x550   : > { %v3415_v18 = vadd.f32 %v3414_v58, %v3277_v63  ;;  %v9266_v63 = vld [vmem:[%s16527_s7 + $0xa0] sm:$0xff]  ;;  %v3772_v58 = vld [vmem:[%s16527_s7 + $0x18] sm:$0xff] }
 0x551   : > { %3643 = vmatmul.f32.gmra.mxu2 %v3430_v16  ;;  %v9238_v16 = vld [vmem:[%s16527_s7 + $0x60] sm:$0xff]  ;;  %4060 = vmatpush.msrb.mxu3 %v9266_v63 }
 0x552   : > { %3700 = vmatpush.msrb.mxu0 %v3415_v18  ;;  %3954 = vmatpush.msra.mxu1 %v9238_v16  ;;  %v9237_v18 = vld [vmem:[%s16527_s7 + $0x58] sm:$0xff] }
 0x553   : > { %3849 = vmatpush.msra.mxu2 %v3772_v58 }
 0x554   : > { %3701 = vmatpush.msrb.mxu0 %v3412_v7  ;;  %v9265_v7 = vld [vmem:[%s16527_s7 + $0x98] sm:$0xff]  ;;  %3955 = vmatpush.msra.mxu1 %v9237_v18 }
 0x555   : > { %4061 = vmatpush.msrb.mxu3 %v9265_v7  ;;  %v3476_v18 = vld [vmem:[%s16525_s5 + $0x1d8] sm:$0xff] }
 0x556   : > { %3702 = vmatpush.msrb.mxu0 %v3409_v39  ;;  %v13592_v40 = vpop.f32.mrf.mxu0  ;;  %v3771_v39 = vld [vmem:[%s16527_s7 + $0x10] sm:$0xff] }
 0x557   : > { %3850 = vmatpush.msra.mxu2 %v3771_v39 }
 0x558   : > { %3703 = vmatpush.msrb.mxu0 %v3406_v62  ;;  %v9236_v62 = vld [vmem:[%s16527_s7 + $0x50] sm:$0xff] }
 0x559   : > { %3646 = vmatmul.f32.gmra.mxu2 %v3433_v28  ;;  %v9264_v28 = vld [vmem:[%s16527_s7 + $0x90] sm:$0xff]  ;;  %3956 = vmatpush.msra.mxu1 %v9236_v62 }
 0x55a   : > { %3704 = vmatpush.msrb.mxu0 %v3403_v36  ;;  %4062 = vmatpush.msrb.mxu3 %v9264_v28 }
 0x55c   : > { %3705 = vmatpush.msrb.mxu0 %v3400_v49  ;;  %v3770_v49 = vld [vmem:[%s16527_s7 + $0x8] sm:$0xff] }
 0x55d   : > { %3851 = vmatpush.msra.mxu2 %v3770_v49 }
 0x55e   : > { %3706 = vmatpush.msrb.mxu0 %v3397_v15  ;;  %v13605_v11 = vpop.f32.mrf.mxu0  ;;  %v9235_v15 = vld [vmem:[%s16527_s7 + $0x48] sm:$0xff] }
 0x55f   : > { %3957 = vmatpush.msra.mxu1 %v9235_v15 }
 0x560   : > { %3707 = vmatpush.msrb.mxu0 %v3394_v59  ;;  %v9263_v59 = vld [vmem:[%s16527_s7 + $0x88] sm:$0xff] }
 0x561   : > { %9194 = vmatmul.msk.f32.vlgmr.msrb.gmra.mxu0 %vm3477_vm1, %v3419_v0  ;;  %3649 = vmatmul.f32.gmra.mxu2 %v3436_v57  ;;  %v3455_v0 = vld [vmem:[%s16525_s5 + $0x130] sm:$0xff]  ;;  %v3472_v57 = vld [vmem:[%s16525_s5 + $0x1b8] sm:$0xff] }
 0x562   : > { %4063 = vmatpush.msrb.mxu3 %v9263_v59 }
 0x566   : > { %v13614_v3 = vpop.f32.mrf.mxu0 }
 0x569   : > { %9195 = vmatmul.msk.f32.gmra.mxu0 %vm3477_vm1, %v3422_v1  ;;  %3652 = vmatmul.f32.gmra.mxu2 %v3439_v60  ;;  %v3769_v1 = vld [vmem:[%s16527_s7] sm:$0xff] }
 0x56a   : > { %v9234_v60 = vld [vmem:[%s16527_s7 + $0x40] sm:$0xff]  ;;  %3852 = vmatpush.msra.mxu2 %v3769_v1 }
 0x56b   : > { %3958 = vmatpush.msra.mxu1 %v9234_v60 }
 0x56e   : > { %v13623_v20 = vpop.f32.mrf.mxu0 }
 0x571   : > { %9196 = vmatmul.msk.f32.gmra.mxu0 %vm3477_vm1, %v3425_v12  ;;  %3655 = vmatmul.f32.gmra.mxu2 %v3442_v4  ;;  %v9262_v12 = vld [vmem:[%s16527_s7 + $0x80] sm:$0xff] }
 0x572   : > { %4064 = vmatpush.msrb.mxu3 %v9262_v12 }
 0x576   : > { %v13632_v33 = vpop.f32.mrf.mxu0 }
 0x579   : > { %9197 = vmatmul.msk.f32.gmra.mxu0 %vm3477_vm1, %v3428_v42  ;;  %3658 = vmatmul.f32.gmra.mxu2 %v3445_v14  ;;  %v3458_v14 = vld [vmem:[%s16525_s5 + $0x148] sm:$0xff] }
 0x57e   : > { %v13641_v31 = vpop.f32.mrf.mxu0 }
 0x581   : > { %9198 = vmatmul.msk.f32.gmra.mxu0 %vm3477_vm1, %v3431_v43  ;;  %3661 = vmatmul.f32.gmra.mxu2 %v3448_v24  ;;  %v3475_v43 = vld [vmem:[%s16525_s5 + $0x1d0] sm:$0xff] }
 0x586   : > { %v13650_v6 = vpop.f32.mrf.mxu0 }
 0x589   : > { %9199 = vmatmul.msk.f32.gmra.mxu0 %vm3477_vm1, %v3434_v29  ;;  %3664 = vmatmul.f32.gmra.mxu2 %v3451_v38  ;;  %v3461_v38 = vld [vmem:[%s16525_s5 + $0x160] sm:$0xff] }
 0x58e   : > { %v13659_v25 = vpop.f32.mrf.mxu0 }
 0x591   : > { %9200 = vmatmul.msk.f32.gmra.mxu0 %vm3477_vm1, %v3437_v50  ;;  %3667 = vmatmul.f32.gmra.mxu2 %v3454_v55  ;;  %v9297_v50 = vld [vmem:[%s16527_s7 + $0xf8] sm:$0xff]  ;;  %v9296_v55 = vld [vmem:[%s16527_s7 + $0xf0] sm:$0xff] }
 0x592   : > { %4163 = vmatpush.msra.mxu0 %v9297_v50 }
 0x594   : > { %4164 = vmatpush.msra.mxu0 %v9296_v55 }
 0x596   : > { %v13668_v37 = vpop.f32.mrf.mxu0 }
 0x599   : > { %9201 = vmatmul.msk.f32.gmra.mxu0 %vm3477_vm1, %v3440_v56  ;;  %3670 = vmatmul.f32.gmra.mxu2 %v3457_v9 }
 0x59e   : > { %v13678_v19 = vpop.f32.mrf.mxu0 }
 0x5a1   : > { %9202 = vmatmul.msk.f32.gmra.mxu0 %vm3477_vm1, %v3443_v44  ;;  %3673 = vmatmul.f32.gmra.mxu2 %v3460_v35  ;;  %v3464_v44 = vld [vmem:[%s16525_s5 + $0x178] sm:$0xff]  ;;  %v9295_v35 = vld [vmem:[%s16527_s7 + $0xe8] sm:$0xff] }
 0x5a2   : > { %4165 = vmatpush.msra.mxu0 %v9295_v35 }
 0x5a6   : > { %v13687_v45 = vpop.f32.mrf.mxu0 }
 0x5a9   : > { %9203 = vmatmul.msk.f32.gmra.mxu0 %vm3477_vm1, %v3446_v8  ;;  %3676 = vmatmul.f32.gmra.mxu2 %v3463_v53  ;;  %v9294_v8 = vld [vmem:[%s16527_s7 + $0xe0] sm:$0xff]  ;;  %v9293_v53 = vld [vmem:[%s16527_s7 + $0xd8] sm:$0xff] }
 0x5aa   : > { %4166 = vmatpush.msra.mxu0 %v9294_v8 }
 0x5ac   : > { %4167 = vmatpush.msra.mxu0 %v9293_v53 }
 0x5ae   : > { %v13731_v52 = vpop.f32.mrf.mxu0 }
 0x5b1   : > { %9204 = vmatmul.msk.f32.gmra.mxu0 %vm3477_vm1, %v3449_v32  ;;  %3679 = vmatmul.f32.gmra.mxu2 %v3466_v34  ;;  %v9292_v32 = vld [vmem:[%s16527_s7 + $0xd0] sm:$0xff] }
 0x5b2   : > { %4168 = vmatpush.msra.mxu0 %v9292_v32 }
 0x5b4   : > { %v13714_v41 = vpop.f32.mrf.mxu2  ;;  %4169 = vmatpush.msra.mxu0 %v9291_v47 }
 0x5b5   : > { %v3633_v5 = vadd.f32 %v13714_v41, %v13555_v27 }
 0x5b6   : > { %v13785_v4 = vpop.f32.mrf.mxu0  ;;  %4170 = vmatpush.msra.mxu0 %v9290_v2 }
 0x5b9   : > { %9205 = vmatmul.msk.f32.gmra.mxu0 %vm3477_vm1, %v3452_v30  ;;  %3682 = vmatmul.f32.gmra.mxu2 %v3469_v17 }
 0x5bc   : > { %v3635_v36 = vpop.f32.mrf.mxu2 }
 0x5bd   : > { %v3636_v41 = vadd.f32 %v3635_v36, %v13563_v10 }
 0x5be   : > { %v13795_v24 = vpop.f32.mrf.mxu0 }
 0x5c1   : > { %9206 = vmatmul.msk.f32.gmra.mxu0 %vm3477_vm1, %v3455_v0  ;;  %3685 = vmatmul.f32.gmra.mxu2 %v3472_v57 }
 0x5c4   : > { %v3638_v42 = vpop.f32.mrf.mxu2 }
 0x5c5   : > { %v3639_v10 = vadd.f32 %v3638_v42, %v13571_v23 }
 0x5c6   : > { %v13807_v56 = vpop.f32.mrf.mxu0 }
 0x5c9   : > { %9207 = vmatmul.msk.f32.gmra.mxu0 %vm3477_vm1, %v3458_v14  ;;  %3688 = vmatmul.f32.gmra.mxu2 %v3475_v43 }
 0x5cc   : > { %v3641_v29 = vpop.f32.mrf.mxu2 }
 0x5cd   : > { %v3642_v23 = vadd.f32 %v3641_v29, %v13579_v48 }
 0x5d1   : > { %9208 = vmatmul.msk.f32.gmra.mxu0 %vm3477_vm1, %v3461_v38 }
 0x5d4   : > { %v3644_v9 = vpop.f32.mrf.mxu2 }
 0x5d5   : > { %v3645_v48 = vadd.f32 %v3644_v9, %v13587_v22 }
 0x5d9   : > { %9209 = vmatmul.msk.f32.gmra.mxu0 %vm3477_vm1, %v3464_v44 }
 0x5dc   : > { %v3647_v34 = vpop.f32.mrf.mxu2 }
 0x5dd   : > { %v3648_v49 = vadd.f32 %v3647_v34, %v13592_v40 }
 0x5de   : > { %v3709_v13 = vpop.f32.mrf.mxu0 }
 0x5df   : > { %v13833_v26 = vadd.f32 %v3709_v13, %v3633_v5 }
 0x5e1   : > { %9210 = vmatmul.msk.f32.gmra.mxu0 %vm3477_vm1, %v3467_v61  ;;  %9214 = vmatmul.msk.f32.vlgmr.msra.gmra.mxu2 %vm3477_vm1, %v13833_v26 }
 0x5e2   : > { %9242 = vmatmul.msk.f32.vlgmr.msra.gmra.mxu1 %vm3477_vm1, %v13833_v26  ;;  %9270 = vmatmul.msk.f32.vlgmr.msrb.gmra.mxu3 %vm3477_vm1, %v13833_v26 }
 0x5e4   : > { %v3650_v27 = vpop.f32.mrf.mxu2 }
 0x5e5   : > { %v3651_v0 = vadd.f32 %v3650_v27, %v13605_v11 }
 0x5e6   : > { %v3712_v30 = vpop.f32.mrf.mxu0 }
 0x5e7   : > { %v13849_v21 = vadd.f32 %v3712_v30, %v3636_v41  ;;  %v9353_v41 = vld [vmem:[%s16527_s7 + $0x178] sm:$0xff] }
 0x5e8   : > { %v9381_v30 = vld [vmem:[%s16527_s7 + $0x1b8] sm:$0xff]  ;;  %4375 = vmatpush.msrb.mxu1 %v9353_v41  ;;  %v9435_v41 = vld [vmem:[%s16527_s7 + $0x228] sm:$0xff] }
 0x5e9   : > { %9211 = vmatmul.msk.f32.gmra.mxu0 %vm3477_vm1, %v3470_v51  ;;  %9215 = vmatmul.msk.f32.gmra.mxu2 %vm3477_vm1, %v13849_v21  ;;  %v9324_v51 = vld [vmem:[%s16527_s7 + $0x130] sm:$0xff] }
 0x5ea   : > { %9243 = vmatmul.msk.f32.gmra.mxu1 %vm3477_vm1, %v13849_v21  ;;  %9271 = vmatmul.msk.f32.gmra.mxu3 %vm3477_vm1, %v13849_v21 }
 0x5eb   : > { %4481 = vmatpush.msra.mxu3 %v9381_v30 }
 0x5ec   : > { %v3653_v46 = vpop.f32.mrf.mxu2 }
 0x5ed   : > { %v3654_v1 = vadd.f32 %v3653_v46, %v13614_v3  ;;  %v9352_v46 = vld [vmem:[%s16527_s7 + $0x170] sm:$0xff] }
 0x5ee   : > { %v3715_v17 = vpop.f32.mrf.mxu0  ;;  %4376 = vmatpush.msrb.mxu1 %v9352_v46 }
 0x5ef   : > { %v13862_v16 = vadd.f32 %v3715_v17, %v3639_v10  ;;  %v9380_v10 = vld [vmem:[%s16527_s7 + $0x1b0] sm:$0xff] }
 0x5f0   : > { %4482 = vmatpush.msra.mxu3 %v9380_v10  ;;  %v9407_v10 = vld [vmem:[%s16527_s7 + $0x1e8] sm:$0xff] }
 0x5f1   : > { %9212 = vmatmul.msk.f32.gmra.mxu0 %vm3477_vm1, %v3473_v54  ;;  %9216 = vmatmul.msk.f32.gmra.mxu2 %vm3477_vm1, %v13862_v16 }
 0x5f2   : > { %9244 = vmatmul.msk.f32.gmra.mxu1 %vm3477_vm1, %v13862_v16  ;;  %9272 = vmatmul.msk.f32.gmra.mxu3 %vm3477_vm1, %v13862_v16 }
 0x5f4   : > { %v3656_v63 = vpop.f32.mrf.mxu2 }
 0x5f5   : > { %v3657_v42 = vadd.f32 %v3656_v63, %v13623_v20  ;;  %v9323_v63 = vld [vmem:[%s16527_s7 + $0x128] sm:$0xff] }
 0x5f6   : > { %v3718_v58 = vpop.f32.mrf.mxu0 }
 0x5f7   : > { %v13875_v7 = vadd.f32 %v3718_v58, %v3642_v23  ;;  %v9351_v23 = vld [vmem:[%s16527_s7 + $0x168] sm:$0xff] }
 0x5f8   : > { %v9379_v58 = vld [vmem:[%s16527_s7 + $0x1a8] sm:$0xff]  ;;  %4377 = vmatpush.msrb.mxu1 %v9351_v23  ;;  %v9433_v23 = vld [vmem:[%s16527_s7 + $0x218] sm:$0xff] }
 0x5f9   : > { %9213 = vmatmul.msk.f32.gmra.mxu0 %vm3477_vm1, %v3476_v18  ;;  %9217 = vmatmul.msk.f32.gmra.mxu2 %vm3477_vm1, %v13875_v7 }
 0x5fa   : > { %9245 = vmatmul.msk.f32.gmra.mxu1 %vm3477_vm1, %v13875_v7  ;;  %9273 = vmatmul.msk.f32.gmra.mxu3 %vm3477_vm1, %v13875_v7 }
 0x5fb   : > { %4483 = vmatpush.msra.mxu3 %v9379_v58  ;;  %v9405_v58 = vld [vmem:[%s16527_s7 + $0x1d8] sm:$0xff] }
 0x5fc   : > { %v3659_v39 = vpop.f32.mrf.mxu2 }
 0x5fd   : > { %v3660_v29 = vadd.f32 %v3659_v39, %v13632_v33  ;;  %v9350_v39 = vld [vmem:[%s16527_s7 + $0x160] sm:$0xff] }
 0x5fe   : > { %v3721_v62 = vpop.f32.mrf.mxu0  ;;  %4378 = vmatpush.msrb.mxu1 %v9350_v39  ;;  %v9432_v39 = vld [vmem:[%s16527_s7 + $0x210] sm:$0xff] }
 0x5ff   : > { %v13885_v28 = vadd.f32 %v3721_v62, %v3645_v48  ;;  %v9378_v48 = vld [vmem:[%s16527_s7 + $0x1a0] sm:$0xff]  ;;  %v9321_v62 = vld [vmem:[%s16527_s7 + $0x118] sm:$0xff] }
 0x600   : > { %4484 = vmatpush.msra.mxu3 %v9378_v48  ;;  %v9404_v48 = vld [vmem:[%s16527_s7 + $0x1d0] sm:$0xff] }
 0x601   : > { %9218 = vmatmul.msk.f32.gmra.mxu2 %vm3477_vm1, %v13885_v28  ;;  %9298 = vmatmul.msk.f32.vlgmr.msra.gmra.mxu0 %vm3477_vm1, %v13833_v26 }
 0x602   : > { %9246 = vmatmul.msk.f32.gmra.mxu1 %vm3477_vm1, %v13885_v28  ;;  %9274 = vmatmul.msk.f32.gmra.mxu3 %vm3477_vm1, %v13885_v28 }
 0x604   : > { %v3662_v36 = vpop.f32.mrf.mxu2 }
 0x605   : > { %v3663_v55 = vadd.f32 %v3662_v36, %v13641_v31  ;;  %v9349_v36 = vld [vmem:[%s16527_s7 + $0x158] sm:$0xff] }
 0x606   : > { %v3724_v15 = vpop.f32.mrf.mxu0  ;;  %4379 = vmatpush.msrb.mxu1 %v9349_v36 }
 0x607   : > { %v13896_v22 = vadd.f32 %v3724_v15, %v3648_v49  ;;  %v9377_v49 = vld [vmem:[%s16527_s7 + $0x198] sm:$0xff] }
 0x608   : > { %4485 = vmatpush.msra.mxu3 %v9377_v49 }
 0x609   : > { %9219 = vmatmul.msk.f32.gmra.mxu2 %vm3477_vm1, %v13896_v22  ;;  %9299 = vmatmul.msk.f32.gmra.mxu0 %vm3477_vm1, %v13849_v21 }
 0x60a   : > { %9247 = vmatmul.msk.f32.gmra.mxu1 %vm3477_vm1, %v13896_v22  ;;  %9275 = vmatmul.msk.f32.gmra.mxu3 %vm3477_vm1, %v13896_v22 }
 0x60c   : > { %v3665_v59 = vpop.f32.mrf.mxu2 }
 0x60d   : > { %v3666_v35 = vadd.f32 %v3665_v59, %v13650_v6  ;;  %v9320_v59 = vld [vmem:[%s16527_s7 + $0x110] sm:$0xff] }
 0x60e   : > { %v3727_v57 = vpop.f32.mrf.mxu0 }
 0x60f   : > { %v13907_v40 = vadd.f32 %v3727_v57, %v3651_v0  ;;  %v9348_v0 = vld [vmem:[%s16527_s7 + $0x150] sm:$0xff] }
 0x610   : > { %4380 = vmatpush.msrb.mxu1 %v9348_v0  ;;  %v9430_v0 = vld [vmem:[%s16527_s7 + $0x200] sm:$0xff] }
 0x611   : > { %9220 = vmatmul.msk.f32.gmra.mxu2 %vm3477_vm1, %v13907_v40  ;;  %9300 = vmatmul.msk.f32.gmra.mxu0 %vm3477_vm1, %v13862_v16 }
 0x612   : > { %9248 = vmatmul.msk.f32.gmra.mxu1 %vm3477_vm1, %v13907_v40  ;;  %9276 = vmatmul.msk.f32.gmra.mxu3 %vm3477_vm1, %v13907_v40 }
 0x614   : > { %v3668_v60 = vpop.f32.mrf.mxu2 }
 0x615   : > { %v3669_v53 = vadd.f32 %v3668_v60, %v13659_v25 }
 0x616   : > { %v3730_v12 = vpop.f32.mrf.mxu0 }
 0x617   : > { %v13918_v11 = vadd.f32 %v3730_v12, %v3654_v1  ;;  %v9376_v1 = vld [vmem:[%s16527_s7 + $0x190] sm:$0xff] }
 0x618   : > { %4486 = vmatpush.msra.mxu3 %v9376_v1 }
 0x619   : > { %9221 = vmatmul.msk.f32.gmra.mxu2 %vm3477_vm1, %v13918_v11  ;;  %9301 = vmatmul.msk.f32.gmra.mxu0 %vm3477_vm1, %v13875_v7 }
 0x61a   : > { %9249 = vmatmul.msk.f32.gmra.mxu1 %vm3477_vm1, %v13918_v11  ;;  %9277 = vmatmul.msk.f32.gmra.mxu3 %vm3477_vm1, %v13918_v11 }
 0x61c   : > { %v3671_v43 = vpop.f32.mrf.mxu2 }
 0x61d   : > { %v3672_v5 = vadd.f32 %v3671_v43, %v13668_v37  ;;  %v9375_v43 = vld [vmem:[%s16527_s7 + $0x188] sm:$0xff] }
 0x61e   : > { %v3733_v14 = vpop.f32.mrf.mxu0  ;;  %4487 = vmatpush.msra.mxu3 %v9375_v43 }
 0x61f   : > { %v13929_v3 = vadd.f32 %v3733_v14, %v3657_v42  ;;  %v9347_v14 = vld [vmem:[%s16527_s7 + $0x148] sm:$0xff] }
 0x620   : > { %4381 = vmatpush.msrb.mxu1 %v9347_v14 }
 0x621   : > { %9222 = vmatmul.msk.f32.gmra.mxu2 %vm3477_vm1, %v13929_v3  ;;  %9302 = vmatmul.msk.f32.gmra.mxu0 %vm3477_vm1, %v13885_v28 }
 0x622   : > { %9250 = vmatmul.msk.f32.gmra.mxu1 %vm3477_vm1, %v13929_v3  ;;  %9278 = vmatmul.msk.f32.gmra.mxu3 %vm3477_vm1, %v13929_v3 }
 0x624   : > { %v3674_v50 = vpop.f32.mrf.mxu2 }
 0x625   : > { %v3675_v47 = vadd.f32 %v3674_v50, %v13678_v19  ;;  %v9325_v19 = vld [vmem:[%s16527_s7 + $0x138] sm:$0xff]  ;;  %v9374_v50 = vld [vmem:[%s16527_s7 + $0x180] sm:$0xff] }
 0x626   : > { %v3736_v38 = vpop.f32.mrf.mxu0  ;;  %4269 = vmatpush.msrb.mxu2 %v9325_v19  ;;  %4488 = vmatpush.msra.mxu3 %v9374_v50  ;;  %v9408_v19 = vld [vmem:[%s16527_s7 + $0x1f0] sm:$0xff] }
 0x627   : > { %v13940_v20 = vadd.f32 %v3736_v38, %v3660_v29  ;;  %v9318_v29 = vld [vmem:[%s16527_s7 + $0x100] sm:$0xff] }
 0x628   : > { %4270 = vmatpush.msrb.mxu2 %v9324_v51  ;;  %v9346_v38 = vld [vmem:[%s16527_s7 + $0x140] sm:$0xff] }
 0x629   : > { %9223 = vmatmul.msk.f32.gmra.mxu2 %vm3477_vm1, %v13940_v20  ;;  %9303 = vmatmul.msk.f32.gmra.mxu0 %vm3477_vm1, %v13896_v22 }
 0x62a   : > { %9251 = vmatmul.msk.f32.gmra.mxu1 %vm3477_vm1, %v13940_v20  ;;  %9279 = vmatmul.msk.f32.gmra.mxu3 %vm3477_vm1, %v13940_v20 }
 0x62b   : > { %4271 = vmatpush.msrb.mxu2 %v9323_v63  ;;  %4382 = vmatpush.msrb.mxu1 %v9346_v38  ;;  %v9406_v63 = vld [vmem:[%s16527_s7 + $0x1e0] sm:$0xff] }
 0x62c   : > { %v3677_v44 = vpop.f32.mrf.mxu2 }
 0x62d   : > { %v3678_v17 = vadd.f32 %v3677_v44, %v13687_v45  ;;  %v9322_v45 = vld [vmem:[%s16527_s7 + $0x120] sm:$0xff] }
 0x62e   : > { %v3739_v9 = vpop.f32.mrf.mxu0  ;;  %4272 = vmatpush.msrb.mxu2 %v9322_v45 }
 0x62f   : > { %v13951_v33 = vadd.f32 %v3739_v9, %v3663_v55 }
 0x630   : > { %4273 = vmatpush.msrb.mxu2 %v9321_v62 }
 0x631   : > { %9224 = vmatmul.msk.f32.gmra.mxu2 %vm3477_vm1, %v13951_v33  ;;  %9304 = vmatmul.msk.f32.gmra.mxu0 %vm3477_vm1, %v13907_v40 }
 0x632   : > { %9252 = vmatmul.msk.f32.gmra.mxu1 %vm3477_vm1, %v13951_v33  ;;  %9280 = vmatmul.msk.f32.gmra.mxu3 %vm3477_vm1, %v13951_v33 }
 0x633   : > { %4274 = vmatpush.msrb.mxu2 %v9320_v59  ;;  %v9403_v59 = vld [vmem:[%s16527_s7 + $0x1c8] sm:$0xff] }
 0x634   : > { %v3680_v32 = vpop.f32.mrf.mxu2 }
 0x635   : > { %v3681_v57 = vadd.f32 %v3680_v32, %v13731_v52  ;;  %v9319_v52 = vld [vmem:[%s16527_s7 + $0x108] sm:$0xff] }
 0x636   : > { %v3742_v8 = vpop.f32.mrf.mxu0  ;;  %4275 = vmatpush.msrb.mxu2 %v9319_v52 }
 0x637   : > { %v13962_v31 = vadd.f32 %v3742_v8, %v3666_v35 }
 0x638   : > { %4276 = vmatpush.msrb.mxu2 %v9318_v29 }
 0x639   : > { %9225 = vmatmul.msk.f32.gmra.mxu2 %vm3477_vm1, %v13962_v31  ;;  %9305 = vmatmul.msk.f32.gmra.mxu0 %vm3477_vm1, %v13918_v11 }
 0x63a   : > { %9253 = vmatmul.msk.f32.gmra.mxu1 %vm3477_vm1, %v13962_v31  ;;  %9281 = vmatmul.msk.f32.gmra.mxu3 %vm3477_vm1, %v13962_v31 }
 0x63c   : > { %v13986_v61 = vpop.f32.mrf.mxu2 }
 0x63d   : > { %v3684_v9 = vadd.f32 %v13986_v61, %v13785_v4 }
 0x63e   : > { %v3745_v34 = vpop.f32.mrf.mxu0 }
 0x63f   : > { %v13973_v6 = vadd.f32 %v3745_v34, %v3669_v53 }
 0x641   : > { %9226 = vmatmul.msk.f32.gmra.mxu2 %vm3477_vm1, %v13973_v6  ;;  %9306 = vmatmul.msk.f32.gmra.mxu0 %vm3477_vm1, %v13929_v3 }
 0x642   : > { %9254 = vmatmul.msk.f32.gmra.mxu1 %vm3477_vm1, %v13973_v6  ;;  %9282 = vmatmul.msk.f32.gmra.mxu3 %vm3477_vm1, %v13973_v6 }
 0x644   : > { %v14003_v27 = vpop.f32.mrf.mxu2 }
 0x645   : > { %v3687_v32 = vadd.f32 %v14003_v27, %v13795_v24  ;;  %v9409_v24 = vld [vmem:[%s16527_s7 + $0x1f8] sm:$0xff] }
 0x646   : > { %v3748_v13 = vpop.f32.mrf.mxu0  ;;  %4587 = vmatpush.msrb.mxu0 %v9409_v24 }
 0x647   : > { %v13984_v25 = vadd.f32 %v3748_v13, %v3672_v5 }
 0x648   : > { %4588 = vmatpush.msrb.mxu0 %v9408_v19 }
 0x649   : > { %9227 = vmatmul.msk.f32.gmra.mxu2 %vm3477_vm1, %v13984_v25  ;;  %9307 = vmatmul.msk.f32.gmra.mxu0 %vm3477_vm1, %v13940_v20 }
 0x64a   : > { %9255 = vmatmul.msk.f32.gmra.mxu1 %vm3477_vm1, %v13984_v25  ;;  %9283 = vmatmul.msk.f32.gmra.mxu3 %vm3477_vm1, %v13984_v25 }
 0x64b   : > { %4589 = vmatpush.msrb.mxu0 %v9407_v10 }
 0x64c   : > { %v14065_v15 = vpop.f32.mrf.mxu2 }
 0x64d   : > { %v3690_v30 = vadd.f32 %v14065_v15, %v13807_v56  ;;  %v9434_v56 = vld [vmem:[%s16527_s7 + $0x220] sm:$0xff]  ;;  %4590 = vmatpush.msrb.mxu0 %v9406_v63  ;;  %v9431_v15 = vld [vmem:[%s16527_s7 + $0x208] sm:$0xff] }
 0x64e   : > { %v3751_v37 = vpop.f32.mrf.mxu0 }
 0x64f   : > { %v13997_v2 = vadd.f32 %v3751_v37, %v3675_v47  ;;  %v9437_v47 = vld [vmem:[%s16527_s7 + $0x238] sm:$0xff]  ;;  %v9436_v37 = vld [vmem:[%s16527_s7 + $0x230] sm:$0xff]  ;;  %4591 = vmatpush.msrb.mxu0 %v9405_v58 }
 0x650   : > { %4693 = vmatpush.msra.mxu2 %v9437_v47 }
 0x651   : > { %9228 = vmatmul.msk.f32.gmra.mxu2 %vm3477_vm1, %v13997_v2  ;;  %9308 = vmatmul.msk.f32.gmra.mxu0 %vm3477_vm1, %v13951_v33 }
 0x652   : > { %9256 = vmatmul.msk.f32.gmra.mxu1 %vm3477_vm1, %v13997_v2  ;;  %9284 = vmatmul.msk.f32.gmra.mxu3 %vm3477_vm1, %v13997_v2 }
 0x653   : > { %4694 = vmatpush.msra.mxu2 %v9436_v37  ;;  %4592 = vmatpush.msrb.mxu0 %v9404_v48 }
 0x655   : > { %4695 = vmatpush.msra.mxu2 %v9435_v41  ;;  %4593 = vmatpush.msrb.mxu0 %v9403_v59 }
 0x656   : > { %v3754_v54 = vpop.f32.mrf.mxu0 }
 0x657   : > { %v14037_v18 = vadd.f32 %v3754_v54, %v3678_v17  ;;  %4696 = vmatpush.msra.mxu2 %v9434_v56 }
 0x659   : > { %9229 = vmatmul.msk.f32.gmra.mxu2 %vm3477_vm1, %v14037_v18  ;;  %9309 = vmatmul.msk.f32.gmra.mxu0 %vm3477_vm1, %v13962_v31 }
 0x65a   : > { %9257 = vmatmul.msk.f32.gmra.mxu1 %vm3477_vm1, %v14037_v18  ;;  %9285 = vmatmul.msk.f32.gmra.mxu3 %vm3477_vm1, %v14037_v18 }
 0x65b   : > { %4697 = vmatpush.msra.mxu2 %v9433_v23 }
 0x65d   : > { %4698 = vmatpush.msra.mxu2 %v9432_v39 }
 0x65e   : > { %v3757_v60 = vpop.f32.mrf.mxu0 }
 0x65f   : > { %v14077_v12 = vadd.f32 %v3757_v60, %v3681_v57  ;;  %v3960_v42 = vpop.f32.mrf.mxu1  ;;  %v9402_v57 = vld [vmem:[%s16527_s7 + $0x1c0] sm:$0xff]  ;;  %4699 = vmatpush.msra.mxu2 %v9431_v15 }
 0x660   : > { %4020 = vst.msk [vmem:[#allocation3 + $0xa0] sm:$0xff] %vm3477_vm1, %v3960_v42  ;;  %4594 = vmatpush.msrb.mxu0 %v9402_v57 }
 0x661   : > { %9230 = vmatmul.msk.f32.gmra.mxu2 %vm3477_vm1, %v14077_v12  ;;  %9310 = vmatmul.msk.f32.gmra.mxu0 %vm3477_vm1, %v13973_v6 }
 0x662   : > { %9258 = vmatmul.msk.f32.gmra.mxu1 %vm3477_vm1, %v14077_v12  ;;  %9286 = vmatmul.msk.f32.gmra.mxu3 %vm3477_vm1, %v14077_v12 }
 0x663   : > { %4700 = vmatpush.msra.mxu2 %v9430_v0 }
 0x664   : > { %v3854_v55 = vpop.f32.mrf.mxu2 }
 0x665   : > { %3914 = vst.msk [vmem:[#allocation3] sm:$0xff] %vm3477_vm1, %v3854_v55  ;;  %v4066_v44 = vpop.f32.mrf.mxu3 }
 0x666   : > { %4126 = vst.msk [vmem:[#allocation3 + $0x140] sm:$0xff] %vm3477_vm1, %v4066_v44  ;;  %v3760_v35 = vpop.f32.mrf.mxu0 }
 0x667   : > { %v14110_v8 = vadd.f32 %v3760_v35, %v3684_v9  ;;  %v3963_v53 = vpop.f32.mrf.mxu1 }
 0x668   : > { %4021 = vst.msk [vmem:[#allocation3 + $0xa8] sm:$0xff] %vm3477_vm1, %v3963_v53 }
 0x669   : > { %9231 = vmatmul.msk.f32.gmra.mxu2 %vm3477_vm1, %v14110_v8  ;;  %9311 = vmatmul.msk.f32.gmra.mxu0 %vm3477_vm1, %v13984_v25 }
 0x66a   : > { %9259 = vmatmul.msk.f32.gmra.mxu1 %vm3477_vm1, %v14110_v8  ;;  %9287 = vmatmul.msk.f32.gmra.mxu3 %vm3477_vm1, %v14110_v8 }
 0x66c   : > { %v3857_v4 = vpop.f32.mrf.mxu2 }
 0x66d   : > { %3915 = vst.msk [vmem:[#allocation3 + $0x8] sm:$0xff] %vm3477_vm1, %v3857_v4  ;;  %v4069_v34 = vpop.f32.mrf.mxu3  ;;  %v5062_v48 = vld [vmem:[#allocation3 + $0x140] sm:$0xff] }
 0x66e   : > { %4127 = vst.msk [vmem:[#allocation3 + $0x148] sm:$0xff] %vm3477_vm1, %v4069_v34  ;;  %v3763_v5 = vpop.f32.mrf.mxu0 }
 0x66f   : > { %v14125_v13 = vadd.f32 %v3763_v5, %v3687_v32  ;;  %v3966_v61 = vpop.f32.mrf.mxu1 }
 0x670   : > { %4022 = vst.msk [vmem:[#allocation3 + $0xb0] sm:$0xff] %vm3477_vm1, %v3966_v61 }
 0x671   : > { %9232 = vmatmul.msk.f32.gmra.mxu2 %vm3477_vm1, %v14125_v13  ;;  %9312 = vmatmul.msk.f32.gmra.mxu0 %vm3477_vm1, %v13997_v2 }
 0x672   : > { %9260 = vmatmul.msk.f32.gmra.mxu1 %vm3477_vm1, %v14125_v13  ;;  %9288 = vmatmul.msk.f32.gmra.mxu3 %vm3477_vm1, %v14125_v13 }
 0x674   : > { %v3860_v27 = vpop.f32.mrf.mxu2 }
 0x675   : > { %3916 = vst.msk [vmem:[#allocation3 + $0x10] sm:$0xff] %vm3477_vm1, %v3860_v27  ;;  %v4072_v51 = vpop.f32.mrf.mxu3 }
 0x676   : > { %4128 = vst.msk [vmem:[#allocation3 + $0x150] sm:$0xff] %vm3477_vm1, %v4072_v51  ;;  %v3766_v46 = vpop.f32.mrf.mxu0 }
 0x677   : > { %v14158_v17 = vadd.f32 %v3766_v46, %v3690_v30  ;;  %v3969_v54 = vpop.f32.mrf.mxu1 }
 0x678   : > { %4023 = vst.msk [vmem:[#allocation3 + $0xb8] sm:$0xff] %vm3477_vm1, %v3969_v54 }
 0x679   : > { %9233 = vmatmul.msk.f32.gmra.mxu2 %vm3477_vm1, %v14158_v17  ;;  %9313 = vmatmul.msk.f32.gmra.mxu0 %vm3477_vm1, %v14037_v18 }
 0x67a   : > { %9261 = vmatmul.msk.f32.gmra.mxu1 %vm3477_vm1, %v14158_v17  ;;  %9289 = vmatmul.msk.f32.gmra.mxu3 %vm3477_vm1, %v14158_v17 }
 0x67c   : > { %v3863_v45 = vpop.f32.mrf.mxu2 }
 0x67d   : > { %3917 = vst.msk [vmem:[#allocation3 + $0x18] sm:$0xff] %vm3477_vm1, %v3863_v45  ;;  %v4075_v62 = vpop.f32.mrf.mxu3  ;;  %v5064_v58 = vld [vmem:[#allocation3 + $0x150] sm:$0xff]  ;;  %v5063_v45 = vld [vmem:[#allocation3 + $0x148] sm:$0xff] }
 0x67e   : > { %4129 = vst.msk [vmem:[#allocation3 + $0x158] sm:$0xff] %vm3477_vm1, %v4075_v62  ;;  %v4172_v36 = vpop.f32.mrf.mxu0 }
 0x67f   : > { %v3972_v49 = vpop.f32.mrf.mxu1  ;;  %4232 = vst.msk [vmem:[#allocation3 + $0x1e0] sm:$0xff] %vm3477_vm1, %v4172_v36 }
 0x680   : > { %4024 = vst.msk [vmem:[#allocation3 + $0xc0] sm:$0xff] %vm3477_vm1, %v3972_v49 }
 0x681   : > { %9314 = vmatmul.msk.f32.gmra.mxu0 %vm3477_vm1, %v14077_v12  ;;  %9326 = vmatmul.msk.f32.vlgmr.msrb.gmra.mxu2 %vm3477_vm1, %v13833_v26 }
 0x682   : > { %9354 = vmatmul.msk.f32.vlgmr.msrb.gmra.mxu1 %vm3477_vm1, %v13833_v26  ;;  %9382 = vmatmul.msk.f32.vlgmr.msra.gmra.mxu3 %vm3477_vm1, %v13833_v26 }
 0x684   : > { %v3866_v1 = vpop.f32.mrf.mxu2 }
 0x685   : > { %3918 = vst.msk [vmem:[#allocation3 + $0x20] sm:$0xff] %vm3477_vm1, %v3866_v1  ;;  %v4078_v60 = vpop.f32.mrf.mxu3  ;;  %v5065_v56 = vld [vmem:[#allocation3 + $0x158] sm:$0xff] }
 0x686   : > { %4130 = vst.msk [vmem:[#allocation3 + $0x160] sm:$0xff] %vm3477_vm1, %v4078_v60  ;;  %v4175_v42 = vpop.f32.mrf.mxu0  ;;  %v5082_v27 = vld [vmem:[#allocation3 + $0x1e0] sm:$0xff] }
 0x687   : > { %v3975_v52 = vpop.f32.mrf.mxu1  ;;  %4233 = vst.msk [vmem:[#allocation3 + $0x1e8] sm:$0xff] %vm3477_vm1, %v4175_v42 }
 0x688   : > { %4025 = vst.msk [vmem:[#allocation3 + $0xc8] sm:$0xff] %vm3477_vm1, %v3975_v52 }
 0x689   : > { %9315 = vmatmul.msk.f32.gmra.mxu0 %vm3477_vm1, %v14110_v8  ;;  %9327 = vmatmul.msk.f32.gmra.mxu2 %vm3477_vm1, %v13849_v21 }
 0x68a   : > { %9355 = vmatmul.msk.f32.gmra.mxu1 %vm3477_vm1, %v13849_v21  ;;  %9383 = vmatmul.msk.f32.gmra.mxu3 %vm3477_vm1, %v13849_v21 }
 0x68c   : > { %v3869_v14 = vpop.f32.mrf.mxu2 }
 0x68d   : > { %3919 = vst.msk [vmem:[#allocation3 + $0x28] sm:$0xff] %vm3477_vm1, %v3869_v14  ;;  %v4081_v43 = vpop.f32.mrf.mxu3  ;;  %v5066_v46 = vld [vmem:[#allocation3 + $0x160] sm:$0xff] }
 0x68e   : > { %4131 = vst.msk [vmem:[#allocation3 + $0x168] sm:$0xff] %vm3477_vm1, %v4081_v43  ;;  %v4178_v29 = vpop.f32.mrf.mxu0  ;;  %v5083_v61 = vld [vmem:[#allocation3 + $0x1e8] sm:$0xff] }
 0x68f   : > { %v3978_v38 = vpop.f32.mrf.mxu1  ;;  %4234 = vst.msk [vmem:[#allocation3 + $0x1f0] sm:$0xff] %vm3477_vm1, %v4178_v29 }
 0x690   : > { %4026 = vst.msk [vmem:[#allocation3 + $0xd0] sm:$0xff] %vm3477_vm1, %v3978_v38 }
 0x691   : > { %9316 = vmatmul.msk.f32.gmra.mxu0 %vm3477_vm1, %v14125_v13  ;;  %9328 = vmatmul.msk.f32.gmra.mxu2 %vm3477_vm1, %v13862_v16 }
 0x692   : > { %9356 = vmatmul.msk.f32.gmra.mxu1 %vm3477_vm1, %v13862_v16  ;;  %9384 = vmatmul.msk.f32.gmra.mxu3 %vm3477_vm1, %v13862_v16 }
 0x694   : > { %v3872_v50 = vpop.f32.mrf.mxu2 }
 0x695   : > { %3920 = vst.msk [vmem:[#allocation3 + $0x30] sm:$0xff] %vm3477_vm1, %v3872_v50  ;;  %v4084_v55 = vpop.f32.mrf.mxu3  ;;  %v5067_v51 = vld [vmem:[#allocation3 + $0x168] sm:$0xff] }
 0x696   : > { %4132 = vst.msk [vmem:[#allocation3 + $0x170] sm:$0xff] %vm3477_vm1, %v4084_v55  ;;  %v4181_v9 = vpop.f32.mrf.mxu0  ;;  %v5084_v5 = vld [vmem:[#allocation3 + $0x1f0] sm:$0xff] }
 0x697   : > { %v3981_v44 = vpop.f32.mrf.mxu1  ;;  %4235 = vst.msk [vmem:[#allocation3 + $0x1f8] sm:$0xff] %vm3477_vm1, %v4181_v9  ;;  %v5048_v55 = vld [vmem:[#allocation3 + $0xd0] sm:$0xff]  ;;  %v5047_v9 = vld [vmem:[#allocation3 + $0xc8] sm:$0xff] }
 0x698   : > { %4027 = vst.msk [vmem:[#allocation3 + $0xd8] sm:$0xff] %vm3477_vm1, %v3981_v44 }
 0x699   : > { %9317 = vmatmul.msk.f32.gmra.mxu0 %vm3477_vm1, %v14158_v17  ;;  %9329 = vmatmul.msk.f32.gmra.mxu2 %vm3477_vm1, %v13875_v7 }
 0x69a   : > { %9357 = vmatmul.msk.f32.gmra.mxu1 %vm3477_vm1, %v13875_v7  ;;  %9385 = vmatmul.msk.f32.gmra.mxu3 %vm3477_vm1, %v13875_v7 }
 0x69c   : > { %v3875_v35 = vpop.f32.mrf.mxu2 }
 0x69d   : > { %3921 = vst.msk [vmem:[#allocation3 + $0x38] sm:$0xff] %vm3477_vm1, %v3875_v35  ;;  %v4087_v53 = vpop.f32.mrf.mxu3  ;;  %v5068_v30 = vld [vmem:[#allocation3 + $0x170] sm:$0xff] }
 0x69e   : > { %4133 = vst.msk [vmem:[#allocation3 + $0x178] sm:$0xff] %vm3477_vm1, %v4087_v53  ;;  %v4184_v4 = vpop.f32.mrf.mxu0  ;;  %v5085_v32 = vld [vmem:[#allocation3 + $0x1f8] sm:$0xff]  ;;  %v5046_v53 = vld [vmem:[#allocation3 + $0xc0] sm:$0xff] }
 0x69f   : > { %v3984_v34 = vpop.f32.mrf.mxu1  ;;  %4236 = vst.msk [vmem:[#allocation3 + $0x200] sm:$0xff] %vm3477_vm1, %v4184_v4  ;;  %5614 = vmatpush.msrb.mxu2 %v5085_v32  ;;  %v5049_v50 = vld [vmem:[#allocation3 + $0xd8] sm:$0xff] }
 0x6a0   : > { %4028 = vst.msk [vmem:[#allocation3 + $0xe0] sm:$0xff] %vm3477_vm1, %v3984_v34  ;;  %v5045_v34 = vld [vmem:[#allocation3 + $0xb8] sm:$0xff] }
 0x6a1   : > { %9330 = vmatmul.msk.f32.gmra.mxu2 %vm3477_vm1, %v13885_v28  ;;  %9410 = vmatmul.msk.f32.vlgmr.msrb.gmra.mxu0 %vm3477_vm1, %v13833_v26 }
 0x6a2   : > { %9358 = vmatmul.msk.f32.gmra.mxu1 %vm3477_vm1, %v13885_v28  ;;  %9386 = vmatmul.msk.f32.gmra.mxu3 %vm3477_vm1, %v13885_v28 }
 0x6a3   : > { %5615 = vmatpush.msrb.mxu2 %v5084_v5  ;;  %v5044_v5 = vld [vmem:[#allocation3 + $0xb0] sm:$0xff] }
 0x6a4   : > { %v3878_v47 = vpop.f32.mrf.mxu2 }
 0x6a5   : > { %5616 = vmatpush.msrb.mxu2 %v5083_v61  ;;  %3922 = vst.msk [vmem:[#allocation3 + $0x40] sm:$0xff] %vm3477_vm1, %v3878_v47  ;;  %v4090_v24 = vpop.f32.mrf.mxu3  ;;  %v5069_v37 = vld [vmem:[#allocation3 + $0x178] sm:$0xff]  ;;  %v5043_v61 = vld [vmem:[#allocation3 + $0xa8] sm:$0xff] }
 0x6a6   : > { %4134 = vst.msk [vmem:[#allocation3 + $0x180] sm:$0xff] %vm3477_vm1, %v4090_v24  ;;  %5537 = vmatpush.msra.mxu0 %v5069_v37  ;;  %v4187_v19 = vpop.f32.mrf.mxu0  ;;  %v5042_v37 = vld [vmem:[#allocation3 + $0xa0] sm:$0xff] }
 0x6a7   : > { %5617 = vmatpush.msrb.mxu2 %v5082_v27  ;;  %v3987_v41 = vpop.f32.mrf.mxu1  ;;  %4237 = vst.msk [vmem:[#allocation3 + $0x208] sm:$0xff] %vm3477_vm1, %v4187_v19  ;;  %v5050_v43 = vld [vmem:[#allocation3 + $0xe0] sm:$0xff] }
 0x6a8   : > { %4029 = vst.msk [vmem:[#allocation3 + $0xe8] sm:$0xff] %vm3477_vm1, %v3987_v41  ;;  %5538 = vmatpush.msra.mxu0 %v5068_v30 }
 0x6a9   : > { %9331 = vmatmul.msk.f32.gmra.mxu2 %vm3477_vm1, %v13896_v22  ;;  %9411 = vmatmul.msk.f32.gmra.mxu0 %vm3477_vm1, %v13849_v21 }
 0x6aa   : > { %9359 = vmatmul.msk.f32.gmra.mxu1 %vm3477_vm1, %v13896_v22  ;;  %9387 = vmatmul.msk.f32.gmra.mxu3 %vm3477_vm1, %v13896_v22 }
 0x6ab   : > { %5539 = vmatpush.msra.mxu0 %v5067_v51 }
 0x6ac   : > { %v3881_v10 = vpop.f32.mrf.mxu2 }
 0x6ad   : > { %5540 = vmatpush.msra.mxu0 %v5066_v46  ;;  %3923 = vst.msk [vmem:[#allocation3 + $0x48] sm:$0xff] %vm3477_vm1, %v3881_v10  ;;  %v4093_v54 = vpop.f32.mrf.mxu3 }
 0x6ae   : > { %4135 = vst.msk [vmem:[#allocation3 + $0x188] sm:$0xff] %vm3477_vm1, %v4093_v54  ;;  %v4190_v63 = vpop.f32.mrf.mxu0 }
 0x6af   : > { %5541 = vmatpush.msra.mxu0 %v5065_v56  ;;  %v3990_v23 = vpop.f32.mrf.mxu1  ;;  %4238 = vst.msk [vmem:[#allocation3 + $0x210] sm:$0xff] %vm3477_vm1, %v4190_v63  ;;  %v5051_v42 = vld [vmem:[#allocation3 + $0xe8] sm:$0xff] }
 0x6b0   : > { %4030 = vst.msk [vmem:[#allocation3 + $0xf0] sm:$0xff] %vm3477_vm1, %v3990_v23 }
 0x6b1   : > { %5542 = vmatpush.msra.mxu0 %v5064_v58  ;;  %9332 = vmatmul.msk.f32.gmra.mxu2 %vm3477_vm1, %v13907_v40 }
 0x6b2   : > { %9360 = vmatmul.msk.f32.gmra.mxu1 %vm3477_vm1, %v13907_v40  ;;  %9388 = vmatmul.msk.f32.gmra.mxu3 %vm3477_vm1, %v13907_v40 }
 0x6b3   : > { %9412 = vmatmul.msk.f32.gmra.mxu0 %vm3477_vm1, %v13862_v16 }
 0x6b4   : > { %5543 = vmatpush.msra.mxu0 %v5063_v45  ;;  %v3884_v39 = vpop.f32.mrf.mxu2 }
 0x6b5   : > { %3924 = vst.msk [vmem:[#allocation3 + $0x50] sm:$0xff] %vm3477_vm1, %v3884_v39  ;;  %v4096_v62 = vpop.f32.mrf.mxu3 }
 0x6b6   : > { %5544 = vmatpush.msra.mxu0 %v5062_v48  ;;  %4136 = vst.msk [vmem:[#allocation3 + $0x190] sm:$0xff] %vm3477_vm1, %v4096_v62  ;;  %v4193_v36 = vpop.f32.mrf.mxu0 }
 0x6b7   : > { %v3993_v49 = vpop.f32.mrf.mxu1  ;;  %4239 = vst.msk [vmem:[#allocation3 + $0x218] sm:$0xff] %vm3477_vm1, %v4193_v36  ;;  %v5052_v60 = vld [vmem:[#allocation3 + $0xf0] sm:$0xff] }
 0x6b8   : > { %4031 = vst.msk [vmem:[#allocation3 + $0xf8] sm:$0xff] %vm3477_vm1, %v3993_v49 }
 0x6b9   : > { %9333 = vmatmul.msk.f32.gmra.mxu2 %vm3477_vm1, %v13918_v11 }
 0x6ba   : > { %9361 = vmatmul.msk.f32.gmra.mxu1 %vm3477_vm1, %v13918_v11  ;;  %9389 = vmatmul.msk.f32.gmra.mxu3 %vm3477_vm1, %v13918_v11 }
 0x6bb   : > { %9413 = vmatmul.msk.f32.gmra.mxu0 %vm3477_vm1, %v13875_v7 }
 0x6bc   : > { %v3887_v15 = vpop.f32.mrf.mxu2 }
 0x6bd   : > { %3925 = vst.msk [vmem:[#allocation3 + $0x58] sm:$0xff] %vm3477_vm1, %v3887_v15  ;;  %v4099_v59 = vpop.f32.mrf.mxu3  ;;  %v5032_v15 = vld [vmem:[#allocation3 + $0x50] sm:$0xff] }
 0x6be   : > { %4137 = vst.msk [vmem:[#allocation3 + $0x198] sm:$0xff] %vm3477_vm1, %v4099_v59  ;;  %v4196_v0 = vpop.f32.mrf.mxu0 }
 0x6bf   : > { %v3996_v57 = vpop.f32.mrf.mxu1  ;;  %4240 = vst.msk [vmem:[#allocation3 + $0x220] sm:$0xff] %vm3477_vm1, %v4196_v0  ;;  %v5053_v1 = vld [vmem:[#allocation3 + $0xf8] sm:$0xff]  ;;  %v5031_v0 = vld [vmem:[#allocation3 + $0x48] sm:$0xff] }
 0x6c0   : > { %4032 = vst.msk [vmem:[#allocation3 + $0x100] sm:$0xff] %vm3477_vm1, %v3996_v57  ;;  %5460 = vmatpush.msrb.mxu3 %v5053_v1  ;;  %v5030_v57 = vld [vmem:[#allocation3 + $0x40] sm:$0xff] }
 0x6c1   : > { %9334 = vmatmul.msk.f32.gmra.mxu2 %vm3477_vm1, %v13929_v3 }
 0x6c2   : > { %9362 = vmatmul.msk.f32.gmra.mxu1 %vm3477_vm1, %v13929_v3  ;;  %9390 = vmatmul.msk.f32.gmra.mxu3 %vm3477_vm1, %v13929_v3 }
 0x6c3   : > { %9414 = vmatmul.msk.f32.gmra.mxu0 %vm3477_vm1, %v13885_v28  ;;  %5461 = vmatpush.msrb.mxu3 %v5052_v60  ;;  %v5029_v60 = vld [vmem:[#allocation3 + $0x38] sm:$0xff] }
 0x6c4   : > { %v3890_v52 = vpop.f32.mrf.mxu2  ;;  %v5033_v62 = vld [vmem:[#allocation3 + $0x58] sm:$0xff] }
 0x6c5   : > { %5462 = vmatpush.msrb.mxu3 %v5051_v42  ;;  %3926 = vst.msk [vmem:[#allocation3 + $0x60] sm:$0xff] %vm3477_vm1, %v3890_v52  ;;  %v4102_v14 = vpop.f32.mrf.mxu3 }
 0x6c6   : > { %4138 = vst.msk [vmem:[#allocation3 + $0x1a0] sm:$0xff] %vm3477_vm1, %v4102_v14  ;;  %v4199_v29 = vpop.f32.mrf.mxu0  ;;  %v5028_v14 = vld [vmem:[#allocation3 + $0x30] sm:$0xff] }
 0x6c7   : > { %5463 = vmatpush.msrb.mxu3 %v5050_v43  ;;  %v3999_v38 = vpop.f32.mrf.mxu1  ;;  %4241 = vst.msk [vmem:[#allocation3 + $0x228] sm:$0xff] %vm3477_vm1, %v4199_v29  ;;  %v5027_v29 = vld [vmem:[#allocation3 + $0x28] sm:$0xff] }
 0x6c8   : > { %4033 = vst.msk [vmem:[#allocation3 + $0x108] sm:$0xff] %vm3477_vm1, %v3999_v38  ;;  %v5026_v38 = vld [vmem:[#allocation3 + $0x20] sm:$0xff] }
 0x6c9   : > { %5464 = vmatpush.msrb.mxu3 %v5049_v50  ;;  %9335 = vmatmul.msk.f32.gmra.mxu2 %vm3477_vm1, %v13940_v20 }
 0x6ca   : > { %9363 = vmatmul.msk.f32.gmra.mxu1 %vm3477_vm1, %v13940_v20  ;;  %9391 = vmatmul.msk.f32.gmra.mxu3 %vm3477_vm1, %v13940_v20 }
 0x6cb   : > { %9415 = vmatmul.msk.f32.gmra.mxu0 %vm3477_vm1, %v13896_v22  ;;  %5465 = vmatpush.msrb.mxu3 %v5048_v55  ;;  %v5025_v55 = vld [vmem:[#allocation3 + $0x18] sm:$0xff] }
 0x6cc   : > { %v3893_v44 = vpop.f32.mrf.mxu2  ;;  %v5034_v39 = vld [vmem:[#allocation3 + $0x60] sm:$0xff] }
 0x6cd   : > { %5466 = vmatpush.msrb.mxu3 %v5047_v9  ;;  %3927 = vst.msk [vmem:[#allocation3 + $0x68] sm:$0xff] %vm3477_vm1, %v3893_v44  ;;  %v4105_v35 = vpop.f32.mrf.mxu3 }
 0x6ce   : > { %4139 = vst.msk [vmem:[#allocation3 + $0x1a8] sm:$0xff] %vm3477_vm1, %v4105_v35  ;;  %v4202_v4 = vpop.f32.mrf.mxu0  ;;  %v5024_v35 = vld [vmem:[#allocation3 + $0x10] sm:$0xff] }
 0x6cf   : > { %5467 = vmatpush.msrb.mxu3 %v5046_v53  ;;  %v4002_v32 = vpop.f32.mrf.mxu1  ;;  %4242 = vst.msk [vmem:[#allocation3 + $0x230] sm:$0xff] %vm3477_vm1, %v4202_v4 }
 0x6d0   : > { %4034 = vst.msk [vmem:[#allocation3 + $0x110] sm:$0xff] %vm3477_vm1, %v4002_v32  ;;  %v5023_v32 = vld [vmem:[#allocation3 + $0x8] sm:$0xff] }
 0x6d1   : > { %5468 = vmatpush.msrb.mxu3 %v5045_v34  ;;  %9336 = vmatmul.msk.f32.gmra.mxu2 %vm3477_vm1, %v13951_v33  ;;  %v5022_v34 = vld [vmem:[#allocation3] sm:$0xff] }
 0x6d2   : > { %9364 = vmatmul.msk.f32.gmra.mxu1 %vm3477_vm1, %v13951_v33  ;;  %9392 = vmatmul.msk.f32.gmra.mxu3 %vm3477_vm1, %v13951_v33 }
 0x6d3   : > { %9416 = vmatmul.msk.f32.gmra.mxu0 %vm3477_vm1, %v13907_v40  ;;  %5469 = vmatpush.msrb.mxu3 %v5044_v5 }
 0x6d4   : > { %v3896_v47 = vpop.f32.mrf.mxu2  ;;  %v5035_v45 = vld [vmem:[#allocation3 + $0x68] sm:$0xff] }
 0x6d5   : > { %5470 = vmatpush.msrb.mxu3 %v5043_v61  ;;  %3928 = vst.msk [vmem:[#allocation3 + $0x70] sm:$0xff] %vm3477_vm1, %v3896_v47  ;;  %v4108_v24 = vpop.f32.mrf.mxu3 }
 0x6d6   : > { %4140 = vst.msk [vmem:[#allocation3 + $0x1b0] sm:$0xff] %vm3477_vm1, %v4108_v24  ;;  %v4205_v27 = vpop.f32.mrf.mxu0 }
 0x6d7   : > { %5471 = vmatpush.msrb.mxu3 %v5042_v37  ;;  %v4005_v19 = vpop.f32.mrf.mxu1  ;;  %4243 = vst.msk [vmem:[#allocation3 + $0x238] sm:$0xff] %vm3477_vm1, %v4205_v27 }
 0x6d8   : > { %4035 = vst.msk [vmem:[#allocation3 + $0x118] sm:$0xff] %vm3477_vm1, %v4005_v19 }
 0x6d9   : > { %9337 = vmatmul.msk.f32.gmra.mxu2 %vm3477_vm1, %v13962_v31 }
 0x6da   : > { %9365 = vmatmul.msk.f32.gmra.mxu1 %vm3477_vm1, %v13962_v31  ;;  %9393 = vmatmul.msk.f32.gmra.mxu3 %vm3477_vm1, %v13962_v31 }
 0x6db   : > { %9417 = vmatmul.msk.f32.gmra.mxu0 %vm3477_vm1, %v13918_v11 }
 0x6dc   : > { %v3899_v41 = vpop.f32.mrf.mxu2  ;;  %v5036_v23 = vld [vmem:[#allocation3 + $0x70] sm:$0xff] }
 0x6dd   : > { %3929 = vst.msk [vmem:[#allocation3 + $0x78] sm:$0xff] %vm3477_vm1, %v3899_v41  ;;  %v4111_v30 = vpop.f32.mrf.mxu3 }
 0x6de   : > { %4141 = vst.msk [vmem:[#allocation3 + $0x1b8] sm:$0xff] %vm3477_vm1, %v4111_v30  ;;  %v4208_v51 = vpop.f32.mrf.mxu0 }
 0x6df   : > { %v4008_v46 = vpop.f32.mrf.mxu1  ;;  %4244 = vst.msk [vmem:[#allocation3 + $0x240] sm:$0xff] %vm3477_vm1, %v4208_v51 }
 0x6e0   : > { %4036 = vst.msk [vmem:[#allocation3 + $0x120] sm:$0xff] %vm3477_vm1, %v4008_v46 }
 0x6e1   : > { %9338 = vmatmul.msk.f32.gmra.mxu2 %vm3477_vm1, %v13973_v6 }
 0x6e2   : > { %9366 = vmatmul.msk.f32.gmra.mxu1 %vm3477_vm1, %v13973_v6  ;;  %9394 = vmatmul.msk.f32.gmra.mxu3 %vm3477_vm1, %v13973_v6 }
 0x6e3   : > { %9418 = vmatmul.msk.f32.gmra.mxu0 %vm3477_vm1, %v13929_v3 }
 0x6e4   : > { %v3902_v10 = vpop.f32.mrf.mxu2  ;;  %v5037_v54 = vld [vmem:[#allocation3 + $0x78] sm:$0xff] }
 0x6e5   : > { %3930 = vst.msk [vmem:[#allocation3 + $0x80] sm:$0xff] %vm3477_vm1, %v3902_v10  ;;  %v4114_v56 = vpop.f32.mrf.mxu3  ;;  %5383 = vmatpush.msra.mxu1 %v5037_v54  ;;  %v5057_v54 = vld [vmem:[#allocation3 + $0x118] sm:$0xff] }
 0x6e6   : > { %4142 = vst.msk [vmem:[#allocation3 + $0x1c0] sm:$0xff] %vm3477_vm1, %v4114_v56  ;;  %v4211_v63 = vpop.f32.mrf.mxu0  ;;  %v5056_v56 = vld [vmem:[#allocation3 + $0x110] sm:$0xff] }
 0x6e7   : > { %v4011_v58 = vpop.f32.mrf.mxu1  ;;  %4245 = vst.msk [vmem:[#allocation3 + $0x248] sm:$0xff] %vm3477_vm1, %v4211_v63  ;;  %5384 = vmatpush.msra.mxu1 %v5036_v23  ;;  %v5058_v30 = vld [vmem:[#allocation3 + $0x120] sm:$0xff] }
 0x6e8   : > { %4037 = vst.msk [vmem:[#allocation3 + $0x128] sm:$0xff] %vm3477_vm1, %v4011_v58 }
 0x6e9   : > { %9339 = vmatmul.msk.f32.gmra.mxu2 %vm3477_vm1, %v13984_v25  ;;  %5385 = vmatpush.msra.mxu1 %v5035_v45  ;;  %v5055_v45 = vld [vmem:[#allocation3 + $0x108] sm:$0xff] }
 0x6ea   : > { %9367 = vmatmul.msk.f32.gmra.mxu1 %vm3477_vm1, %v13984_v25  ;;  %9395 = vmatmul.msk.f32.gmra.mxu3 %vm3477_vm1, %v13984_v25 }
 0x6eb   : > { %9419 = vmatmul.msk.f32.gmra.mxu0 %vm3477_vm1, %v13940_v20  ;;  %5386 = vmatpush.msra.mxu1 %v5034_v39 }
 0x6ec   : > { %v3905_v48 = vpop.f32.mrf.mxu2  ;;  %v5038_v23 = vld [vmem:[#allocation3 + $0x80] sm:$0xff] }
 0x6ed   : > { %3931 = vst.msk [vmem:[#allocation3 + $0x88] sm:$0xff] %vm3477_vm1, %v3905_v48  ;;  %v4117_v36 = vpop.f32.mrf.mxu3  ;;  %5387 = vmatpush.msra.mxu1 %v5033_v62  ;;  %v5078_v39 = vld [vmem:[#allocation3 + $0x1c0] sm:$0xff] }
 0x6ee   : > { %4143 = vst.msk [vmem:[#allocation3 + $0x1c8] sm:$0xff] %vm3477_vm1, %v4117_v36  ;;  %v4214_v49 = vpop.f32.mrf.mxu0  ;;  %v5054_v36 = vld [vmem:[#allocation3 + $0x100] sm:$0xff] }
 0x6ef   : > { %v4014_v59 = vpop.f32.mrf.mxu1  ;;  %4246 = vst.msk [vmem:[#allocation3 + $0x250] sm:$0xff] %vm3477_vm1, %v4214_v49  ;;  %5388 = vmatpush.msra.mxu1 %v5032_v15  ;;  %v5059_v24 = vld [vmem:[#allocation3 + $0x128] sm:$0xff]  ;;  %v5077_v49 = vld [vmem:[#allocation3 + $0x1b8] sm:$0xff] }
 0x6f0   : > { %4038 = vst.msk [vmem:[#allocation3 + $0x130] sm:$0xff] %vm3477_vm1, %v4014_v59  ;;  %v5076_v59 = vld [vmem:[#allocation3 + $0x1b0] sm:$0xff] }
 0x6f1   : > { %9340 = vmatmul.msk.f32.gmra.mxu2 %vm3477_vm1, %v13997_v2  ;;  %5389 = vmatpush.msra.mxu1 %v5031_v0  ;;  %v5075_v0 = vld [vmem:[#allocation3 + $0x1a8] sm:$0xff] }
 0x6f2   : > { %9368 = vmatmul.msk.f32.gmra.mxu1 %vm3477_vm1, %v13997_v2  ;;  %9396 = vmatmul.msk.f32.gmra.mxu3 %vm3477_vm1, %v13997_v2 }
 0x6f3   : > { %9420 = vmatmul.msk.f32.gmra.mxu0 %vm3477_vm1, %v13951_v33  ;;  %5390 = vmatpush.msra.mxu1 %v5030_v57 }
 0x6f4   : > { %v3908_v1 = vpop.f32.mrf.mxu2  ;;  %v5039_v10 = vld [vmem:[#allocation3 + $0x88] sm:$0xff] }
 0x6f5   : > { %3932 = vst.msk [vmem:[#allocation3 + $0x90] sm:$0xff] %vm3477_vm1, %v3908_v1  ;;  %v4120_v42 = vpop.f32.mrf.mxu3  ;;  %5391 = vmatpush.msra.mxu1 %v5029_v60  ;;  %v5079_v63 = vld [vmem:[#allocation3 + $0x1c8] sm:$0xff]  ;;  %v5074_v1 = vld [vmem:[#allocation3 + $0x1a0] sm:$0xff] }
 0x6f6   : > { %4144 = vst.msk [vmem:[#allocation3 + $0x1d0] sm:$0xff] %vm3477_vm1, %v4120_v42  ;;  %v4217_v52 = vpop.f32.mrf.mxu0 }
 0x6f7   : > { %v4017_v43 = vpop.f32.mrf.mxu1  ;;  %4247 = vst.msk [vmem:[#allocation3 + $0x258] sm:$0xff] %vm3477_vm1, %v4217_v52  ;;  %5392 = vmatpush.msra.mxu1 %v5028_v14  ;;  %v5060_v5 = vld [vmem:[#allocation3 + $0x130] sm:$0xff]  ;;  %v5073_v52 = vld [vmem:[#allocation3 + $0x198] sm:$0xff] }
 0x6f8   : > { %4039 = vst.msk [vmem:[#allocation3 + $0x138] sm:$0xff] %vm3477_vm1, %v4017_v43  ;;  %v5072_v43 = vld [vmem:[#allocation3 + $0x190] sm:$0xff] }
 0x6f9   : > { %9341 = vmatmul.msk.f32.gmra.mxu2 %vm3477_vm1, %v14037_v18  ;;  %5393 = vmatpush.msra.mxu1 %v5027_v29  ;;  %v5071_v29 = vld [vmem:[#allocation3 + $0x188] sm:$0xff] }
 0x6fa   : > { %9369 = vmatmul.msk.f32.gmra.mxu1 %vm3477_vm1, %v14037_v18  ;;  %9397 = vmatmul.msk.f32.gmra.mxu3 %vm3477_vm1, %v14037_v18 }
 0x6fb   : > { %9421 = vmatmul.msk.f32.gmra.mxu0 %vm3477_vm1, %v13962_v31  ;;  %5394 = vmatpush.msra.mxu1 %v5026_v38 }
 0x6fc   : > { %v3911_v50 = vpop.f32.mrf.mxu2  ;;  %v5040_v41 = vld [vmem:[#allocation3 + $0x90] sm:$0xff] }
 0x6fd   : > { %3933 = vst.msk [vmem:[#allocation3 + $0x98] sm:$0xff] %vm3477_vm1, %v3911_v50  ;;  %v4123_v9 = vpop.f32.mrf.mxu3  ;;  %5395 = vmatpush.msra.mxu1 %v5025_v55  ;;  %v5080_v46 = vld [vmem:[#allocation3 + $0x1d0] sm:$0xff]  ;;  %v5070_v50 = vld [vmem:[#allocation3 + $0x180] sm:$0xff] }
 0x6fe   : > { %4145 = vst.msk [vmem:[#allocation3 + $0x1d8] sm:$0xff] %vm3477_vm1, %v4123_v9  ;;  %v4220_v44 = vpop.f32.mrf.mxu0 }
 0x6ff   : > { %4248 = vst.msk [vmem:[#allocation3 + $0x260] sm:$0xff] %vm3477_vm1, %v4220_v44  ;;  %v4384_v53 = vpop.f32.mrf.mxu1  ;;  %5396 = vmatpush.msra.mxu1 %v5024_v35  ;;  %v5061_v4 = vld [vmem:[#allocation3 + $0x138] sm:$0xff] }
 0x700   : > { %4444 = vst.msk [vmem:[#allocation3 + $0x320] sm:$0xff] %vm3477_vm1, %v4384_v53  ;;  %5545 = vmatpush.msra.mxu0 %v5061_v4  ;;  %v4782_v53 = vld [vmem:[#allocation5] sm:$0xff]  ;;  %v4783_v4 = vld [vmem:[#allocation5 + $0x8] sm:$0xff] }
 0x701   : > { %9342 = vmatmul.msk.f32.gmra.mxu2 %vm3477_vm1, %v14077_v12  ;;  %5397 = vmatpush.msra.mxu1 %v5023_v32 }
 0x702   : > { %9370 = vmatmul.msk.f32.gmra.mxu1 %vm3477_vm1, %v14077_v12  ;;  %9398 = vmatmul.msk.f32.gmra.mxu3 %vm3477_vm1, %v14077_v12 }
 0x703   : > { %9422 = vmatmul.msk.f32.gmra.mxu0 %vm3477_vm1, %v13973_v6  ;;  %5398 = vmatpush.msra.mxu1 %v5022_v34 }
 0x704   : > { %5546 = vmatpush.msra.mxu0 %v5060_v5  ;;  %v4278_v61 = vpop.f32.mrf.mxu2  ;;  %v5041_v47 = vld [vmem:[#allocation3 + $0x98] sm:$0xff] }
 0x705   : > { %4338 = vst.msk [vmem:[#allocation3 + $0x280] sm:$0xff] %vm3477_vm1, %v4278_v61  ;;  %v4490_v37 = vpop.f32.mrf.mxu3  ;;  %5472 = vmatpush.msrb.mxu3 %v5041_v47  ;;  %v5081_v27 = vld [vmem:[#allocation3 + $0x1d8] sm:$0xff] }
 0x706   : > { %5547 = vmatpush.msra.mxu0 %v5059_v24  ;;  %4550 = vst.msk [vmem:[#allocation3 + $0x3c0] sm:$0xff] %vm3477_vm1, %v4490_v37  ;;  %5618 = vmatpush.msrb.mxu2 %v5081_v27  ;;  %v4223_v19 = vpop.f32.mrf.mxu0  ;;  %v5098_v47 = vld [vmem:[#allocation3 + $0x260] sm:$0xff]  ;;  %v4794_v27 = vld [vmem:[#allocation5 + $0x60] sm:$0xff] }
 0x707   : > { %4249 = vst.msk [vmem:[#allocation3 + $0x268] sm:$0xff] %vm3477_vm1, %v4223_v19  ;;  %v4387_v51 = vpop.f32.mrf.mxu1  ;;  %5473 = vmatpush.msrb.mxu3 %v5040_v41  ;;  %v4795_v19 = vld [vmem:[#allocation5 + $0x68] sm:$0xff]  ;;  %v5096_v41 = vld [vmem:[#allocation3 + $0x250] sm:$0xff] }
 0x708   : > { %5548 = vmatpush.msra.mxu0 %v5058_v30  ;;  %4445 = vst.msk [vmem:[#allocation3 + $0x328] sm:$0xff] %vm3477_vm1, %v4387_v51  ;;  %5619 = vmatpush.msrb.mxu2 %v5080_v46  ;;  %v5095_v51 = vld [vmem:[#allocation3 + $0x248] sm:$0xff] }
 0x709   : > { %9343 = vmatmul.msk.f32.gmra.mxu2 %vm3477_vm1, %v14110_v8  ;;  %5474 = vmatpush.msrb.mxu3 %v5039_v10  ;;  %v5094_v10 = vld [vmem:[#allocation3 + $0x240] sm:$0xff] }
 0x70a   : > { %5549 = vmatpush.msra.mxu0 %v5057_v54  ;;  %9371 = vmatmul.msk.f32.gmra.mxu1 %vm3477_vm1, %v14110_v8 }
 0x70b   : > { %9399 = vmatmul.msk.f32.gmra.mxu3 %vm3477_vm1, %v14110_v8  ;;  %9423 = vmatmul.msk.f32.gmra.mxu0 %vm3477_vm1, %v13984_v25 }
 0x70c   : > { %5550 = vmatpush.msra.mxu0 %v5056_v56  ;;  %5620 = vmatpush.msrb.mxu2 %v5079_v63  ;;  %v4281_v58 = vpop.f32.mrf.mxu2  ;;  %v4806_v56 = vld [vmem:[#allocation5 + $0xc0] sm:$0xff]  ;;  %v5093_v63 = vld [vmem:[#allocation3 + $0x238] sm:$0xff] }
 0x70d   : > { %5475 = vmatpush.msrb.mxu3 %v5038_v23  ;;  %4339 = vst.msk [vmem:[#allocation3 + $0x288] sm:$0xff] %vm3477_vm1, %v4281_v58  ;;  %v4493_v48 = vpop.f32.mrf.mxu3  ;;  %v4807_v23 = vld [vmem:[#allocation5 + $0xc8] sm:$0xff]  ;;  %v5092_v58 = vld [vmem:[#allocation3 + $0x230] sm:$0xff] }
 0x70e   : > { %5551 = vmatpush.msra.mxu0 %v5055_v45  ;;  %5621 = vmatpush.msrb.mxu2 %v5078_v39  ;;  %4551 = vst.msk [vmem:[#allocation3 + $0x3c8] sm:$0xff] %vm3477_vm1, %v4493_v48  ;;  %v4226_v62 = vpop.f32.mrf.mxu0  ;;  %v5099_v34 = vld [vmem:[#allocation3 + $0x268] sm:$0xff] }
 0x70f   : > { %4250 = vst.msk [vmem:[#allocation3 + $0x270] sm:$0xff] %vm3477_vm1, %v4226_v62  ;;  %v4390_v15 = vpop.f32.mrf.mxu1  ;;  %v5091_v39 = vld [vmem:[#allocation3 + $0x228] sm:$0xff]  ;;  %v5090_v62 = vld [vmem:[#allocation3 + $0x220] sm:$0xff] }
 0x710   : > { %5552 = vmatpush.msra.mxu0 %v5054_v36  ;;  %5622 = vmatpush.msrb.mxu2 %v5077_v49  ;;  %4446 = vst.msk [vmem:[#allocation3 + $0x330] sm:$0xff] %vm3477_vm1, %v4390_v15  ;;  %v4818_v49 = vld [vmem:[#allocation5 + $0x120] sm:$0xff]  ;;  %v5089_v15 = vld [vmem:[#allocation3 + $0x218] sm:$0xff] }
 0x711   : > { %9344 = vmatmul.msk.f32.gmra.mxu2 %vm3477_vm1, %v14125_v13 }
 0x712   : > { %5623 = vmatpush.msrb.mxu2 %v5076_v59  ;;  %9372 = vmatmul.msk.f32.gmra.mxu1 %vm3477_vm1, %v14125_v13  ;;  %v4819_v59 = vld [vmem:[#allocation5 + $0x128] sm:$0xff] }
 0x713   : > { %9400 = vmatmul.msk.f32.gmra.mxu3 %vm3477_vm1, %v14125_v13  ;;  %9424 = vmatmul.msk.f32.gmra.mxu0 %vm3477_vm1, %v13997_v2 }
 0x714   : > { %5624 = vmatpush.msrb.mxu2 %v5075_v0  ;;  %v4284_v57 = vpop.f32.mrf.mxu2  ;;  %v5088_v0 = vld [vmem:[#allocation3 + $0x210] sm:$0xff] }
 0x715   : > { %4340 = vst.msk [vmem:[#allocation3 + $0x290] sm:$0xff] %vm3477_vm1, %v4284_v57  ;;  %v4496_v60 = vpop.f32.mrf.mxu3 }
 0x716   : > { %5625 = vmatpush.msrb.mxu2 %v5074_v1  ;;  %4552 = vst.msk [vmem:[#allocation3 + $0x3d0] sm:$0xff] %vm3477_vm1, %v4496_v60  ;;  %v4229_v42 = vpop.f32.mrf.mxu0  ;;  %v5100_v32 = vld [vmem:[#allocation3 + $0x270] sm:$0xff]  ;;  %v5087_v1 = vld [vmem:[#allocation3 + $0x208] sm:$0xff] }
 0x717   : > { %4251 = vst.msk [vmem:[#allocation3 + $0x278] sm:$0xff] %vm3477_vm1, %v4229_v42  ;;  %v4393_v14 = vpop.f32.mrf.mxu1  ;;  %v5086_v42 = vld [vmem:[#allocation3 + $0x200] sm:$0xff] }
 0x718   : > { %5626 = vmatpush.msrb.mxu2 %v5073_v52  ;;  %4447 = vst.msk [vmem:[#allocation3 + $0x338] sm:$0xff] %vm3477_vm1, %v4393_v14 }
 0x719   : > { %9345 = vmatmul.msk.f32.gmra.mxu2 %vm3477_vm1, %v14158_v17 }
 0x71a   : > { %5627 = vmatpush.msrb.mxu2 %v5072_v43  ;;  %9373 = vmatmul.msk.f32.gmra.mxu1 %vm3477_vm1, %v14158_v17  ;;  %v4830_v43 = vld [vmem:[#allocation5 + $0x180] sm:$0xff] }
 0x71b   : > { %9401 = vmatmul.msk.f32.gmra.mxu3 %vm3477_vm1, %v14158_v17  ;;  %9425 = vmatmul.msk.f32.gmra.mxu0 %vm3477_vm1, %v14037_v18 }
 0x71c   : > { %5628 = vmatpush.msrb.mxu2 %v5071_v29  ;;  %v4287_v38 = vpop.f32.mrf.mxu2  ;;  %v4784_v29 = vld [vmem:[#allocation5 + $0x10] sm:$0xff] }
 0x71d   : > { %4341 = vst.msk [vmem:[#allocation3 + $0x298] sm:$0xff] %vm3477_vm1, %v4287_v38  ;;  %v4499_v55 = vpop.f32.mrf.mxu3  ;;  %v4831_v38 = vld [vmem:[#allocation5 + $0x188] sm:$0xff] }
 0x71e   : > { %5629 = vmatpush.msrb.mxu2 %v5070_v50  ;;  %4553 = vst.msk [vmem:[#allocation3 + $0x3d8] sm:$0xff] %vm3477_vm1, %v4499_v55  ;;  %v4596_v9 = vpop.f32.mrf.mxu0  ;;  %v5101_v44 = vld [vmem:[#allocation3 + $0x278] sm:$0xff] }
 0x71f   : > { %v4396_v35 = vpop.f32.mrf.mxu1  ;;  %4656 = vst.msk [vmem:[#allocation3 + $0x460] sm:$0xff] %vm3477_vm1, %v4596_v9  ;;  %5691 = vmatpush.msrb.mxu1 %v5101_v44 }
 0x720   : > { %4448 = vst.msk [vmem:[#allocation3 + $0x340] sm:$0xff] %vm3477_vm1, %v4396_v35 }
 0x721   : > { %9438 = vmatmul.msk.f32.vlgmr.msra.gmra.mxu2 %vm3477_vm1, %v13833_v26  ;;  %5692 = vmatpush.msrb.mxu1 %v5100_v32  ;;  %v5097_v26 = vld [vmem:[#allocation3 + $0x258] sm:$0xff] }
 0x722   : > { %5399 = vmatmul.f32.vlgmr.msra.gmra.mxu1 %v4782_v53 }
 0x723   : > { %9426 = vmatmul.msk.f32.gmra.mxu0 %vm3477_vm1, %v14077_v12  ;;  %5476 = vmatmul.f32.vlgmr.msrb.gmra.mxu3 %v4783_v4 }
 0x724   : > { %5693 = vmatpush.msrb.mxu1 %v5099_v34  ;;  %v4290_v5 = vpop.f32.mrf.mxu2  ;;  %v4842_v34 = vld [vmem:[#allocation5 + $0x1e0] sm:$0xff] }
 0x725   : > { %4342 = vst.msk [vmem:[#allocation3 + $0x2a0] sm:$0xff] %vm3477_vm1, %v4290_v5  ;;  %v4502_v61 = vpop.f32.mrf.mxu3  ;;  %v4796_v5 = vld [vmem:[#allocation5 + $0x70] sm:$0xff] }
 0x726   : > { %4554 = vst.msk [vmem:[#allocation3 + $0x3e0] sm:$0xff] %vm3477_vm1, %v4502_v61  ;;  %5694 = vmatpush.msrb.mxu1 %v5098_v47  ;;  %v4599_v24 = vpop.f32.mrf.mxu0  ;;  %v5162_v53 = vld [vmem:[#allocation3 + $0x460] sm:$0xff]  ;;  %v4843_v61 = vld [vmem:[#allocation5 + $0x1e8] sm:$0xff] }
 0x727   : > { %v4399_v37 = vpop.f32.mrf.mxu1  ;;  %4657 = vst.msk [vmem:[#allocation3 + $0x468] sm:$0xff] %vm3477_vm1, %v4599_v24 }
 0x728   : > { %4449 = vst.msk [vmem:[#allocation3 + $0x348] sm:$0xff] %vm3477_vm1, %v4399_v37  ;;  %5695 = vmatpush.msrb.mxu1 %v5097_v26 }
 0x729   : > { %9439 = vmatmul.msk.f32.gmra.mxu2 %vm3477_vm1, %v13849_v21 }
 0x72a   : > { %5402 = vmatmul.f32.gmra.mxu1 %v4794_v27  ;;  %v5145_v27 = vld [vmem:[#allocation3 + $0x3d8] sm:$0xff] }
 0x72b   : > { %9427 = vmatmul.msk.f32.gmra.mxu0 %vm3477_vm1, %v14110_v8  ;;  %5479 = vmatmul.f32.gmra.mxu3 %v4795_v19 }
 0x72c   : > { %5696 = vmatpush.msrb.mxu1 %v5096_v41  ;;  %v4293_v30 = vpop.f32.mrf.mxu2  ;;  %v5144_v41 = vld [vmem:[#allocation3 + $0x3d0] sm:$0xff] }
 0x72d   : > { %4343 = vst.msk [vmem:[#allocation3 + $0x2a8] sm:$0xff] %vm3477_vm1, %v4293_v30  ;;  %v4505_v46 = vpop.f32.mrf.mxu3  ;;  %v5146_v24 = vld [vmem:[#allocation3 + $0x3e0] sm:$0xff]  ;;  %v4854_v30 = vld [vmem:[#allocation5 + $0x240] sm:$0xff] }
 0x72e   : > { %5697 = vmatpush.msrb.mxu1 %v5095_v51  ;;  %4555 = vst.msk [vmem:[#allocation3 + $0x3e8] sm:$0xff] %vm3477_vm1, %v4505_v46  ;;  %v5163_v9 = vld [vmem:[#allocation3 + $0x468] sm:$0xff]  ;;  %v4808_v51 = vld [vmem:[#allocation5 + $0xd0] sm:$0xff]  ;;  %v4855_v46 = vld [vmem:[#allocation5 + $0x248] sm:$0xff] }
 0x72f   : > { %v4402_v54 = vpop.f32.mrf.mxu1 }
 0x730   : > { %5698 = vmatpush.msrb.mxu1 %v5094_v10  ;;  %4450 = vst.msk [vmem:[#allocation3 + $0x350] sm:$0xff] %vm3477_vm1, %v4402_v54  ;;  %v4602_v21 = vpop.f32.mrf.mxu0  ;;  %v5143_v10 = vld [vmem:[#allocation3 + $0x3c8] sm:$0xff]  ;;  %v5142_v54 = vld [vmem:[#allocation3 + $0x3c0] sm:$0xff] }
 0x731   : > { %4658 = vst.msk [vmem:[#allocation3 + $0x470] sm:$0xff] %vm3477_vm1, %v4602_v21  ;;  %9440 = vmatmul.msk.f32.gmra.mxu2 %vm3477_vm1, %v13862_v16 }
 0x732   : > { %5699 = vmatpush.msrb.mxu1 %v5093_v63 }
 0x733   : > { %9428 = vmatmul.msk.f32.gmra.mxu0 %vm3477_vm1, %v14125_v13  ;;  %5405 = vmatmul.f32.gmra.mxu1 %v4806_v56 }
 0x734   : > { %5482 = vmatmul.f32.gmra.mxu3 %v4807_v23  ;;  %5700 = vmatpush.msrb.mxu1 %v5092_v58  ;;  %v4296_v45 = vpop.f32.mrf.mxu2  ;;  %v4866_v58 = vld [vmem:[#allocation5 + $0x2a0] sm:$0xff] }
 0x735   : > { %4344 = vst.msk [vmem:[#allocation3 + $0x2b0] sm:$0xff] %vm3477_vm1, %v4296_v45  ;;  %v4508_v48 = vpop.f32.mrf.mxu3  ;;  %v5147_v47 = vld [vmem:[#allocation3 + $0x3e8] sm:$0xff]  ;;  %v4867_v45 = vld [vmem:[#allocation5 + $0x2a8] sm:$0xff] }
 0x736   : > { %5701 = vmatpush.msrb.mxu1 %v5091_v39  ;;  %4556 = vst.msk [vmem:[#allocation3 + $0x3f0] sm:$0xff] %vm3477_vm1, %v4508_v48 }
 0x737   : > { %v4405_v36 = vpop.f32.mrf.mxu1 }
 0x738   : > { %5702 = vmatpush.msrb.mxu1 %v5090_v62  ;;  %4451 = vst.msk [vmem:[#allocation3 + $0x358] sm:$0xff] %vm3477_vm1, %v4405_v36  ;;  %v4605_v16 = vpop.f32.mrf.mxu0  ;;  %v5164_v50 = vld [vmem:[#allocation3 + $0x470] sm:$0xff] }
 0x739   : > { %4659 = vst.msk [vmem:[#allocation3 + $0x478] sm:$0xff] %vm3477_vm1, %v4605_v16  ;;  %9441 = vmatmul.msk.f32.gmra.mxu2 %vm3477_vm1, %v13875_v7 }
 0x73a   : > { %5703 = vmatpush.msrb.mxu1 %v5089_v15  ;;  %v4832_v15 = vld [vmem:[#allocation5 + $0x190] sm:$0xff] }
 0x73b   : > { %9429 = vmatmul.msk.f32.gmra.mxu0 %vm3477_vm1, %v14158_v17  ;;  %5408 = vmatmul.f32.gmra.mxu1 %v4818_v49  ;;  %v4878_v49 = vld [vmem:[#allocation5 + $0x300] sm:$0xff] }
 0x73c   : > { %5485 = vmatmul.f32.gmra.mxu3 %v4819_v59  ;;  %5704 = vmatpush.msrb.mxu1 %v5088_v0  ;;  %v4299_v57 = vpop.f32.mrf.mxu2 }
 0x73d   : > { %4345 = vst.msk [vmem:[#allocation3 + $0x2b8] sm:$0xff] %vm3477_vm1, %v4299_v57  ;;  %v4511_v60 = vpop.f32.mrf.mxu3  ;;  %v5148_v32 = vld [vmem:[#allocation3 + $0x3f0] sm:$0xff] }
 0x73e   : > { %5705 = vmatpush.msrb.mxu1 %v5087_v1  ;;  %4557 = vst.msk [vmem:[#allocation3 + $0x3f8] sm:$0xff] %vm3477_vm1, %v4511_v60 }
 0x73f   : > { %v4408_v52 = vpop.f32.mrf.mxu1 }
 0x740   : > { %5706 = vmatpush.msrb.mxu1 %v5086_v42  ;;  %4452 = vst.msk [vmem:[#allocation3 + $0x360] sm:$0xff] %vm3477_vm1, %v4408_v52  ;;  %v4608_v7 = vpop.f32.mrf.mxu0  ;;  %v5165_v14 = vld [vmem:[#allocation3 + $0x478] sm:$0xff] }
 0x741   : > { %4660 = vst.msk [vmem:[#allocation3 + $0x480] sm:$0xff] %vm3477_vm1, %v4608_v7  ;;  %9442 = vmatmul.msk.f32.gmra.mxu2 %vm3477_vm1, %v13885_v28  ;;  %v5129_v52 = vld [vmem:[#allocation3 + $0x358] sm:$0xff]  ;;  %v4890_v7 = vld [vmem:[#allocation5 + $0x360] sm:$0xff] }
 0x742   : > { %5999 = vmatpush.msra.mxu1 %v5165_v14  ;;  %v4844_v14 = vld [vmem:[#allocation5 + $0x1f0] sm:$0xff] }
 0x743   : > { %5411 = vmatmul.f32.gmra.mxu1 %v4830_v43  ;;  %5553 = vmatmul.f32.vlgmr.msra.gmra.mxu0 %v4784_v29  ;;  %v4891_v43 = vld [vmem:[#allocation5 + $0x368] sm:$0xff]  ;;  %v5128_v29 = vld [vmem:[#allocation3 + $0x350] sm:$0xff] }
 0x744   : > { %5488 = vmatmul.f32.gmra.mxu3 %v4831_v38  ;;  %6000 = vmatpush.msra.mxu1 %v5164_v50  ;;  %v4302_v55 = vpop.f32.mrf.mxu2  ;;  %v5127_v38 = vld [vmem:[#allocation3 + $0x348] sm:$0xff] }
 0x745   : > { %4346 = vst.msk [vmem:[#allocation3 + $0x2c0] sm:$0xff] %vm3477_vm1, %v4302_v55  ;;  %v4514_v44 = vpop.f32.mrf.mxu3  ;;  %v5149_v35 = vld [vmem:[#allocation3 + $0x3f8] sm:$0xff] }
 0x746   : > { %6001 = vmatpush.msra.mxu1 %v5163_v9  ;;  %4558 = vst.msk [vmem:[#allocation3 + $0x400] sm:$0xff] %vm3477_vm1, %v4514_v44  ;;  %5922 = vmatpush.msra.mxu2 %v5149_v35  ;;  %v5126_v9 = vld [vmem:[#allocation3 + $0x340] sm:$0xff]  ;;  %v5125_v35 = vld [vmem:[#allocation3 + $0x338] sm:$0xff] }
 0x747   : > { %v4411_v4 = vpop.f32.mrf.mxu1  ;;  %v5130_v60 = vld [vmem:[#allocation3 + $0x360] sm:$0xff] }
 0x748   : > { %6002 = vmatpush.msra.mxu1 %v5162_v53  ;;  %4453 = vst.msk [vmem:[#allocation3 + $0x368] sm:$0xff] %vm3477_vm1, %v4411_v4  ;;  %v4611_v28 = vpop.f32.mrf.mxu0  ;;  %5923 = vmatpush.msra.mxu2 %v5148_v32  ;;  %v4902_v53 = vld [vmem:[#allocation5 + $0x3c0] sm:$0xff]  ;;  %v4856_v4 = vld [vmem:[#allocation5 + $0x250] sm:$0xff]  ;;  %v4903_v32 = vld [vmem:[#allocation5 + $0x3c8] sm:$0xff] }
 0x749   : > { %4661 = vst.msk [vmem:[#allocation3 + $0x488] sm:$0xff] %vm3477_vm1, %v4611_v28  ;;  %9443 = vmatmul.msk.f32.gmra.mxu2 %vm3477_vm1, %v13896_v22  ;;  %v5124_v28 = vld [vmem:[#allocation3 + $0x330] sm:$0xff] }
 0x74a   : > { %5924 = vmatpush.msra.mxu2 %v5147_v47  ;;  %v5122_v47 = vld [vmem:[#allocation3 + $0x320] sm:$0xff] }
 0x74b   : > { %5414 = vmatmul.f32.gmra.mxu1 %v4842_v34  ;;  %5556 = vmatmul.f32.gmra.mxu0 %v4796_v5  ;;  %v5123_v34 = vld [vmem:[#allocation3 + $0x328] sm:$0xff] }
 0x74c   : > { %5491 = vmatmul.f32.gmra.mxu3 %v4843_v61  ;;  %5925 = vmatpush.msra.mxu2 %v5146_v24  ;;  %v4305_v37 = vpop.f32.mrf.mxu2 }
 0x74d   : > { %4347 = vst.msk [vmem:[#allocation3 + $0x2c8] sm:$0xff] %vm3477_vm1, %v4305_v37  ;;  %v4517_v26 = vpop.f32.mrf.mxu3  ;;  %v4914_v37 = vld [vmem:[#allocation5 + $0x420] sm:$0xff] }
 0x74e   : > { %4559 = vst.msk [vmem:[#allocation3 + $0x408] sm:$0xff] %vm3477_vm1, %v4517_v26  ;;  %5926 = vmatpush.msra.mxu2 %v5145_v27  ;;  %v4868_v26 = vld [vmem:[#allocation5 + $0x2b0] sm:$0xff]  ;;  %v4915_v27 = vld [vmem:[#allocation5 + $0x428] sm:$0xff] }
 0x74f   : > { %v4414_v19 = vpop.f32.mrf.mxu1  ;;  %v5131_v0 = vld [vmem:[#allocation3 + $0x368] sm:$0xff] }
 0x750   : > { %4454 = vst.msk [vmem:[#allocation3 + $0x370] sm:$0xff] %vm3477_vm1, %v4414_v19  ;;  %v4614_v22 = vpop.f32.mrf.mxu0  ;;  %5927 = vmatpush.msra.mxu2 %v5144_v41 }
 0x751   : > { %4662 = vst.msk [vmem:[#allocation3 + $0x490] sm:$0xff] %vm3477_vm1, %v4614_v22  ;;  %9444 = vmatmul.msk.f32.gmra.mxu2 %vm3477_vm1, %v13907_v40  ;;  %v4820_v40 = vld [vmem:[#allocation5 + $0x130] sm:$0xff] }
 0x752   : > { %5928 = vmatpush.msra.mxu2 %v5143_v10 }
 0x753   : > { %5417 = vmatmul.f32.gmra.mxu1 %v4854_v30  ;;  %5559 = vmatmul.f32.gmra.mxu0 %v4808_v51  ;;  %v4926_v51 = vld [vmem:[#allocation5 + $0x480] sm:$0xff] }
 0x754   : > { %5494 = vmatmul.f32.gmra.mxu3 %v4855_v46  ;;  %5929 = vmatpush.msra.mxu2 %v5142_v54  ;;  %v4308_v21 = vpop.f32.mrf.mxu2  ;;  %v4880_v46 = vld [vmem:[#allocation5 + $0x310] sm:$0xff] }
 0x755   : > { %4348 = vst.msk [vmem:[#allocation3 + $0x2d0] sm:$0xff] %vm3477_vm1, %v4308_v21  ;;  %v4520_v56 = vpop.f32.mrf.mxu3 }
 0x756   : > { %4560 = vst.msk [vmem:[#allocation3 + $0x410] sm:$0xff] %vm3477_vm1, %v4520_v56 }
 0x757   : > { %v4417_v63 = vpop.f32.mrf.mxu1  ;;  %v5132_v59 = vld [vmem:[#allocation3 + $0x370] sm:$0xff] }
 0x758   : > { %4455 = vst.msk [vmem:[#allocation3 + $0x378] sm:$0xff] %vm3477_vm1, %v4417_v63  ;;  %v4617_v23 = vpop.f32.mrf.mxu0 }
 0x759   : > { %4663 = vst.msk [vmem:[#allocation3 + $0x498] sm:$0xff] %vm3477_vm1, %v4617_v23  ;;  %9445 = vmatmul.msk.f32.gmra.mxu2 %vm3477_vm1, %v13918_v11  ;;  %v4879_v11 = vld [vmem:[#allocation5 + $0x308] sm:$0xff] }
 0x75b   : > { %5420 = vmatmul.f32.gmra.mxu1 %v4866_v58  ;;  %5562 = vmatmul.f32.gmra.mxu0 %v4820_v40  ;;  %v4938_v58 = vld [vmem:[#allocation5 + $0x4e0] sm:$0xff] }
 0x75c   : > { %5497 = vmatmul.f32.gmra.mxu3 %v4867_v45  ;;  %v4311_v39 = vpop.f32.mrf.mxu2  ;;  %v4939_v45 = vld [vmem:[#allocation5 + $0x4e8] sm:$0xff] }
 0x75d   : > { %4349 = vst.msk [vmem:[#allocation3 + $0x2d8] sm:$0xff] %vm3477_vm1, %v4311_v39  ;;  %v4523_v48 = vpop.f32.mrf.mxu3 }
 0x75e   : > { %4561 = vst.msk [vmem:[#allocation3 + $0x418] sm:$0xff] %vm3477_vm1, %v4523_v48 }
 0x75f   : > { %v4420_v62 = vpop.f32.mrf.mxu1  ;;  %v5133_v36 = vld [vmem:[#allocation3 + $0x378] sm:$0xff] }
 0x760   : > { %4456 = vst.msk [vmem:[#allocation3 + $0x380] sm:$0xff] %vm3477_vm1, %v4420_v62  ;;  %v4620_v16 = vpop.f32.mrf.mxu0  ;;  %5845 = vmatpush.msrb.mxu0 %v5133_v36 }
 0x761   : > { %4664 = vst.msk [vmem:[#allocation3 + $0x4a0] sm:$0xff] %vm3477_vm1, %v4620_v16  ;;  %9446 = vmatmul.msk.f32.gmra.mxu2 %vm3477_vm1, %v13929_v3 }
 0x762   : > { %5846 = vmatpush.msrb.mxu0 %v5132_v59  ;;  %v4951_v59 = vld [vmem:[#allocation5 + $0x548] sm:$0xff] }
 0x763   : > { %5423 = vmatmul.f32.gmra.mxu1 %v4878_v49  ;;  %5565 = vmatmul.f32.gmra.mxu0 %v4832_v15  ;;  %v4950_v15 = vld [vmem:[#allocation5 + $0x540] sm:$0xff] }
 0x764   : > { %5500 = vmatmul.f32.gmra.mxu3 %v4879_v11  ;;  %5847 = vmatpush.msrb.mxu0 %v5131_v0  ;;  %v4314_v57 = vpop.f32.mrf.mxu2  ;;  %v5113_v36 = vld [vmem:[#allocation3 + $0x2d8] sm:$0xff]  ;;  %v4904_v11 = vld [vmem:[#allocation5 + $0x3d0] sm:$0xff]  ;;  %v5111_v0 = vld [vmem:[#allocation3 + $0x2c8] sm:$0xff] }
 0x765   : > { %4350 = vst.msk [vmem:[#allocation3 + $0x2e0] sm:$0xff] %vm3477_vm1, %v4314_v57  ;;  %v4526_v1 = vpop.f32.mrf.mxu3 }
 0x766   : > { %4562 = vst.msk [vmem:[#allocation3 + $0x420] sm:$0xff] %vm3477_vm1, %v4526_v1  ;;  %5848 = vmatpush.msrb.mxu0 %v5130_v60  ;;  %v5110_v1 = vld [vmem:[#allocation3 + $0x2c0] sm:$0xff] }
 0x767   : > { %v4423_v42 = vpop.f32.mrf.mxu1 }
 0x768   : > { %4457 = vst.msk [vmem:[#allocation3 + $0x388] sm:$0xff] %vm3477_vm1, %v4423_v42  ;;  %v4623_v3 = vpop.f32.mrf.mxu0  ;;  %5849 = vmatpush.msrb.mxu0 %v5129_v52  ;;  %v5109_v52 = vld [vmem:[#allocation3 + $0x2b8] sm:$0xff] }
 0x769   : > { %4665 = vst.msk [vmem:[#allocation3 + $0x4a8] sm:$0xff] %vm3477_vm1, %v4623_v3  ;;  %9447 = vmatmul.msk.f32.gmra.mxu2 %vm3477_vm1, %v13940_v20 }
 0x76a   : > { %5850 = vmatpush.msrb.mxu0 %v5128_v29  ;;  %v5107_v29 = vld [vmem:[#allocation3 + $0x2a8] sm:$0xff] }
 0x76b   : > { %5426 = vmatmul.f32.gmra.mxu1 %v4890_v7  ;;  %5568 = vmatmul.f32.gmra.mxu0 %v4844_v14  ;;  %v4963_v7 = vld [vmem:[#allocation5 + $0x5a8] sm:$0xff]  ;;  %v4916_v14 = vld [vmem:[#allocation5 + $0x430] sm:$0xff] }
 0x76c   : > { %5503 = vmatmul.f32.gmra.mxu3 %v4891_v43  ;;  %5851 = vmatpush.msrb.mxu0 %v5127_v38  ;;  %v4317_v50 = vpop.f32.mrf.mxu2  ;;  %v5114_v39 = vld [vmem:[#allocation3 + $0x2e0] sm:$0xff]  ;;  %v5108_v43 = vld [vmem:[#allocation3 + $0x2b0] sm:$0xff] }
 0x76d   : > { %4351 = vst.msk [vmem:[#allocation3 + $0x2e8] sm:$0xff] %vm3477_vm1, %v4317_v50  ;;  %v4529_v55 = vpop.f32.mrf.mxu3  ;;  %v5106_v50 = vld [vmem:[#allocation3 + $0x2a0] sm:$0xff] }
 0x76e   : > { %4563 = vst.msk [vmem:[#allocation3 + $0x428] sm:$0xff] %vm3477_vm1, %v4529_v55  ;;  %5852 = vmatpush.msrb.mxu0 %v5126_v9 }
 0x76f   : > { %v4426_v44 = vpop.f32.mrf.mxu1 }
 0x770   : > { %4458 = vst.msk [vmem:[#allocation3 + $0x390] sm:$0xff] %vm3477_vm1, %v4426_v44  ;;  %v4626_v20 = vpop.f32.mrf.mxu0  ;;  %5853 = vmatpush.msrb.mxu0 %v5125_v35  ;;  %v5105_v44 = vld [vmem:[#allocation3 + $0x298] sm:$0xff] }
 0x771   : > { %4666 = vst.msk [vmem:[#allocation3 + $0x4b0] sm:$0xff] %vm3477_vm1, %v4626_v20  ;;  %9448 = vmatmul.msk.f32.gmra.mxu2 %vm3477_vm1, %v13951_v33  ;;  %v4974_v20 = vld [vmem:[#allocation5 + $0x600] sm:$0xff] }
 0x772   : > { %5854 = vmatpush.msrb.mxu0 %v5124_v28  ;;  %v5104_v28 = vld [vmem:[#allocation3 + $0x290] sm:$0xff] }
 0x773   : > { %5429 = vmatmul.f32.gmra.mxu1 %v4902_v53  ;;  %5571 = vmatmul.f32.gmra.mxu0 %v4856_v4  ;;  %v4975_v53 = vld [vmem:[#allocation5 + $0x608] sm:$0xff]  ;;  %v4928_v4 = vld [vmem:[#allocation5 + $0x490] sm:$0xff] }
 0x774   : > { %5506 = vmatmul.f32.gmra.mxu3 %v4903_v32  ;;  %5855 = vmatpush.msrb.mxu0 %v5123_v34  ;;  %v4320_v5 = vpop.f32.mrf.mxu2  ;;  %v5115_v40 = vld [vmem:[#allocation3 + $0x2e8] sm:$0xff] }
 0x775   : > { %4352 = vst.msk [vmem:[#allocation3 + $0x2f0] sm:$0xff] %vm3477_vm1, %v4320_v5  ;;  %v4532_v61 = vpop.f32.mrf.mxu3  ;;  %v5103_v34 = vld [vmem:[#allocation3 + $0x288] sm:$0xff] }
 0x776   : > { %4564 = vst.msk [vmem:[#allocation3 + $0x430] sm:$0xff] %vm3477_vm1, %v4532_v61  ;;  %5856 = vmatpush.msrb.mxu0 %v5122_v47 }
 0x777   : > { %v4429_v24 = vpop.f32.mrf.mxu1 }
 0x778   : > { %4459 = vst.msk [vmem:[#allocation3 + $0x398] sm:$0xff] %vm3477_vm1, %v4429_v24  ;;  %v4629_v33 = vpop.f32.mrf.mxu0  ;;  %v5102_v24 = vld [vmem:[#allocation3 + $0x280] sm:$0xff] }
 0x779   : > { %4667 = vst.msk [vmem:[#allocation3 + $0x4b8] sm:$0xff] %vm3477_vm1, %v4629_v33  ;;  %9449 = vmatmul.msk.f32.gmra.mxu2 %vm3477_vm1, %v13962_v31  ;;  %v4927_v31 = vld [vmem:[#allocation5 + $0x488] sm:$0xff] }
 0x77b   : > { %5432 = vmatmul.f32.gmra.mxu1 %v4914_v37  ;;  %5574 = vmatmul.f32.gmra.mxu0 %v4868_v26 }
 0x77c   : > { %5509 = vmatmul.f32.gmra.mxu3 %v4915_v27  ;;  %v4323_v19 = vpop.f32.mrf.mxu2  ;;  %v5116_v56 = vld [vmem:[#allocation3 + $0x2f0] sm:$0xff] }
 0x77d   : > { %4353 = vst.msk [vmem:[#allocation3 + $0x2f8] sm:$0xff] %vm3477_vm1, %v4323_v19  ;;  %v4535_v41 = vpop.f32.mrf.mxu3 }
 0x77e   : > { %4565 = vst.msk [vmem:[#allocation3 + $0x438] sm:$0xff] %vm3477_vm1, %v4535_v41 }
 0x77f   : > { %v4432_v22 = vpop.f32.mrf.mxu1  ;;  %v5137_v41 = vld [vmem:[#allocation3 + $0x398] sm:$0xff] }
 0x780   : > { %4460 = vst.msk [vmem:[#allocation3 + $0x3a0] sm:$0xff] %vm3477_vm1, %v4432_v22  ;;  %v4632_v30 = vpop.f32.mrf.mxu0  ;;  %v4986_v22 = vld [vmem:[#allocation5 + $0x660] sm:$0xff] }
 0x781   : > { %4668 = vst.msk [vmem:[#allocation3 + $0x4c0] sm:$0xff] %vm3477_vm1, %v4632_v30  ;;  %9450 = vmatmul.msk.f32.gmra.mxu2 %vm3477_vm1, %v13973_v6  ;;  %v4892_v6 = vld [vmem:[#allocation5 + $0x370] sm:$0xff] }
 0x783   : > { %5435 = vmatmul.f32.gmra.mxu1 %v4926_v51  ;;  %5577 = vmatmul.f32.gmra.mxu0 %v4880_v46  ;;  %v4987_v51 = vld [vmem:[#allocation5 + $0x668] sm:$0xff]  ;;  %v4940_v46 = vld [vmem:[#allocation5 + $0x4f0] sm:$0xff] }
 0x784   : > { %5512 = vmatmul.f32.gmra.mxu3 %v4927_v31  ;;  %v4326_v10 = vpop.f32.mrf.mxu2  ;;  %v5117_v54 = vld [vmem:[#allocation3 + $0x2f8] sm:$0xff] }
 0x785   : > { %4354 = vst.msk [vmem:[#allocation3 + $0x300] sm:$0xff] %vm3477_vm1, %v4326_v10  ;;  %v4538_v21 = vpop.f32.mrf.mxu3  ;;  %5768 = vmatpush.msra.mxu3 %v5117_v54  ;;  %v5136_v10 = vld [vmem:[#allocation3 + $0x390] sm:$0xff] }
 0x786   : > { %4566 = vst.msk [vmem:[#allocation3 + $0x440] sm:$0xff] %vm3477_vm1, %v4538_v21 }
 0x787   : > { %v4435_v63 = vpop.f32.mrf.mxu1  ;;  %5769 = vmatpush.msra.mxu3 %v5116_v56 }
 0x788   : > { %4461 = vst.msk [vmem:[#allocation3 + $0x3a8] sm:$0xff] %vm3477_vm1, %v4435_v63  ;;  %v4635_v23 = vpop.f32.mrf.mxu0  ;;  %v5135_v63 = vld [vmem:[#allocation3 + $0x388] sm:$0xff] }
 0x789   : > { %4669 = vst.msk [vmem:[#allocation3 + $0x4c8] sm:$0xff] %vm3477_vm1, %v4635_v23  ;;  %9451 = vmatmul.msk.f32.gmra.mxu2 %vm3477_vm1, %v13984_v25  ;;  %5770 = vmatpush.msra.mxu3 %v5115_v40  ;;  %v5112_v25 = vld [vmem:[#allocation3 + $0x2d0] sm:$0xff] }
 0x78b   : > { %5438 = vmatmul.f32.gmra.mxu1 %v4938_v58  ;;  %5580 = vmatmul.f32.gmra.mxu0 %v4892_v6  ;;  %v5157_v6 = vld [vmem:[#allocation3 + $0x438] sm:$0xff] }
 0x78c   : > { %5515 = vmatmul.f32.gmra.mxu3 %v4939_v45  ;;  %v4329_v48 = vpop.f32.mrf.mxu2  ;;  %v5118_v56 = vld [vmem:[#allocation3 + $0x300] sm:$0xff] }
 0x78d   : > { %5771 = vmatpush.msra.mxu3 %v5114_v39  ;;  %4355 = vst.msk [vmem:[#allocation3 + $0x308] sm:$0xff] %vm3477_vm1, %v4329_v48  ;;  %v5158_v23 = vld [vmem:[#allocation3 + $0x440] sm:$0xff]  ;;  %v4998_v39 = vld [vmem:[#allocation5 + $0x6c0] sm:$0xff]  ;;  %v4999_v48 = vld [vmem:[#allocation5 + $0x6c8] sm:$0xff] }
 0x78e   : > { %v4541_v62 = vpop.f32.mrf.mxu3 }
 0x78f   : > { %4567 = vst.msk [vmem:[#allocation3 + $0x448] sm:$0xff] %vm3477_vm1, %v4541_v62  ;;  %5772 = vmatpush.msra.mxu3 %v5113_v36  ;;  %v4438_v16 = vpop.f32.mrf.mxu1  ;;  %v5139_v5 = vld [vmem:[#allocation3 + $0x3a8] sm:$0xff]  ;;  %v5156_v62 = vld [vmem:[#allocation3 + $0x430] sm:$0xff]  ;;  %v4952_v36 = vld [vmem:[#allocation5 + $0x550] sm:$0xff] }
 0x790   : > { %4462 = vst.msk [vmem:[#allocation3 + $0x3b0] sm:$0xff] %vm3477_vm1, %v4438_v16  ;;  %v4638_v49 = vpop.f32.mrf.mxu0  ;;  %v5155_v16 = vld [vmem:[#allocation3 + $0x428] sm:$0xff] }
 0x791   : > { %4670 = vst.msk [vmem:[#allocation3 + $0x4d0] sm:$0xff] %vm3477_vm1, %v4638_v49  ;;  %5773 = vmatpush.msra.mxu3 %v5112_v25  ;;  %9452 = vmatmul.msk.f32.gmra.mxu2 %vm3477_vm1, %v13997_v2  ;;  %v4962_v2 = vld [vmem:[#allocation5 + $0x5a0] sm:$0xff]  ;;  %v5154_v25 = vld [vmem:[#allocation3 + $0x420] sm:$0xff] }
 0x793   : > { %5441 = vmatmul.f32.gmra.mxu1 %v4950_v15  ;;  %5583 = vmatmul.f32.gmra.mxu0 %v4904_v11  ;;  %v5153_v11 = vld [vmem:[#allocation3 + $0x418] sm:$0xff] }
 0x794   : > { %5518 = vmatmul.f32.gmra.mxu3 %v4951_v59  ;;  %v4332_v57 = vpop.f32.mrf.mxu2  ;;  %v5119_v31 = vld [vmem:[#allocation3 + $0x308] sm:$0xff] }
 0x795   : > { %5774 = vmatpush.msra.mxu3 %v5111_v0  ;;  %4356 = vst.msk [vmem:[#allocation3 + $0x310] sm:$0xff] %vm3477_vm1, %v4332_v57  ;;  %v5011_v57 = vld [vmem:[#allocation5 + $0x728] sm:$0xff] }
 0x796   : > { %v4544_v60 = vpop.f32.mrf.mxu3  ;;  %v5159_v54 = vld [vmem:[#allocation3 + $0x448] sm:$0xff] }
 0x797   : > { %5775 = vmatpush.msra.mxu3 %v5110_v1  ;;  %4568 = vst.msk [vmem:[#allocation3 + $0x450] sm:$0xff] %vm3477_vm1, %v4544_v60  ;;  %v4441_v42 = vpop.f32.mrf.mxu1  ;;  %v5140_v32 = vld [vmem:[#allocation3 + $0x3b0] sm:$0xff]  ;;  %v4964_v60 = vld [vmem:[#allocation5 + $0x5b0] sm:$0xff] }
 0x798   : > { %4463 = vst.msk [vmem:[#allocation3 + $0x3b8] sm:$0xff] %vm3477_vm1, %v4441_v42  ;;  %v4641_v3 = vpop.f32.mrf.mxu0  ;;  %v5152_v1 = vld [vmem:[#allocation3 + $0x410] sm:$0xff]  ;;  %v5151_v42 = vld [vmem:[#allocation3 + $0x408] sm:$0xff] }
 0x799   : > { %5776 = vmatpush.msra.mxu3 %v5109_v52  ;;  %4671 = vst.msk [vmem:[#allocation3 + $0x4d8] sm:$0xff] %vm3477_vm1, %v4641_v3  ;;  %9453 = vmatmul.msk.f32.gmra.mxu2 %vm3477_vm1, %v14037_v18  ;;  %v5150_v3 = vld [vmem:[#allocation3 + $0x400] sm:$0xff] }
 0x79b   : > { %5777 = vmatpush.msra.mxu3 %v5108_v43  ;;  %5444 = vmatmul.f32.gmra.mxu1 %v4962_v2 }
 0x79c   : > { %5521 = vmatmul.f32.gmra.mxu3 %v4963_v7  ;;  %5586 = vmatmul.f32.gmra.mxu0 %v4916_v14  ;;  %v4335_v38 = vpop.f32.mrf.mxu2  ;;  %v5120_v27 = vld [vmem:[#allocation3 + $0x310] sm:$0xff]  ;;  %v4785_v7 = vld [vmem:[#allocation5 + $0x18] sm:$0xff] }
 0x79d   : > { %5778 = vmatpush.msra.mxu3 %v5107_v29  ;;  %4357 = vst.msk [vmem:[#allocation3 + $0x318] sm:$0xff] %vm3477_vm1, %v4335_v38  ;;  %v4787_v29 = vld [vmem:[#allocation5 + $0x28] sm:$0xff]  ;;  %v4786_v38 = vld [vmem:[#allocation5 + $0x20] sm:$0xff] }
 0x79e   : > { %v4547_v55 = vpop.f32.mrf.mxu3  ;;  %v5160_v30 = vld [vmem:[#allocation3 + $0x450] sm:$0xff] }
 0x79f   : > { %5779 = vmatpush.msra.mxu3 %v5106_v50  ;;  %4569 = vst.msk [vmem:[#allocation3 + $0x458] sm:$0xff] %vm3477_vm1, %v4547_v55  ;;  %v14545_v9 = vpop.f32.mrf.mxu1  ;;  %v5141_v18 = vld [vmem:[#allocation3 + $0x3b8] sm:$0xff]  ;;  %v4976_v50 = vld [vmem:[#allocation5 + $0x610] sm:$0xff] }
 0x7a0   : > { %v4644_v35 = vpop.f32.mrf.mxu0  ;;  %5930 = vmatpush.msra.mxu2 %v5141_v18 }
 0x7a1   : > { %5780 = vmatpush.msra.mxu3 %v5105_v44  ;;  %4672 = vst.msk [vmem:[#allocation3 + $0x4e0] sm:$0xff] %vm3477_vm1, %v4644_v35  ;;  %9454 = vmatmul.msk.f32.gmra.mxu2 %vm3477_vm1, %v14077_v12  ;;  %v5138_v12 = vld [vmem:[#allocation3 + $0x3a0] sm:$0xff] }
 0x7a2   : > { %5931 = vmatpush.msra.mxu2 %v5140_v32  ;;  %v5177_v32 = vld [vmem:[#allocation3 + $0x4d8] sm:$0xff] }
 0x7a3   : > { %5781 = vmatpush.msra.mxu3 %v5104_v28  ;;  %5447 = vmatmul.f32.gmra.mxu1 %v4974_v20 }
 0x7a4   : > { %5524 = vmatmul.f32.gmra.mxu3 %v4975_v53  ;;  %5589 = vmatmul.f32.gmra.mxu0 %v4928_v4  ;;  %v4702_v61 = vpop.f32.mrf.mxu2  ;;  %v5121_v47 = vld [vmem:[#allocation3 + $0x318] sm:$0xff]  ;;  %v4797_v53 = vld [vmem:[#allocation5 + $0x78] sm:$0xff] }
 0x7a5   : > { %5782 = vmatpush.msra.mxu3 %v5103_v34  ;;  %5932 = vmatpush.msra.mxu2 %v5139_v5  ;;  %4762 = vst.msk [vmem:[#allocation3 + $0x500] sm:$0xff] %vm3477_vm1, %v4702_v61  ;;  %v4799_v34 = vld [vmem:[#allocation5 + $0x88] sm:$0xff]  ;;  %v4798_v5 = vld [vmem:[#allocation5 + $0x80] sm:$0xff]  ;;  %v4988_v61 = vld [vmem:[#allocation5 + $0x670] sm:$0xff] }
 0x7a6   : > { %v14551_v33 = vpop.f32.mrf.mxu3  ;;  %5857 = vmatpush.msrb.mxu0 %v5121_v47  ;;  %v5161_v37 = vld [vmem:[#allocation3 + $0x458] sm:$0xff]  ;;  %v5176_v47 = vld [vmem:[#allocation3 + $0x4d0] sm:$0xff] }
 0x7a7   : > { %5783 = vmatpush.msra.mxu3 %v5102_v24  ;;  %5933 = vmatpush.msra.mxu2 %v5138_v12  ;;  %v14553_v26 = vpop.f32.mrf.mxu1  ;;  %v5175_v24 = vld [vmem:[#allocation3 + $0x4c8] sm:$0xff] }
 0x7a8   : > { %6003 = vmatpush.msra.mxu1 %v5161_v37  ;;  %v4647_v19 = vpop.f32.mrf.mxu0  ;;  %5858 = vmatpush.msrb.mxu0 %v5120_v27  ;;  %v5178_v35 = vld [vmem:[#allocation3 + $0x4e0] sm:$0xff] }
 0x7a9   : > { %4673 = vst.msk [vmem:[#allocation3 + $0x4e8] sm:$0xff] %vm3477_vm1, %v4647_v19  ;;  %5934 = vmatpush.msra.mxu2 %v5137_v41  ;;  %v5174_v37 = vld [vmem:[#allocation3 + $0x4c0] sm:$0xff]  ;;  %v4809_v19 = vld [vmem:[#allocation5 + $0xd8] sm:$0xff] }
 0x7aa   : > { %6004 = vmatpush.msra.mxu1 %v5160_v30  ;;  %9455 = vmatmul.msk.f32.gmra.mxu2 %vm3477_vm1, %v14110_v8  ;;  %v5134_v8 = vld [vmem:[#allocation3 + $0x380] sm:$0xff]  ;;  %v4811_v30 = vld [vmem:[#allocation5 + $0xe8] sm:$0xff] }
 0x7ab   : > { %5450 = vmatmul.f32.gmra.mxu1 %v4986_v22  ;;  %5859 = vmatpush.msrb.mxu0 %v5119_v31  ;;  %v5173_v22 = vld [vmem:[#allocation3 + $0x4b8] sm:$0xff]  ;;  %v5172_v31 = vld [vmem:[#allocation3 + $0x4b0] sm:$0xff] }
 0x7ac   : > { %5527 = vmatmul.f32.gmra.mxu3 %v4987_v51  ;;  %5592 = vmatmul.f32.gmra.mxu0 %v4940_v46  ;;  %v4705_v21 = vpop.f32.mrf.mxu2  ;;  %v4810_v51 = vld [vmem:[#allocation5 + $0xe0] sm:$0xff]  ;;  %v5000_v46 = vld [vmem:[#allocation5 + $0x6d0] sm:$0xff] }
 0x7ad   : > { %5935 = vmatpush.msra.mxu2 %v5136_v10  ;;  %6005 = vmatpush.msra.mxu1 %v5159_v54  ;;  %4763 = vst.msk [vmem:[#allocation3 + $0x508] sm:$0xff] %vm3477_vm1, %v4705_v21  ;;  %v5171_v54 = vld [vmem:[#allocation3 + $0x4a8] sm:$0xff] }
 0x7ae   : > { %5860 = vmatpush.msrb.mxu0 %v5118_v56  ;;  %v14559_v58 = vpop.f32.mrf.mxu3  ;;  %v5170_v56 = vld [vmem:[#allocation3 + $0x4a0] sm:$0xff] }
 0x7af   : > { %5936 = vmatpush.msra.mxu2 %v5135_v63  ;;  %6006 = vmatpush.msra.mxu1 %v5158_v23  ;;  %v4821_v23 = vld [vmem:[#allocation5 + $0x138] sm:$0xff] }
 0x7b0   : > { %v4650_v40 = vpop.f32.mrf.mxu0  ;;  %v14561_v45 = vpop.f32.mrf.mxu1  ;;  %v5179_v18 = vld [vmem:[#allocation3 + $0x4e8] sm:$0xff] }
 0x7b1   : > { %5937 = vmatpush.msra.mxu2 %v5134_v8  ;;  %6007 = vmatpush.msra.mxu1 %v5157_v6  ;;  %4674 = vst.msk [vmem:[#allocation3 + $0x4f0] sm:$0xff] %vm3477_vm1, %v4650_v40  ;;  %v5169_v6 = vld [vmem:[#allocation3 + $0x498] sm:$0xff] }
 0x7b2   : > { %9456 = vmatmul.msk.f32.gmra.mxu2 %vm3477_vm1, %v14125_v13  ;;  %v5010_v13 = vld [vmem:[#allocation5 + $0x720] sm:$0xff]  ;;  %v4823_v40 = vld [vmem:[#allocation5 + $0x148] sm:$0xff] }
 0x7b3   : > { %6008 = vmatpush.msra.mxu1 %v5156_v62  ;;  %v5168_v62 = vld [vmem:[#allocation3 + $0x490] sm:$0xff] }
 0x7b4   : > { %5453 = vmatmul.f32.gmra.mxu1 %v4998_v39  ;;  %5530 = vmatmul.f32.gmra.mxu3 %v4999_v48  ;;  %v4708_v49 = vpop.f32.mrf.mxu2  ;;  %v4822_v39 = vld [vmem:[#allocation5 + $0x140] sm:$0xff]  ;;  %v5012_v48 = vld [vmem:[#allocation5 + $0x730] sm:$0xff] }
 0x7b5   : > { %5595 = vmatmul.f32.gmra.mxu0 %v4952_v36  ;;  %6009 = vmatpush.msra.mxu1 %v5155_v16  ;;  %4764 = vst.msk [vmem:[#allocation3 + $0x510] sm:$0xff] %vm3477_vm1, %v4708_v49  ;;  %v5167_v36 = vld [vmem:[#allocation3 + $0x488] sm:$0xff] }
 0x7b7   : > { %6010 = vmatpush.msra.mxu1 %v5154_v25  ;;  %v14567_v15 = vpop.f32.mrf.mxu3  ;;  %v5166_v25 = vld [vmem:[#allocation3 + $0x480] sm:$0xff] }
 0x7b8   : > { %v4653_v59 = vpop.f32.mrf.mxu0  ;;  %v14569_v0 = vpop.f32.mrf.mxu1  ;;  %v5180_v55 = vld [vmem:[#allocation3 + $0x4f0] sm:$0xff] }
 0x7b9   : > { %6011 = vmatpush.msra.mxu1 %v5153_v11  ;;  %4675 = vst.msk [vmem:[#allocation3 + $0x4f8] sm:$0xff] %vm3477_vm1, %v4653_v59  ;;  %v4833_v59 = vld [vmem:[#allocation5 + $0x198] sm:$0xff] }
 0x7ba   : > { %9457 = vmatmul.msk.f32.gmra.mxu2 %vm3477_vm1, %v14158_v17 }
 0x7bb   : > { %6012 = vmatpush.msra.mxu1 %v5152_v1  ;;  %v4834_v1 = vld [vmem:[#allocation5 + $0x1a0] sm:$0xff] }
 0x7bc   : > { %5456 = vmatmul.f32.gmra.mxu1 %v5010_v13  ;;  %5533 = vmatmul.f32.gmra.mxu3 %v5011_v57  ;;  %v4711_v52 = vpop.f32.mrf.mxu2  ;;  %v4835_v57 = vld [vmem:[#allocation5 + $0x1a8] sm:$0xff] }
 0x7bd   : > { %5598 = vmatmul.f32.gmra.mxu0 %v4964_v60  ;;  %6013 = vmatpush.msra.mxu1 %v5151_v42  ;;  %4765 = vst.msk [vmem:[#allocation3 + $0x518] sm:$0xff] %vm3477_vm1, %v4711_v52  ;;  %v4788_v60 = vld [vmem:[#allocation5 + $0x30] sm:$0xff] }
 0x7bf   : > { %6014 = vmatpush.msra.mxu1 %v5150_v3  ;;  %v14575_v2 = vpop.f32.mrf.mxu3 }
 0x7c0   : > { %v14577_v14 = vpop.f32.mrf.mxu1  ;;  %v14579_v43 = vpop.f32.mrf.mxu0  ;;  %v5181_v17 = vld [vmem:[#allocation3 + $0x4f8] sm:$0xff] }
 0x7c1   : > { %6076 = vmatpush.msrb.mxu3 %v5181_v17 }
 0x7c2   : > { %5630 = vmatmul.f32.vlgmr.msrb.gmra.mxu2 %v4785_v7  ;;  %v4845_v7 = vld [vmem:[#allocation5 + $0x1f8] sm:$0xff] }
 0x7c3   : > { %6077 = vmatpush.msrb.mxu3 %v5180_v55 }
 0x7c4   : > { %v4714_v44 = vpop.f32.mrf.mxu2  ;;  %5784 = vmatmul.f32.vlgmr.msra.gmra.mxu3 %v4787_v29  ;;  %5707 = vmatmul.f32.vlgmr.msrb.gmra.mxu1 %v4786_v38  ;;  %v4847_v29 = vld [vmem:[#allocation5 + $0x208] sm:$0xff]  ;;  %v4846_v38 = vld [vmem:[#allocation5 + $0x200] sm:$0xff] }
 0x7c5   : > { %5601 = vmatmul.f32.gmra.mxu0 %v4976_v50  ;;  %6078 = vmatpush.msrb.mxu3 %v5179_v18  ;;  %4766 = vst.msk [vmem:[#allocation3 + $0x520] sm:$0xff] %vm3477_vm1, %v4714_v44  ;;  %v4800_v50 = vld [vmem:[#allocation5 + $0x90] sm:$0xff]  ;;  %v4857_v44 = vld [vmem:[#allocation5 + $0x258] sm:$0xff] }
 0x7c7   : > { %v14582_v20 = vpop.f32.mrf.mxu3  ;;  %6079 = vmatpush.msrb.mxu3 %v5178_v35 }
 0x7c8   : > { %v14584_v4 = vpop.f32.mrf.mxu1  ;;  %v14586_v28 = vpop.f32.mrf.mxu0 }
 0x7c9   : > { %6080 = vmatpush.msrb.mxu3 %v5177_v32  ;;  %v4859_v32 = vld [vmem:[#allocation5 + $0x268] sm:$0xff] }
 0x7ca   : > { %5633 = vmatmul.f32.gmra.mxu2 %v4797_v53 }
 0x7cb   : > { %6081 = vmatpush.msrb.mxu3 %v5176_v47 }
 0x7cc   : > { %v4717_v12 = vpop.f32.mrf.mxu2  ;;  %5787 = vmatmul.f32.gmra.mxu3 %v4799_v34  ;;  %5710 = vmatmul.f32.gmra.mxu1 %v4798_v5  ;;  %v4858_v34 = vld [vmem:[#allocation5 + $0x260] sm:$0xff]  ;;  %v4812_v5 = vld [vmem:[#allocation5 + $0xf0] sm:$0xff] }
 0x7cd   : > { %5604 = vmatmul.f32.gmra.mxu0 %v4988_v61  ;;  %6082 = vmatpush.msrb.mxu3 %v5175_v24  ;;  %4767 = vst.msk [vmem:[#allocation3 + $0x528] sm:$0xff] %vm3477_vm1, %v4717_v12  ;;  %v4869_v24 = vld [vmem:[#allocation5 + $0x2b8] sm:$0xff] }
 0x7cf   : > { %v14589_v27 = vpop.f32.mrf.mxu3  ;;  %6083 = vmatpush.msrb.mxu3 %v5174_v37  ;;  %v4871_v37 = vld [vmem:[#allocation5 + $0x2c8] sm:$0xff] }
 0x7d0   : > { %v14591_v41 = vpop.f32.mrf.mxu1  ;;  %v14593_v10 = vpop.f32.mrf.mxu0 }
 0x7d1   : > { %6084 = vmatpush.msrb.mxu3 %v5173_v22  ;;  %v4824_v22 = vld [vmem:[#allocation5 + $0x150] sm:$0xff] }
 0x7d2   : > { %5636 = vmatmul.f32.gmra.mxu2 %v4809_v19  ;;  %v4870_v19 = vld [vmem:[#allocation5 + $0x2c0] sm:$0xff] }
 0x7d3   : > { %6085 = vmatpush.msrb.mxu3 %v5172_v31  ;;  %v4881_v31 = vld [vmem:[#allocation5 + $0x318] sm:$0xff] }
 0x7d4   : > { %v4720_v21 = vpop.f32.mrf.mxu2  ;;  %5790 = vmatmul.f32.gmra.mxu3 %v4811_v30  ;;  %5713 = vmatmul.f32.gmra.mxu1 %v4810_v51 }
 0x7d5   : > { %5607 = vmatmul.f32.gmra.mxu0 %v5000_v46  ;;  %6086 = vmatpush.msrb.mxu3 %v5171_v54  ;;  %4768 = vst.msk [vmem:[#allocation3 + $0x530] sm:$0xff] %vm3477_vm1, %v4720_v21  ;;  %v4883_v21 = vld [vmem:[#allocation5 + $0x328] sm:$0xff] }
 0x7d7   : > { %v14596_v63 = vpop.f32.mrf.mxu3  ;;  %6087 = vmatpush.msrb.mxu3 %v5170_v56  ;;  %v4882_v56 = vld [vmem:[#allocation5 + $0x320] sm:$0xff] }
 0x7d8   : > { %v14598_v8 = vpop.f32.mrf.mxu1  ;;  %v14600_v49 = vpop.f32.mrf.mxu0 }
 0x7d9   : > { %6088 = vmatpush.msrb.mxu3 %v5169_v6 }
 0x7da   : > { %5639 = vmatmul.f32.gmra.mxu2 %v4821_v23  ;;  %v4836_v23 = vld [vmem:[#allocation5 + $0x1b0] sm:$0xff] }
 0x7db   : > { %6089 = vmatpush.msrb.mxu3 %v5168_v62 }
 0x7dc   : > { %v4723_v16 = vpop.f32.mrf.mxu2  ;;  %5793 = vmatmul.f32.gmra.mxu3 %v4823_v40  ;;  %5716 = vmatmul.f32.gmra.mxu1 %v4822_v39 }
 0x7dd   : > { %5610 = vmatmul.f32.gmra.mxu0 %v5012_v48  ;;  %6090 = vmatpush.msrb.mxu3 %v5167_v36  ;;  %4769 = vst.msk [vmem:[#allocation3 + $0x538] sm:$0xff] %vm3477_vm1, %v4723_v16  ;;  %v4893_v48 = vld [vmem:[#allocation5 + $0x378] sm:$0xff]  ;;  %v4895_v36 = vld [vmem:[#allocation5 + $0x388] sm:$0xff]  ;;  %v4894_v16 = vld [vmem:[#allocation5 + $0x380] sm:$0xff] }
 0x7df   : > { %v14603_v11 = vpop.f32.mrf.mxu3  ;;  %6091 = vmatpush.msrb.mxu3 %v5166_v25  ;;  %v4848_v25 = vld [vmem:[#allocation5 + $0x210] sm:$0xff] }
 0x7e0   : > { %v14605_v13 = vpop.f32.mrf.mxu1  ;;  %v14608_v52 = vpop.f32.mrf.mxu0 }
 0x7e2   : > { %5642 = vmatmul.f32.gmra.mxu2 %v4833_v59 }
 0x7e4   : > { %v4726_v42 = vpop.f32.mrf.mxu2  ;;  %5796 = vmatmul.f32.gmra.mxu3 %v4835_v57  ;;  %5719 = vmatmul.f32.gmra.mxu1 %v4834_v1 }
 0x7e5   : > { %5861 = vmatmul.f32.vlgmr.msrb.gmra.mxu0 %v4788_v60  ;;  %4770 = vst.msk [vmem:[#allocation3 + $0x540] sm:$0xff] %vm3477_vm1, %v4726_v42  ;;  %v4905_v60 = vld [vmem:[#allocation5 + $0x3d8] sm:$0xff] }
 0x7e7   : > { %v14610_v3 = vpop.f32.mrf.mxu3 }
 0x7e8   : > { %v14612_v17 = vpop.f32.mrf.mxu1  ;;  %v14619_v53 = vpop.f32.mrf.mxu0 }
 0x7ea   : > { %5645 = vmatmul.f32.gmra.mxu2 %v4845_v7  ;;  %v4907_v7 = vld [vmem:[#allocation5 + $0x3e8] sm:$0xff] }
 0x7ec   : > { %v4729_v55 = vpop.f32.mrf.mxu2  ;;  %5799 = vmatmul.f32.gmra.mxu3 %v4847_v29  ;;  %5722 = vmatmul.f32.gmra.mxu1 %v4846_v38  ;;  %v4906_v29 = vld [vmem:[#allocation5 + $0x3e0] sm:$0xff]  ;;  %v4860_v38 = vld [vmem:[#allocation5 + $0x270] sm:$0xff] }
 0x7ed   : > { %5864 = vmatmul.f32.gmra.mxu0 %v4800_v50  ;;  %4771 = vst.msk [vmem:[#allocation3 + $0x548] sm:$0xff] %vm3477_vm1, %v4729_v55 }
 0x7ef   : > { %v14615_v18 = vpop.f32.mrf.mxu3 }
 0x7f0   : > { %v14617_v35 = vpop.f32.mrf.mxu1  ;;  %v14626_v30 = vpop.f32.mrf.mxu0 }
 0x7f2   : > { %5648 = vmatmul.f32.gmra.mxu2 %v4857_v44  ;;  %v4917_v44 = vld [vmem:[#allocation5 + $0x438] sm:$0xff] }
 0x7f4   : > { %v4732_v61 = vpop.f32.mrf.mxu2  ;;  %5802 = vmatmul.f32.gmra.mxu3 %v4859_v32  ;;  %5725 = vmatmul.f32.gmra.mxu1 %v4858_v34 }
 0x7f5   : > { %5867 = vmatmul.f32.gmra.mxu0 %v4812_v5  ;;  %4772 = vst.msk [vmem:[#allocation3 + $0x550] sm:$0xff] %vm3477_vm1, %v4732_v61  ;;  %v4919_v5 = vld [vmem:[#allocation5 + $0x448] sm:$0xff]  ;;  %v4918_v61 = vld [vmem:[#allocation5 + $0x440] sm:$0xff] }
 0x7f7   : > { %v14622_v47 = vpop.f32.mrf.mxu3 }
 0x7f8   : > { %v14624_v12 = vpop.f32.mrf.mxu1  ;;  %v14633_v40 = vpop.f32.mrf.mxu0 }
 0x7fa   : > { %5651 = vmatmul.f32.gmra.mxu2 %v4869_v24  ;;  %v4872_v24 = vld [vmem:[#allocation5 + $0x2d0] sm:$0xff] }
 0x7fc   : > { %v4735_v51 = vpop.f32.mrf.mxu2  ;;  %5805 = vmatmul.f32.gmra.mxu3 %v4871_v37  ;;  %5728 = vmatmul.f32.gmra.mxu1 %v4870_v19 }
 0x7fd   : > { %5870 = vmatmul.f32.gmra.mxu0 %v4824_v22  ;;  %4773 = vst.msk [vmem:[#allocation3 + $0x558] sm:$0xff] %vm3477_vm1, %v4735_v51  ;;  %v4929_v22 = vld [vmem:[#allocation5 + $0x498] sm:$0xff] }
 0x7ff   : > { %v14629_v46 = vpop.f32.mrf.mxu3 }
 0x800   : > { %v14631_v54 = vpop.f32.mrf.mxu1  ;;  %v14641_v57 = vpop.f32.mrf.mxu0 }
 0x802   : > { %5654 = vmatmul.f32.gmra.mxu2 %v4881_v31  ;;  %v4931_v31 = vld [vmem:[#allocation5 + $0x4a8] sm:$0xff] }
 0x804   : > { %v4738_v6 = vpop.f32.mrf.mxu2  ;;  %5808 = vmatmul.f32.gmra.mxu3 %v4883_v21  ;;  %5731 = vmatmul.f32.gmra.mxu1 %v4882_v56  ;;  %v4930_v21 = vld [vmem:[#allocation5 + $0x4a0] sm:$0xff]  ;;  %v4884_v56 = vld [vmem:[#allocation5 + $0x330] sm:$0xff] }
 0x805   : > { %5873 = vmatmul.f32.gmra.mxu0 %v4836_v23  ;;  %4774 = vst.msk [vmem:[#allocation3 + $0x560] sm:$0xff] %vm3477_vm1, %v4738_v6 }
 0x807   : > { %v14636_v39 = vpop.f32.mrf.mxu3 }
 0x808   : > { %v14638_v62 = vpop.f32.mrf.mxu1  ;;  %v14652_v34 = vpop.f32.mrf.mxu0 }
 0x80a   : > { %5657 = vmatmul.f32.gmra.mxu2 %v4893_v48 }
 0x80c   : > { %v4741_v59 = vpop.f32.mrf.mxu2  ;;  %5811 = vmatmul.f32.gmra.mxu3 %v4895_v36  ;;  %5734 = vmatmul.f32.gmra.mxu1 %v4894_v16 }
 0x80d   : > { %5876 = vmatmul.f32.gmra.mxu0 %v4848_v25  ;;  %4775 = vst.msk [vmem:[#allocation3 + $0x568] sm:$0xff] %vm3477_vm1, %v4741_v59  ;;  %v4941_v25 = vld [vmem:[#allocation5 + $0x4f8] sm:$0xff] }
 0x80f   : > { %v14643_v1 = vpop.f32.mrf.mxu3 }
 0x810   : > { %v14645_v42 = vpop.f32.mrf.mxu1  ;;  %v14659_v23 = vpop.f32.mrf.mxu0 }
 0x812   : > { %5660 = vmatmul.f32.gmra.mxu2 %v4905_v60 }
 0x814   : > { %v4744_v50 = vpop.f32.mrf.mxu2  ;;  %5814 = vmatmul.f32.gmra.mxu3 %v4907_v7  ;;  %5737 = vmatmul.f32.gmra.mxu1 %v4906_v29  ;;  %v5195_v60 = vld [vmem:[#allocation3 + $0x568] sm:$0xff]  ;;  %v4943_v7 = vld [vmem:[#allocation5 + $0x508] sm:$0xff]  ;;  %v4896_v29 = vld [vmem:[#allocation5 + $0x390] sm:$0xff] }
 0x815   : > { %5879 = vmatmul.f32.gmra.mxu0 %v4860_v38  ;;  %4776 = vst.msk [vmem:[#allocation3 + $0x570] sm:$0xff] %vm3477_vm1, %v4744_v50  ;;  %v4942_v38 = vld [vmem:[#allocation5 + $0x500] sm:$0xff]  ;;  %v5194_v50 = vld [vmem:[#allocation3 + $0x560] sm:$0xff] }
 0x817   : > { %v14648_v55 = vpop.f32.mrf.mxu3 }
 0x818   : > { %v14650_v32 = vpop.f32.mrf.mxu1 }
 0x81a   : > { %5663 = vmatmul.f32.gmra.mxu2 %v4917_v44  ;;  %v14666_v44 = vpop.f32.mrf.mxu0 }
 0x81c   : > { %v4747_v37 = vpop.f32.mrf.mxu2  ;;  %5817 = vmatmul.f32.gmra.mxu3 %v4919_v5  ;;  %5740 = vmatmul.f32.gmra.mxu1 %v4918_v61  ;;  %v5196_v16 = vld [vmem:[#allocation3 + $0x570] sm:$0xff]  ;;  %v5193_v61 = vld [vmem:[#allocation3 + $0x558] sm:$0xff] }
 0x81d   : > { %5882 = vmatmul.f32.gmra.mxu0 %v4872_v24  ;;  %4777 = vst.msk [vmem:[#allocation3 + $0x578] sm:$0xff] %vm3477_vm1, %v4747_v37  ;;  %v5192_v37 = vld [vmem:[#allocation3 + $0x550] sm:$0xff] }
 0x81f   : > { %v14655_v19 = vpop.f32.mrf.mxu3 }
 0x820   : > { %v14657_v51 = vpop.f32.mrf.mxu1 }
 0x822   : > { %5666 = vmatmul.f32.gmra.mxu2 %v4929_v22  ;;  %v4953_v22 = vld [vmem:[#allocation5 + $0x558] sm:$0xff] }
 0x824   : > { %v4750_v6 = vpop.f32.mrf.mxu2  ;;  %5820 = vmatmul.f32.gmra.mxu3 %v4931_v31  ;;  %v5197_v48 = vld [vmem:[#allocation3 + $0x578] sm:$0xff]  ;;  %5743 = vmatmul.f32.gmra.mxu1 %v4930_v21  ;;  %v5191_v21 = vld [vmem:[#allocation3 + $0x548] sm:$0xff] }
 0x825   : > { %5885 = vmatmul.f32.gmra.mxu0 %v4884_v56  ;;  %4778 = vst.msk [vmem:[#allocation3 + $0x580] sm:$0xff] %vm3477_vm1, %v4750_v6  ;;  %v4955_v56 = vld [vmem:[#allocation5 + $0x568] sm:$0xff]  ;;  %v4908_v6 = vld [vmem:[#allocation5 + $0x3f0] sm:$0xff] }
 0x826   : > { %6153 = vmatpush.msra.mxu0 %v5197_v48  ;;  %v4954_v48 = vld [vmem:[#allocation5 + $0x560] sm:$0xff] }
 0x827   : > { %v14662_v36 = vpop.f32.mrf.mxu3 }
 0x828   : > { %v14664_v59 = vpop.f32.mrf.mxu1  ;;  %6154 = vmatpush.msra.mxu0 %v5196_v16  ;;  %v5190_v16 = vld [vmem:[#allocation3 + $0x540] sm:$0xff] }
 0x829   : > { %16642 = vst [vmem:[#allocation21_spill] sm:$0xff] %v14664_v59  ;;  %v4989_v59 = vld [vmem:[#allocation5 + $0x678] sm:$0xff] }
 0x82a   : > { %5669 = vmatmul.f32.gmra.mxu2 %v4941_v25  ;;  %6155 = vmatpush.msra.mxu0 %v5195_v60  ;;  %v5189_v60 = vld [vmem:[#allocation3 + $0x538] sm:$0xff] }
 0x82c   : > { %6156 = vmatpush.msra.mxu0 %v5194_v50  ;;  %5823 = vmatmul.f32.gmra.mxu3 %v4943_v7  ;;  %v14674_v7 = vpop.f32.mrf.mxu0  ;;  %v4965_v50 = vld [vmem:[#allocation5 + $0x5b8] sm:$0xff] }
 0x82d   : > { %5888 = vmatmul.f32.gmra.mxu0 %v4896_v29  ;;  %v4753_v5 = vpop.f32.mrf.mxu2  ;;  %5746 = vmatmul.f32.gmra.mxu1 %v4942_v38  ;;  %v5188_v38 = vld [vmem:[#allocation3 + $0x530] sm:$0xff] }
 0x82e   : > { %4779 = vst.msk [vmem:[#allocation3 + $0x588] sm:$0xff] %vm3477_vm1, %v4753_v5  ;;  %6157 = vmatpush.msra.mxu0 %v5193_v61  ;;  %v5187_v61 = vld [vmem:[#allocation3 + $0x528] sm:$0xff] }
 0x82f   : > { %v14669_v24 = vpop.f32.mrf.mxu3 }
 0x830   : > { %16643 = vst [vmem:[#allocation35_spill] sm:$0xff] %v14669_v24  ;;  %6158 = vmatpush.msra.mxu0 %v5192_v37  ;;  %v4967_v37 = vld [vmem:[#allocation5 + $0x5c8] sm:$0xff] }
 0x831   : > { %v14671_v31 = vpop.f32.mrf.mxu1 }
 0x832   : > { %16644 = vst [vmem:[#allocation23_spill] sm:$0xff] %v14671_v31  ;;  %5672 = vmatmul.f32.gmra.mxu2 %v4953_v22  ;;  %6159 = vmatpush.msra.mxu0 %v5191_v21  ;;  %v4920_v22 = vld [vmem:[#allocation5 + $0x450] sm:$0xff]  ;;  %v4966_v21 = vld [vmem:[#allocation5 + $0x5c0] sm:$0xff] }
 0x834   : > { %6160 = vmatpush.msra.mxu0 %v5190_v16  ;;  %5826 = vmatmul.f32.gmra.mxu3 %v4955_v56  ;;  %v5186_v56 = vld [vmem:[#allocation3 + $0x520] sm:$0xff]  ;;  %v5225_v16 = vpop.permute.xlu1 %5224 }
 0x835   : > { %5891 = vmatmul.f32.gmra.mxu0 %v4908_v6  ;;  %v4756_v25 = vpop.f32.mrf.mxu2  ;;  %5749 = vmatmul.f32.gmra.mxu1 %v4954_v48  ;;  %v5185_v48 = vld [vmem:[#allocation3 + $0x518] sm:$0xff] }
 0x836   : > { %4780 = vst.msk [vmem:[#allocation3 + $0x590] sm:$0xff] %vm3477_vm1, %v4756_v25  ;;  %6161 = vmatpush.msra.mxu0 %v5189_v60  ;;  %v5184_v60 = vld [vmem:[#allocation3 + $0x510] sm:$0xff] }
 0x837   : > { %v14676_v29 = vpop.f32.mrf.mxu3 }
 0x838   : > { %16645 = vst [vmem:[#allocation37_spill] sm:$0xff] %v14676_v29  ;;  %6162 = vmatpush.msra.mxu0 %v5188_v38  ;;  %v4977_v38 = vld [vmem:[#allocation5 + $0x618] sm:$0xff] }
 0x839   : > { %v14678_v5 = vpop.f32.mrf.mxu1 }
 0x83a   : > { %16646 = vst [vmem:[#allocation25_spill] sm:$0xff] %v14678_v5  ;;  %5675 = vmatmul.f32.gmra.mxu2 %v4965_v50  ;;  %6163 = vmatpush.msra.mxu0 %v5187_v61  ;;  %v5401_v50 = vadd.f32 %v14545_v9, %v5225_v16  ;;  %v14684_v61 = vpop.f32.mrf.mxu0  ;;  %v5183_v5 = vld [vmem:[#allocation3 + $0x508] sm:$0xff] }
 0x83c   : > { %6164 = vmatpush.msra.mxu0 %v5186_v56  ;;  %5829 = vmatmul.f32.gmra.mxu3 %v4967_v37  ;;  %v4979_v56 = vld [vmem:[#allocation5 + $0x628] sm:$0xff] }
 0x83d   : > { %5894 = vmatmul.f32.gmra.mxu0 %v4920_v22  ;;  %v4759_v6 = vpop.f32.mrf.mxu2  ;;  %5752 = vmatmul.f32.gmra.mxu1 %v4966_v21  ;;  %v5478_v22 = vadd.f32 %v14551_v33, %v5401_v50  ;;  %v4932_v21 = vld [vmem:[#allocation5 + $0x4b0] sm:$0xff]  ;;  %v5200_v31 = vld [vmem:[#allocation3 + $0x590] sm:$0xff] }
 0x83e   : > { %4781 = vst.msk [vmem:[#allocation3 + $0x598] sm:$0xff] %vm3477_vm1, %v4759_v6  ;;  %6165 = vmatpush.msra.mxu0 %v5185_v48  ;;  %v4978_v6 = vld [vmem:[#allocation5 + $0x620] sm:$0xff]  ;;  %v5182_v48 = vld [vmem:[#allocation3 + $0x500] sm:$0xff] }
 0x83f   : > { %v14681_v25 = vpop.f32.mrf.mxu3  ;;  %v5555_v29 = vadd.f32 %v14579_v43, %v5478_v22 }
 0x840   : > { %16647 = vst [vmem:[#allocation39_spill] sm:$0xff] %v14681_v25  ;;  %6166 = vmatpush.msra.mxu0 %v5184_v60  ;;  %v5230_v60 = vpop.permute.xlu2 %5229 }
 0x841   : > { %v5708_v37 = vpop.f32.mrf.mxu1  ;;  %v5404_v33 = vadd.f32 %v14553_v26, %v5230_v60 }
 0x842   : > { %5678 = vmatmul.f32.gmra.mxu2 %v4977_v38  ;;  %6167 = vmatpush.msra.mxu0 %v5183_v5  ;;  %v4991_v5 = vld [vmem:[#allocation5 + $0x688] sm:$0xff] }
 0x843   : > { %v5481_v43 = vadd.f32 %v14559_v58, %v5404_v33 }
 0x844   : > { %6168 = vmatpush.msra.mxu0 %v5182_v48  ;;  %5832 = vmatmul.f32.gmra.mxu3 %v4979_v56  ;;  %v4944_v56 = vld [vmem:[#allocation5 + $0x510] sm:$0xff] }
 0x845   : > { %5897 = vmatmul.f32.gmra.mxu0 %v4932_v21  ;;  %v5631_v25 = vpop.f32.mrf.mxu2  ;;  %v5201_v9 = vld [vmem:[#allocation3 + $0x598] sm:$0xff]  ;;  %5755 = vmatmul.f32.gmra.mxu1 %v4978_v6  ;;  %v5199_v21 = vld [vmem:[#allocation3 + $0x588] sm:$0xff]  ;;  %v14692_v6 = vpop.f32.mrf.mxu0  ;;  %v5198_v48 = vld [vmem:[#allocation3 + $0x580] sm:$0xff] }
 0x846   : > { %v5632_v16 = vadd.f32 %v5631_v25, %v5555_v29  ;;  %6242 = vmatpush.msrb.mxu2 %v5201_v9  ;;  %v4990_v29 = vld [vmem:[#allocation5 + $0x680] sm:$0xff]  ;;  %v5558_v25 = vadd.f32 %v14586_v28, %v5481_v43  ;;  %v4956_v28 = vld [vmem:[#allocation5 + $0x570] sm:$0xff] }
 0x847   : > { %v5785_v24 = vpop.f32.mrf.mxu3 }
 0x848   : > { %v5709_v38 = vadd.f32 %v5708_v37, %v5632_v16  ;;  %6243 = vmatpush.msrb.mxu2 %v5200_v31  ;;  %v5235_v37 = vpop.permute.xlu0 %5234  ;;  %v5003_v16 = vld [vmem:[#allocation5 + $0x6e8] sm:$0xff] }
 0x849   : > { %v5711_v50 = vpop.f32.mrf.mxu1 }
 0x84a   : > { %v14690_v22 = vadd.f32 %v5785_v24, %v5709_v38  ;;  %5681 = vmatmul.f32.gmra.mxu2 %v4989_v59  ;;  %v5001_v24 = vld [vmem:[#allocation5 + $0x6d8] sm:$0xff]  ;;  %v5407_v59 = vadd.f32 %v14561_v45, %v5235_v37  ;;  %v5240_v45 = vpop.permute.xlu1 %5239 }
 0x84b   : > { %6244 = vmatpush.msrb.mxu2 %v5199_v21 }
 0x84c   : > { %5835 = vmatmul.f32.gmra.mxu3 %v4991_v5  ;;  %v5484_v33 = vadd.f32 %v14567_v15, %v5407_v59  ;;  %v5002_v5 = vld [vmem:[#allocation5 + $0x6e0] sm:$0xff] }
 0x84d   : > { %5900 = vmatmul.f32.gmra.mxu0 %v4944_v56  ;;  %6245 = vmatpush.msrb.mxu2 %v5198_v48  ;;  %v5634_v26 = vpop.f32.mrf.mxu2  ;;  %v14700_v56 = vpop.f32.mrf.mxu0  ;;  %v5410_v48 = vadd.f32 %v14569_v0, %v5240_v45 }
 0x84e   : > { %v5635_v31 = vadd.f32 %v5634_v26, %v5558_v25  ;;  %5758 = vmatmul.f32.gmra.mxu1 %v4990_v29  ;;  %v5561_v43 = vadd.f32 %v14593_v10, %v5484_v33  ;;  %v5013_v25 = vld [vmem:[#allocation5 + $0x738] sm:$0xff]  ;;  %v5015_v26 = vld [vmem:[#allocation5 + $0x748] sm:$0xff]  ;;  %v4968_v10 = vld [vmem:[#allocation5 + $0x5d0] sm:$0xff] }
 0x84f   : > { %v5788_v58 = vpop.f32.mrf.mxu3  ;;  %v5487_v37 = vadd.f32 %v14575_v2, %v5410_v48 }
 0x850   : > { %v5712_v9 = vadd.f32 %v5711_v50, %v5635_v31 }
 0x851   : > { %v5714_v60 = vpop.f32.mrf.mxu1  ;;  %v5564_v59 = vadd.f32 %v14600_v49, %v5487_v37  ;;  %v4980_v49 = vld [vmem:[#allocation5 + $0x630] sm:$0xff] }
 0x852   : > { %v14697_v38 = vadd.f32 %v5788_v58, %v5712_v9  ;;  %5684 = vmatmul.f32.gmra.mxu2 %v5001_v24  ;;  %v5014_v24 = vld [vmem:[#allocation5 + $0x740] sm:$0xff] }
 0x854   : > { %5838 = vmatmul.f32.gmra.mxu3 %v5003_v16  ;;  %v5245_v16 = vpop.permute.xlu2 %5244 }
 0x855   : > { %5903 = vmatmul.f32.gmra.mxu0 %v4956_v28  ;;  %v5637_v21 = vpop.f32.mrf.mxu2  ;;  %v14707_v28 = vpop.f32.mrf.mxu0 }
 0x856   : > { %v5638_v29 = vadd.f32 %v5637_v21, %v5561_v43  ;;  %5761 = vmatmul.f32.gmra.mxu1 %v5002_v5  ;;  %v5413_v5 = vadd.f32 %v14577_v14, %v5245_v16  ;;  %v4791_v43 = vld [vmem:[#allocation5 + $0x48] sm:$0xff]  ;;  %v4801_v14 = vld [vmem:[#allocation5 + $0x98] sm:$0xff] }
 0x857   : > { %v5791_v50 = vpop.f32.mrf.mxu3 }
 0x858   : > { %v5715_v15 = vadd.f32 %v5714_v60, %v5638_v29  ;;  %v4789_v60 = vld [vmem:[#allocation5 + $0x38] sm:$0xff]  ;;  %v5490_v29 = vadd.f32 %v14582_v20, %v5413_v5  ;;  %v4803_v20 = vld [vmem:[#allocation5 + $0xa8] sm:$0xff] }
 0x859   : > { %v5717_v31 = vpop.f32.mrf.mxu1 }
 0x85a   : > { %v14704_v58 = vadd.f32 %v5791_v50, %v5715_v15  ;;  %5687 = vmatmul.f32.gmra.mxu2 %v5013_v25  ;;  %v4790_v50 = vld [vmem:[#allocation5 + $0x40] sm:$0xff]  ;;  %v5567_v25 = vadd.f32 %v14608_v52, %v5490_v29  ;;  %v4992_v52 = vld [vmem:[#allocation5 + $0x690] sm:$0xff] }
 0x85c   : > { %5841 = vmatmul.f32.gmra.mxu3 %v5015_v26  ;;  %v5250_v26 = vpop.permute.xlu0 %5249 }
 0x85d   : > { %5906 = vmatmul.f32.gmra.mxu0 %v4968_v10  ;;  %v5640_v9 = vpop.f32.mrf.mxu2 }
 0x85e   : > { %v5641_v33 = vadd.f32 %v5640_v9, %v5564_v59  ;;  %5764 = vmatmul.f32.gmra.mxu1 %v5014_v24  ;;  %v14715_v24 = vpop.f32.mrf.mxu0 }
 0x85f   : > { %v5794_v0 = vpop.f32.mrf.mxu3 }
 0x860   : > { %v5718_v2 = vadd.f32 %v5717_v31, %v5641_v33  ;;  %v5416_v31 = vadd.f32 %v14584_v4, %v5250_v26  ;;  %v4802_v33 = vld [vmem:[#allocation5 + $0xa0] sm:$0xff]  ;;  %v5255_v4 = vpop.permute.xlu1 %5254 }
 0x861   : > { %v5720_v21 = vpop.f32.mrf.mxu1 }
 0x862   : > { %v14711_v45 = vadd.f32 %v5794_v0, %v5718_v2  ;;  %5938 = vmatmul.f32.vlgmr.msra.gmra.mxu2 %v4789_v60  ;;  %v5493_v9 = vadd.f32 %v14589_v27, %v5416_v31 }
 0x864   : > { %6092 = vmatmul.f32.vlgmr.msrb.gmra.mxu3 %v4791_v43  ;;  %v5570_v0 = vadd.f32 %v14619_v53, %v5493_v9  ;;  %v4813_v43 = vld [vmem:[#allocation5 + $0xf8] sm:$0xff] }
 0x865   : > { %5909 = vmatmul.f32.gmra.mxu0 %v4980_v49  ;;  %v5643_v48 = vpop.f32.mrf.mxu2  ;;  %v4815_v49 = vld [vmem:[#allocation5 + $0x108] sm:$0xff] }
 0x866   : > { %v5644_v15 = vadd.f32 %v5643_v48, %v5567_v25  ;;  %6015 = vmatmul.f32.vlgmr.msra.gmra.mxu1 %v4790_v50  ;;  %v5004_v48 = vld [vmem:[#allocation5 + $0x6f0] sm:$0xff]  ;;  %v14725_v53 = vpop.f32.mrf.mxu0 }
 0x867   : > { %v5797_v37 = vpop.f32.mrf.mxu3 }
 0x868   : > { %v5721_v10 = vadd.f32 %v5720_v21, %v5644_v15  ;;  %v5419_v21 = vadd.f32 %v14591_v41, %v5255_v4  ;;  %v4814_v15 = vld [vmem:[#allocation5 + $0x100] sm:$0xff]  ;;  %v5260_v41 = vpop.permute.xlu2 %5259 }
 0x869   : > { %v5723_v59 = vpop.f32.mrf.mxu1 }
 0x86a   : > { %v14718_v16 = vadd.f32 %v5797_v37, %v5721_v10  ;;  %5941 = vmatmul.f32.gmra.mxu2 %v4801_v14  ;;  %v5496_v50 = vadd.f32 %v14596_v63, %v5419_v21  ;;  %v4825_v10 = vld [vmem:[#allocation5 + $0x158] sm:$0xff] }
 0x86b   : > { %v4837_v21 = vld [vmem:[#allocation5 + $0x1b8] sm:$0xff] }
 0x86c   : > { %6095 = vmatmul.f32.gmra.mxu3 %v4803_v20  ;;  %v5573_v26 = vadd.f32 %v14626_v30, %v5496_v50  ;;  %v5422_v20 = vadd.f32 %v14598_v8, %v5260_v41  ;;  %v4826_v30 = vld [vmem:[#allocation5 + $0x160] sm:$0xff]  ;;  %v5265_v8 = vpop.permute.xlu0 %5264 }
 0x86d   : > { %5912 = vmatmul.f32.gmra.mxu0 %v4992_v52  ;;  %v5646_v60 = vpop.f32.mrf.mxu2 }
 0x86e   : > { %v5647_v5 = vadd.f32 %v5646_v60, %v5570_v0  ;;  %6018 = vmatmul.f32.gmra.mxu1 %v4802_v33  ;;  %v5499_v52 = vadd.f32 %v14603_v11, %v5422_v20  ;;  %v5016_v0 = vld [vmem:[#allocation5 + $0x750] sm:$0xff] }
 0x86f   : > { %v5800_v2 = vpop.f32.mrf.mxu3 }
 0x870   : > { %v5724_v29 = vadd.f32 %v5723_v59, %v5647_v5  ;;  %v4827_v59 = vld [vmem:[#allocation5 + $0x168] sm:$0xff]  ;;  %v5576_v60 = vadd.f32 %v14633_v40, %v5499_v52  ;;  %v14733_v5 = vpop.f32.mrf.mxu0  ;;  %v4792_v40 = vld [vmem:[#allocation5 + $0x50] sm:$0xff] }
 0x871   : > { %v5726_v27 = vpop.f32.mrf.mxu1 }
 0x872   : > { %v14723_v25 = vadd.f32 %v5800_v2, %v5724_v29  ;;  %5944 = vmatmul.f32.gmra.mxu2 %v4813_v43  ;;  %v5425_v29 = vadd.f32 %v14605_v13, %v5265_v8 }
 0x874   : > { %6098 = vmatmul.f32.gmra.mxu3 %v4815_v49  ;;  %v4839_v49 = vld [vmem:[#allocation5 + $0x1c8] sm:$0xff]  ;;  %v5502_v50 = vadd.f32 %v14610_v3, %v5425_v29 }
 0x875   : > { %5915 = vmatmul.f32.gmra.mxu0 %v5004_v48  ;;  %v5649_v37 = vpop.f32.mrf.mxu2 }
 0x876   : > { %v5650_v14 = vadd.f32 %v5649_v37, %v5573_v26  ;;  %6021 = vmatmul.f32.gmra.mxu1 %v4814_v15  ;;  %v4838_v15 = vld [vmem:[#allocation5 + $0x1c0] sm:$0xff]  ;;  %v5579_v26 = vadd.f32 %v14641_v57, %v5502_v50  ;;  %v4804_v57 = vld [vmem:[#allocation5 + $0xb0] sm:$0xff] }
 0x877   : > { %v5803_v31 = vpop.f32.mrf.mxu3  ;;  %v4862_v50 = vld [vmem:[#allocation5 + $0x280] sm:$0xff] }
 0x878   : > { %v5727_v63 = vadd.f32 %v5726_v27, %v5650_v14  ;;  %v5270_v14 = vpop.permute.xlu1 %5269 }
 0x879   : > { %v5729_v9 = vpop.f32.mrf.mxu1  ;;  %v5428_v20 = vadd.f32 %v14612_v17, %v5270_v14  ;;  %v4861_v17 = vld [vmem:[#allocation5 + $0x278] sm:$0xff] }
 0x87a   : > { %v14730_v33 = vadd.f32 %v5803_v31, %v5727_v63  ;;  %5947 = vmatmul.f32.gmra.mxu2 %v4825_v10  ;;  %v14740_v31 = vpop.f32.mrf.mxu0  ;;  %v4849_v10 = vld [vmem:[#allocation5 + $0x218] sm:$0xff]  ;;  %v4851_v63 = vld [vmem:[#allocation5 + $0x228] sm:$0xff] }
 0x87b   : > { %v4873_v14 = vld [vmem:[#allocation5 + $0x2d8] sm:$0xff] }
 0x87c   : > { %6101 = vmatmul.f32.gmra.mxu3 %v4827_v59 }
 0x87d   : > { %5918 = vmatmul.f32.gmra.mxu0 %v5016_v0  ;;  %v5652_v4 = vpop.f32.mrf.mxu2  ;;  %v4850_v0 = vld [vmem:[#allocation5 + $0x220] sm:$0xff] }
 0x87e   : > { %v5653_v2 = vadd.f32 %v5652_v4, %v5576_v60  ;;  %6024 = vmatmul.f32.gmra.mxu1 %v4826_v30 }
 0x87f   : > { %v5806_v43 = vpop.f32.mrf.mxu3 }
 0x880   : > { %v5730_v11 = vadd.f32 %v5729_v9, %v5653_v2  ;;  %v5505_v9 = vadd.f32 %v14615_v18, %v5428_v20  ;;  %v5275_v2 = vpop.permute.xlu2 %5274  ;;  %v4863_v18 = vld [vmem:[#allocation5 + $0x288] sm:$0xff] }
 0x881   : > { %v5732_v27 = vpop.f32.mrf.mxu1 }
 0x882   : > { %v14737_v48 = vadd.f32 %v5806_v43, %v5730_v11  ;;  %5950 = vmatmul.f32.gmra.mxu2 %v4837_v21  ;;  %v5582_v30 = vadd.f32 %v14652_v34, %v5505_v9  ;;  %v5431_v43 = vadd.f32 %v14617_v35, %v5275_v2  ;;  %v14748_v29 = vpop.f32.mrf.mxu0  ;;  %v4816_v34 = vld [vmem:[#allocation5 + $0x110] sm:$0xff]  ;;  %v5280_v35 = vpop.permute.xlu0 %5279  ;;  %v4887_v2 = vld [vmem:[#allocation5 + $0x348] sm:$0xff] }
 0x884   : > { %6104 = vmatmul.f32.gmra.mxu3 %v4839_v49  ;;  %v5508_v49 = vadd.f32 %v14622_v47, %v5431_v43 }
 0x885   : > { %6169 = vmatmul.f32.vlgmr.msra.gmra.mxu0 %v4792_v40  ;;  %v5655_v37 = vpop.f32.mrf.mxu2 }
 0x886   : > { %v5656_v41 = vadd.f32 %v5655_v37, %v5579_v26  ;;  %6027 = vmatmul.f32.gmra.mxu1 %v4838_v15  ;;  %v5585_v40 = vadd.f32 %v14659_v23, %v5508_v49 }
 0x887   : > { %v5809_v13 = vpop.f32.mrf.mxu3 }
 0x888   : > { %v5733_v3 = vadd.f32 %v5732_v27, %v5656_v41  ;;  %v5434_v41 = vadd.f32 %v14624_v12, %v5280_v35  ;;  %v5285_v12 = vpop.permute.xlu1 %5284 }
 0x889   : > { %v5735_v59 = vpop.f32.mrf.mxu1 }
 0x88a   : > { %v14744_v52 = vadd.f32 %v5809_v13, %v5733_v3  ;;  %5953 = vmatmul.f32.gmra.mxu2 %v4849_v10  ;;  %v4875_v10 = vld [vmem:[#allocation5 + $0x2e8] sm:$0xff]  ;;  %v5511_v20 = vadd.f32 %v14629_v46, %v5434_v41  ;;  %v14758_v23 = vpop.f32.mrf.mxu0  ;;  %v4898_v41 = vld [vmem:[#allocation5 + $0x3a0] sm:$0xff] }
 0x88c   : > { %6107 = vmatmul.f32.gmra.mxu3 %v4851_v63  ;;  %v4828_v63 = vld [vmem:[#allocation5 + $0x170] sm:$0xff]  ;;  %v5588_v9 = vadd.f32 %v14666_v44, %v5511_v20  ;;  %v4886_v44 = vld [vmem:[#allocation5 + $0x340] sm:$0xff] }
 0x88d   : > { %6172 = vmatmul.f32.gmra.mxu0 %v4804_v57  ;;  %v5658_v60 = vpop.f32.mrf.mxu2 }
 0x88e   : > { %v5659_v4 = vadd.f32 %v5658_v60, %v5582_v30  ;;  %6030 = vmatmul.f32.gmra.mxu1 %v4850_v0  ;;  %v4885_v60 = vld [vmem:[#allocation5 + $0x338] sm:$0xff] }
 0x88f   : > { %v5812_v8 = vpop.f32.mrf.mxu3 }
 0x890   : > { %v5736_v21 = vadd.f32 %v5735_v59, %v5659_v4  ;;  %v4874_v59 = vld [vmem:[#allocation5 + $0x2e0] sm:$0xff]  ;;  %v5437_v4 = vadd.f32 %v14631_v54, %v5285_v12  ;;  %v5290_v54 = vpop.permute.xlu2 %5289 }
 0x891   : > { %v5738_v11 = vpop.f32.mrf.mxu1 }
 0x892   : > { %v14751_v27 = vadd.f32 %v5812_v8, %v5736_v21  ;;  %5956 = vmatmul.f32.gmra.mxu2 %v4861_v17  ;;  %v5514_v17 = vadd.f32 %v14636_v39, %v5437_v4  ;;  %v4840_v21 = vld [vmem:[#allocation5 + $0x1d0] sm:$0xff] }
 0x894   : > { %6110 = vmatmul.f32.gmra.mxu3 %v4863_v18  ;;  %v5591_v18 = vadd.f32 %v14674_v7, %v5514_v17  ;;  %v4852_v7 = vld [vmem:[#allocation5 + $0x230] sm:$0xff] }
 0x895   : > { %6175 = vmatmul.f32.gmra.mxu0 %v4816_v34  ;;  %v5661_v15 = vpop.f32.mrf.mxu2 }
 0x896   : > { %v5662_v26 = vadd.f32 %v5661_v15, %v5585_v40  ;;  %6033 = vmatmul.f32.gmra.mxu1 %v4862_v50  ;;  %v4897_v40 = vld [vmem:[#allocation5 + $0x398] sm:$0xff]  ;;  %v5440_v15 = vadd.f32 %v14638_v62, %v5290_v54  ;;  %v4922_v54 = vld [vmem:[#allocation5 + $0x460] sm:$0xff] }
 0x897   : > { %v5815_v37 = vpop.f32.mrf.mxu3 }
 0x898   : > { %v5739_v13 = vadd.f32 %v5738_v11, %v5662_v26  ;;  %v14766_v11 = vpop.f32.mrf.mxu0  ;;  %v4899_v26 = vld [vmem:[#allocation5 + $0x3a8] sm:$0xff]  ;;  %v5517_v35 = vadd.f32 %v14643_v1, %v5440_v15 }
 0x899   : > { %v5741_v47 = vpop.f32.mrf.mxu1 }
 0x89a   : > { %v14756_v3 = vadd.f32 %v5815_v37, %v5739_v13  ;;  %5959 = vmatmul.f32.gmra.mxu2 %v4873_v14  ;;  %v5594_v13 = vadd.f32 %v14684_v61, %v5517_v35  ;;  %v4864_v61 = vld [vmem:[#allocation5 + $0x290] sm:$0xff]  ;;  %v4933_v35 = vld [vmem:[#allocation5 + $0x4b8] sm:$0xff] }
 0x89c   : > { %6113 = vmatmul.f32.gmra.mxu3 %v4875_v10 }
 0x89d   : > { %6178 = vmatmul.f32.gmra.mxu0 %v4828_v63  ;;  %v5664_v57 = vpop.f32.mrf.mxu2 }
 0x89e   : > { %v5665_v0 = vadd.f32 %v5664_v57, %v5588_v9  ;;  %6036 = vmatmul.f32.gmra.mxu1 %v4874_v59  ;;  %v4909_v59 = vld [vmem:[#allocation5 + $0x3f8] sm:$0xff]  ;;  %v4911_v57 = vld [vmem:[#allocation5 + $0x408] sm:$0xff] }
 0x89f   : > { %v5818_v30 = vpop.f32.mrf.mxu3 }
 0x8a0   : > { %v5742_v46 = vadd.f32 %v5741_v47, %v5665_v0  ;;  %v5295_v47 = vpop.permute.xlu0 %5294  ;;  %v14773_v63 = vpop.f32.mrf.mxu0 }
 0x8a1   : > { %v5744_v8 = vpop.f32.mrf.mxu1  ;;  %v5443_v1 = vadd.f32 %v14645_v42, %v5295_v47  ;;  %v4921_v42 = vld [vmem:[#allocation5 + $0x458] sm:$0xff]  ;;  %v4934_v47 = vld [vmem:[#allocation5 + $0x4c0] sm:$0xff] }
 0x8a2   : > { %v14763_v43 = vadd.f32 %v5818_v30, %v5742_v46  ;;  %5962 = vmatmul.f32.gmra.mxu2 %v4885_v60  ;;  %v4910_v60 = vld [vmem:[#allocation5 + $0x400] sm:$0xff] }
 0x8a3   : > { %v5520_v0 = vadd.f32 %v14648_v55, %v5443_v1  ;;  %v4945_v1 = vld [vmem:[#allocation5 + $0x518] sm:$0xff] }
 0x8a4   : > { %6116 = vmatmul.f32.gmra.mxu3 %v4887_v2 }
 0x8a5   : > { %6181 = vmatmul.f32.gmra.mxu0 %v4840_v21  ;;  %v5667_v49 = vpop.f32.mrf.mxu2  ;;  %v5597_v4 = vadd.f32 %v14692_v6, %v5520_v0  ;;  %v4876_v6 = vld [vmem:[#allocation5 + $0x2f0] sm:$0xff] }
 0x8a6   : > { %v5668_v34 = vadd.f32 %v5667_v49, %v5591_v18  ;;  %6039 = vmatmul.f32.gmra.mxu1 %v4886_v44  ;;  %v4923_v18 = vld [vmem:[#allocation5 + $0x468] sm:$0xff]  ;;  %v16649_v0 = vld [vmem:[#allocation35_spill] sm:$0xff] }
 0x8a7   : > { %v5821_v50 = vpop.f32.mrf.mxu3 }
 0x8a8   : > { %v5745_v39 = vadd.f32 %v5744_v8, %v5668_v34  ;;  %v5300_v8 = vpop.permute.xlu1 %5299  ;;  %v14781_v55 = vpop.f32.mrf.mxu0 }
 0x8a9   : > { %v5446_v21 = vadd.f32 %v14650_v32, %v5300_v8  ;;  %v5305_v32 = vpop.permute.xlu2 %5304 }
 0x8aa   : > { %v14770_v37 = vadd.f32 %v5821_v50, %v5745_v39  ;;  %5965 = vmatmul.f32.gmra.mxu2 %v4897_v40  ;;  %v5747_v14 = vpop.f32.mrf.mxu1 }
 0x8ab   : > { %v5523_v49 = vadd.f32 %v14655_v19, %v5446_v21  ;;  %v4935_v19 = vld [vmem:[#allocation5 + $0x4c8] sm:$0xff] }
 0x8ac   : > { %6119 = vmatmul.f32.gmra.mxu3 %v4899_v26 }
 0x8ad   : > { %6184 = vmatmul.f32.gmra.mxu0 %v4852_v7  ;;  %v5670_v10 = vpop.f32.mrf.mxu2  ;;  %v5600_v50 = vadd.f32 %v14700_v56, %v5523_v49  ;;  %v5449_v7 = vadd.f32 %v14657_v51, %v5305_v32  ;;  %v5310_v51 = vpop.permute.xlu0 %5309  ;;  %v4969_v32 = vld [vmem:[#allocation5 + $0x5d8] sm:$0xff] }
 0x8ae   : > { %v5671_v20 = vadd.f32 %v5670_v10, %v5594_v13  ;;  %6042 = vmatmul.f32.gmra.mxu1 %v4898_v41  ;;  %v4888_v10 = vld [vmem:[#allocation5 + $0x350] sm:$0xff] }
 0x8af   : > { %v5824_v62 = vpop.f32.mrf.mxu3  ;;  %v5526_v41 = vadd.f32 %v14662_v36, %v5449_v7  ;;  %v4947_v36 = vld [vmem:[#allocation5 + $0x528] sm:$0xff] }
 0x8b0   : > { %v5748_v9 = vadd.f32 %v5747_v14, %v5671_v20  ;;  %v14791_v56 = vpop.f32.mrf.mxu0  ;;  %v5315_v8 = vpop.permute.xlu1 %5314  ;;  %v4971_v7 = vld [vmem:[#allocation5 + $0x5e8] sm:$0xff] }
 0x8b1   : > { %v5603_v20 = vadd.f32 %v14707_v28, %v5526_v41  ;;  %v4924_v41 = vld [vmem:[#allocation5 + $0x470] sm:$0xff] }
 0x8b2   : > { %v14777_v12 = vadd.f32 %v5824_v62, %v5748_v9  ;;  %5968 = vmatmul.f32.gmra.mxu2 %v4909_v59  ;;  %v5750_v30 = vpop.f32.mrf.mxu1  ;;  %v16648_v9 = vld [vmem:[#allocation21_spill] sm:$0xff] }
 0x8b4   : > { %6122 = vmatmul.f32.gmra.mxu3 %v4911_v57  ;;  %v5452_v57 = vadd.f32 %v16648_v9, %v5310_v51  ;;  %v4936_v9 = vld [vmem:[#allocation5 + $0x4d0] sm:$0xff] }
 0x8b5   : > { %6187 = vmatmul.f32.gmra.mxu0 %v4864_v61  ;;  %v5673_v46 = vpop.f32.mrf.mxu2 }
 0x8b6   : > { %v5674_v2 = vadd.f32 %v5673_v46, %v5597_v4  ;;  %6045 = vmatmul.f32.gmra.mxu1 %v4910_v60  ;;  %v5529_v61 = vadd.f32 %v16649_v0, %v5452_v57  ;;  %v4946_v60 = vld [vmem:[#allocation5 + $0x520] sm:$0xff] }
 0x8b7   : > { %v5827_v17 = vpop.f32.mrf.mxu3  ;;  %v4982_v57 = vld [vmem:[#allocation5 + $0x640] sm:$0xff] }
 0x8b8   : > { %v5751_v44 = vadd.f32 %v5750_v30, %v5674_v2  ;;  %v4900_v30 = vld [vmem:[#allocation5 + $0x3b0] sm:$0xff]  ;;  %v5606_v4 = vadd.f32 %v14715_v24, %v5529_v61  ;;  %v14799_v28 = vpop.f32.mrf.mxu0  ;;  %v4993_v61 = vld [vmem:[#allocation5 + $0x698] sm:$0xff] }
 0x8ba   : > { %v14784_v34 = vadd.f32 %v5827_v17, %v5751_v44  ;;  %5971 = vmatmul.f32.gmra.mxu2 %v4921_v42  ;;  %v5753_v15 = vpop.f32.mrf.mxu1  ;;  %v4957_v17 = vld [vmem:[#allocation5 + $0x578] sm:$0xff]  ;;  %v16650_v42 = vld [vmem:[#allocation23_spill] sm:$0xff]  ;;  %v4959_v44 = vld [vmem:[#allocation5 + $0x588] sm:$0xff] }
 0x8bb   : > { %v5455_v21 = vadd.f32 %v16650_v42, %v5315_v8  ;;  %v5866_v8 = vadd.f32 %v14748_v29, %v14697_v38  ;;  %v5007_v42 = vld [vmem:[#allocation5 + $0x708] sm:$0xff]  ;;  %v5017_v29 = vld [vmem:[#allocation5 + $0x758] sm:$0xff] }
 0x8bc   : > { %6125 = vmatmul.f32.gmra.mxu3 %v4923_v18  ;;  %v16651_v18 = vld [vmem:[#allocation37_spill] sm:$0xff] }
 0x8bd   : > { %6190 = vmatmul.f32.gmra.mxu0 %v4876_v6  ;;  %v5676_v40 = vpop.f32.mrf.mxu2  ;;  %v5532_v49 = vadd.f32 %v16651_v18, %v5455_v21  ;;  %v4912_v6 = vld [vmem:[#allocation5 + $0x410] sm:$0xff]  ;;  %v5869_v18 = vadd.f32 %v14758_v23, %v14704_v58 }
 0x8be   : > { %v5677_v39 = vadd.f32 %v5676_v40, %v5600_v50  ;;  %6048 = vmatmul.f32.gmra.mxu1 %v4922_v54  ;;  %v4958_v54 = vld [vmem:[#allocation5 + $0x580] sm:$0xff]  ;;  %v4960_v21 = vld [vmem:[#allocation5 + $0x590] sm:$0xff] }
 0x8bf   : > { %v5830_v26 = vpop.f32.mrf.mxu3  ;;  %v5609_v24 = vadd.f32 %v14725_v53, %v5532_v49 }
 0x8c0   : > { %v5754_v14 = vadd.f32 %v5753_v15, %v5677_v39  ;;  %v5320_v15 = vpop.permute.xlu2 %5319  ;;  %v14808_v39 = vpop.f32.mrf.mxu0 }
 0x8c2   : > { %v14789_v13 = vadd.f32 %v5830_v26, %v5754_v14  ;;  %5974 = vmatmul.f32.gmra.mxu2 %v4933_v35  ;;  %v16652_v26 = vld [vmem:[#allocation25_spill] sm:$0xff]  ;;  %v16653_v14 = vld [vmem:[#allocation39_spill] sm:$0xff] }
 0x8c3   : > { %v5458_v35 = vadd.f32 %v16652_v26, %v5320_v15  ;;  %v5872_v15 = vadd.f32 %v14766_v11, %v14711_v45  ;;  %v4793_v26 = vld [vmem:[#allocation5 + $0x58] sm:$0xff] }
 0x8c4   : > { %6128 = vmatmul.f32.gmra.mxu3 %v4935_v19  ;;  %v4805_v45 = vld [vmem:[#allocation5 + $0xb8] sm:$0xff] }
 0x8c5   : > { %6193 = vmatmul.f32.gmra.mxu0 %v4888_v10  ;;  %v5679_v62 = vpop.f32.mrf.mxu2  ;;  %v5535_v19 = vadd.f32 %v16653_v14, %v5458_v35  ;;  %v4970_v10 = vld [vmem:[#allocation5 + $0x5e0] sm:$0xff]  ;;  %v4984_v35 = vld [vmem:[#allocation5 + $0x650] sm:$0xff] }
 0x8c6   : > { %v14794_v59 = vadd.f32 %v5679_v62, %v5603_v20  ;;  %6051 = vmatmul.f32.gmra.mxu1 %v4934_v47  ;;  %v4981_v62 = vld [vmem:[#allocation5 + $0x638] sm:$0xff] }
 0x8c7   : > { %v5612_v53 = vadd.f32 %v14733_v5, %v5535_v19 }
 0x8c8   : > { %v14815_v51 = vpop.f32.mrf.mxu0 }
 0x8ca   : > { %5977 = vmatmul.f32.gmra.mxu2 %v4945_v1  ;;  %v4983_v1 = vld [vmem:[#allocation5 + $0x648] sm:$0xff] }
 0x8cc   : > { %6131 = vmatmul.f32.gmra.mxu3 %v4947_v36  ;;  %v5863_v36 = vadd.f32 %v14740_v31, %v14690_v22  ;;  %v5005_v31 = vld [vmem:[#allocation5 + $0x6f8] sm:$0xff] }
 0x8cd   : > { %6196 = vmatmul.f32.gmra.mxu0 %v4900_v30  ;;  %v5682_v46 = vpop.f32.mrf.mxu2  ;;  %v4995_v30 = vld [vmem:[#allocation5 + $0x6a8] sm:$0xff] }
 0x8ce   : > { %v14801_v2 = vadd.f32 %v5682_v46, %v5606_v4  ;;  %6054 = vmatmul.f32.gmra.mxu1 %v4946_v60  ;;  %v4948_v60 = vld [vmem:[#allocation5 + $0x530] sm:$0xff]  ;;  %v4994_v46 = vld [vmem:[#allocation5 + $0x6a0] sm:$0xff] }
 0x8d0   : > { %v14821_v4 = vpop.f32.mrf.mxu0 }
 0x8d2   : > { %5980 = vmatmul.f32.gmra.mxu2 %v4957_v17 }
 0x8d4   : > { %6134 = vmatmul.f32.gmra.mxu3 %v4959_v44  ;;  %v5006_v44 = vld [vmem:[#allocation5 + $0x700] sm:$0xff] }
 0x8d5   : > { %6199 = vmatmul.f32.gmra.mxu0 %v4912_v6  ;;  %v5685_v50 = vpop.f32.mrf.mxu2 }
 0x8d6   : > { %v14806_v40 = vadd.f32 %v5685_v50, %v5609_v24  ;;  %6057 = vmatmul.f32.gmra.mxu1 %v4958_v54  ;;  %v5019_v54 = vld [vmem:[#allocation5 + $0x768] sm:$0xff]  ;;  %v4972_v24 = vld [vmem:[#allocation5 + $0x5f0] sm:$0xff]  ;;  %v5018_v50 = vld [vmem:[#allocation5 + $0x760] sm:$0xff] }
 0x8d8   : > { %v14829_v49 = vpop.f32.mrf.mxu0 }
 0x8da   : > { %5983 = vmatmul.f32.gmra.mxu2 %v4969_v32 }
 0x8dc   : > { %6137 = vmatmul.f32.gmra.mxu3 %v4971_v7  ;;  %v5875_v7 = vadd.f32 %v14773_v63, %v14718_v16  ;;  %v5881_v63 = vadd.f32 %v14791_v56, %v14730_v33  ;;  %v5887_v56 = vadd.f32 %v14808_v39, %v14744_v52  ;;  %v5893_v39 = vadd.f32 %v14821_v4, %v14756_v3 }
 0x8dd   : > { %6202 = vmatmul.f32.gmra.mxu0 %v4924_v41  ;;  %v5688_v47 = vpop.f32.mrf.mxu2  ;;  %v4996_v41 = vld [vmem:[#allocation5 + $0x6b0] sm:$0xff] }
 0x8de   : > { %v14813_v20 = vadd.f32 %v5688_v47, %v5612_v53  ;;  %6060 = vmatmul.f32.gmra.mxu1 %v4970_v10  ;;  %v5878_v10 = vadd.f32 %v14781_v55, %v14723_v25  ;;  %v5020_v25 = vld [vmem:[#allocation5 + $0x770] sm:$0xff]  ;;  %v5884_v55 = vadd.f32 %v14799_v28, %v14737_v48  ;;  %v5890_v48 = vadd.f32 %v14815_v51, %v14751_v27  ;;  %v4877_v27 = vld [vmem:[#allocation5 + $0x2f8] sm:$0xff] }
 0x8e0   : > { %v14837_v23 = vpop.f32.mrf.mxu0 }
 0x8e1   : > { %v5899_v4 = vadd.f32 %v14837_v23, %v14770_v37  ;;  %v4913_v37 = vld [vmem:[#allocation5 + $0x418] sm:$0xff] }
 0x8e2   : > { %5986 = vmatmul.f32.gmra.mxu2 %v4981_v62  ;;  %v4817_v62 = vld [vmem:[#allocation5 + $0x118] sm:$0xff] }
 0x8e4   : > { %6140 = vmatmul.f32.gmra.mxu3 %v4983_v1  ;;  %v5008_v1 = vld [vmem:[#allocation5 + $0x710] sm:$0xff] }
 0x8e5   : > { %6205 = vmatmul.f32.gmra.mxu0 %v4936_v9  ;;  %v5939_v0 = vpop.f32.mrf.mxu2 }
 0x8e6   : > { %v14819_v5 = vadd.f32 %v5939_v0, %v5863_v36  ;;  %6063 = vmatmul.f32.gmra.mxu1 %v4982_v57  ;;  %v4829_v36 = vld [vmem:[#allocation5 + $0x178] sm:$0xff]  ;;  %v14854_v0 = vpop.f32.mrf.mxu1 }
 0x8e8   : > { %v5901_v11 = vpop.f32.mrf.mxu0 }
 0x8ea   : > { %5989 = vmatmul.f32.gmra.mxu2 %v4993_v61 }
 0x8ec   : > { %6143 = vmatmul.f32.gmra.mxu3 %v4995_v30 }
 0x8ed   : > { %6208 = vmatmul.f32.gmra.mxu0 %v4948_v60  ;;  %v5942_v17 = vpop.f32.mrf.mxu2 }
 0x8ee   : > { %v14825_v22 = vadd.f32 %v5942_v17, %v5866_v8  ;;  %6066 = vmatmul.f32.gmra.mxu1 %v4994_v46  ;;  %v4841_v46 = vld [vmem:[#allocation5 + $0x1d8] sm:$0xff]  ;;  %v14862_v33 = vpop.f32.mrf.mxu1 }
 0x8f0   : > { %v5904_v16 = vpop.f32.mrf.mxu0 }
 0x8f2   : > { %5992 = vmatmul.f32.gmra.mxu2 %v5005_v31  ;;  %v4853_v31 = vld [vmem:[#allocation5 + $0x238] sm:$0xff] }
 0x8f4   : > { %6146 = vmatmul.f32.gmra.mxu3 %v5007_v42 }
 0x8f5   : > { %6211 = vmatmul.f32.gmra.mxu0 %v4960_v21  ;;  %v5945_v6 = vpop.f32.mrf.mxu2 }
 0x8f6   : > { %v14831_v38 = vadd.f32 %v5945_v6, %v5869_v18  ;;  %6069 = vmatmul.f32.gmra.mxu1 %v5006_v44  ;;  %v14871_v28 = vpop.f32.mrf.mxu1  ;;  %v4865_v44 = vld [vmem:[#allocation5 + $0x298] sm:$0xff]  ;;  %v14875_v18 = vpop.f32.mrf.mxu3 }
 0x8f8   : > { %v5907_v61 = vpop.f32.mrf.mxu0 }
 0x8fa   : > { %5995 = vmatmul.f32.gmra.mxu2 %v5017_v29 }
 0x8fc   : > { %6149 = vmatmul.f32.gmra.mxu3 %v5019_v54 }
 0x8fd   : > { %6214 = vmatmul.f32.gmra.mxu0 %v4972_v24  ;;  %v5948_v32 = vpop.f32.mrf.mxu2  ;;  %v5896_v24 = vadd.f32 %v14829_v49, %v14763_v43  ;;  %v4901_v43 = vld [vmem:[#allocation5 + $0x3b8] sm:$0xff] }
 0x8fe   : > { %v14835_v58 = vadd.f32 %v5948_v32, %v5872_v15  ;;  %6072 = vmatmul.f32.gmra.mxu1 %v5018_v50  ;;  %v14884_v54 = vpop.f32.mrf.mxu1  ;;  %v14887_v51 = vpop.f32.mrf.mxu3 }
 0x900   : > { %v14878_v52 = vpop.f32.mrf.mxu0 }
 0x902   : > { %9458 = vmatmul.msk.f32.vlgmr.msrb.gmra.mxu2 %vm5322_vm2, %v4793_v26  ;;  %v4889_v26 = vld [vmem:[#allocation5 + $0x358] sm:$0xff] }
 0x905   : > { %6217 = vmatmul.f32.gmra.mxu0 %v4984_v35  ;;  %v5951_v14 = vpop.f32.mrf.mxu2 }
 0x906   : > { %v14842_v19 = vadd.f32 %v5951_v14, %v5875_v7  ;;  %v14895_v3 = vpop.f32.mrf.mxu1  ;;  %v14900_v35 = vpop.f32.mrf.mxu3 }
 0x908   : > { %v14891_v50 = vpop.f32.mrf.mxu0 }
 0x90a   : > { %9459 = vmatmul.msk.f32.gmra.mxu2 %vm5322_vm2, %v4805_v45 }
 0x90d   : > { %6220 = vmatmul.f32.gmra.mxu0 %v4996_v41  ;;  %v5954_v53 = vpop.f32.mrf.mxu2  ;;  %v5902_v41 = vadd.f32 %v5901_v11, %v14777_v12  ;;  %v6334_v11 = vld [vmem:[%s16529_s9 + $0x38] sm:$0xff] }
 0x90e   : > { %v14847_v47 = vadd.f32 %v5954_v53, %v5878_v10  ;;  %v14907_v49 = vpop.f32.mrf.mxu1  ;;  %6403 = vmatpush.msrb.mxu1 %v6334_v11 }
 0x910   : > { %v14904_v45 = vpop.f32.mrf.mxu0 }
 0x912   : > { %9460 = vmatmul.msk.f32.gmra.mxu2 %vm5322_vm2, %v4817_v62  ;;  %v14912_v62 = vpop.f32.mrf.mxu3 }
 0x915   : > { %6223 = vmatmul.f32.gmra.mxu0 %v5008_v1  ;;  %v5957_v9 = vpop.f32.mrf.mxu2  ;;  %v5905_v1 = vadd.f32 %v5904_v16, %v14784_v34  ;;  %v6333_v34 = vld [vmem:[%s16529_s9 + $0x30] sm:$0xff] }
 0x916   : > { %v14852_v57 = vadd.f32 %v5957_v9, %v5881_v63  ;;  %v14918_v63 = vpop.f32.mrf.mxu1  ;;  %6404 = vmatpush.msrb.mxu1 %v6333_v34 }
 0x918   : > { %v14914_v23 = vpop.f32.mrf.mxu0 }
 0x91a   : > { %9461 = vmatmul.msk.f32.gmra.mxu2 %vm5322_vm2, %v4829_v36 }
 0x91d   : > { %6226 = vmatmul.f32.gmra.mxu0 %v5020_v25  ;;  %v5960_v30 = vpop.f32.mrf.mxu2  ;;  %v4925_v25 = vld [vmem:[#allocation5 + $0x478] sm:$0xff] }
 0x91e   : > { %v14859_v60 = vadd.f32 %v5960_v30, %v5884_v55  ;;  %v6093_v55 = vpop.f32.mrf.mxu3  ;;  %v5908_v30 = vadd.f32 %v5907_v61, %v14789_v13  ;;  %v14932_v16 = vpop.f32.mrf.mxu1  ;;  %v6331_v61 = vld [vmem:[%s16529_s9 + $0x20] sm:$0xff] }
 0x920   : > { %v6170_v12 = vpop.f32.mrf.mxu0 }
 0x922   : > { %9462 = vmatmul.msk.f32.gmra.mxu2 %vm5322_vm2, %v4841_v46 }
 0x925   : > { %v5963_v8 = vpop.f32.mrf.mxu2 }
 0x926   : > { %v14866_v17 = vadd.f32 %v5963_v8, %v5887_v56  ;;  %v4937_v8 = vld [vmem:[#allocation5 + $0x4d8] sm:$0xff]  ;;  %v6096_v13 = vpop.f32.mrf.mxu3 }
 0x92a   : > { %9463 = vmatmul.msk.f32.gmra.mxu2 %vm5322_vm2, %v4853_v31  ;;  %v6332_v31 = vld [vmem:[%s16529_s9 + $0x28] sm:$0xff] }
 0x92b   : > { %6405 = vmatpush.msrb.mxu1 %v6332_v31 }
 0x92d   : > { %v5966_v42 = vpop.f32.mrf.mxu2  ;;  %6406 = vmatpush.msrb.mxu1 %v6331_v61 }
 0x92e   : > { %v14873_v21 = vadd.f32 %v5966_v42, %v5890_v48  ;;  %v6330_v48 = vld [vmem:[%s16529_s9 + $0x18] sm:$0xff]  ;;  %v6173_v42 = vpop.f32.mrf.mxu0 }
 0x92f   : > { %6407 = vmatpush.msrb.mxu1 %v6330_v48 }
 0x932   : > { %9464 = vmatmul.msk.f32.gmra.mxu2 %vm5322_vm2, %v4865_v44 }
 0x935   : > { %v5969_v6 = vpop.f32.mrf.mxu2 }
 0x936   : > { %v14882_v29 = vadd.f32 %v5969_v6, %v5893_v39  ;;  %v4949_v39 = vld [vmem:[#allocation5 + $0x538] sm:$0xff]  ;;  %v6329_v6 = vld [vmem:[%s16529_s9 + $0x10] sm:$0xff] }
 0x937   : > { %6408 = vmatpush.msrb.mxu1 %v6329_v6 }
 0x93a   : > { %9465 = vmatmul.msk.f32.gmra.mxu2 %vm5322_vm2, %v4877_v27  ;;  %v6028_v27 = vpop.f32.mrf.mxu1 }
 0x93d   : > { %v5972_v15 = vpop.f32.mrf.mxu2 }
 0x93e   : > { %v14893_v32 = vadd.f32 %v5972_v15, %v5896_v24  ;;  %v6328_v24 = vld [vmem:[%s16529_s9 + $0x8] sm:$0xff]  ;;  %v6327_v15 = vld [vmem:[%s16529_s9] sm:$0xff] }
 0x93f   : > { %6409 = vmatpush.msrb.mxu1 %v6328_v24 }
 0x941   : > { %6410 = vmatpush.msrb.mxu1 %v6327_v15  ;;  %v4997_v15 = vld [vmem:[#allocation5 + $0x6b8] sm:$0xff] }
 0x942   : > { %9466 = vmatmul.msk.f32.gmra.mxu2 %vm5322_vm2, %v4889_v26  ;;  %v6099_v26 = vpop.f32.mrf.mxu3 }
 0x945   : > { %v5975_v7 = vpop.f32.mrf.mxu2 }
 0x946   : > { %v14902_v14 = vadd.f32 %v5975_v7, %v5899_v4  ;;  %v6176_v7 = vpop.f32.mrf.mxu0 }
 0x94a   : > { %9467 = vmatmul.msk.f32.gmra.mxu2 %vm5322_vm2, %v4901_v43  ;;  %v4961_v43 = vld [vmem:[#allocation5 + $0x598] sm:$0xff] }
 0x94d   : > { %v5978_v10 = vpop.f32.mrf.mxu2 }
 0x94e   : > { %v14910_v53 = vadd.f32 %v5978_v10, %v5902_v41  ;;  %v6031_v41 = vpop.f32.mrf.mxu1 }
 0x952   : > { %9468 = vmatmul.msk.f32.gmra.mxu2 %vm5322_vm2, %v4913_v37  ;;  %v6102_v37 = vpop.f32.mrf.mxu3 }
 0x955   : > { %v5981_v9 = vpop.f32.mrf.mxu2 }
 0x956   : > { %v14920_v36 = vadd.f32 %v5981_v9, %v5905_v1  ;;  %v4973_v1 = vld [vmem:[#allocation5 + $0x5f8] sm:$0xff]  ;;  %v6179_v9 = vpop.f32.mrf.mxu0 }
 0x95a   : > { %9469 = vmatmul.msk.f32.gmra.mxu2 %vm5322_vm2, %v4925_v25  ;;  %v14962_v25 = vpop.f32.mrf.mxu1  ;;  %v6105_v34 = vpop.f32.mrf.mxu3 }
 0x95d   : > { %v5984_v46 = vpop.f32.mrf.mxu2 }
 0x95e   : > { %v14927_v56 = vadd.f32 %v5984_v46, %v5908_v30  ;;  %v6017_v30 = vadd.f32 %v14895_v3, %v14819_v5  ;;  %v4985_v46 = vld [vmem:[#allocation5 + $0x658] sm:$0xff]  ;;  %v6182_v31 = vpop.f32.mrf.mxu0 }
 0x962   : > { %9470 = vmatmul.msk.f32.gmra.mxu2 %vm5322_vm2, %v4937_v8  ;;  %v6094_v8 = vadd.f32 %v6093_v55, %v6017_v30  ;;  %v6037_v24 = vpop.f32.mrf.mxu1  ;;  %v6108_v5 = vpop.f32.mrf.mxu3 }
 0x964   : > { %v6171_v61 = vadd.f32 %v6170_v12, %v6094_v8  ;;  %v6023_v12 = vadd.f32 %v14918_v63, %v14831_v38  ;;  %v5009_v8 = vld [vmem:[#allocation5 + $0x718] sm:$0xff] }
 0x965   : > { %v14944_v44 = vpop.f32.mrf.mxu2 }
 0x966   : > { %v6185_v55 = vpop.f32.mrf.mxu0 }
 0x96a   : > { %9471 = vmatmul.msk.f32.gmra.mxu2 %vm5322_vm2, %v4949_v39  ;;  %v6020_v39 = vadd.f32 %v14907_v49, %v14825_v22  ;;  %v6040_v22 = vpop.f32.mrf.mxu1  ;;  %v6100_v49 = vadd.f32 %v6099_v26, %v6023_v12 }
 0x96d   : > { %v14956_v4 = vpop.f32.mrf.mxu2 }
 0x972   : > { %9472 = vmatmul.msk.f32.gmra.mxu2 %vm5322_vm2, %v4961_v43  ;;  %v6043_v63 = vpop.f32.mrf.mxu1 }
 0x975   : > { %v14959_v10 = vpop.f32.mrf.mxu2 }
 0x97a   : > { %9473 = vmatmul.msk.f32.gmra.mxu2 %vm5322_vm2, %v4973_v1  ;;  %v6097_v1 = vadd.f32 %v6096_v13, %v6020_v39  ;;  %v6177_v13 = vadd.f32 %v6176_v7, %v6100_v49 }
 0x97c   : > { %v6174_v3 = vadd.f32 %v6173_v42, %v6097_v1  ;;  %v6026_v42 = vadd.f32 %v14932_v16, %v14835_v58  ;;  %v6046_v16 = vpop.f32.mrf.mxu1 }
 0x97d   : > { %v14964_v11 = vpop.f32.mrf.mxu2 }
 0x97e   : > { %16654 = vst [vmem:[#allocation52_spill] sm:$0xff] %v14964_v11  ;;  %v6103_v38 = vadd.f32 %v6102_v37, %v6026_v42  ;;  %v6032_v37 = vadd.f32 %v6031_v41, %v14847_v47 }
 0x980   : > { %v6180_v26 = vadd.f32 %v6179_v9, %v6103_v38  ;;  %v6109_v42 = vadd.f32 %v6108_v5, %v6032_v37  ;;  %v6038_v5 = vadd.f32 %v6037_v24, %v14859_v60  ;;  %v6044_v24 = vadd.f32 %v6043_v63, %v14873_v21 }
 0x982   : > { %9474 = vmatmul.msk.f32.gmra.mxu2 %vm5322_vm2, %v4985_v46 }
 0x985   : > { %v6247_v48 = vpop.f32.mrf.mxu2 }
 0x986   : > { %v6248_v6 = vadd.f32 %v6247_v48, %v6171_v61  ;;  %v6111_v61 = vpop.f32.mrf.mxu3 }
 0x988   : > { %v6307_v43 = vmax.f32 %v6248_v6, 0.0  ;;  %v6188_v6 = vpop.f32.mrf.mxu0 }
 0x98a   : > { %9475 = vmatmul.msk.f32.gmra.mxu2 %vm5322_vm2, %v4997_v15  ;;  %9478 = vmatmul.msk.f32.vlgmr.msrb.gmra.mxu1 %vm3477_vm1, %v6307_v43  ;;  %v5021_v15 = vld [vmem:[#allocation5 + $0x778] sm:$0xff] }
 0x98d   : > { %v6250_v30 = vpop.f32.mrf.mxu2 }
 0x98e   : > { %v6251_v46 = vadd.f32 %v6250_v30, %v6174_v3  ;;  %v6114_v3 = vpop.f32.mrf.mxu3 }
 0x990   : > { %v6308_v11 = vmax.f32 %v6251_v46, 0.0  ;;  %v6191_v12 = vpop.f32.mrf.mxu0 }
 0x992   : > { %9476 = vmatmul.msk.f32.gmra.mxu2 %vm5322_vm2, %v5009_v8  ;;  %9479 = vmatmul.msk.f32.gmra.mxu1 %vm3477_vm1, %v6308_v11  ;;  %v6029_v11 = vadd.f32 %v6028_v27, %v14842_v19  ;;  %v6186_v19 = vadd.f32 %v6185_v55, %v6109_v42  ;;  %v6115_v55 = vadd.f32 %v6114_v3, %v6038_v5 }
 0x994   : > { %v6106_v46 = vadd.f32 %v6105_v34, %v6029_v11 }
 0x995   : > { %v6253_v48 = vpop.f32.mrf.mxu2 }
 0x996   : > { %v6254_v39 = vadd.f32 %v6253_v48, %v6177_v13  ;;  %v6183_v58 = vadd.f32 %v6182_v31, %v6106_v46  ;;  %v6117_v48 = vpop.f32.mrf.mxu3  ;;  %v6041_v46 = vadd.f32 %v6040_v22, %v14866_v17 }
 0x998   : > { %v6309_v43 = vmax.f32 %v6254_v39, 0.0  ;;  %v6194_v9 = vpop.f32.mrf.mxu0  ;;  %v6035_v39 = vadd.f32 %v14962_v25, %v14852_v57  ;;  %v6118_v37 = vadd.f32 %v6117_v48, %v6041_v46 }
 0x99a   : > { %9477 = vmatmul.msk.f32.gmra.mxu2 %vm5322_vm2, %v5021_v15  ;;  %9480 = vmatmul.msk.f32.gmra.mxu1 %vm3477_vm1, %v6309_v43  ;;  %v6049_v15 = vpop.f32.mrf.mxu1  ;;  %v6112_v31 = vadd.f32 %v6111_v61, %v6035_v39  ;;  %v6047_v39 = vadd.f32 %v6046_v16, %v14882_v29 }
 0x99c   : > { %v6189_v47 = vadd.f32 %v6188_v6, %v6112_v31 }
 0x99d   : > { %v6256_v1 = vpop.f32.mrf.mxu2 }
 0x99e   : > { %v6257_v7 = vadd.f32 %v6256_v1, %v6180_v26  ;;  %v6120_v38 = vpop.f32.mrf.mxu3 }
 0x9a0   : > { %v6310_v30 = vmax.f32 %v6257_v7, 0.0  ;;  %v6197_v41 = vpop.f32.mrf.mxu0 }
 0x9a2   : > { %9481 = vmatmul.msk.f32.gmra.mxu1 %vm3477_vm1, %v6310_v30  ;;  %v6052_v7 = vpop.f32.mrf.mxu1  ;;  %v6192_v30 = vadd.f32 %v6191_v12, %v6115_v55  ;;  %v6121_v12 = vadd.f32 %v6120_v38, %v6044_v24 }
 0x9a3   : > { %v6053_v55 = vadd.f32 %v6052_v7, %v14902_v14 }
 0x9a5   : > { %v6259_v8 = vpop.f32.mrf.mxu2 }
 0x9a6   : > { %v6260_v49 = vadd.f32 %v6259_v8, %v6183_v58  ;;  %v6123_v57 = vpop.f32.mrf.mxu3 }
 0x9a7   : > { %v6124_v31 = vadd.f32 %v6123_v57, %v6047_v39 }
 0x9a8   : > { %v6311_v13 = vmax.f32 %v6260_v49, 0.0  ;;  %v6200_v58 = vpop.f32.mrf.mxu0  ;;  %v6195_v49 = vadd.f32 %v6194_v9, %v6118_v37 }
 0x9a9   : > { %v6201_v21 = vadd.f32 %v6200_v58, %v6124_v31 }
 0x9aa   : > { %9482 = vmatmul.msk.f32.gmra.mxu1 %vm3477_vm1, %v6311_v13  ;;  %v6055_v6 = vpop.f32.mrf.mxu1 }
 0x9ab   : > { %v6056_v58 = vadd.f32 %v6055_v6, %v14910_v53 }
 0x9ad   : > { %v6262_v27 = vpop.f32.mrf.mxu2 }
 0x9ae   : > { %v6263_v34 = vadd.f32 %v6262_v27, %v6186_v19  ;;  %v6126_v3 = vpop.f32.mrf.mxu3  ;;  %v6198_v27 = vadd.f32 %v6197_v41, %v6121_v12 }
 0x9b0   : > { %v6312_v43 = vmax.f32 %v6263_v34, 0.0  ;;  %v6203_v19 = vpop.f32.mrf.mxu0 }
 0x9b2   : > { %9483 = vmatmul.msk.f32.gmra.mxu1 %vm3477_vm1, %v6312_v43  ;;  %v6058_v17 = vpop.f32.mrf.mxu1 }
 0x9b3   : > { %v6059_v7 = vadd.f32 %v6058_v17, %v14920_v36 }
 0x9b5   : > { %v6265_v26 = vpop.f32.mrf.mxu2 }
 0x9b6   : > { %v6266_v1 = vadd.f32 %v6265_v26, %v6189_v47  ;;  %v6129_v43 = vpop.f32.mrf.mxu3  ;;  %v6050_v47 = vadd.f32 %v6049_v15, %v14893_v32 }
 0x9b7   : > { %v6130_v46 = vadd.f32 %v6129_v43, %v6053_v55 }
 0x9b8   : > { %v6313_v11 = vmax.f32 %v6266_v1, 0.0  ;;  %v6206_v9 = vpop.f32.mrf.mxu0  ;;  %v6127_v1 = vadd.f32 %v6126_v3, %v6050_v47 }
 0x9ba   : > { %9484 = vmatmul.msk.f32.gmra.mxu1 %vm3477_vm1, %v6313_v11  ;;  %v6061_v38 = vpop.f32.mrf.mxu1  ;;  %v6204_v11 = vadd.f32 %v6203_v19, %v6127_v1  ;;  %v5763_v1 = vadd.f32 %v14871_v28, %v14806_v40  ;;  %v5766_v40 = vadd.f32 %v14884_v54, %v14813_v20 }
 0x9bd   : > { %v6268_v25 = vpop.f32.mrf.mxu2 }
 0x9be   : > { %v6269_v61 = vadd.f32 %v6268_v25, %v6192_v30  ;;  %v6132_v41 = vpop.f32.mrf.mxu3 }
 0x9c0   : > { %v6314_v8 = vmax.f32 %v6269_v61, 0.0  ;;  %v6209_v29 = vpop.f32.mrf.mxu0  ;;  %v6207_v61 = vadd.f32 %v6206_v9, %v6130_v46  ;;  %v5760_v9 = vadd.f32 %v14862_v33, %v14801_v2 }
 0x9c2   : > { %9485 = vmatmul.msk.f32.gmra.mxu1 %vm3477_vm1, %v6314_v8  ;;  %v6064_v25 = vpop.f32.mrf.mxu1 }
 0x9c5   : > { %v6271_v60 = vpop.f32.mrf.mxu2 }
 0x9c6   : > { %v6272_v13 = vadd.f32 %v6271_v60, %v6195_v49  ;;  %v6135_v32 = vpop.f32.mrf.mxu3  ;;  %v6133_v60 = vadd.f32 %v6132_v41, %v6056_v58 }
 0x9c8   : > { %v6315_v42 = vmax.f32 %v6272_v13, 0.0  ;;  %v6212_v37 = vpop.f32.mrf.mxu0  ;;  %v6210_v13 = vadd.f32 %v6209_v29, %v6133_v60  ;;  %v16655_v60 = vld [vmem:[#allocation52_spill] sm:$0xff] }
 0x9ca   : > { %9486 = vmatmul.msk.f32.gmra.mxu1 %vm3477_vm1, %v6315_v42  ;;  %v6067_v24 = vpop.f32.mrf.mxu1 }
 0x9cd   : > { %v6274_v22 = vpop.f32.mrf.mxu2 }
 0x9ce   : > { %v6275_v48 = vadd.f32 %v6274_v22, %v6198_v27  ;;  %v6138_v42 = vpop.f32.mrf.mxu3  ;;  %v5757_v27 = vadd.f32 %v14854_v0, %v14794_v59  ;;  %v6136_v22 = vadd.f32 %v6135_v32, %v6059_v7 }
 0x9d0   : > { %v6316_v34 = vmax.f32 %v6275_v48, 0.0  ;;  %v6215_v12 = vpop.f32.mrf.mxu0  ;;  %v6213_v53 = vadd.f32 %v6212_v37, %v6136_v22  ;;  %v5834_v48 = vadd.f32 %v14875_v18, %v5757_v27  ;;  %v5837_v18 = vadd.f32 %v14887_v51, %v5760_v9 }
 0x9d1   : > { %v5840_v51 = vadd.f32 %v14900_v35, %v5763_v1  ;;  %v5843_v35 = vadd.f32 %v14912_v62, %v5766_v40  ;;  %v6477_v1 = vld [vmem:[%s16530_s10 + $0x28] sm:$0xff]  ;;  %v6490_v40 = vld [vmem:[%s16530_s10 + $0x90] sm:$0xff] }
 0x9d2   : > { %9487 = vmatmul.msk.f32.gmra.mxu1 %vm3477_vm1, %v6316_v34  ;;  %v6070_v6 = vpop.f32.mrf.mxu1  ;;  %v6062_v34 = vadd.f32 %v6061_v38, %v14927_v56  ;;  %v5911_v36 = vadd.f32 %v14878_v52, %v5834_v48  ;;  %v5914_v52 = vadd.f32 %v14891_v50, %v5837_v18  ;;  %v6472_v18 = vld [vmem:[%s16530_s10] sm:$0xff] }
 0x9d3   : > { %v5917_v50 = vadd.f32 %v14904_v45, %v5840_v51  ;;  %v5920_v45 = vadd.f32 %v14914_v23, %v5843_v35  ;;  %v6484_v51 = vld [vmem:[%s16530_s10 + $0x60] sm:$0xff] }
 0x9d4   : > { %v5988_v59 = vadd.f32 %v14944_v44, %v5911_v36  ;;  %v5991_v33 = vadd.f32 %v14956_v4, %v5914_v52  ;;  %v6475_v52 = vld [vmem:[%s16530_s10 + $0x18] sm:$0xff]  ;;  %v6706_v35 = vld [vmem:[#allocation7 + $0x10] sm:$0xff] }
 0x9d5   : > { %v6277_v63 = vpop.f32.mrf.mxu2  ;;  %v5994_v4 = vadd.f32 %v14959_v10, %v5917_v50  ;;  %v5997_v20 = vadd.f32 %v16655_v60, %v5920_v45  ;;  %v6488_v50 = vld [vmem:[%s16530_s10 + $0x80] sm:$0xff] }
 0x9d6   : > { %v6278_v26 = vadd.f32 %v6277_v63, %v6201_v21  ;;  %v6141_v31 = vpop.f32.mrf.mxu3  ;;  %v6139_v21 = vadd.f32 %v6138_v42, %v6062_v34 }
 0x9d7   : > { %v6071_v32 = vadd.f32 %v6070_v6, %v5994_v4  ;;  %v6617_v4 = vld [vmem:[#allocation7 + $0x8] sm:$0xff] }
 0x9d8   : > { %v6317_v5 = vmax.f32 %v6278_v26, 0.0  ;;  %v6218_v0 = vpop.f32.mrf.mxu0  ;;  %v6216_v63 = vadd.f32 %v6215_v12, %v6139_v21  ;;  %v6065_v26 = vadd.f32 %v6064_v25, %v5988_v59  ;;  %6662 = vmatpush.msra.mxu2 %v6617_v4 }
 0x9da   : > { %9488 = vmatmul.msk.f32.gmra.mxu1 %vm3477_vm1, %v6317_v5  ;;  %v6073_v38 = vpop.f32.mrf.mxu1  ;;  %v6142_v2 = vadd.f32 %v6141_v31, %v6065_v26 }
 0x9dc   : > { %v6219_v41 = vadd.f32 %v6218_v0, %v6142_v2  ;;  %v6478_v2 = vld [vmem:[%s16530_s10 + $0x30] sm:$0xff] }
 0x9dd   : > { %v6280_v16 = vpop.f32.mrf.mxu2 }
 0x9de   : > { %v6281_v30 = vadd.f32 %v6280_v16, %v6204_v11  ;;  %v6144_v44 = vpop.f32.mrf.mxu3  ;;  %v6068_v16 = vadd.f32 %v6067_v24, %v5991_v33  ;;  %v6074_v24 = vadd.f32 %v6073_v38, %v5997_v20  ;;  %v6474_v38 = vld [vmem:[%s16530_s10 + $0x10] sm:$0xff]  ;;  %v6479_v33 = vld [vmem:[%s16530_s10 + $0x38] sm:$0xff] }
 0x9e0   : > { %v6318_v57 = vmax.f32 %v6281_v30, 0.0  ;;  %v6221_v11 = vpop.f32.mrf.mxu0  ;;  %v6145_v28 = vadd.f32 %v6144_v44, %v6068_v16  ;;  %v6480_v44 = vld [vmem:[%s16530_s10 + $0x40] sm:$0xff]  ;;  %v6485_v16 = vld [vmem:[%s16530_s10 + $0x68] sm:$0xff] }
 0x9e2   : > { %9489 = vmatmul.msk.f32.gmra.mxu1 %vm3477_vm1, %v6318_v57  ;;  %v6222_v25 = vadd.f32 %v6221_v11, %v6145_v28  ;;  %v6482_v11 = vld [vmem:[%s16530_s10 + $0x50] sm:$0xff]  ;;  %v6491_v28 = vld [vmem:[%s16530_s10 + $0x98] sm:$0xff] }
 0x9e5   : > { %v6283_v15 = vpop.f32.mrf.mxu2 }
 0x9e6   : > { %v6284_v8 = vadd.f32 %v6283_v15, %v6207_v61  ;;  %v6147_v46 = vpop.f32.mrf.mxu3 }
 0x9e8   : > { %v6319_v49 = vmax.f32 %v6284_v8, 0.0  ;;  %v6224_v58 = vpop.f32.mrf.mxu0 }
 0x9ea   : > { %9490 = vmatmul.msk.f32.gmra.mxu1 %vm3477_vm1, %v6319_v49  ;;  %v6148_v49 = vadd.f32 %v6147_v46, %v6071_v32  ;;  %v6887_v46 = vld [vmem:[#allocation7 + $0x48] sm:$0xff]  ;;  %v6886_v32 = vld [vmem:[#allocation7 + $0x40] sm:$0xff] }
 0x9eb   : > { %6902 = vmatpush.msra.mxu1 %v6887_v46 }
 0x9ec   : > { %v6225_v54 = vadd.f32 %v6224_v58, %v6148_v49  ;;  %v6766_v58 = vld [vmem:[#allocation7 + $0x20] sm:$0xff] }
 0x9ed   : > { %v6286_v14 = vpop.f32.mrf.mxu2  ;;  %6903 = vmatpush.msra.mxu1 %v6886_v32 }
 0x9ee   : > { %v6287_v3 = vadd.f32 %v6286_v14, %v6210_v13  ;;  %v6150_v14 = vpop.f32.mrf.mxu3 }
 0x9ef   : > { %v6151_v42 = vadd.f32 %v6150_v14, %v6074_v24 }
 0x9f0   : > { %v6320_v19 = vmax.f32 %v6287_v3, 0.0  ;;  %v6227_v62 = vpop.f32.mrf.mxu0 }
 0x9f2   : > { %9491 = vmatmul.msk.f32.gmra.mxu1 %vm3477_vm1, %v6320_v19  ;;  %v6228_v19 = vadd.f32 %v6227_v62, %v6151_v42 }
 0x9f5   : > { %v6289_v39 = vpop.f32.mrf.mxu2 }
 0x9f6   : > { %v6290_v43 = vadd.f32 %v6289_v39, %v6213_v53 }
 0x9f8   : > { %v6321_v17 = vmax.f32 %v6290_v43, 0.0 }
 0x9fa   : > { %9492 = vmatmul.msk.f32.gmra.mxu1 %vm3477_vm1, %v6321_v17 }
 0x9fd   : > { %v6292_v47 = vpop.f32.mrf.mxu2 }
 0x9fe   : > { %v6293_v56 = vadd.f32 %v6292_v47, %v6216_v63 }
 0xa00   : > { %v6322_v5 = vmax.f32 %v6293_v56, 0.0  ;;  %v6473_v56 = vld [vmem:[%s16530_s10 + $0x8] sm:$0xff] }
 0xa02   : > { %9493 = vmatmul.msk.f32.gmra.mxu1 %vm3477_vm1, %v6322_v5  ;;  %v6476_v5 = vld [vmem:[%s16530_s10 + $0x20] sm:$0xff] }
 0xa05   : > { %v6295_v29 = vpop.f32.mrf.mxu2 }
 0xa06   : > { %v6296_v55 = vadd.f32 %v6295_v29, %v6219_v41  ;;  %v6481_v41 = vld [vmem:[%s16530_s10 + $0x48] sm:$0xff]  ;;  %v6483_v29 = vld [vmem:[%s16530_s10 + $0x58] sm:$0xff] }
 0xa07   : > { %v15020_v30 = vpop.f32.mrf.mxu1 }
 0xa08   : > { %v6323_v57 = vmax.f32 %v6296_v55, 0.0  ;;  %v6486_v55 = vld [vmem:[%s16530_s10 + $0x70] sm:$0xff] }
 0xa0a   : > { %9494 = vmatmul.msk.f32.gmra.mxu1 %vm3477_vm1, %v6323_v57  ;;  %v6489_v57 = vld [vmem:[%s16530_s10 + $0x88] sm:$0xff] }
 0xa0d   : > { %v6298_v61 = vpop.f32.mrf.mxu2 }
 0xa0e   : > { %v6299_v15 = vadd.f32 %v6298_v61, %v6222_v25  ;;  %v6707_v25 = vld [vmem:[#allocation7 + $0x18] sm:$0xff]  ;;  %v6616_v61 = vld [vmem:[#allocation7] sm:$0xff] }
 0xa0f   : > { %v6415_v8 = vpop.f32.mrf.mxu1  ;;  %6663 = vmatpush.msra.mxu2 %v6616_v61 }
 0xa10   : > { %v6324_v37 = vmax.f32 %v6299_v15, 0.0  ;;  %v6767_v15 = vld [vmem:[#allocation7 + $0x28] sm:$0xff] }
 0xa12   : > { %9495 = vmatmul.msk.f32.gmra.mxu1 %vm3477_vm1, %v6324_v37 }
 0xa15   : > { %v6301_v10 = vpop.f32.mrf.mxu2 }
 0xa16   : > { %v6302_v13 = vadd.f32 %v6301_v10, %v6225_v54 }
 0xa17   : > { %v6418_v7 = vpop.f32.mrf.mxu1 }
 0xa18   : > { %v6325_v3 = vmax.f32 %v6302_v13, 0.0 }
 0xa1a   : > { %9496 = vmatmul.msk.f32.gmra.mxu1 %vm3477_vm1, %v6325_v3 }
 0xa1d   : > { %v6304_v12 = vpop.f32.mrf.mxu2 }
 0xa1e   : > { %v6305_v23 = vadd.f32 %v6304_v12, %v6228_v19 }
 0xa1f   : > { %v6421_v27 = vpop.f32.mrf.mxu1 }
 0xa20   : > { %v6326_v22 = vmax.f32 %v6305_v23, 0.0 }
 0xa22   : > { %9497 = vmatmul.msk.f32.gmra.mxu1 %vm3477_vm1, %v6326_v22  ;;  %v6947_v22 = vld [vmem:[#allocation7 + $0x58] sm:$0xff] }
 0xa27   : > { %v6424_v53 = vpop.f32.mrf.mxu1 }
 0xa2f   : > { %v6427_v6 = vpop.f32.mrf.mxu1 }
 0xa37   : > { %v6430_v39 = vpop.f32.mrf.mxu1 }
 0xa3f   : > { %v6433_v48 = vpop.f32.mrf.mxu1 }
 0xa47   : > { %v6436_v34 = vpop.f32.mrf.mxu1 }
 0xa4f   : > { %v6439_v43 = vpop.f32.mrf.mxu1 }
 0xa57   : > { %v6442_v36 = vpop.f32.mrf.mxu1 }
 0xa5f   : > { %v6445_v17 = vpop.f32.mrf.mxu1 }
 0xa67   : > { %v6448_v31 = vpop.f32.mrf.mxu1 }
 0xa6f   : > { %v6451_v9 = vpop.f32.mrf.mxu1 }
 0xa77   : > { %v6454_v21 = vpop.f32.mrf.mxu1 }
 0xa7f   : > { %v6457_v59 = vpop.f32.mrf.mxu1 }
 0xa80   : > { %6522 = vmatpush.msra.mxu3 %v6457_v59 }
 0xa82   : > { %6523 = vmatpush.msra.mxu3 %v6454_v21 }
 0xa84   : > { %6524 = vmatpush.msra.mxu3 %v6451_v9 }
 0xa86   : > { %6525 = vmatpush.msra.mxu3 %v6448_v31  ;;  %v7006_v31 = vld [vmem:[#allocation7 + $0x60] sm:$0xff] }
 0xa87   : > { %v6460_v0 = vpop.f32.mrf.mxu1 }
 0xa88   : > { %6526 = vmatpush.msra.mxu3 %v6445_v17  ;;  %v7007_v17 = vld [vmem:[#allocation7 + $0x68] sm:$0xff] }
 0xa8a   : > { %6527 = vmatpush.msra.mxu3 %v6442_v36 }
 0xa8c   : > { %6528 = vmatpush.msra.mxu3 %v6439_v43 }
 0xa8e   : > { %6529 = vmatpush.msra.mxu3 %v6436_v34 }
 0xa8f   : > { %v6463_v63 = vpop.f32.mrf.mxu1 }
 0xa90   : > { %6530 = vmatpush.msra.mxu3 %v6433_v48  ;;  %v7126_v48 = vld [vmem:[#allocation7 + $0x80] sm:$0xff] }
 0xa92   : > { %6531 = vmatpush.msra.mxu3 %v6430_v39  ;;  %v6946_v39 = vld [vmem:[#allocation7 + $0x50] sm:$0xff] }
 0xa94   : > { %6532 = vmatpush.msra.mxu3 %v6427_v6  ;;  %v6826_v6 = vld [vmem:[#allocation7 + $0x30] sm:$0xff] }
 0xa96   : > { %6533 = vmatpush.msra.mxu3 %v6424_v53  ;;  %v7127_v53 = vld [vmem:[#allocation7 + $0x88] sm:$0xff] }
 0xa97   : > { %v6466_v47 = vpop.f32.mrf.mxu1  ;;  %7142 = vmatpush.msrb.mxu1 %v7127_v53 }
 0xa98   : > { %6534 = vmatpush.msra.mxu3 %v6421_v27  ;;  %v6827_v27 = vld [vmem:[#allocation7 + $0x38] sm:$0xff] }
 0xa99   : > { %6842 = vmatpush.msrb.mxu2 %v6827_v27  ;;  %7143 = vmatpush.msrb.mxu1 %v7126_v48 }
 0xa9a   : > { %6535 = vmatpush.msra.mxu3 %v6418_v7 }
 0xa9b   : > { %6843 = vmatpush.msrb.mxu2 %v6826_v6 }
 0xa9c   : > { %6536 = vmatpush.msra.mxu3 %v6415_v8 }
 0xa9e   : > { %6537 = vmatpush.msra.mxu3 %v15020_v30  ;;  %v6487_v30 = vld [vmem:[%s16530_s10 + $0x78] sm:$0xff] }
 0xa9f   : > { %v6469_v26 = vpop.f32.mrf.mxu1  ;;  %6538 = vmatmul.f32.vlgmr.msra.gmra.mxu3 %v6472_v18 }
 0xaa0   : > { %6581 = vmatpush.msrb.mxu0 %v6469_v26  ;;  %6722 = vmatpush.msrb.mxu3 %v6707_v25 }
 0xaa2   : > { %6582 = vmatpush.msrb.mxu0 %v6466_v47  ;;  %6723 = vmatpush.msrb.mxu3 %v6706_v35 }
 0xaa4   : > { %6583 = vmatpush.msrb.mxu0 %v6463_v63  ;;  %6962 = vmatpush.msra.mxu3 %v6947_v22 }
 0xaa6   : > { %6584 = vmatpush.msrb.mxu0 %v6460_v0  ;;  %6963 = vmatpush.msra.mxu3 %v6946_v39 }
 0xaa7   : > { %9498 = vmatmul.msk.f32.vlgmr.msrb.gmra.mxu0 %vm5322_vm2, %v6473_v56  ;;  %6541 = vmatmul.f32.gmra.mxu3 %v6474_v38 }
 0xaa8   : > { %6782 = vmatpush.msra.mxu0 %v6767_v15 }
 0xaaa   : > { %6783 = vmatpush.msra.mxu0 %v6766_v58 }
 0xaac   : > { %7022 = vmatpush.msrb.mxu0 %v7007_v17 }
 0xaae   : > { %7023 = vmatpush.msrb.mxu0 %v7006_v31 }
 0xaaf   : > { %9499 = vmatmul.msk.f32.gmra.mxu0 %vm5322_vm2, %v6475_v52  ;;  %6544 = vmatmul.f32.gmra.mxu3 %v6476_v5  ;;  %v7067_v5 = vld [vmem:[#allocation7 + $0x78] sm:$0xff] }
 0xab7   : > { %9500 = vmatmul.msk.f32.gmra.mxu0 %vm5322_vm2, %v6477_v1  ;;  %6547 = vmatmul.f32.gmra.mxu3 %v6478_v2  ;;  %v7066_v1 = vld [vmem:[#allocation7 + $0x70] sm:$0xff] }
 0xabf   : > { %9501 = vmatmul.msk.f32.gmra.mxu0 %vm5322_vm2, %v6479_v33  ;;  %6550 = vmatmul.f32.gmra.mxu3 %v6480_v44 }
 0xac7   : > { %9502 = vmatmul.msk.f32.gmra.mxu0 %vm5322_vm2, %v6481_v41  ;;  %6553 = vmatmul.f32.gmra.mxu3 %v6482_v11 }
 0xacf   : > { %9503 = vmatmul.msk.f32.gmra.mxu0 %vm5322_vm2, %v6483_v29  ;;  %6556 = vmatmul.f32.gmra.mxu3 %v6484_v51 }
 0xad7   : > { %9504 = vmatmul.msk.f32.gmra.mxu0 %vm5322_vm2, %v6485_v16  ;;  %6559 = vmatmul.f32.gmra.mxu3 %v6486_v55 }
 0xadf   : > { %9505 = vmatmul.msk.f32.gmra.mxu0 %vm5322_vm2, %v6487_v30  ;;  %6562 = vmatmul.f32.gmra.mxu3 %v6488_v50 }
 0xae7   : > { %9506 = vmatmul.msk.f32.gmra.mxu0 %vm5322_vm2, %v6489_v57  ;;  %6565 = vmatmul.f32.gmra.mxu3 %v6490_v40 }
 0xaef   : > { %9507 = vmatmul.msk.f32.gmra.mxu0 %vm5322_vm2, %v6491_v28 }
 0xb22   : > { %v6539_v8 = vpop.f32.mrf.mxu3 }
 0xb24   : > { %v6586_v45 = vpop.f32.mrf.mxu0 }
 0xb25   : > { %v15104_v37 = vadd.f32 %v6586_v45, %v6539_v8 }
 0xb27   : > { %9508 = vmatmul.msk.f32.vlgmr.msra.gmra.mxu2 %vm2362_vm0, %v15104_v37  ;;  %9518 = vmatmul.msk.f32.vlgmr.msrb.gmra.mxu3 %vm2362_vm0, %v15104_v37 }
 0xb28   : > { %9548 = vmatmul.msk.f32.vlgmr.msra.gmra.mxu1 %vm2362_vm0, %v15104_v37  ;;  %9528 = vmatmul.msk.f32.vlgmr.msra.gmra.mxu0 %vm2362_vm0, %v15104_v37 }
 0xb29   : > { %7082 = vmatpush.msra.mxu2 %v7067_v5 }
 0xb2a   : > { %v6542_v49 = vpop.f32.mrf.mxu3 }
 0xb2b   : > { %7083 = vmatpush.msra.mxu2 %v7066_v1 }
 0xb2c   : > { %v6589_v60 = vpop.f32.mrf.mxu0 }
 0xb2d   : > { %v15114_v20 = vadd.f32 %v6589_v60, %v6542_v49 }
 0xb2f   : > { %9509 = vmatmul.msk.f32.gmra.mxu2 %vm2362_vm0, %v15114_v20  ;;  %9519 = vmatmul.msk.f32.gmra.mxu3 %vm2362_vm0, %v15114_v20 }
 0xb30   : > { %9549 = vmatmul.msk.f32.gmra.mxu1 %vm2362_vm0, %v15114_v20  ;;  %9529 = vmatmul.msk.f32.gmra.mxu0 %vm2362_vm0, %v15114_v20 }
 0xb32   : > { %v6545_v54 = vpop.f32.mrf.mxu3 }
 0xb34   : > { %v6592_v10 = vpop.f32.mrf.mxu0 }
 0xb35   : > { %v15124_v24 = vadd.f32 %v6592_v10, %v6545_v54 }
 0xb37   : > { %9510 = vmatmul.msk.f32.gmra.mxu2 %vm2362_vm0, %v15124_v24  ;;  %9520 = vmatmul.msk.f32.gmra.mxu3 %vm2362_vm0, %v15124_v24 }
 0xb38   : > { %9550 = vmatmul.msk.f32.gmra.mxu1 %vm2362_vm0, %v15124_v24  ;;  %9530 = vmatmul.msk.f32.gmra.mxu0 %vm2362_vm0, %v15124_v24 }
 0xb3a   : > { %v6548_v13 = vpop.f32.mrf.mxu3 }
 0xb3c   : > { %v6595_v14 = vpop.f32.mrf.mxu0 }
 0xb3d   : > { %v15134_v7 = vadd.f32 %v6595_v14, %v6548_v13 }
 0xb3f   : > { %9511 = vmatmul.msk.f32.gmra.mxu2 %vm2362_vm0, %v15134_v7  ;;  %9521 = vmatmul.msk.f32.gmra.mxu3 %vm2362_vm0, %v15134_v7 }
 0xb40   : > { %9551 = vmatmul.msk.f32.gmra.mxu1 %vm2362_vm0, %v15134_v7  ;;  %9531 = vmatmul.msk.f32.gmra.mxu0 %vm2362_vm0, %v15134_v7 }
 0xb42   : > { %v6551_v3 = vpop.f32.mrf.mxu3 }
 0xb44   : > { %v6598_v62 = vpop.f32.mrf.mxu0 }
 0xb45   : > { %v15144_v42 = vadd.f32 %v6598_v62, %v6551_v3 }
 0xb47   : > { %9512 = vmatmul.msk.f32.gmra.mxu2 %vm2362_vm0, %v15144_v42  ;;  %9522 = vmatmul.msk.f32.gmra.mxu3 %vm2362_vm0, %v15144_v42 }
 0xb48   : > { %9552 = vmatmul.msk.f32.gmra.mxu1 %vm2362_vm0, %v15144_v42  ;;  %9532 = vmatmul.msk.f32.gmra.mxu0 %vm2362_vm0, %v15144_v42 }
 0xb4a   : > { %v6554_v19 = vpop.f32.mrf.mxu3 }
 0xb4c   : > { %v6601_v12 = vpop.f32.mrf.mxu0 }
 0xb4d   : > { %v15154_v23 = vadd.f32 %v6601_v12, %v6554_v19 }
 0xb4f   : > { %9513 = vmatmul.msk.f32.gmra.mxu2 %vm2362_vm0, %v15154_v23  ;;  %9523 = vmatmul.msk.f32.gmra.mxu3 %vm2362_vm0, %v15154_v23 }
 0xb50   : > { %9553 = vmatmul.msk.f32.gmra.mxu1 %vm2362_vm0, %v15154_v23  ;;  %9533 = vmatmul.msk.f32.gmra.mxu0 %vm2362_vm0, %v15154_v23 }
 0xb52   : > { %v6557_v34 = vpop.f32.mrf.mxu3 }
 0xb54   : > { %v6604_v43 = vpop.f32.mrf.mxu0 }
 0xb55   : > { %v15164_v36 = vadd.f32 %v6604_v43, %v6557_v34 }
 0xb57   : > { %9514 = vmatmul.msk.f32.gmra.mxu2 %vm2362_vm0, %v15164_v36  ;;  %9524 = vmatmul.msk.f32.gmra.mxu3 %vm2362_vm0, %v15164_v36 }
 0xb58   : > { %9554 = vmatmul.msk.f32.gmra.mxu1 %vm2362_vm0, %v15164_v36  ;;  %9534 = vmatmul.msk.f32.gmra.mxu0 %vm2362_vm0, %v15164_v36 }
 0xb5a   : > { %v6560_v9 = vpop.f32.mrf.mxu3 }
 0xb5c   : > { %v6607_v21 = vpop.f32.mrf.mxu0 }
 0xb5d   : > { %v15174_v59 = vadd.f32 %v6607_v21, %v6560_v9 }
 0xb5f   : > { %9515 = vmatmul.msk.f32.gmra.mxu2 %vm2362_vm0, %v15174_v59  ;;  %9525 = vmatmul.msk.f32.gmra.mxu3 %vm2362_vm0, %v15174_v59 }
 0xb60   : > { %9555 = vmatmul.msk.f32.gmra.mxu1 %vm2362_vm0, %v15174_v59  ;;  %9535 = vmatmul.msk.f32.gmra.mxu0 %vm2362_vm0, %v15174_v59 }
 0xb62   : > { %v6563_v0 = vpop.f32.mrf.mxu3 }
 0xb64   : > { %v6610_v63 = vpop.f32.mrf.mxu0 }
 0xb65   : > { %v15184_v47 = vadd.f32 %v6610_v63, %v6563_v0 }
 0xb67   : > { %9516 = vmatmul.msk.f32.gmra.mxu2 %vm2362_vm0, %v15184_v47  ;;  %9526 = vmatmul.msk.f32.gmra.mxu3 %vm2362_vm0, %v15184_v47 }
 0xb68   : > { %9556 = vmatmul.msk.f32.gmra.mxu1 %vm2362_vm0, %v15184_v47  ;;  %9536 = vmatmul.msk.f32.gmra.mxu0 %vm2362_vm0, %v15184_v47 }
 0xb6a   : > { %v6566_v18 = vpop.f32.mrf.mxu3 }
 0xb6c   : > { %v6613_v26 = vpop.f32.mrf.mxu0 }
 0xb6d   : > { %v15194_v56 = vadd.f32 %v6613_v26, %v6566_v18 }
 0xb6f   : > { %9517 = vmatmul.msk.f32.gmra.mxu2 %vm2362_vm0, %v15194_v56  ;;  %9527 = vmatmul.msk.f32.gmra.mxu3 %vm2362_vm0, %v15194_v56 }
 0xb70   : > { %9557 = vmatmul.msk.f32.gmra.mxu1 %vm2362_vm0, %v15194_v56  ;;  %9537 = vmatmul.msk.f32.gmra.mxu0 %vm2362_vm0, %v15194_v56 }
 0xb77   : > { %9538 = vmatmul.msk.f32.vlgmr.msrb.gmra.mxu2 %vm2362_vm0, %v15104_v37  ;;  %9558 = vmatmul.msk.f32.vlgmr.msra.gmra.mxu3 %vm2362_vm0, %v15104_v37 }
 0xb78   : > { %9588 = vmatmul.msk.f32.vlgmr.msrb.gmra.mxu1 %vm2362_vm0, %v15104_v37  ;;  %9568 = vmatmul.msk.f32.vlgmr.msrb.gmra.mxu0 %vm2362_vm0, %v15104_v37 }
 0xb7f   : > { %9539 = vmatmul.msk.f32.gmra.mxu2 %vm2362_vm0, %v15114_v20  ;;  %9559 = vmatmul.msk.f32.gmra.mxu3 %vm2362_vm0, %v15114_v20 }
 0xb80   : > { %9589 = vmatmul.msk.f32.gmra.mxu1 %vm2362_vm0, %v15114_v20  ;;  %9569 = vmatmul.msk.f32.gmra.mxu0 %vm2362_vm0, %v15114_v20 }
 0xb87   : > { %9540 = vmatmul.msk.f32.gmra.mxu2 %vm2362_vm0, %v15124_v24  ;;  %9560 = vmatmul.msk.f32.gmra.mxu3 %vm2362_vm0, %v15124_v24 }
 0xb88   : > { %9590 = vmatmul.msk.f32.gmra.mxu1 %vm2362_vm0, %v15124_v24  ;;  %9570 = vmatmul.msk.f32.gmra.mxu0 %vm2362_vm0, %v15124_v24 }
 0xb8f   : > { %9541 = vmatmul.msk.f32.gmra.mxu2 %vm2362_vm0, %v15134_v7  ;;  %9561 = vmatmul.msk.f32.gmra.mxu3 %vm2362_vm0, %v15134_v7 }
 0xb90   : > { %9591 = vmatmul.msk.f32.gmra.mxu1 %vm2362_vm0, %v15134_v7  ;;  %9571 = vmatmul.msk.f32.gmra.mxu0 %vm2362_vm0, %v15134_v7 }
 0xb97   : > { %9542 = vmatmul.msk.f32.gmra.mxu2 %vm2362_vm0, %v15144_v42  ;;  %9562 = vmatmul.msk.f32.gmra.mxu3 %vm2362_vm0, %v15144_v42 }
 0xb98   : > { %9592 = vmatmul.msk.f32.gmra.mxu1 %vm2362_vm0, %v15144_v42  ;;  %9572 = vmatmul.msk.f32.gmra.mxu0 %vm2362_vm0, %v15144_v42 }
 0xb9f   : > { %9543 = vmatmul.msk.f32.gmra.mxu2 %vm2362_vm0, %v15154_v23  ;;  %9563 = vmatmul.msk.f32.gmra.mxu3 %vm2362_vm0, %v15154_v23 }
 0xba0   : > { %9593 = vmatmul.msk.f32.gmra.mxu1 %vm2362_vm0, %v15154_v23  ;;  %9573 = vmatmul.msk.f32.gmra.mxu0 %vm2362_vm0, %v15154_v23 }
 0xba5   : > { %v6905_v38 = vpop.f32.mrf.mxu1  ;;  %v6785_v52 = vpop.f32.mrf.mxu0 }
 0xba6   : > { %6935 = vst.msk [vmem:[#allocation4 + $0x140] sm:$0xff] %vm2362_vm0, %v6905_v38 }
 0xba7   : > { %9544 = vmatmul.msk.f32.gmra.mxu2 %vm2362_vm0, %v15164_v36  ;;  %9564 = vmatmul.msk.f32.gmra.mxu3 %vm2362_vm0, %v15164_v36  ;;  %6815 = vst.msk [vmem:[#allocation4 + $0xa0] sm:$0xff] %vm2362_vm0, %v6785_v52 }
 0xba8   : > { %9594 = vmatmul.msk.f32.gmra.mxu1 %vm2362_vm0, %v15164_v36  ;;  %9574 = vmatmul.msk.f32.gmra.mxu0 %vm2362_vm0, %v15164_v36 }
 0xbaa   : > { %v6665_v2 = vpop.f32.mrf.mxu2  ;;  %v6725_v33 = vpop.f32.mrf.mxu3 }
 0xbab   : > { %6695 = vst.msk [vmem:[#allocation4] sm:$0xff] %vm2362_vm0, %v6665_v2 }
 0xbac   : > { %6755 = vst.msk [vmem:[#allocation4 + $0x50] sm:$0xff] %vm2362_vm0, %v6725_v33 }
 0xbad   : > { %v6908_v44 = vpop.f32.mrf.mxu1  ;;  %v6788_v41 = vpop.f32.mrf.mxu0  ;;  %v7417_v0 = vld [vmem:[#allocation4 + $0x140] sm:$0xff] }
 0xbae   : > { %6936 = vst.msk [vmem:[#allocation4 + $0x148] sm:$0xff] %vm2362_vm0, %v6908_v44 }
 0xbaf   : > { %9545 = vmatmul.msk.f32.gmra.mxu2 %vm2362_vm0, %v15174_v59  ;;  %9565 = vmatmul.msk.f32.gmra.mxu3 %vm2362_vm0, %v15174_v59  ;;  %6816 = vst.msk [vmem:[#allocation4 + $0xa8] sm:$0xff] %vm2362_vm0, %v6788_v41 }
 0xbb0   : > { %9595 = vmatmul.msk.f32.gmra.mxu1 %vm2362_vm0, %v15174_v59  ;;  %9575 = vmatmul.msk.f32.gmra.mxu0 %vm2362_vm0, %v15174_v59 }
 0xbb2   : > { %v6668_v11 = vpop.f32.mrf.mxu2  ;;  %v6728_v29 = vpop.f32.mrf.mxu3 }
 0xbb3   : > { %6696 = vst.msk [vmem:[#allocation4 + $0x8] sm:$0xff] %vm2362_vm0, %v6668_v11  ;;  %v7387_v12 = vld [vmem:[#allocation4 + $0x50] sm:$0xff] }
 0xbb4   : > { %6756 = vst.msk [vmem:[#allocation4 + $0x58] sm:$0xff] %vm2362_vm0, %v6728_v29 }
 0xbb5   : > { %v6911_v51 = vpop.f32.mrf.mxu1  ;;  %v6791_v16 = vpop.f32.mrf.mxu0  ;;  %v7418_v31 = vld [vmem:[#allocation4 + $0x148] sm:$0xff] }
 0xbb6   : > { %6937 = vst.msk [vmem:[#allocation4 + $0x150] sm:$0xff] %vm2362_vm0, %v6911_v51 }
 0xbb7   : > { %9546 = vmatmul.msk.f32.gmra.mxu2 %vm2362_vm0, %v15184_v47  ;;  %9566 = vmatmul.msk.f32.gmra.mxu3 %vm2362_vm0, %v15184_v47  ;;  %6817 = vst.msk [vmem:[#allocation4 + $0xb0] sm:$0xff] %vm2362_vm0, %v6791_v16 }
 0xbb8   : > { %9596 = vmatmul.msk.f32.gmra.mxu1 %vm2362_vm0, %v15184_v47  ;;  %9576 = vmatmul.msk.f32.gmra.mxu0 %vm2362_vm0, %v15184_v47 }
 0xbba   : > { %v6671_v55 = vpop.f32.mrf.mxu2  ;;  %v6731_v30 = vpop.f32.mrf.mxu3 }
 0xbbb   : > { %6697 = vst.msk [vmem:[#allocation4 + $0x10] sm:$0xff] %vm2362_vm0, %v6671_v55  ;;  %v7388_v62 = vld [vmem:[#allocation4 + $0x58] sm:$0xff] }
 0xbbc   : > { %6757 = vst.msk [vmem:[#allocation4 + $0x60] sm:$0xff] %vm2362_vm0, %v6731_v30 }
 0xbbd   : > { %v6914_v50 = vpop.f32.mrf.mxu1  ;;  %v6794_v57 = vpop.f32.mrf.mxu0 }
 0xbbe   : > { %6938 = vst.msk [vmem:[#allocation4 + $0x158] sm:$0xff] %vm2362_vm0, %v6914_v50  ;;  %v7378_v50 = vld [vmem:[#allocation4 + $0x8] sm:$0xff] }
 0xbbf   : > { %9547 = vmatmul.msk.f32.gmra.mxu2 %vm2362_vm0, %v15194_v56  ;;  %9567 = vmatmul.msk.f32.gmra.mxu3 %vm2362_vm0, %v15194_v56  ;;  %6818 = vst.msk [vmem:[#allocation4 + $0xb8] sm:$0xff] %vm2362_vm0, %v6794_v57 }
 0xbc0   : > { %9597 = vmatmul.msk.f32.gmra.mxu1 %vm2362_vm0, %v15194_v56  ;;  %9577 = vmatmul.msk.f32.gmra.mxu0 %vm2362_vm0, %v15194_v56 }
 0xbc2   : > { %v6674_v40 = vpop.f32.mrf.mxu2  ;;  %v6734_v28 = vpop.f32.mrf.mxu3  ;;  %v7379_v16 = vld [vmem:[#allocation4 + $0x10] sm:$0xff] }
 0xbc3   : > { %6698 = vst.msk [vmem:[#allocation4 + $0x18] sm:$0xff] %vm2362_vm0, %v6674_v40  ;;  %v7389_v13 = vld [vmem:[#allocation4 + $0x60] sm:$0xff] }
 0xbc4   : > { %6758 = vst.msk [vmem:[#allocation4 + $0x68] sm:$0xff] %vm2362_vm0, %v6734_v28  ;;  %v7185_v40 = vld [vmem:[%s16531_s11] sm:$0xff] }
 0xbc5   : > { %v6917_v4 = vpop.f32.mrf.mxu1  ;;  %v6797_v25 = vpop.f32.mrf.mxu0  ;;  %v7420_v17 = vld [vmem:[#allocation4 + $0x158] sm:$0xff] }
 0xbc6   : > { %6939 = vst.msk [vmem:[#allocation4 + $0x160] sm:$0xff] %vm2362_vm0, %v6917_v4 }
 0xbc7   : > { %9578 = vmatmul.msk.f32.vlgmr.msra.gmra.mxu2 %vm2362_vm0, %v15104_v37  ;;  %6819 = vst.msk [vmem:[#allocation4 + $0xc0] sm:$0xff] %vm2362_vm0, %v6797_v25 }
 0xbca   : > { %v6677_v46 = vpop.f32.mrf.mxu2  ;;  %v6737_v61 = vpop.f32.mrf.mxu3 }
 0xbcb   : > { %6699 = vst.msk [vmem:[#allocation4 + $0x20] sm:$0xff] %vm2362_vm0, %v6677_v46 }
 0xbcc   : > { %6759 = vst.msk [vmem:[#allocation4 + $0x70] sm:$0xff] %vm2362_vm0, %v6737_v61 }
 0xbcd   : > { %v6920_v35 = vpop.f32.mrf.mxu1  ;;  %v6800_v32 = vpop.f32.mrf.mxu0  ;;  %v7421_v48 = vld [vmem:[#allocation4 + $0x160] sm:$0xff] }
 0xbce   : > { %6940 = vst.msk [vmem:[#allocation4 + $0x168] sm:$0xff] %vm2362_vm0, %v6920_v35 }
 0xbcf   : > { %9579 = vmatmul.msk.f32.gmra.mxu2 %vm2362_vm0, %v15114_v20  ;;  %6820 = vst.msk [vmem:[#allocation4 + $0xc8] sm:$0xff] %vm2362_vm0, %v6800_v32 }
 0xbd2   : > { %v6680_v15 = vpop.f32.mrf.mxu2  ;;  %v6740_v58 = vpop.f32.mrf.mxu3  ;;  %v7381_v11 = vld [vmem:[#allocation4 + $0x20] sm:$0xff] }
 0xbd3   : > { %6700 = vst.msk [vmem:[#allocation4 + $0x28] sm:$0xff] %vm2362_vm0, %v6680_v15  ;;  %v7391_v54 = vld [vmem:[#allocation4 + $0x70] sm:$0xff] }
 0xbd4   : > { %6760 = vst.msk [vmem:[#allocation4 + $0x78] sm:$0xff] %vm2362_vm0, %v6740_v58  ;;  %v7191_v58 = vld [vmem:[%s16531_s11 + $0x30] sm:$0xff] }
 0xbd5   : > { %v6923_v8 = vpop.f32.mrf.mxu1  ;;  %v6803_v45 = vpop.f32.mrf.mxu0  ;;  %v7422_v53 = vld [vmem:[#allocation4 + $0x168] sm:$0xff] }
 0xbd6   : > { %6941 = vst.msk [vmem:[#allocation4 + $0x170] sm:$0xff] %vm2362_vm0, %v6923_v8 }
 0xbd7   : > { %9580 = vmatmul.msk.f32.gmra.mxu2 %vm2362_vm0, %v15124_v24  ;;  %6821 = vst.msk [vmem:[#allocation4 + $0xd0] sm:$0xff] %vm2362_vm0, %v6803_v45  ;;  %v7390_v24 = vld [vmem:[#allocation4 + $0x68] sm:$0xff] }
 0xbda   : > { %v6683_v37 = vpop.f32.mrf.mxu2  ;;  %v6743_v49 = vpop.f32.mrf.mxu3  ;;  %v7382_v41 = vld [vmem:[#allocation4 + $0x28] sm:$0xff] }
 0xbdb   : > { %6701 = vst.msk [vmem:[#allocation4 + $0x30] sm:$0xff] %vm2362_vm0, %v6683_v37  ;;  %v7392_v60 = vld [vmem:[#allocation4 + $0x78] sm:$0xff]  ;;  %v7402_v37 = vld [vmem:[#allocation4 + $0xc8] sm:$0xff] }
 0xbdc   : > { %6761 = vst.msk [vmem:[#allocation4 + $0x80] sm:$0xff] %vm2362_vm0, %v6743_v49  ;;  %7756 = vmatpush.msrb.mxu3 %v7392_v60  ;;  %v7401_v60 = vld [vmem:[#allocation4 + $0xc0] sm:$0xff] }
 0xbdd   : > { %v6926_v20 = vpop.f32.mrf.mxu1  ;;  %v6806_v10 = vpop.f32.mrf.mxu0 }
 0xbde   : > { %6942 = vst.msk [vmem:[#allocation4 + $0x178] sm:$0xff] %vm2362_vm0, %v6926_v20  ;;  %7757 = vmatpush.msrb.mxu3 %v7391_v54  ;;  %v7403_v8 = vld [vmem:[#allocation4 + $0xd0] sm:$0xff] }
 0xbdf   : > { %9581 = vmatmul.msk.f32.gmra.mxu2 %vm2362_vm0, %v15134_v7  ;;  %6822 = vst.msk [vmem:[#allocation4 + $0xd8] sm:$0xff] %vm2362_vm0, %v6806_v10  ;;  %v7423_v7 = vld [vmem:[#allocation4 + $0x170] sm:$0xff] }
 0xbe0   : > { %7758 = vmatpush.msrb.mxu3 %v7390_v24  ;;  %v7400_v24 = vld [vmem:[#allocation4 + $0xb8] sm:$0xff] }
 0xbe2   : > { %v6686_v14 = vpop.f32.mrf.mxu2  ;;  %v6746_v3 = vpop.f32.mrf.mxu3  ;;  %7759 = vmatpush.msrb.mxu3 %v7389_v13 }
 0xbe3   : > { %6702 = vst.msk [vmem:[#allocation4 + $0x38] sm:$0xff] %vm2362_vm0, %v6686_v14  ;;  %v7197_v14 = vld [vmem:[%s16531_s11 + $0x60] sm:$0xff] }
 0xbe4   : > { %6762 = vst.msk [vmem:[#allocation4 + $0x88] sm:$0xff] %vm2362_vm0, %v6746_v3  ;;  %7760 = vmatpush.msrb.mxu3 %v7388_v62  ;;  %v7399_v3 = vld [vmem:[#allocation4 + $0xb0] sm:$0xff] }
 0xbe5   : > { %v6929_v19 = vpop.f32.mrf.mxu1  ;;  %v6809_v27 = vpop.f32.mrf.mxu0  ;;  %v7424_v22 = vld [vmem:[#allocation4 + $0x178] sm:$0xff] }
 0xbe6   : > { %6943 = vst.msk [vmem:[#allocation4 + $0x180] sm:$0xff] %vm2362_vm0, %v6929_v19  ;;  %7761 = vmatpush.msrb.mxu3 %v7387_v12  ;;  %7982 = vmatpush.msrb.mxu2 %v7424_v22  ;;  %v7404_v15 = vld [vmem:[#allocation4 + $0xd8] sm:$0xff]  ;;  %v7397_v22 = vld [vmem:[#allocation4 + $0xa0] sm:$0xff] }
 0xbe7   : > { %9582 = vmatmul.msk.f32.gmra.mxu2 %vm2362_vm0, %v15144_v42  ;;  %6823 = vst.msk [vmem:[#allocation4 + $0xe0] sm:$0xff] %vm2362_vm0, %v6809_v27  ;;  %v7419_v42 = vld [vmem:[#allocation4 + $0x150] sm:$0xff]  ;;  %v7398_v27 = vld [vmem:[#allocation4 + $0xa8] sm:$0xff] }
 0xbe8   : > { %7983 = vmatpush.msrb.mxu2 %v7423_v7 }
 0xbea   : > { %v6689_v6 = vpop.f32.mrf.mxu2  ;;  %v6749_v39 = vpop.f32.mrf.mxu3  ;;  %7984 = vmatpush.msrb.mxu2 %v7422_v53  ;;  %v7384_v2 = vld [vmem:[#allocation4 + $0x38] sm:$0xff] }
 0xbeb   : > { %6703 = vst.msk [vmem:[#allocation4 + $0x40] sm:$0xff] %vm2362_vm0, %v6689_v6 }
 0xbec   : > { %6763 = vst.msk [vmem:[#allocation4 + $0x90] sm:$0xff] %vm2362_vm0, %v6749_v39  ;;  %7985 = vmatpush.msrb.mxu2 %v7421_v48  ;;  %v7203_v39 = vld [vmem:[%s16531_s11 + $0x90] sm:$0xff] }
 0xbed   : > { %v6932_v34 = vpop.f32.mrf.mxu1  ;;  %v6812_v43 = vpop.f32.mrf.mxu0 }
 0xbee   : > { %6944 = vst.msk [vmem:[#allocation4 + $0x188] sm:$0xff] %vm2362_vm0, %v6932_v34  ;;  %7986 = vmatpush.msrb.mxu2 %v7420_v17  ;;  %v7405_v61 = vld [vmem:[#allocation4 + $0xe0] sm:$0xff] }
 0xbef   : > { %9583 = vmatmul.msk.f32.gmra.mxu2 %vm2362_vm0, %v15154_v23  ;;  %6824 = vst.msk [vmem:[#allocation4 + $0xe8] sm:$0xff] %vm2362_vm0, %v6812_v43  ;;  %v7394_v43 = vld [vmem:[#allocation4 + $0x88] sm:$0xff] }
 0xbf0   : > { %7987 = vmatpush.msrb.mxu2 %v7419_v42  ;;  %v7186_v42 = vld [vmem:[%s16531_s11 + $0x8] sm:$0xff] }
 0xbf2   : > { %v6692_v9 = vpop.f32.mrf.mxu2  ;;  %v6752_v21 = vpop.f32.mrf.mxu3  ;;  %7988 = vmatpush.msrb.mxu2 %v7418_v31  ;;  %v7385_v52 = vld [vmem:[#allocation4 + $0x40] sm:$0xff] }
 0xbf3   : > { %6704 = vst.msk [vmem:[#allocation4 + $0x48] sm:$0xff] %vm2362_vm0, %v6692_v9  ;;  %v7395_v48 = vld [vmem:[#allocation4 + $0x90] sm:$0xff]  ;;  %v7393_v31 = vld [vmem:[#allocation4 + $0x80] sm:$0xff] }
 0xbf4   : > { %6764 = vst.msk [vmem:[#allocation4 + $0x98] sm:$0xff] %vm2362_vm0, %v6752_v21  ;;  %7989 = vmatpush.msrb.mxu2 %v7417_v0  ;;  %v7209_v0 = vld [vmem:[%s16531_s11 + $0xc0] sm:$0xff] }
 0xbf5   : > { %v7145_v63 = vpop.f32.mrf.mxu1  ;;  %v7025_v18 = vpop.f32.mrf.mxu0 }
 0xbf6   : > { %7175 = vst.msk [vmem:[#allocation4 + $0x280] sm:$0xff] %vm2362_vm0, %v7145_v63  ;;  %v7406_v46 = vld [vmem:[#allocation4 + $0xe8] sm:$0xff] }
 0xbf7   : > { %9584 = vmatmul.msk.f32.gmra.mxu2 %vm2362_vm0, %v15164_v36  ;;  %7055 = vst.msk [vmem:[#allocation4 + $0x1e0] sm:$0xff] %vm2362_vm0, %v7025_v18  ;;  %v7383_v36 = vld [vmem:[#allocation4 + $0x30] sm:$0xff] }
 0xbfa   : > { %v6845_v23 = vpop.f32.mrf.mxu2  ;;  %v6965_v26 = vpop.f32.mrf.mxu3  ;;  %v7386_v38 = vld [vmem:[#allocation4 + $0x48] sm:$0xff] }
 0xbfb   : > { %6875 = vst.msk [vmem:[#allocation4 + $0xf0] sm:$0xff] %vm2362_vm0, %v6845_v23  ;;  %7762 = vmatpush.msrb.mxu3 %v7386_v38  ;;  %v7396_v6 = vld [vmem:[#allocation4 + $0x98] sm:$0xff] }
 0xbfc   : > { %6995 = vst.msk [vmem:[#allocation4 + $0x190] sm:$0xff] %vm2362_vm0, %v6965_v26  ;;  %v7192_v23 = vld [vmem:[%s16531_s11 + $0x38] sm:$0xff] }
 0xbfd   : > { %v7148_v5 = vpop.f32.mrf.mxu1  ;;  %7763 = vmatpush.msrb.mxu3 %v7385_v52  ;;  %v7028_v1 = vpop.f32.mrf.mxu0  ;;  %v7215_v52 = vld [vmem:[%s16531_s11 + $0xf0] sm:$0xff] }
 0xbfe   : > { %7176 = vst.msk [vmem:[#allocation4 + $0x288] sm:$0xff] %vm2362_vm0, %v7148_v5  ;;  %v7437_v62 = vld [vmem:[#allocation4 + $0x1e0] sm:$0xff] }
 0xbff   : > { %9585 = vmatmul.msk.f32.gmra.mxu2 %vm2362_vm0, %v15174_v59  ;;  %7764 = vmatpush.msrb.mxu3 %v7384_v2  ;;  %7056 = vst.msk [vmem:[#allocation4 + $0x1e8] sm:$0xff] %vm2362_vm0, %v7028_v1  ;;  %v7380_v59 = vld [vmem:[#allocation4 + $0x18] sm:$0xff]  ;;  %v7198_v2 = vld [vmem:[%s16531_s11 + $0x68] sm:$0xff] }
 0xc01   : > { %7765 = vmatpush.msrb.mxu3 %v7383_v36 }
 0xc02   : > { %v6848_v33 = vpop.f32.mrf.mxu2  ;;  %v6968_v44 = vpop.f32.mrf.mxu3  ;;  %v7407_v28 = vld [vmem:[#allocation4 + $0xf0] sm:$0xff] }
 0xc03   : > { %6876 = vst.msk [vmem:[#allocation4 + $0xf8] sm:$0xff] %vm2362_vm0, %v6848_v33  ;;  %7766 = vmatpush.msrb.mxu3 %v7382_v41 }
 0xc04   : > { %6996 = vst.msk [vmem:[#allocation4 + $0x198] sm:$0xff] %vm2362_vm0, %v6968_v44  ;;  %v7221_v44 = vld [vmem:[%s16531_s11 + $0x120] sm:$0xff] }
 0xc05   : > { %v7151_v29 = vpop.f32.mrf.mxu1  ;;  %7767 = vmatpush.msrb.mxu3 %v7381_v11  ;;  %v7031_v51 = vpop.f32.mrf.mxu0 }
 0xc06   : > { %7177 = vst.msk [vmem:[#allocation4 + $0x290] sm:$0xff] %vm2362_vm0, %v7151_v29  ;;  %v7438_v13 = vld [vmem:[#allocation4 + $0x1e8] sm:$0xff]  ;;  %v7204_v29 = vld [vmem:[%s16531_s11 + $0x98] sm:$0xff] }
 0xc07   : > { %9586 = vmatmul.msk.f32.gmra.mxu2 %vm2362_vm0, %v15184_v47  ;;  %7768 = vmatpush.msrb.mxu3 %v7380_v59  ;;  %7057 = vst.msk [vmem:[#allocation4 + $0x1f0] sm:$0xff] %vm2362_vm0, %v7031_v51  ;;  %v7377_v47 = vld [vmem:[#allocation4] sm:$0xff] }
 0xc09   : > { %7769 = vmatpush.msrb.mxu3 %v7379_v16  ;;  %v7227_v16 = vld [vmem:[%s16531_s11 + $0x150] sm:$0xff] }
 0xc0a   : > { %v6851_v55 = vpop.f32.mrf.mxu2  ;;  %v6971_v30 = vpop.f32.mrf.mxu3  ;;  %v7408_v57 = vld [vmem:[#allocation4 + $0xf8] sm:$0xff] }
 0xc0b   : > { %6877 = vst.msk [vmem:[#allocation4 + $0x100] sm:$0xff] %vm2362_vm0, %v6851_v55  ;;  %7770 = vmatpush.msrb.mxu3 %v7378_v50  ;;  %7869 = vmatpush.msra.mxu0 %v7408_v57  ;;  %v7210_v50 = vld [vmem:[%s16531_s11 + $0xc8] sm:$0xff] }
 0xc0c   : > { %6997 = vst.msk [vmem:[#allocation4 + $0x1a0] sm:$0xff] %vm2362_vm0, %v6971_v30 }
 0xc0d   : > { %v7154_v4 = vpop.f32.mrf.mxu1  ;;  %7771 = vmatpush.msrb.mxu3 %v7377_v47  ;;  %7870 = vmatpush.msra.mxu0 %v7407_v28  ;;  %v7034_v25 = vpop.f32.mrf.mxu0 }
 0xc0e   : > { %7178 = vst.msk [vmem:[#allocation4 + $0x298] sm:$0xff] %vm2362_vm0, %v7154_v4  ;;  %7772 = vmatmul.f32.vlgmr.msrb.gmra.mxu3 %v7185_v40  ;;  %v7439_v20 = vld [vmem:[#allocation4 + $0x1f0] sm:$0xff] }
 0xc0f   : > { %9587 = vmatmul.msk.f32.gmra.mxu2 %vm2362_vm0, %v15194_v56  ;;  %7871 = vmatpush.msra.mxu0 %v7406_v46  ;;  %7058 = vst.msk [vmem:[#allocation4 + $0x1f8] sm:$0xff] %vm2362_vm0, %v7034_v25  ;;  %v7233_v46 = vld [vmem:[%s16531_s11 + $0x180] sm:$0xff] }
 0xc11   : > { %7872 = vmatpush.msra.mxu0 %v7405_v61 }
 0xc12   : > { %v6854_v35 = vpop.f32.mrf.mxu2  ;;  %v6974_v32 = vpop.f32.mrf.mxu3 }
 0xc13   : > { %6878 = vst.msk [vmem:[#allocation4 + $0x108] sm:$0xff] %vm2362_vm0, %v6854_v35  ;;  %7873 = vmatpush.msra.mxu0 %v7404_v15 }
 0xc14   : > { %6998 = vst.msk [vmem:[#allocation4 + $0x1a8] sm:$0xff] %vm2362_vm0, %v6974_v32 }
 0xc15   : > { %v7157_v45 = vpop.f32.mrf.mxu1  ;;  %7874 = vmatpush.msra.mxu0 %v7403_v8  ;;  %v7037_v56 = vpop.f32.mrf.mxu0 }
 0xc16   : > { %7179 = vst.msk [vmem:[#allocation4 + $0x2a0] sm:$0xff] %vm2362_vm0, %v7157_v45  ;;  %7775 = vmatmul.f32.gmra.mxu3 %v7191_v58  ;;  %v7440_v49 = vld [vmem:[#allocation4 + $0x1f8] sm:$0xff] }
 0xc17   : > { %7875 = vmatpush.msra.mxu0 %v7402_v37  ;;  %8095 = vmatpush.msra.mxu1 %v7440_v49  ;;  %7059 = vst.msk [vmem:[#allocation4 + $0x200] sm:$0xff] %vm2362_vm0, %v7037_v56  ;;  %v7216_v45 = vld [vmem:[%s16531_s11 + $0xf8] sm:$0xff] }
 0xc18   : > { %v7460_v37 = vld [vmem:[#allocation4 + $0x298] sm:$0xff] }
 0xc19   : > { %7876 = vmatpush.msra.mxu0 %v7401_v60  ;;  %8096 = vmatpush.msra.mxu1 %v7439_v20 }
 0xc1a   : > { %v6857_v54 = vpop.f32.mrf.mxu2  ;;  %v6977_v10 = vpop.f32.mrf.mxu3 }
 0xc1b   : > { %6879 = vst.msk [vmem:[#allocation4 + $0x110] sm:$0xff] %vm2362_vm0, %v6857_v54  ;;  %7877 = vmatpush.msra.mxu0 %v7400_v24  ;;  %8097 = vmatpush.msra.mxu1 %v7438_v13  ;;  %v7459_v54 = vld [vmem:[#allocation4 + $0x290] sm:$0xff] }
 0xc1c   : > { %6999 = vst.msk [vmem:[#allocation4 + $0x1b0] sm:$0xff] %vm2362_vm0, %v6977_v10  ;;  %v7239_v24 = vld [vmem:[%s16531_s11 + $0x1b0] sm:$0xff] }
 0xc1d   : > { %v7160_v19 = vpop.f32.mrf.mxu1  ;;  %7878 = vmatpush.msra.mxu0 %v7399_v3  ;;  %8098 = vmatpush.msra.mxu1 %v7437_v62  ;;  %v7040_v12 = vpop.f32.mrf.mxu0  ;;  %v7461_v58 = vld [vmem:[#allocation4 + $0x2a0] sm:$0xff]  ;;  %v7410_v3 = vld [vmem:[#allocation4 + $0x108] sm:$0xff] }
 0xc1e   : > { %7180 = vst.msk [vmem:[#allocation4 + $0x2a8] sm:$0xff] %vm2362_vm0, %v7160_v19  ;;  %7778 = vmatmul.f32.gmra.mxu3 %v7197_v14  ;;  %v7458_v14 = vld [vmem:[#allocation4 + $0x288] sm:$0xff]  ;;  %v7457_v19 = vld [vmem:[#allocation4 + $0x280] sm:$0xff] }
 0xc1f   : > { %7879 = vmatpush.msra.mxu0 %v7398_v27  ;;  %7060 = vst.msk [vmem:[#allocation4 + $0x208] sm:$0xff] %vm2362_vm0, %v7040_v12  ;;  %v7430_v62 = vld [vmem:[#allocation4 + $0x1a8] sm:$0xff]  ;;  %v7187_v12 = vld [vmem:[%s16531_s11 + $0x10] sm:$0xff]  ;;  %v7409_v27 = vld [vmem:[#allocation4 + $0x100] sm:$0xff] }
 0xc21   : > { %7880 = vmatpush.msra.mxu0 %v7397_v22  ;;  %v7222_v22 = vld [vmem:[%s16531_s11 + $0x128] sm:$0xff] }
 0xc22   : > { %v6860_v7 = vpop.f32.mrf.mxu2  ;;  %v6980_v53 = vpop.f32.mrf.mxu3  ;;  %v7411_v10 = vld [vmem:[#allocation4 + $0x110] sm:$0xff] }
 0xc23   : > { %6880 = vst.msk [vmem:[#allocation4 + $0x118] sm:$0xff] %vm2362_vm0, %v6860_v7  ;;  %7881 = vmatpush.msra.mxu0 %v7396_v6  ;;  %v7431_v13 = vld [vmem:[#allocation4 + $0x1b0] sm:$0xff]  ;;  %v7429_v7 = vld [vmem:[#allocation4 + $0x1a0] sm:$0xff]  ;;  %v7428_v6 = vld [vmem:[#allocation4 + $0x198] sm:$0xff] }
 0xc24   : > { %7000 = vst.msk [vmem:[#allocation4 + $0x1b8] sm:$0xff] %vm2362_vm0, %v6980_v53 }
 0xc25   : > { %v7163_v34 = vpop.f32.mrf.mxu1  ;;  %7882 = vmatpush.msra.mxu0 %v7395_v48  ;;  %v7043_v17 = vpop.f32.mrf.mxu0  ;;  %v7462_v35 = vld [vmem:[#allocation4 + $0x2a8] sm:$0xff]  ;;  %v7427_v48 = vld [vmem:[#allocation4 + $0x190] sm:$0xff] }
 0xc26   : > { %7181 = vst.msk [vmem:[#allocation4 + $0x2b0] sm:$0xff] %vm2362_vm0, %v7163_v34  ;;  %7781 = vmatmul.f32.gmra.mxu3 %v7203_v39  ;;  %v7245_v39 = vld [vmem:[%s16531_s11 + $0x1e0] sm:$0xff]  ;;  %v7426_v34 = vld [vmem:[#allocation4 + $0x188] sm:$0xff] }
 0xc27   : > { %7883 = vmatpush.msra.mxu0 %v7394_v43  ;;  %7061 = vst.msk [vmem:[#allocation4 + $0x210] sm:$0xff] %vm2362_vm0, %v7043_v17  ;;  %v7193_v43 = vld [vmem:[%s16531_s11 + $0x40] sm:$0xff]  ;;  %v7228_v17 = vld [vmem:[%s16531_s11 + $0x158] sm:$0xff] }
 0xc29   : > { %7884 = vmatpush.msra.mxu0 %v7393_v31  ;;  %v7425_v31 = vld [vmem:[#allocation4 + $0x180] sm:$0xff] }
 0xc2a   : > { %v6863_v9 = vpop.f32.mrf.mxu2  ;;  %v6983_v21 = vpop.f32.mrf.mxu3  ;;  %7885 = vmatmul.f32.vlgmr.msra.gmra.mxu0 %v7186_v42  ;;  %v7412_v60 = vld [vmem:[#allocation4 + $0x118] sm:$0xff] }
 0xc2b   : > { %6881 = vst.msk [vmem:[#allocation4 + $0x120] sm:$0xff] %vm2362_vm0, %v6863_v9  ;;  %v7432_v20 = vld [vmem:[#allocation4 + $0x1b8] sm:$0xff] }
 0xc2c   : > { %7001 = vst.msk [vmem:[#allocation4 + $0x1c0] sm:$0xff] %vm2362_vm0, %v6983_v21  ;;  %v7188_v42 = vld [vmem:[%s16531_s11 + $0x18] sm:$0xff]  ;;  %v7251_v21 = vld [vmem:[%s16531_s11 + $0x210] sm:$0xff] }
 0xc2d   : > { %v7166_v63 = vpop.f32.mrf.mxu1  ;;  %v7046_v18 = vpop.f32.mrf.mxu0  ;;  %v7463_v4 = vld [vmem:[#allocation4 + $0x2b0] sm:$0xff] }
 0xc2e   : > { %7182 = vst.msk [vmem:[#allocation4 + $0x2b8] sm:$0xff] %vm2362_vm0, %v7166_v63  ;;  %7784 = vmatmul.f32.gmra.mxu3 %v7209_v0  ;;  %v7199_v0 = vld [vmem:[%s16531_s11 + $0x70] sm:$0xff]  ;;  %v7234_v63 = vld [vmem:[%s16531_s11 + $0x188] sm:$0xff] }
 0xc2f   : > { %7062 = vst.msk [vmem:[#allocation4 + $0x218] sm:$0xff] %vm2362_vm0, %v7046_v18  ;;  %v7194_v18 = vld [vmem:[%s16531_s11 + $0x48] sm:$0xff] }
 0xc32   : > { %v6866_v26 = vpop.f32.mrf.mxu2  ;;  %v6986_v38 = vpop.f32.mrf.mxu3  ;;  %7888 = vmatmul.f32.gmra.mxu0 %v7192_v23  ;;  %v7413_v8 = vld [vmem:[#allocation4 + $0x120] sm:$0xff] }
 0xc33   : > { %6882 = vst.msk [vmem:[#allocation4 + $0x128] sm:$0xff] %vm2362_vm0, %v6866_v26  ;;  %v7433_v56 = vld [vmem:[#allocation4 + $0x1c0] sm:$0xff] }
 0xc34   : > { %7002 = vst.msk [vmem:[#allocation4 + $0x1c8] sm:$0xff] %vm2362_vm0, %v6986_v38  ;;  %v7257_v26 = vld [vmem:[%s16531_s11 + $0x240] sm:$0xff] }
 0xc35   : > { %v7169_v5 = vpop.f32.mrf.mxu1  ;;  %v7049_v1 = vpop.f32.mrf.mxu0  ;;  %v7464_v57 = vld [vmem:[#allocation4 + $0x2b8] sm:$0xff]  ;;  %v7205_v38 = vld [vmem:[%s16531_s11 + $0xa0] sm:$0xff] }
 0xc36   : > { %7183 = vst.msk [vmem:[#allocation4 + $0x2c0] sm:$0xff] %vm2362_vm0, %v7169_v5  ;;  %7787 = vmatmul.f32.gmra.mxu3 %v7215_v52  ;;  %v7240_v52 = vld [vmem:[%s16531_s11 + $0x1b8] sm:$0xff] }
 0xc37   : > { %7063 = vst.msk [vmem:[#allocation4 + $0x220] sm:$0xff] %vm2362_vm0, %v7049_v1  ;;  %v7200_v5 = vld [vmem:[%s16531_s11 + $0x78] sm:$0xff] }
 0xc3a   : > { %v6869_v36 = vpop.f32.mrf.mxu2  ;;  %v6989_v33 = vpop.f32.mrf.mxu3  ;;  %7891 = vmatmul.f32.gmra.mxu0 %v7198_v2  ;;  %v7414_v32 = vld [vmem:[#allocation4 + $0x128] sm:$0xff]  ;;  %v7263_v2 = vld [vmem:[%s16531_s11 + $0x270] sm:$0xff] }
 0xc3b   : > { %6883 = vst.msk [vmem:[#allocation4 + $0x130] sm:$0xff] %vm2362_vm0, %v6869_v36  ;;  %v7434_v15 = vld [vmem:[#allocation4 + $0x1c8] sm:$0xff]  ;;  %v7211_v36 = vld [vmem:[%s16531_s11 + $0xd0] sm:$0xff] }
 0xc3c   : > { %7003 = vst.msk [vmem:[#allocation4 + $0x1d0] sm:$0xff] %vm2362_vm0, %v6989_v33  ;;  %v7246_v33 = vld [vmem:[%s16531_s11 + $0x1e8] sm:$0xff] }
 0xc3d   : > { %v7172_v41 = vpop.f32.mrf.mxu1  ;;  %v7052_v11 = vpop.f32.mrf.mxu0  ;;  %v7465_v30 = vld [vmem:[#allocation4 + $0x2c0] sm:$0xff] }
 0xc3e   : > { %7184 = vst.msk [vmem:[#allocation4 + $0x2c8] sm:$0xff] %vm2362_vm0, %v7172_v41  ;;  %7790 = vmatmul.f32.gmra.mxu3 %v7221_v44  ;;  %v7206_v44 = vld [vmem:[%s16531_s11 + $0xa8] sm:$0xff] }
 0xc3f   : > { %7064 = vst.msk [vmem:[#allocation4 + $0x228] sm:$0xff] %vm2362_vm0, %v7052_v11  ;;  %v7269_v11 = vld [vmem:[%s16531_s11 + $0x2a0] sm:$0xff] }
 0xc42   : > { %v6872_v51 = vpop.f32.mrf.mxu2  ;;  %v6992_v59 = vpop.f32.mrf.mxu3  ;;  %7894 = vmatmul.f32.gmra.mxu0 %v7204_v29  ;;  %v7415_v25 = vld [vmem:[#allocation4 + $0x130] sm:$0xff]  ;;  %v7217_v29 = vld [vmem:[%s16531_s11 + $0x100] sm:$0xff] }
 0xc43   : > { %6884 = vst.msk [vmem:[#allocation4 + $0x138] sm:$0xff] %vm2362_vm0, %v6872_v51  ;;  %v7435_v61 = vld [vmem:[#allocation4 + $0x1d0] sm:$0xff]  ;;  %v7252_v51 = vld [vmem:[%s16531_s11 + $0x218] sm:$0xff] }
 0xc44   : > { %7004 = vst.msk [vmem:[#allocation4 + $0x1d8] sm:$0xff] %vm2362_vm0, %v6992_v59  ;;  %v7212_v59 = vld [vmem:[%s16531_s11 + $0xd8] sm:$0xff] }
 0xc45   : > { %v7466_v55 = vld [vmem:[#allocation4 + $0x2c8] sm:$0xff] }
 0xc46   : > { %8327 = vmatpush.msrb.mxu0 %v7466_v55  ;;  %7793 = vmatmul.f32.gmra.mxu3 %v7227_v16  ;;  %v7275_v55 = vld [vmem:[%s16531_s11 + $0x2d0] sm:$0xff] }
 0xc48   : > { %8328 = vmatpush.msrb.mxu0 %v7465_v30  ;;  %v7223_v30 = vld [vmem:[%s16531_s11 + $0x130] sm:$0xff] }
 0xc4a   : > { %8329 = vmatpush.msrb.mxu0 %v7464_v57  ;;  %v7085_v40 = vpop.f32.mrf.mxu2  ;;  %v7416_v47 = vld [vmem:[#allocation4 + $0x138] sm:$0xff]  ;;  %v7218_v57 = vld [vmem:[%s16531_s11 + $0x108] sm:$0xff] }
 0xc4b   : > { %7115 = vst.msk [vmem:[#allocation4 + $0x230] sm:$0xff] %vm2362_vm0, %v7085_v40  ;;  %7897 = vmatmul.f32.gmra.mxu0 %v7210_v50  ;;  %7990 = vmatpush.msrb.mxu2 %v7416_v47  ;;  %v7436_v28 = vld [vmem:[#allocation4 + $0x1d8] sm:$0xff]  ;;  %v7258_v50 = vld [vmem:[%s16531_s11 + $0x248] sm:$0xff]  ;;  %v15518_v40 = vpop.permute.xlu2 %7566 }
 0xc4c   : > { %8099 = vmatpush.msra.mxu1 %v7436_v28  ;;  %8330 = vmatpush.msrb.mxu0 %v7463_v4  ;;  %v7281_v28 = vld [vmem:[%s16531_s11 + $0x300] sm:$0xff] }
 0xc4d   : > { %7991 = vmatpush.msrb.mxu2 %v7415_v25  ;;  %v7229_v4 = vld [vmem:[%s16531_s11 + $0x160] sm:$0xff]  ;;  %v7264_v25 = vld [vmem:[%s16531_s11 + $0x278] sm:$0xff] }
 0xc4e   : > { %8100 = vmatpush.msra.mxu1 %v7435_v61  ;;  %8331 = vmatpush.msrb.mxu0 %v7462_v35  ;;  %v15533_v61 = vpop.permute.xlu0 %7576 }
 0xc4f   : > { %7796 = vmatmul.f32.gmra.mxu3 %v7233_v46  ;;  %7992 = vmatpush.msrb.mxu2 %v7414_v32  ;;  %v7224_v46 = vld [vmem:[%s16531_s11 + $0x138] sm:$0xff] }
 0xc50   : > { %8101 = vmatpush.msra.mxu1 %v7434_v15  ;;  %8332 = vmatpush.msrb.mxu0 %v7461_v58  ;;  %v7287_v58 = vld [vmem:[%s16531_s11 + $0x330] sm:$0xff] }
 0xc51   : > { %7993 = vmatpush.msrb.mxu2 %v7413_v8  ;;  %v7235_v8 = vld [vmem:[%s16531_s11 + $0x190] sm:$0xff] }
 0xc52   : > { %8102 = vmatpush.msra.mxu1 %v7433_v56  ;;  %8333 = vmatpush.msrb.mxu0 %v7460_v37  ;;  %v7088_v49 = vpop.f32.mrf.mxu2  ;;  %v7230_v56 = vld [vmem:[%s16531_s11 + $0x168] sm:$0xff] }
 0xc53   : > { %7116 = vst.msk [vmem:[#allocation4 + $0x238] sm:$0xff] %vm2362_vm0, %v7088_v49  ;;  %7900 = vmatmul.f32.gmra.mxu0 %v7216_v45  ;;  %7994 = vmatpush.msrb.mxu2 %v7412_v60  ;;  %v15537_v15 = vpop.permute.xlu2 %7656  ;;  %v7270_v45 = vld [vmem:[%s16531_s11 + $0x2a8] sm:$0xff] }
 0xc54   : > { %8103 = vmatpush.msra.mxu1 %v7432_v20  ;;  %8334 = vmatpush.msrb.mxu0 %v7459_v54  ;;  %16656 = vst [vmem:[#allocation27_spill] sm:$0xff] %v15537_v15  ;;  %v7293_v20 = vld [vmem:[%s16531_s11 + $0x360] sm:$0xff] }
 0xc55   : > { %7995 = vmatpush.msrb.mxu2 %v7411_v10 }
 0xc56   : > { %8104 = vmatpush.msra.mxu1 %v7431_v13  ;;  %8335 = vmatpush.msrb.mxu0 %v7458_v14  ;;  %v15554_v60 = vpop.permute.xlu0 %7561  ;;  %v7241_v13 = vld [vmem:[%s16531_s11 + $0x1c0] sm:$0xff]  ;;  %v7276_v14 = vld [vmem:[%s16531_s11 + $0x2d8] sm:$0xff] }
 0xc57   : > { %7799 = vmatmul.f32.gmra.mxu3 %v7239_v24  ;;  %7996 = vmatpush.msrb.mxu2 %v7410_v3  ;;  %v7236_v3 = vld [vmem:[%s16531_s11 + $0x198] sm:$0xff] }
 0xc58   : > { %8105 = vmatpush.msra.mxu1 %v7430_v62  ;;  %8336 = vmatpush.msrb.mxu0 %v7457_v19 }
 0xc59   : > { %7997 = vmatpush.msrb.mxu2 %v7409_v27 }
 0xc5a   : > { %8106 = vmatpush.msra.mxu1 %v7429_v7  ;;  %v7091_v53 = vpop.f32.mrf.mxu2  ;;  %7998 = vmatmul.f32.vlgmr.msrb.gmra.mxu2 %v7187_v12  ;;  %v15572_v12 = vpop.permute.xlu1 %7571 }
 0xc5b   : > { %7117 = vst.msk [vmem:[#allocation4 + $0x240] sm:$0xff] %vm2362_vm0, %v7091_v53  ;;  %7903 = vmatmul.f32.gmra.mxu0 %v7222_v22  ;;  %v15559_v54 = vpop.permute.xlu2 %7546  ;;  %v7299_v22 = vld [vmem:[%s16531_s11 + $0x390] sm:$0xff] }
 0xc5c   : > { %8107 = vmatpush.msra.mxu1 %v7428_v6  ;;  %16657 = vst [vmem:[#allocation41_spill] sm:$0xff] %v15559_v54 }
 0xc5e   : > { %8108 = vmatpush.msra.mxu1 %v7427_v48  ;;  %v15577_v7 = vpop.permute.xlu0 %7551 }
 0xc5f   : > { %7802 = vmatmul.f32.gmra.mxu3 %v7245_v39  ;;  %16658 = vst [vmem:[#allocation29_spill] sm:$0xff] %v15577_v7 }
 0xc60   : > { %8109 = vmatpush.msra.mxu1 %v7426_v34  ;;  %v7247_v34 = vld [vmem:[%s16531_s11 + $0x1f0] sm:$0xff] }
 0xc62   : > { %8110 = vmatpush.msra.mxu1 %v7425_v31  ;;  %v7094_v9 = vpop.f32.mrf.mxu2  ;;  %8001 = vmatmul.f32.gmra.mxu2 %v7193_v43  ;;  %v7282_v43 = vld [vmem:[%s16531_s11 + $0x308] sm:$0xff]  ;;  %v7449_v31 = vld [vmem:[#allocation4 + $0x240] sm:$0xff] }
 0xc63   : > { %7118 = vst.msk [vmem:[#allocation4 + $0x248] sm:$0xff] %vm2362_vm0, %v7094_v9  ;;  %7906 = vmatmul.f32.gmra.mxu0 %v7228_v17  ;;  %8111 = vmatmul.f32.vlgmr.msra.gmra.mxu1 %v7188_v42  ;;  %v15579_v6 = vpop.permute.xlu2 %7641  ;;  %v7242_v17 = vld [vmem:[%s16531_s11 + $0x1c8] sm:$0xff]  ;;  %v7448_v9 = vld [vmem:[#allocation4 + $0x238] sm:$0xff] }
 0xc64   : > { %16659 = vst [vmem:[#allocation43_spill] sm:$0xff] %v15579_v6 }
 0xc67   : > { %7805 = vmatmul.f32.gmra.mxu3 %v7251_v21  ;;  %v7305_v21 = vld [vmem:[%s16531_s11 + $0x3c0] sm:$0xff] }
 0xc6a   : > { %v7097_v23 = vpop.f32.mrf.mxu2  ;;  %8004 = vmatmul.f32.gmra.mxu2 %v7199_v0  ;;  %v7450_v48 = vld [vmem:[#allocation4 + $0x248] sm:$0xff]  ;;  %v15597_v0 = vpop.permute.xlu1 %7556 }
 0xc6b   : > { %7119 = vst.msk [vmem:[#allocation4 + $0x250] sm:$0xff] %vm2362_vm0, %v7097_v23  ;;  %7909 = vmatmul.f32.gmra.mxu0 %v7234_v63  ;;  %8114 = vmatmul.f32.gmra.mxu1 %v7194_v18  ;;  %v7447_v63 = vld [vmem:[#allocation4 + $0x230] sm:$0xff]  ;;  %v15599_v18 = vpop.permute.xlu0 %7646 }
 0xc6c   : > { %16660 = vst [vmem:[#allocation30_spill] sm:$0xff] %v15597_v0 }
 0xc6d   : > { %16661 = vst [vmem:[#allocation45_spill] sm:$0xff] %v15599_v18  ;;  %v7361_v18 = vld [vmem:[%s16531_s11 + $0x580] sm:$0xff] }
 0xc6f   : > { %7808 = vmatmul.f32.gmra.mxu3 %v7257_v26  ;;  %v7446_v26 = vld [vmem:[#allocation4 + $0x228] sm:$0xff] }
 0xc72   : > { %v7100_v1 = vpop.f32.mrf.mxu2  ;;  %8007 = vmatmul.f32.gmra.mxu2 %v7205_v38  ;;  %v7451_v53 = vld [vmem:[#allocation4 + $0x250] sm:$0xff]  ;;  %v7253_v38 = vld [vmem:[%s16531_s11 + $0x220] sm:$0xff] }
 0xc73   : > { %7120 = vst.msk [vmem:[#allocation4 + $0x258] sm:$0xff] %vm2362_vm0, %v7100_v1  ;;  %7912 = vmatmul.f32.gmra.mxu0 %v7240_v52  ;;  %8117 = vmatmul.f32.gmra.mxu1 %v7200_v5  ;;  %v7288_v52 = vld [vmem:[%s16531_s11 + $0x338] sm:$0xff]  ;;  %v15612_v1 = vpop.permute.xlu2 %7531 }
 0xc74   : > { %v7248_v5 = vld [vmem:[%s16531_s11 + $0x1f8] sm:$0xff] }
 0xc77   : > { %7811 = vmatmul.f32.gmra.mxu3 %v7263_v2 }
 0xc7a   : > { %v7103_v41 = vpop.f32.mrf.mxu2  ;;  %8010 = vmatmul.f32.gmra.mxu2 %v7211_v36  ;;  %v7452_v27 = vld [vmem:[#allocation4 + $0x258] sm:$0xff]  ;;  %v7445_v36 = vld [vmem:[#allocation4 + $0x220] sm:$0xff] }
 0xc7b   : > { %7121 = vst.msk [vmem:[#allocation4 + $0x260] sm:$0xff] %vm2362_vm0, %v7103_v41  ;;  %7915 = vmatmul.f32.gmra.mxu0 %v7246_v33  ;;  %8120 = vmatmul.f32.gmra.mxu1 %v7206_v44  ;;  %v7444_v33 = vld [vmem:[#allocation4 + $0x218] sm:$0xff]  ;;  %v7311_v44 = vld [vmem:[%s16531_s11 + $0x3f0] sm:$0xff] }
 0xc7c   : > { %v7443_v41 = vld [vmem:[#allocation4 + $0x210] sm:$0xff] }
 0xc7f   : > { %7814 = vmatmul.f32.gmra.mxu3 %v7269_v11  ;;  %v15619_v11 = vpop.permute.xlu1 %7651 }
 0xc80   : > { %16662 = vst [vmem:[#allocation32_spill] sm:$0xff] %v15619_v11 }
 0xc82   : > { %v7106_v16 = vpop.f32.mrf.mxu2  ;;  %8013 = vmatmul.f32.gmra.mxu2 %v7217_v29  ;;  %v7453_v19 = vld [vmem:[#allocation4 + $0x260] sm:$0xff] }
 0xc83   : > { %7122 = vst.msk [vmem:[#allocation4 + $0x268] sm:$0xff] %vm2362_vm0, %v7106_v16  ;;  %7918 = vmatmul.f32.gmra.mxu0 %v7252_v51  ;;  %8123 = vmatmul.f32.gmra.mxu1 %v7212_v59  ;;  %v7442_v51 = vld [vmem:[#allocation4 + $0x208] sm:$0xff]  ;;  %v7259_v59 = vld [vmem:[%s16531_s11 + $0x250] sm:$0xff] }
 0xc84   : > { %v7294_v16 = vld [vmem:[%s16531_s11 + $0x368] sm:$0xff] }
 0xc87   : > { %7817 = vmatmul.f32.gmra.mxu3 %v7275_v55  ;;  %v7254_v55 = vld [vmem:[%s16531_s11 + $0x228] sm:$0xff] }
 0xc8a   : > { %v7109_v47 = vpop.f32.mrf.mxu2  ;;  %8016 = vmatmul.f32.gmra.mxu2 %v7223_v30  ;;  %v7454_v24 = vld [vmem:[#allocation4 + $0x268] sm:$0xff]  ;;  %v15632_v30 = vpop.permute.xlu0 %7536 }
 0xc8b   : > { %7123 = vst.msk [vmem:[#allocation4 + $0x270] sm:$0xff] %vm2362_vm0, %v7109_v47  ;;  %7921 = vmatmul.f32.gmra.mxu0 %v7258_v50  ;;  %8126 = vmatmul.f32.gmra.mxu1 %v7218_v57  ;;  %v7441_v57 = vld [vmem:[#allocation4 + $0x200] sm:$0xff]  ;;  %v15636_v47 = vpop.permute.xlu2 %7626 }
 0xc8c   : > { %16663 = vst [vmem:[#allocation47_spill] sm:$0xff] %v15636_v47  ;;  %v7355_v47 = vld [vmem:[%s16531_s11 + $0x550] sm:$0xff] }
 0xc8f   : > { %7820 = vmatmul.f32.gmra.mxu3 %v7281_v28  ;;  %v7317_v28 = vld [vmem:[%s16531_s11 + $0x420] sm:$0xff] }
 0xc91   : > { %v15535_v35 = vpop.f32.mrf.mxu3 }
 0xc92   : > { %v7112_v32 = vpop.f32.mrf.mxu2  ;;  %8019 = vmatmul.f32.gmra.mxu2 %v7229_v4  ;;  %v7455_v10 = vld [vmem:[#allocation4 + $0x270] sm:$0xff] }
 0xc93   : > { %7124 = vst.msk [vmem:[#allocation4 + $0x278] sm:$0xff] %vm2362_vm0, %v7112_v32  ;;  %7924 = vmatmul.f32.gmra.mxu0 %v7264_v25  ;;  %8129 = vmatmul.f32.gmra.mxu1 %v7224_v46  ;;  %v7265_v25 = vld [vmem:[%s16531_s11 + $0x280] sm:$0xff]  ;;  %v7300_v46 = vld [vmem:[%s16531_s11 + $0x398] sm:$0xff] }
 0xc94   : > { %v7260_v32 = vld [vmem:[%s16531_s11 + $0x258] sm:$0xff] }
 0xc97   : > { %7823 = vmatmul.f32.gmra.mxu3 %v7287_v58  ;;  %v15652_v58 = vpop.permute.xlu1 %7541 }
 0xc99   : > { %v15552_v37 = vpop.f32.mrf.mxu3 }
 0xc9a   : > { %8022 = vmatmul.f32.gmra.mxu2 %v7235_v8  ;;  %v7456_v49 = vld [vmem:[#allocation4 + $0x278] sm:$0xff] }
 0xc9b   : > { %7927 = vmatmul.f32.gmra.mxu0 %v7270_v45  ;;  %8132 = vmatmul.f32.gmra.mxu1 %v7230_v56  ;;  %v15656_v45 = vpop.permute.xlu0 %7631  ;;  %v7323_v56 = vld [vmem:[%s16531_s11 + $0x450] sm:$0xff] }
 0xc9c   : > { %8208 = vmatpush.msra.mxu3 %v7456_v49  ;;  %16664 = vst [vmem:[#allocation34_spill] sm:$0xff] %v15656_v45  ;;  %v15661_v49 = vpop.permute.xlu2 %7516 }
 0xc9e   : > { %8209 = vmatpush.msra.mxu3 %v7455_v10 }
 0xc9f   : > { %7826 = vmatmul.f32.gmra.mxu3 %v7293_v20  ;;  %v7271_v20 = vld [vmem:[%s16531_s11 + $0x2b0] sm:$0xff] }
 0xca0   : > { %8210 = vmatpush.msra.mxu3 %v7454_v24  ;;  %v7306_v24 = vld [vmem:[%s16531_s11 + $0x3c8] sm:$0xff] }
 0xca1   : > { %v15570_v62 = vpop.f32.mrf.mxu3 }
 0xca2   : > { %8211 = vmatpush.msra.mxu3 %v7453_v19  ;;  %8025 = vmatmul.f32.gmra.mxu2 %v7241_v13  ;;  %v7266_v13 = vld [vmem:[%s16531_s11 + $0x288] sm:$0xff]  ;;  %v7329_v19 = vld [vmem:[%s16531_s11 + $0x480] sm:$0xff] }
 0xca3   : > { %7930 = vmatmul.f32.gmra.mxu0 %v7276_v14  ;;  %8135 = vmatmul.f32.gmra.mxu1 %v7236_v3  ;;  %v15676_v3 = vpop.permute.xlu1 %7636 }
 0xca4   : > { %8212 = vmatpush.msra.mxu3 %v7452_v27  ;;  %16665 = vst [vmem:[#allocation50_spill] sm:$0xff] %v15676_v3  ;;  %v15681_v27 = vpop.permute.xlu0 %7521 }
 0xca6   : > { %8213 = vmatpush.msra.mxu3 %v7451_v53  ;;  %v7277_v53 = vld [vmem:[%s16531_s11 + $0x2e0] sm:$0xff] }
 0xca7   : > { %7829 = vmatmul.f32.gmra.mxu3 %v7299_v22  ;;  %v15581_v39 = vpop.f32.mrf.mxu0  ;;  %v15683_v22 = vpop.permute.xlu2 %7611 }
 0xca8   : > { %8214 = vmatpush.msra.mxu3 %v7450_v48 }
 0xca9   : > { %v15592_v42 = vpop.f32.mrf.mxu3 }
 0xcaa   : > { %8215 = vmatpush.msra.mxu3 %v7449_v31  ;;  %8028 = vmatmul.f32.gmra.mxu2 %v7247_v34  ;;  %v7312_v34 = vld [vmem:[%s16531_s11 + $0x3f8] sm:$0xff]  ;;  %v7335_v31 = vld [vmem:[%s16531_s11 + $0x4b0] sm:$0xff] }
 0xcab   : > { %7933 = vmatmul.f32.gmra.mxu0 %v7282_v43  ;;  %8138 = vmatmul.f32.gmra.mxu1 %v7242_v17  ;;  %v7272_v43 = vld [vmem:[%s16531_s11 + $0x2b8] sm:$0xff] }
 0xcac   : > { %8216 = vmatpush.msra.mxu3 %v7448_v9  ;;  %v15701_v9 = vpop.permute.xlu1 %7526 }
 0xcae   : > { %8217 = vmatpush.msra.mxu3 %v7447_v63  ;;  %v7283_v63 = vld [vmem:[%s16531_s11 + $0x310] sm:$0xff] }
 0xcaf   : > { %7832 = vmatmul.f32.gmra.mxu3 %v7305_v21  ;;  %v15601_v23 = vpop.f32.mrf.mxu0  ;;  %v15703_v21 = vpop.permute.xlu0 %7616 }
 0xcb0   : > { %8218 = vmatpush.msra.mxu3 %v7446_v26 }
 0xcb1   : > { %v15614_v2 = vpop.f32.mrf.mxu3 }
 0xcb2   : > { %8219 = vmatpush.msra.mxu3 %v7445_v36  ;;  %8031 = vmatmul.f32.gmra.mxu2 %v7253_v38  ;;  %v7318_v38 = vld [vmem:[%s16531_s11 + $0x428] sm:$0xff] }
 0xcb3   : > { %7936 = vmatmul.f32.gmra.mxu0 %v7288_v52  ;;  %8141 = vmatmul.f32.gmra.mxu1 %v7248_v5  ;;  %v7278_v52 = vld [vmem:[%s16531_s11 + $0x2e8] sm:$0xff]  ;;  %v7502_v5 = vpop.permute.xlu2 %7501 }
 0xcb4   : > { %8220 = vmatpush.msra.mxu3 %v7444_v33  ;;  %v7774_v36 = vadd.f32 %v15535_v35, %v7502_v5  ;;  %v7289_v35 = vld [vmem:[%s16531_s11 + $0x340] sm:$0xff] }
 0xcb6   : > { %8221 = vmatpush.msra.mxu3 %v7443_v41  ;;  %v7341_v41 = vld [vmem:[%s16531_s11 + $0x4e0] sm:$0xff] }
 0xcb7   : > { %7835 = vmatmul.f32.gmra.mxu3 %v7311_v44  ;;  %v15621_v29 = vpop.f32.mrf.mxu0  ;;  %v7887_v44 = vadd.f32 %v15581_v39, %v7774_v36  ;;  %v7324_v39 = vld [vmem:[%s16531_s11 + $0x458] sm:$0xff] }
 0xcb8   : > { %8222 = vmatpush.msra.mxu3 %v7442_v51 }
 0xcb9   : > { %v15634_v50 = vpop.f32.mrf.mxu3 }
 0xcba   : > { %8223 = vmatpush.msra.mxu3 %v7441_v57  ;;  %8034 = vmatmul.f32.gmra.mxu2 %v7259_v59 }
 0xcbb   : > { %7939 = vmatmul.f32.gmra.mxu0 %v7294_v16  ;;  %8144 = vmatmul.f32.gmra.mxu1 %v7254_v55  ;;  %v15725_v16 = vpop.permute.xlu1 %7621 }
 0xcbf   : > { %7838 = vmatmul.f32.gmra.mxu3 %v7317_v28  ;;  %v15641_v4 = vpop.f32.mrf.mxu0  ;;  %v7284_v28 = vld [vmem:[%s16531_s11 + $0x318] sm:$0xff] }
 0xcc1   : > { %v15654_v8 = vpop.f32.mrf.mxu3 }
 0xcc2   : > { %8037 = vmatmul.f32.gmra.mxu2 %v7265_v25  ;;  %v7507_v25 = vpop.permute.xlu0 %7506 }
 0xcc3   : > { %7942 = vmatmul.f32.gmra.mxu0 %v7300_v46  ;;  %8147 = vmatmul.f32.gmra.mxu1 %v7260_v32  ;;  %v7777_v46 = vadd.f32 %v15552_v37, %v7507_v25  ;;  %v7359_v25 = vld [vmem:[%s16531_s11 + $0x570] sm:$0xff] }
 0xcc7   : > { %7841 = vmatmul.f32.gmra.mxu3 %v7323_v56  ;;  %v7890_v56 = vadd.f32 %v15601_v23, %v7777_v46  ;;  %v7330_v23 = vld [vmem:[%s16531_s11 + $0x488] sm:$0xff] }
 0xcc8   : > { %v15666_v10 = vpop.f32.mrf.mxu0 }
 0xcc9   : > { %v15674_v14 = vpop.f32.mrf.mxu3 }
 0xcca   : > { %8040 = vmatmul.f32.gmra.mxu2 %v7271_v20  ;;  %v7347_v20 = vld [vmem:[%s16531_s11 + $0x510] sm:$0xff]  ;;  %v7602_v54 = vpop.permute.xlu0 %7601 }
 0xccb   : > { %7945 = vmatmul.f32.gmra.mxu0 %v7306_v24  ;;  %8150 = vmatmul.f32.gmra.mxu1 %v7266_v13 }
 0xccf   : > { %7844 = vmatmul.f32.gmra.mxu3 %v7329_v19  ;;  %v7295_v19 = vld [vmem:[%s16531_s11 + $0x370] sm:$0xff] }
 0xcd0   : > { %v15688_v48 = vpop.f32.mrf.mxu0 }
 0xcd2   : > { %v15696_v17 = vpop.f32.mrf.mxu3  ;;  %8043 = vmatmul.f32.gmra.mxu2 %v7277_v53 }
 0xcd3   : > { %7948 = vmatmul.f32.gmra.mxu0 %v7312_v34  ;;  %8153 = vmatmul.f32.gmra.mxu1 %v7272_v43  ;;  %v7290_v34 = vld [vmem:[%s16531_s11 + $0x348] sm:$0xff]  ;;  %v7512_v43 = vpop.permute.xlu1 %7511 }
 0xcd7   : > { %7847 = vmatmul.f32.gmra.mxu3 %v7335_v31  ;;  %v7780_v31 = vadd.f32 %v15570_v62, %v7512_v43  ;;  %v7365_v43 = vld [vmem:[%s16531_s11 + $0x5a0] sm:$0xff] }
 0xcd8   : > { %v15708_v26 = vpop.f32.mrf.mxu0 }
 0xcda   : > { %v15717_v33 = vpop.f32.mrf.mxu3  ;;  %8046 = vmatmul.f32.gmra.mxu2 %v7283_v63 }
 0xcdb   : > { %16666 = vst [vmem:[#allocation36_spill] sm:$0xff] %v15717_v33  ;;  %7951 = vmatmul.f32.gmra.mxu0 %v7318_v38  ;;  %8156 = vmatmul.f32.gmra.mxu1 %v7278_v52  ;;  %v7893_v38 = vadd.f32 %v15621_v29, %v7780_v31  ;;  %v7353_v52 = vld [vmem:[%s16531_s11 + $0x540] sm:$0xff]  ;;  %v7336_v29 = vld [vmem:[%s16531_s11 + $0x4b8] sm:$0xff] }
 0xcdd   : > { %v7999_v51 = vpop.f32.mrf.mxu2 }
 0xcde   : > { %v15723_v59 = vadd.f32 %v7999_v51, %v7887_v44  ;;  %v7301_v44 = vld [vmem:[%s16531_s11 + $0x3a0] sm:$0xff]  ;;  %v7296_v51 = vld [vmem:[%s16531_s11 + $0x378] sm:$0xff] }
 0xcdf   : > { %7850 = vmatmul.f32.gmra.mxu3 %v7341_v41 }
 0xce0   : > { %v15730_v55 = vpop.f32.mrf.mxu0  ;;  %v15732_v57 = vpop.f32.mrf.mxu1 }
 0xce2   : > { %v15741_v32 = vpop.f32.mrf.mxu3  ;;  %8049 = vmatmul.f32.gmra.mxu2 %v7289_v35  ;;  %v7783_v35 = vadd.f32 %v15592_v42, %v15661_v49 }
 0xce3   : > { %16667 = vst [vmem:[#allocation38_spill] sm:$0xff] %v15741_v32  ;;  %7954 = vmatmul.f32.gmra.mxu0 %v7324_v39  ;;  %8159 = vmatmul.f32.gmra.mxu1 %v7284_v28 }
 0xce4   : > { %v7896_v28 = vadd.f32 %v15641_v4, %v7783_v35  ;;  %v7342_v4 = vld [vmem:[%s16531_s11 + $0x4e8] sm:$0xff]  ;;  %v7371_v35 = vld [vmem:[%s16531_s11 + $0x5d0] sm:$0xff] }
 0xce5   : > { %v8002_v24 = vpop.f32.mrf.mxu2 }
 0xce6   : > { %v15747_v13 = vadd.f32 %v8002_v24, %v7890_v56  ;;  %v7302_v24 = vld [vmem:[%s16531_s11 + $0x3a8] sm:$0xff] }
 0xce7   : > { %7853 = vmatmul.f32.gmra.mxu3 %v7347_v20  ;;  %v7307_v20 = vld [vmem:[%s16531_s11 + $0x3d0] sm:$0xff] }
 0xce8   : > { %v15752_v37 = vpop.f32.mrf.mxu0  ;;  %v15754_v53 = vpop.f32.mrf.mxu1 }
 0xcea   : > { %v15763_v63 = vpop.f32.mrf.mxu3  ;;  %8052 = vmatmul.f32.gmra.mxu2 %v7295_v19  ;;  %v7786_v19 = vadd.f32 %v15614_v2, %v15681_v27 }
 0xceb   : > { %16668 = vst [vmem:[#allocation40_spill] sm:$0xff] %v15763_v63  ;;  %7957 = vmatmul.f32.gmra.mxu0 %v7330_v23  ;;  %8162 = vmatmul.f32.gmra.mxu1 %v7290_v34 }
 0xcec   : > { %v7899_v34 = vadd.f32 %v15666_v10, %v7786_v19  ;;  %v7348_v10 = vld [vmem:[%s16531_s11 + $0x518] sm:$0xff] }
 0xced   : > { %v8005_v5 = vpop.f32.mrf.mxu2 }
 0xcee   : > { %v15769_v36 = vadd.f32 %v8005_v5, %v7893_v38  ;;  %v7308_v5 = vld [vmem:[%s16531_s11 + $0x3d8] sm:$0xff] }
 0xcef   : > { %7856 = vmatmul.f32.gmra.mxu3 %v7353_v52  ;;  %v7313_v52 = vld [vmem:[%s16531_s11 + $0x400] sm:$0xff] }
 0xcf0   : > { %v15774_v62 = vpop.f32.mrf.mxu0  ;;  %v15776_v41 = vpop.f32.mrf.mxu1 }
 0xcf1   : > { %16669 = vst [vmem:[#allocation42_spill] sm:$0xff] %v15774_v62 }
 0xcf2   : > { %v15786_v39 = vpop.f32.mrf.mxu3  ;;  %8055 = vmatmul.f32.gmra.mxu2 %v7301_v44  ;;  %v7789_v44 = vadd.f32 %v15634_v50, %v15701_v9 }
 0xcf3   : > { %7960 = vmatmul.f32.gmra.mxu0 %v7336_v29  ;;  %8165 = vmatmul.f32.gmra.mxu1 %v7296_v51 }
 0xcf4   : > { %v7902_v51 = vadd.f32 %v15688_v48, %v7789_v44  ;;  %v7354_v48 = vld [vmem:[%s16531_s11 + $0x548] sm:$0xff] }
 0xcf5   : > { %v8008_v46 = vpop.f32.mrf.mxu2 }
 0xcf6   : > { %v15792_v56 = vadd.f32 %v8008_v46, %v7896_v28  ;;  %v7319_v46 = vld [vmem:[%s16531_s11 + $0x430] sm:$0xff] }
 0xcf7   : > { %7859 = vmatmul.f32.gmra.mxu3 %v7359_v25 }
 0xcf8   : > { %v15797_v42 = vpop.f32.mrf.mxu0  ;;  %v15799_v49 = vpop.f32.mrf.mxu1 }
 0xcf9   : > { %16670 = vst [vmem:[#allocation44_spill] sm:$0xff] %v15797_v42 }
 0xcfa   : > { %v15809_v23 = vpop.f32.mrf.mxu3  ;;  %8058 = vmatmul.f32.gmra.mxu2 %v7307_v20  ;;  %v7314_v20 = vld [vmem:[%s16531_s11 + $0x408] sm:$0xff] }
 0xcfb   : > { %7963 = vmatmul.f32.gmra.mxu0 %v7342_v4  ;;  %8168 = vmatmul.f32.gmra.mxu1 %v7302_v24  ;;  %v7792_v4 = vadd.f32 %v15654_v8, %v15612_v1 }
 0xcfd   : > { %v8011_v31 = vpop.f32.mrf.mxu2  ;;  %v7905_v19 = vadd.f32 %v15708_v26, %v7792_v4  ;;  %v7360_v26 = vld [vmem:[%s16531_s11 + $0x578] sm:$0xff]  ;;  %v7798_v4 = vadd.f32 %v15696_v17, %v15652_v58 }
 0xcfe   : > { %v15815_v38 = vadd.f32 %v8011_v31, %v7899_v34  ;;  %v7189_v34 = vld [vmem:[%s16531_s11 + $0x20] sm:$0xff]  ;;  %v7372_v17 = vld [vmem:[%s16531_s11 + $0x5d8] sm:$0xff] }
 0xcff   : > { %7862 = vmatmul.f32.gmra.mxu3 %v7365_v43 }
 0xd00   : > { %v15820_v2 = vpop.f32.mrf.mxu0  ;;  %v15822_v27 = vpop.f32.mrf.mxu1 }
 0xd01   : > { %16671 = vst [vmem:[#allocation46_spill] sm:$0xff] %v15820_v2  ;;  %v7374_v2 = vld [vmem:[%s16531_s11 + $0x5e8] sm:$0xff] }
 0xd02   : > { %v15832_v29 = vpop.f32.mrf.mxu3  ;;  %8061 = vmatmul.f32.gmra.mxu2 %v7313_v52  ;;  %v7325_v52 = vld [vmem:[%s16531_s11 + $0x460] sm:$0xff] }
 0xd03   : > { %7966 = vmatmul.f32.gmra.mxu0 %v7348_v10  ;;  %8171 = vmatmul.f32.gmra.mxu1 %v7308_v5  ;;  %v7320_v10 = vld [vmem:[%s16531_s11 + $0x438] sm:$0xff]  ;;  %v7795_v5 = vadd.f32 %v15674_v14, %v15632_v30 }
 0xd05   : > { %v8014_v28 = vpop.f32.mrf.mxu2 }
 0xd06   : > { %v15838_v25 = vadd.f32 %v8014_v28, %v7902_v51  ;;  %v7908_v51 = vadd.f32 %v15730_v55, %v7795_v5  ;;  %v7366_v55 = vld [vmem:[%s16531_s11 + $0x5a8] sm:$0xff] }
 0xd07   : > { %7865 = vmatmul.f32.gmra.mxu3 %v7371_v35  ;;  %v7195_v35 = vld [vmem:[%s16531_s11 + $0x50] sm:$0xff] }
 0xd08   : > { %v15843_v50 = vpop.f32.mrf.mxu0  ;;  %v15845_v9 = vpop.f32.mrf.mxu1 }
 0xd09   : > { %16672 = vst [vmem:[#allocation48_spill] sm:$0xff] %v15843_v50 }
 0xd0a   : > { %v15855_v24 = vpop.f32.mrf.mxu3  ;;  %8064 = vmatmul.f32.gmra.mxu2 %v7319_v46 }
 0xd0b   : > { %7969 = vmatmul.f32.gmra.mxu0 %v7354_v48  ;;  %8174 = vmatmul.f32.gmra.mxu1 %v7314_v20  ;;  %v7331_v48 = vld [vmem:[%s16531_s11 + $0x490] sm:$0xff]  ;;  %v7326_v20 = vld [vmem:[%s16531_s11 + $0x468] sm:$0xff] }
 0xd0d   : > { %v8017_v43 = vpop.f32.mrf.mxu2 }
 0xd0e   : > { %v15861_v31 = vadd.f32 %v8017_v43, %v7905_v19  ;;  %v7201_v43 = vld [vmem:[%s16531_s11 + $0x80] sm:$0xff] }
 0xd0f   : > { %8224 = vmatmul.f32.vlgmr.msra.gmra.mxu3 %v7189_v34  ;;  %v7911_v34 = vadd.f32 %v15752_v37, %v7798_v4  ;;  %v7332_v37 = vld [vmem:[%s16531_s11 + $0x498] sm:$0xff] }
 0xd10   : > { %v15866_v1 = vpop.f32.mrf.mxu0  ;;  %v15868_v8 = vpop.f32.mrf.mxu1 }
 0xd12   : > { %v15878_v44 = vpop.f32.mrf.mxu3  ;;  %8067 = vmatmul.f32.gmra.mxu2 %v7325_v52 }
 0xd13   : > { %7972 = vmatmul.f32.gmra.mxu0 %v7360_v26  ;;  %8177 = vmatmul.f32.gmra.mxu1 %v7320_v10  ;;  %v7337_v10 = vld [vmem:[%s16531_s11 + $0x4c0] sm:$0xff] }
 0xd15   : > { %v8020_v28 = vpop.f32.mrf.mxu2 }
 0xd16   : > { %v15884_v46 = vadd.f32 %v8020_v28, %v7908_v51  ;;  %v7207_v28 = vld [vmem:[%s16531_s11 + $0xb0] sm:$0xff] }
 0xd17   : > { %8227 = vmatmul.f32.gmra.mxu3 %v7195_v35 }
 0xd18   : > { %v15889_v30 = vpop.f32.mrf.mxu0  ;;  %v15891_v14 = vpop.f32.mrf.mxu1 }
 0xd1a   : > { %v15901_v19 = vpop.f32.mrf.mxu3  ;;  %8070 = vmatmul.f32.gmra.mxu2 %v7331_v48 }
 0xd1b   : > { %7975 = vmatmul.f32.gmra.mxu0 %v7366_v55  ;;  %8180 = vmatmul.f32.gmra.mxu1 %v7326_v20  ;;  %v7343_v55 = vld [vmem:[%s16531_s11 + $0x4f0] sm:$0xff] }
 0xd1d   : > { %v8023_v52 = vpop.f32.mrf.mxu2 }
 0xd1e   : > { %v8024_v26 = vadd.f32 %v8023_v52, %v7911_v34  ;;  %v7338_v34 = vld [vmem:[%s16531_s11 + $0x4c8] sm:$0xff] }
 0xd1f   : > { %8230 = vmatmul.f32.gmra.mxu3 %v7201_v43  ;;  %v7190_v43 = vld [vmem:[%s16531_s11 + $0x28] sm:$0xff] }
 0xd20   : > { %v15910_v5 = vpop.f32.mrf.mxu0  ;;  %v8136_v58 = vpop.f32.mrf.mxu1 }
 0xd21   : > { %v15918_v51 = vadd.f32 %v8136_v58, %v8024_v26  ;;  %v7213_v26 = vld [vmem:[%s16531_s11 + $0xe0] sm:$0xff] }
 0xd22   : > { %v15920_v35 = vpop.f32.mrf.mxu3  ;;  %8073 = vmatmul.f32.gmra.mxu2 %v7337_v10  ;;  %v7349_v58 = vld [vmem:[%s16531_s11 + $0x520] sm:$0xff] }
 0xd23   : > { %7978 = vmatmul.f32.gmra.mxu0 %v7372_v17  ;;  %8183 = vmatmul.f32.gmra.mxu1 %v7332_v37 }
 0xd25   : > { %v15925_v48 = vpop.f32.mrf.mxu2 }
 0xd26   : > { %16673 = vst [vmem:[#allocation51_spill] sm:$0xff] %v15925_v48 }
 0xd27   : > { %8233 = vmatmul.f32.gmra.mxu3 %v7207_v28  ;;  %v7344_v28 = vld [vmem:[%s16531_s11 + $0x4f8] sm:$0xff] }
 0xd28   : > { %v15930_v20 = vpop.f32.mrf.mxu0  ;;  %v15932_v4 = vpop.f32.mrf.mxu1 }
 0xd29   : > { %16674 = vst [vmem:[#allocation53_spill] sm:$0xff] %v15932_v4  ;;  %v16009_v4 = vpop.permute.xlu1 %7606 }
 0xd2a   : > { %v15940_v52 = vpop.f32.mrf.mxu3  ;;  %8076 = vmatmul.f32.gmra.mxu2 %v7343_v55  ;;  %v7196_v55 = vld [vmem:[%s16531_s11 + $0x58] sm:$0xff] }
 0xd2b   : > { %8186 = vmatmul.f32.gmra.mxu1 %v7338_v34  ;;  %9598 = vmatmul.msk.f32.vlgmr.msrb.gmra.mxu0 %vm7659_vm3, %v7190_v43  ;;  %v7219_v43 = vld [vmem:[%s16531_s11 + $0x110] sm:$0xff] }
 0xd2d   : > { %v15946_v10 = vpop.f32.mrf.mxu2 }
 0xd2e   : > { %16675 = vst [vmem:[#allocation11_spill] sm:$0xff] %v15946_v10 }
 0xd2f   : > { %8236 = vmatmul.f32.gmra.mxu3 %v7213_v26 }
 0xd30   : > { %v15951_v17 = vpop.f32.mrf.mxu0  ;;  %v15953_v37 = vpop.f32.mrf.mxu1 }
 0xd31   : > { %16676 = vst [vmem:[#allocation12_spill] sm:$0xff] %v15953_v37  ;;  %v7597_v62 = vpop.permute.xlu1 %7596 }
 0xd32   : > { %v15961_v34 = vpop.f32.mrf.mxu3  ;;  %8079 = vmatmul.f32.gmra.mxu2 %v7349_v58  ;;  %v7350_v58 = vld [vmem:[%s16531_s11 + $0x528] sm:$0xff] }
 0xd33   : > { %8189 = vmatmul.f32.gmra.mxu1 %v7344_v28  ;;  %9599 = vmatmul.msk.f32.gmra.mxu0 %vm7659_vm3, %v7196_v55  ;;  %v7202_v28 = vld [vmem:[%s16531_s11 + $0x88] sm:$0xff] }
 0xd35   : > { %v15967_v26 = vpop.f32.mrf.mxu2 }
 0xd36   : > { %16677 = vst [vmem:[#allocation13_spill] sm:$0xff] %v15967_v26 }
 0xd37   : > { %8239 = vmatmul.f32.gmra.mxu3 %v7219_v43  ;;  %v7225_v43 = vld [vmem:[%s16531_s11 + $0x140] sm:$0xff] }
 0xd38   : > { %v15972_v45 = vpop.f32.mrf.mxu0  ;;  %v15974_v3 = vpop.f32.mrf.mxu1 }
 0xd39   : > { %16678 = vst [vmem:[#allocation14_spill] sm:$0xff] %v15974_v3  ;;  %v7367_v3 = vld [vmem:[%s16531_s11 + $0x5b0] sm:$0xff] }
 0xd3a   : > { %v15982_v55 = vpop.f32.mrf.mxu3  ;;  %8082 = vmatmul.f32.gmra.mxu2 %v7355_v47  ;;  %v7356_v47 = vld [vmem:[%s16531_s11 + $0x558] sm:$0xff] }
 0xd3b   : > { %8192 = vmatmul.f32.gmra.mxu1 %v7350_v58  ;;  %9600 = vmatmul.msk.f32.gmra.mxu0 %vm7659_vm3, %v7202_v28  ;;  %v7208_v58 = vld [vmem:[%s16531_s11 + $0xb8] sm:$0xff] }
 0xd3d   : > { %v15988_v6 = vpop.f32.mrf.mxu2 }
 0xd3e   : > { %16679 = vst [vmem:[#allocation15_spill] sm:$0xff] %v15988_v6 }
 0xd3f   : > { %8242 = vmatmul.f32.gmra.mxu3 %v7225_v43  ;;  %v7231_v43 = vld [vmem:[%s16531_s11 + $0x170] sm:$0xff] }
 0xd40   : > { %v15993_v15 = vpop.f32.mrf.mxu0  ;;  %v15995_v11 = vpop.f32.mrf.mxu1 }
 0xd41   : > { %16680 = vst [vmem:[#allocation16_spill] sm:$0xff] %v15995_v11 }
 0xd42   : > { %v16003_v28 = vpop.f32.mrf.mxu3  ;;  %8085 = vmatmul.f32.gmra.mxu2 %v7361_v18  ;;  %v7362_v18 = vld [vmem:[%s16531_s11 + $0x588] sm:$0xff] }
 0xd43   : > { %8195 = vmatmul.f32.gmra.mxu1 %v7356_v47  ;;  %9601 = vmatmul.msk.f32.gmra.mxu0 %vm7659_vm3, %v7208_v58  ;;  %v7214_v47 = vld [vmem:[%s16531_s11 + $0xe8] sm:$0xff] }
 0xd45   : > { %v16011_v37 = vpop.f32.mrf.mxu2 }
 0xd46   : > { %16681 = vst [vmem:[#allocation17_spill] sm:$0xff] %v16011_v37 }
 0xd47   : > { %8245 = vmatmul.f32.gmra.mxu3 %v7231_v43  ;;  %v7237_v43 = vld [vmem:[%s16531_s11 + $0x1a0] sm:$0xff] }
 0xd48   : > { %v16016_v48 = vpop.f32.mrf.mxu0  ;;  %v16018_v11 = vpop.f32.mrf.mxu1 }
 0xd49   : > { %16682 = vst [vmem:[#allocation18_spill] sm:$0xff] %v16018_v11  ;;  %v7373_v11 = vld [vmem:[%s16531_s11 + $0x5e0] sm:$0xff] }
 0xd4a   : > { %v16026_v58 = vpop.f32.mrf.mxu3  ;;  %8088 = vmatmul.f32.gmra.mxu2 %v7367_v3  ;;  %v7368_v3 = vld [vmem:[%s16531_s11 + $0x5b8] sm:$0xff] }
 0xd4b   : > { %8198 = vmatmul.f32.gmra.mxu1 %v7362_v18  ;;  %9602 = vmatmul.msk.f32.gmra.mxu0 %vm7659_vm3, %v7214_v47  ;;  %v7220_v18 = vld [vmem:[%s16531_s11 + $0x118] sm:$0xff] }
 0xd4d   : > { %v16032_v10 = vpop.f32.mrf.mxu2 }
 0xd4f   : > { %8248 = vmatmul.f32.gmra.mxu3 %v7237_v43  ;;  %v7243_v43 = vld [vmem:[%s16531_s11 + $0x1d0] sm:$0xff] }
 0xd50   : > { %v16037_v26 = vpop.f32.mrf.mxu0  ;;  %v16039_v42 = vpop.f32.mrf.mxu1 }
 0xd51   : > { %16683 = vst [vmem:[#allocation20_spill] sm:$0xff] %v16039_v42 }
 0xd52   : > { %v16047_v47 = vpop.f32.mrf.mxu3  ;;  %8091 = vmatmul.f32.gmra.mxu2 %v7373_v11  ;;  %v7226_v11 = vld [vmem:[%s16531_s11 + $0x148] sm:$0xff] }
 0xd53   : > { %8201 = vmatmul.f32.gmra.mxu1 %v7368_v3  ;;  %9603 = vmatmul.msk.f32.gmra.mxu0 %vm7659_vm3, %v7220_v18  ;;  %v7582_v3 = vpop.permute.xlu1 %7581 }
 0xd54   : > { %v7822_v18 = vadd.f32 %v15878_v44, %v7582_v3  ;;  %v7232_v44 = vld [vmem:[%s16531_s11 + $0x178] sm:$0xff]  ;;  %v7587_v3 = vpop.permute.xlu0 %7586 }
 0xd55   : > { %v16053_v33 = vpop.f32.mrf.mxu2 }
 0xd57   : > { %8251 = vmatmul.f32.gmra.mxu3 %v7243_v43  ;;  %v7935_v43 = vadd.f32 %v15930_v20, %v7822_v18 }
 0xd58   : > { %v16055_v42 = vpop.f32.mrf.mxu0  ;;  %v16057_v6 = vpop.f32.mrf.mxu1 }
 0xd59   : > { %16684 = vst [vmem:[#allocation22_spill] sm:$0xff] %v16057_v6  ;;  %v7249_v6 = vld [vmem:[%s16531_s11 + $0x200] sm:$0xff] }
 0xd5a   : > { %v16066_v32 = vpop.f32.mrf.mxu3 }
 0xd5b   : > { %16685 = vst [vmem:[#allocation24_spill] sm:$0xff] %v16066_v32  ;;  %8204 = vmatmul.f32.gmra.mxu1 %v7374_v2  ;;  %9604 = vmatmul.msk.f32.gmra.mxu0 %vm7659_vm3, %v7226_v11  ;;  %v7825_v11 = vadd.f32 %v15901_v19, %v7587_v3  ;;  %v7592_v19 = vpop.permute.xlu2 %7591 }
 0xd5d   : > { %v8047_v7 = vpop.f32.mrf.mxu2  ;;  %v7938_v18 = vadd.f32 %v15951_v17, %v7825_v11  ;;  %v7261_v11 = vld [vmem:[%s16531_s11 + $0x260] sm:$0xff] }
 0xd5e   : > { %v8048_v37 = vadd.f32 %v8047_v7, %v7935_v43  ;;  %v7255_v7 = vld [vmem:[%s16531_s11 + $0x230] sm:$0xff] }
 0xd5f   : > { %8254 = vmatmul.f32.gmra.mxu3 %v7249_v6 }
 0xd60   : > { %v16073_v50 = vpop.f32.mrf.mxu0  ;;  %v8160_v63 = vpop.f32.mrf.mxu1 }
 0xd61   : > { %v16078_v2 = vadd.f32 %v8160_v63, %v8048_v37  ;;  %v7238_v63 = vld [vmem:[%s16531_s11 + $0x1a8] sm:$0xff] }
 0xd62   : > { %v16081_v20 = vpop.f32.mrf.mxu3 }
 0xd63   : > { %16686 = vst [vmem:[#allocation54_spill] sm:$0xff] %v16081_v20  ;;  %9605 = vmatmul.msk.f32.gmra.mxu0 %vm7659_vm3, %v7232_v44  ;;  %v7828_v44 = vadd.f32 %v15920_v35, %v7592_v19  ;;  %v7267_v19 = vld [vmem:[%s16531_s11 + $0x290] sm:$0xff] }
 0xd65   : > { %v8050_v6 = vpop.f32.mrf.mxu2  ;;  %v7941_v3 = vadd.f32 %v15972_v45, %v7828_v44 }
 0xd66   : > { %v8051_v43 = vadd.f32 %v8050_v6, %v7938_v18 }
 0xd67   : > { %8257 = vmatmul.f32.gmra.mxu3 %v7255_v7 }
 0xd68   : > { %v16088_v32 = vpop.f32.mrf.mxu0  ;;  %v8163_v0 = vpop.f32.mrf.mxu1 }
 0xd69   : > { %v16093_v37 = vadd.f32 %v8163_v0, %v8051_v43  ;;  %v7244_v0 = vld [vmem:[%s16531_s11 + $0x1d8] sm:$0xff]  ;;  %v7831_v43 = vadd.f32 %v15940_v52, %v7597_v62  ;;  %v7250_v62 = vld [vmem:[%s16531_s11 + $0x208] sm:$0xff] }
 0xd6a   : > { %v16096_v17 = vpop.f32.mrf.mxu3 }
 0xd6b   : > { %16687 = vst [vmem:[#allocation26_spill] sm:$0xff] %v16096_v17  ;;  %9606 = vmatmul.msk.f32.gmra.mxu0 %vm7659_vm3, %v7238_v63  ;;  %v7944_v45 = vadd.f32 %v15993_v15, %v7831_v43  ;;  %v7819_v17 = vadd.f32 %v15855_v24, %v15533_v61  ;;  %v16701_v24 = vld [vmem:[#allocation30_spill] sm:$0xff] }
 0xd6d   : > { %v8053_v18 = vpop.f32.mrf.mxu2 }
 0xd6e   : > { %v8054_v7 = vadd.f32 %v8053_v18, %v7941_v3 }
 0xd6f   : > { %8260 = vmatmul.f32.gmra.mxu3 %v7261_v11 }
 0xd70   : > { %v16103_v6 = vpop.f32.mrf.mxu0  ;;  %v8166_v20 = vpop.f32.mrf.mxu1 }
 0xd71   : > { %16688 = vst [vmem:[#allocation55_spill] sm:$0xff] %v16103_v6  ;;  %v16108_v35 = vadd.f32 %v8166_v20, %v8054_v7  ;;  %v7834_v20 = vadd.f32 %v15961_v34, %v7602_v54  ;;  %v7256_v54 = vld [vmem:[%s16531_s11 + $0x238] sm:$0xff]  ;;  %v7358_v6 = vld [vmem:[%s16531_s11 + $0x568] sm:$0xff] }
 0xd72   : > { %v16111_v63 = vpop.f32.mrf.mxu3 }
 0xd73   : > { %16689 = vst [vmem:[#allocation28_spill] sm:$0xff] %v16111_v63  ;;  %9607 = vmatmul.msk.f32.gmra.mxu0 %vm7659_vm3, %v7244_v0  ;;  %v7947_v15 = vadd.f32 %v16016_v48, %v7834_v20  ;;  %v7273_v0 = vld [vmem:[%s16531_s11 + $0x2c0] sm:$0xff]  ;;  %v7932_v63 = vadd.f32 %v15910_v5, %v7819_v17  ;;  %v16704_v17 = vld [vmem:[#allocation17_spill] sm:$0xff] }
 0xd75   : > { %v8056_v44 = vpop.f32.mrf.mxu2  ;;  %v8045_v61 = vadd.f32 %v16053_v33, %v7932_v63  ;;  %v16709_v33 = vld [vmem:[#allocation20_spill] sm:$0xff] }
 0xd76   : > { %v8057_v3 = vadd.f32 %v8056_v44, %v7944_v45 }
 0xd77   : > { %8263 = vmatmul.f32.gmra.mxu3 %v7267_v19 }
 0xd78   : > { %v16118_v11 = vpop.f32.mrf.mxu0  ;;  %v8169_v18 = vpop.f32.mrf.mxu1 }
 0xd79   : > { %16690 = vst [vmem:[#allocation56_spill] sm:$0xff] %v16118_v11  ;;  %v16123_v52 = vadd.f32 %v8169_v18, %v8057_v3  ;;  %v7837_v3 = vadd.f32 %v15982_v55, %v16009_v4  ;;  %v7262_v4 = vld [vmem:[%s16531_s11 + $0x268] sm:$0xff] }
 0xd7a   : > { %v16126_v7 = vpop.f32.mrf.mxu3 }
 0xd7b   : > { %16691 = vst [vmem:[#allocation31_spill] sm:$0xff] %v16126_v7  ;;  %9608 = vmatmul.msk.f32.gmra.mxu0 %vm7659_vm3, %v7250_v62  ;;  %v7950_v18 = vadd.f32 %v16037_v26, %v7837_v3  ;;  %v7279_v62 = vld [vmem:[%s16531_s11 + $0x2f0] sm:$0xff] }
 0xd7c   : > { %v16705_v7 = vld [vmem:[#allocation29_spill] sm:$0xff] }
 0xd7d   : > { %v8059_v43 = vpop.f32.mrf.mxu2 }
 0xd7e   : > { %v8060_v45 = vadd.f32 %v8059_v43, %v7947_v15 }
 0xd7f   : > { %8266 = vmatmul.f32.gmra.mxu3 %v7273_v0 }
 0xd80   : > { %v16133_v19 = vpop.f32.mrf.mxu0  ;;  %v8172_v44 = vpop.f32.mrf.mxu1 }
 0xd81   : > { %16692 = vst [vmem:[#allocation19_spill] sm:$0xff] %v16133_v19  ;;  %v16138_v34 = vadd.f32 %v8172_v44, %v8060_v45  ;;  %v7840_v45 = vadd.f32 %v16003_v28, %v15683_v22  ;;  %v7268_v22 = vld [vmem:[%s16531_s11 + $0x298] sm:$0xff]  ;;  %v8113_v28 = vadd.f32 %v15732_v57, %v15723_v59 }
 0xd82   : > { %v16142_v48 = vpop.f32.mrf.mxu3  ;;  %v7364_v19 = vld [vmem:[%s16531_s11 + $0x598] sm:$0xff] }
 0xd83   : > { %16693 = vst [vmem:[#allocation33_spill] sm:$0xff] %v16142_v48  ;;  %9609 = vmatmul.msk.f32.gmra.mxu0 %vm7659_vm3, %v7256_v54  ;;  %v7953_v44 = vadd.f32 %v16055_v42, %v7840_v45  ;;  %v7285_v54 = vld [vmem:[%s16531_s11 + $0x320] sm:$0xff]  ;;  %v7843_v42 = vadd.f32 %v16026_v58, %v15703_v21  ;;  %v7274_v21 = vld [vmem:[%s16531_s11 + $0x2c8] sm:$0xff]  ;;  %v8116_v58 = vadd.f32 %v15754_v53, %v15747_v13 }
 0xd84   : > { %v16712_v48 = vld [vmem:[#allocation36_spill] sm:$0xff] }
 0xd85   : > { %v8062_v20 = vpop.f32.mrf.mxu2  ;;  %v7956_v45 = vadd.f32 %v16073_v50, %v7843_v42  ;;  %v7846_v50 = vadd.f32 %v16047_v47, %v15725_v16  ;;  %v7297_v42 = vld [vmem:[%s16531_s11 + $0x380] sm:$0xff]  ;;  %v7280_v16 = vld [vmem:[%s16531_s11 + $0x2f8] sm:$0xff]  ;;  %v8119_v47 = vadd.f32 %v15776_v41, %v15769_v36  ;;  %v8122_v36 = vadd.f32 %v15799_v49, %v15792_v56 }
 0xd86   : > { %v8063_v15 = vadd.f32 %v8062_v20, %v7950_v18 }
 0xd87   : > { %8269 = vmatmul.f32.gmra.mxu3 %v7279_v62 }
 0xd88   : > { %v16149_v0 = vpop.f32.mrf.mxu0  ;;  %v8175_v43 = vpop.f32.mrf.mxu1 }
 0xd89   : > { %16694 = vst [vmem:[#allocation49_spill] sm:$0xff] %v16149_v0  ;;  %v16154_v55 = vadd.f32 %v8175_v43, %v8063_v15 }
 0xd8a   : > { %v16158_v26 = vpop.f32.mrf.mxu3 }
 0xd8b   : > { %16695 = vst [vmem:[#allocation21_spill] sm:$0xff] %v16158_v26  ;;  %9610 = vmatmul.msk.f32.gmra.mxu0 %vm7659_vm3, %v7262_v4  ;;  %v16710_v26 = vld [vmem:[#allocation22_spill] sm:$0xff] }
 0xd8d   : > { %v8065_v3 = vpop.f32.mrf.mxu2 }
 0xd8e   : > { %v8066_v18 = vadd.f32 %v8065_v3, %v7953_v44  ;;  %v7291_v44 = vld [vmem:[%s16531_s11 + $0x350] sm:$0xff] }
 0xd8f   : > { %8272 = vmatmul.f32.gmra.mxu3 %v7285_v54 }
 0xd90   : > { %v16165_v62 = vpop.f32.mrf.mxu0  ;;  %v8178_v20 = vpop.f32.mrf.mxu1 }
 0xd91   : > { %16696 = vst [vmem:[#allocation35_spill] sm:$0xff] %v16165_v62  ;;  %v16172_v15 = vadd.f32 %v8178_v20, %v8066_v18  ;;  %v7813_v62 = vadd.f32 %v15809_v23, %v15518_v40  ;;  %v16702_v40 = vld [vmem:[#allocation40_spill] sm:$0xff] }
 0xd92   : > { %v8225_v43 = vpop.f32.mrf.mxu3  ;;  %v7807_v23 = vadd.f32 %v16702_v40, %v16701_v24  ;;  %v8158_v24 = vadd.f32 %v16710_v26, %v8045_v61  ;;  %v16711_v40 = vld [vmem:[#allocation41_spill] sm:$0xff]  ;;  %v7376_v26 = vld [vmem:[%s16531_s11 + $0x5f8] sm:$0xff] }
 0xd93   : > { %v16176_v4 = vadd.f32 %v8225_v43, %v8113_v28  ;;  %9611 = vmatmul.msk.f32.gmra.mxu0 %vm7659_vm3, %v7268_v22  ;;  %v7959_v28 = vadd.f32 %v16088_v32, %v7846_v50  ;;  %v7309_v50 = vld [vmem:[%s16531_s11 + $0x3e0] sm:$0xff] }
 0xd95   : > { %v8068_v54 = vpop.f32.mrf.mxu2 }
 0xd96   : > { %v8069_v3 = vadd.f32 %v8068_v54, %v7956_v45 }
 0xd97   : > { %8275 = vmatmul.f32.gmra.mxu3 %v7291_v44 }
 0xd98   : > { %v16183_v59 = vpop.f32.mrf.mxu0  ;;  %v8181_v57 = vpop.f32.mrf.mxu1 }
 0xd99   : > { %16697 = vst [vmem:[#allocation23_spill] sm:$0xff] %v16183_v59  ;;  %v16190_v18 = vadd.f32 %v8181_v57, %v8069_v3  ;;  %v7303_v3 = vld [vmem:[%s16531_s11 + $0x3b0] sm:$0xff] }
 0xd9a   : > { %v8228_v20 = vpop.f32.mrf.mxu3 }
 0xd9b   : > { %16698 = vst [vmem:[#allocation37_spill] sm:$0xff] %v16190_v18  ;;  %v16194_v22 = vadd.f32 %v8228_v20, %v8116_v58  ;;  %9612 = vmatmul.msk.f32.gmra.mxu0 %vm7659_vm3, %v7274_v21  ;;  %v7286_v21 = vld [vmem:[%s16531_s11 + $0x328] sm:$0xff] }
 0xd9d   : > { %v8071_v43 = vpop.f32.mrf.mxu2 }
 0xd9e   : > { %v8072_v45 = vadd.f32 %v8071_v43, %v7959_v28  ;;  %v7292_v28 = vld [vmem:[%s16531_s11 + $0x358] sm:$0xff]  ;;  %v7315_v43 = vld [vmem:[%s16531_s11 + $0x410] sm:$0xff] }
 0xd9f   : > { %8278 = vmatmul.f32.gmra.mxu3 %v7297_v42  ;;  %v8125_v42 = vadd.f32 %v15822_v27, %v15815_v38 }
 0xda0   : > { %v16201_v13 = vpop.f32.mrf.mxu0  ;;  %v8184_v53 = vpop.f32.mrf.mxu1 }
 0xda1   : > { %16699 = vst [vmem:[#allocation25_spill] sm:$0xff] %v16201_v13  ;;  %v16208_v44 = vadd.f32 %v8184_v53, %v8072_v45  ;;  %v7298_v53 = vld [vmem:[%s16531_s11 + $0x388] sm:$0xff] }
 0xda2   : > { %v8231_v32 = vpop.f32.mrf.mxu3 }
 0xda3   : > { %16700 = vst [vmem:[#allocation39_spill] sm:$0xff] %v16208_v44  ;;  %v16210_v54 = vadd.f32 %v8231_v32, %v8119_v47  ;;  %9613 = vmatmul.msk.f32.gmra.mxu0 %vm7659_vm3, %v7280_v16  ;;  %v8128_v16 = vadd.f32 %v15845_v9, %v15838_v25  ;;  %v7321_v47 = vld [vmem:[%s16531_s11 + $0x440] sm:$0xff] }
 0xda7   : > { %8281 = vmatmul.f32.gmra.mxu3 %v7303_v3  ;;  %v7304_v3 = vld [vmem:[%s16531_s11 + $0x3b8] sm:$0xff] }
 0xda8   : > { %v16216_v57 = vpop.f32.mrf.mxu0 }
 0xdaa   : > { %v8234_v41 = vpop.f32.mrf.mxu3 }
 0xdab   : > { %v16223_v58 = vadd.f32 %v8234_v41, %v8122_v36  ;;  %9614 = vmatmul.msk.f32.gmra.mxu0 %vm7659_vm3, %v7286_v21  ;;  %v8131_v21 = vadd.f32 %v15868_v8, %v15861_v31  ;;  %v7327_v36 = vld [vmem:[%s16531_s11 + $0x470] sm:$0xff] }
 0xdaf   : > { %8284 = vmatmul.f32.gmra.mxu3 %v7309_v50  ;;  %v7310_v50 = vld [vmem:[%s16531_s11 + $0x3e8] sm:$0xff] }
 0xdb0   : > { %v16229_v20 = vpop.f32.mrf.mxu0 }
 0xdb2   : > { %v8237_v56 = vpop.f32.mrf.mxu3 }
 0xdb3   : > { %v16236_v49 = vadd.f32 %v8237_v56, %v8125_v42  ;;  %9615 = vmatmul.msk.f32.gmra.mxu0 %vm7659_vm3, %v7292_v28  ;;  %v8134_v28 = vadd.f32 %v15891_v14, %v15884_v46  ;;  %v7333_v42 = vld [vmem:[%s16531_s11 + $0x4a0] sm:$0xff]  ;;  %v7339_v46 = vld [vmem:[%s16531_s11 + $0x4d0] sm:$0xff] }
 0xdb7   : > { %8287 = vmatmul.f32.gmra.mxu3 %v7315_v43  ;;  %v7316_v43 = vld [vmem:[%s16531_s11 + $0x418] sm:$0xff] }
 0xdb8   : > { %v16242_v45 = vpop.f32.mrf.mxu0 }
 0xdba   : > { %v8240_v38 = vpop.f32.mrf.mxu3 }
 0xdbb   : > { %v16249_v27 = vadd.f32 %v8240_v38, %v8128_v16  ;;  %9616 = vmatmul.msk.f32.gmra.mxu0 %vm7659_vm3, %v7298_v53  ;;  %v7322_v38 = vld [vmem:[%s16531_s11 + $0x448] sm:$0xff] }
 0xdbf   : > { %8290 = vmatmul.f32.gmra.mxu3 %v7321_v47 }
 0xdc0   : > { %v16255_v32 = vpop.f32.mrf.mxu0 }
 0xdc2   : > { %v8243_v25 = vpop.f32.mrf.mxu3 }
 0xdc3   : > { %v16262_v9 = vadd.f32 %v8243_v25, %v8131_v21  ;;  %9617 = vmatmul.msk.f32.gmra.mxu0 %vm7659_vm3, %v7304_v3  ;;  %v7328_v21 = vld [vmem:[%s16531_s11 + $0x478] sm:$0xff] }
 0xdc7   : > { %8293 = vmatmul.f32.gmra.mxu3 %v7327_v36  ;;  %v7351_v36 = vld [vmem:[%s16531_s11 + $0x530] sm:$0xff] }
 0xdc8   : > { %v16268_v41 = vpop.f32.mrf.mxu0 }
 0xdca   : > { %v8246_v31 = vpop.f32.mrf.mxu3 }
 0xdcb   : > { %v16275_v8 = vadd.f32 %v8246_v31, %v8134_v28  ;;  %9618 = vmatmul.msk.f32.gmra.mxu0 %vm7659_vm3, %v7310_v50  ;;  %v7334_v28 = vld [vmem:[%s16531_s11 + $0x4a8] sm:$0xff] }
 0xdcf   : > { %8296 = vmatmul.f32.gmra.mxu3 %v7333_v42 }
 0xdd0   : > { %v16281_v56 = vpop.f32.mrf.mxu0 }
 0xdd2   : > { %v8249_v53 = vpop.f32.mrf.mxu3 }
 0xdd3   : > { %v8250_v16 = vadd.f32 %v8249_v53, %v15918_v51  ;;  %9619 = vmatmul.msk.f32.gmra.mxu0 %vm7659_vm3, %v7316_v43  ;;  %v7345_v51 = vld [vmem:[%s16531_s11 + $0x500] sm:$0xff] }
 0xdd4   : > { %v7357_v43 = vld [vmem:[%s16531_s11 + $0x560] sm:$0xff] }
 0xdd7   : > { %8299 = vmatmul.f32.gmra.mxu3 %v7339_v46  ;;  %v7340_v46 = vld [vmem:[%s16531_s11 + $0x4d8] sm:$0xff] }
 0xdd8   : > { %v16291_v14 = vpop.f32.mrf.mxu0 }
 0xdda   : > { %v16296_v47 = vpop.f32.mrf.mxu3 }
 0xddb   : > { %9620 = vmatmul.msk.f32.gmra.mxu0 %vm7659_vm3, %v7322_v38 }
 0xddf   : > { %8302 = vmatmul.f32.gmra.mxu3 %v7345_v51 }
 0xde0   : > { %v16302_v3 = vpop.f32.mrf.mxu0 }
 0xde2   : > { %v16307_v25 = vpop.f32.mrf.mxu3 }
 0xde3   : > { %9621 = vmatmul.msk.f32.gmra.mxu0 %vm7659_vm3, %v7328_v21  ;;  %v7346_v21 = vld [vmem:[%s16531_s11 + $0x508] sm:$0xff] }
 0xde7   : > { %8305 = vmatmul.f32.gmra.mxu3 %v7351_v36 }
 0xde8   : > { %v8362_v50 = vpop.f32.mrf.mxu0 }
 0xde9   : > { %v16316_v31 = vadd.f32 %v8362_v50, %v8250_v16  ;;  %v7363_v16 = vld [vmem:[%s16531_s11 + $0x590] sm:$0xff]  ;;  %v7369_v50 = vld [vmem:[%s16531_s11 + $0x5c0] sm:$0xff] }
 0xdea   : > { %v16318_v42 = vpop.f32.mrf.mxu3 }
 0xdeb   : > { %9622 = vmatmul.msk.f32.gmra.mxu0 %vm7659_vm3, %v7334_v28 }
 0xdef   : > { %8308 = vmatmul.f32.gmra.mxu3 %v7357_v43  ;;  %v7352_v43 = vld [vmem:[%s16531_s11 + $0x538] sm:$0xff] }
 0xdf0   : > { %v16324_v53 = vpop.f32.mrf.mxu0 }
 0xdf2   : > { %v16329_v38 = vpop.f32.mrf.mxu3 }
 0xdf3   : > { %9623 = vmatmul.msk.f32.gmra.mxu0 %vm7659_vm3, %v7340_v46 }
 0xdf7   : > { %8311 = vmatmul.f32.gmra.mxu3 %v7363_v16  ;;  %v7375_v16 = vld [vmem:[%s16531_s11 + $0x5f0] sm:$0xff] }
 0xdf8   : > { %v16335_v51 = vpop.f32.mrf.mxu0 }
 0xdfa   : > { %v8264_v36 = vpop.f32.mrf.mxu3 }
 0xdfb   : > { %9624 = vmatmul.msk.f32.gmra.mxu0 %vm7659_vm3, %v7346_v21 }
 0xdff   : > { %8314 = vmatmul.f32.gmra.mxu3 %v7369_v50 }
 0xe00   : > { %v16344_v28 = vpop.f32.mrf.mxu0 }
 0xe02   : > { %v8267_v46 = vpop.f32.mrf.mxu3 }
 0xe03   : > { %9625 = vmatmul.msk.f32.gmra.mxu0 %vm7659_vm3, %v7352_v43 }
 0xe07   : > { %8317 = vmatmul.f32.gmra.mxu3 %v7375_v16  ;;  %v7816_v16 = vadd.f32 %v15832_v29, %v15572_v12  ;;  %v7926_v12 = vadd.f32 %v15866_v1, %v7813_v62  ;;  %v16707_v1 = vld [vmem:[#allocation46_spill] sm:$0xff] }
 0xe08   : > { %v8374_v21 = vpop.f32.mrf.mxu0  ;;  %v7920_v62 = vadd.f32 %v16707_v1, %v7807_v23  ;;  %v16717_v23 = vld [vmem:[#allocation11_spill] sm:$0xff] }
 0xe0a   : > { %v8270_v50 = vpop.f32.mrf.mxu3 }
 0xe0b   : > { %9626 = vmatmul.msk.f32.gmra.mxu0 %vm7659_vm3, %v7358_v6  ;;  %v7929_v6 = vadd.f32 %v15889_v30, %v7816_v16  ;;  %v8039_v16 = vadd.f32 %v16704_v17, %v7926_v12  ;;  %v16714_v17 = vld [vmem:[#allocation13_spill] sm:$0xff]  ;;  %v8271_v18 = vadd.f32 %v8270_v50, %v8158_v24 }
 0xe0d   : > { %v8042_v29 = vadd.f32 %v16032_v10, %v7929_v6  ;;  %v16708_v10 = vld [vmem:[#allocation15_spill] sm:$0xff] }
 0xe0f   : > { %v8155_v63 = vadd.f32 %v16709_v33, %v8042_v29  ;;  %v16718_v29 = vld [vmem:[#allocation16_spill] sm:$0xff]  ;;  %v16719_v33 = vld [vmem:[#allocation51_spill] sm:$0xff] }
 0xe10   : > { %v8377_v11 = vpop.f32.mrf.mxu0 }
 0xe11   : > { %v8268_v44 = vadd.f32 %v8267_v46, %v8155_v63 }
 0xe12   : > { %v8273_v0 = vpop.f32.mrf.mxu3 }
 0xe13   : > { %v8274_v43 = vadd.f32 %v8273_v0, %v16078_v2  ;;  %9627 = vmatmul.msk.f32.gmra.mxu0 %vm7659_vm3, %v7364_v19  ;;  %v7370_v2 = vld [vmem:[%s16531_s11 + $0x5c8] sm:$0xff]  ;;  %v7810_v19 = vadd.f32 %v15786_v39, %v15554_v60  ;;  %v16706_v60 = vld [vmem:[#allocation38_spill] sm:$0xff] }
 0xe14   : > { %v16703_v0 = vld [vmem:[#allocation48_spill] sm:$0xff]  ;;  %v7804_v39 = vadd.f32 %v16706_v60, %v16705_v7  ;;  %v16716_v7 = vld [vmem:[#allocation42_spill] sm:$0xff] }
 0xe15   : > { %v7923_v5 = vadd.f32 %v16703_v0, %v7810_v19  ;;  %v7801_v19 = vadd.f32 %v16712_v48, %v16711_v40  ;;  %v16713_v0 = vld [vmem:[#allocation44_spill] sm:$0xff]  ;;  %v16720_v40 = vld [vmem:[#allocation14_spill] sm:$0xff] }
 0xe16   : > { %v7917_v12 = vadd.f32 %v16713_v0, %v7804_v39  ;;  %v16721_v0 = vld [vmem:[#allocation12_spill] sm:$0xff] }
 0xe17   : > { %v8036_v6 = vadd.f32 %v16708_v10, %v7923_v5  ;;  %v7914_v60 = vadd.f32 %v16716_v7, %v7801_v19 }
 0xe18   : > { %v8380_v13 = vpop.f32.mrf.mxu0  ;;  %v8030_v1 = vadd.f32 %v16717_v23, %v7917_v12 }
 0xe19   : > { %v8149_v61 = vadd.f32 %v16718_v29, %v8036_v6  ;;  %v8381_v10 = vadd.f32 %v8380_v13, %v8268_v44 }
 0xe1a   : > { %v8276_v30 = vpop.f32.mrf.mxu3  ;;  %v8143_v12 = vadd.f32 %v16721_v0, %v8030_v1  ;;  %v16453_v0 = vpop.f32.mrf.mxu1 }
 0xe1b   : > { %v8277_v59 = vadd.f32 %v8276_v30, %v16093_v37  ;;  %9628 = vmatmul.msk.f32.gmra.mxu0 %vm7659_vm3, %v7370_v2  ;;  %v8033_v37 = vadd.f32 %v16714_v17, %v7920_v62  ;;  %v16715_v30 = vld [vmem:[#allocation18_spill] sm:$0xff]  ;;  %v8027_v62 = vadd.f32 %v16719_v33, %v7914_v60  ;;  %v8262_v50 = vadd.f32 %v16329_v38, %v8149_v61 }
 0xe1c   : > { %v8152_v2 = vadd.f32 %v16715_v30, %v8039_v16  ;;  %v8448_v13 = vmax.f32 %v8381_v10, 0.0  ;;  %v8256_v17 = vadd.f32 %v16307_v25, %v8143_v12 }
 0xe1d   : > { %v8146_v16 = vadd.f32 %v16720_v40, %v8033_v37 }
 0xe1e   : > { %v8265_v48 = vadd.f32 %v8264_v36, %v8152_v2  ;;  %v8375_v36 = vadd.f32 %v8374_v21, %v8262_v50  ;;  %v8369_v30 = vadd.f32 %v16335_v51, %v8256_v17  ;;  %v8357_v51 = vadd.f32 %v16291_v14, %v16262_v9 }
 0xe1f   : > { %v8259_v6 = vadd.f32 %v16318_v42, %v8146_v16  ;;  %v8348_v9 = vadd.f32 %v16255_v32, %v16223_v58  ;;  %v8339_v58 = vadd.f32 %v16216_v57, %v16176_v4 }
 0xe20   : > { %v8383_v5 = vpop.f32.mrf.mxu0  ;;  %v8378_v63 = vadd.f32 %v8377_v11, %v8265_v48  ;;  %v8446_v2 = vmax.f32 %v8375_v36, 0.0  ;;  %v8444_v25 = vmax.f32 %v8369_v30, 0.0 }
 0xe21   : > { %v8384_v39 = vadd.f32 %v8383_v5, %v8271_v18  ;;  %v16722_v18 = vld [vmem:[#allocation53_spill] sm:$0xff]  ;;  %v8372_v37 = vadd.f32 %v16344_v28, %v8259_v6  ;;  %v8360_v28 = vadd.f32 %v16302_v3, %v16275_v8  ;;  %v8351_v8 = vadd.f32 %v16268_v41, %v16236_v49 }
 0xe22   : > { %v8279_v46 = vpop.f32.mrf.mxu3  ;;  %v8140_v44 = vadd.f32 %v16722_v18, %v8027_v62  ;;  %v8447_v38 = vmax.f32 %v8378_v63, 0.0  ;;  %v8440_v3 = vmax.f32 %v8357_v51, 0.0  ;;  %v8437_v49 = vmax.f32 %v8348_v9, 0.0  ;;  %v16723_v62 = vld [vmem:[#allocation37_spill] sm:$0xff] }
 0xe23   : > { %v8449_v24 = vmax.f32 %v8384_v39, 0.0  ;;  %v8280_v19 = vadd.f32 %v8279_v46, %v16108_v35  ;;  %9629 = vmatmul.msk.f32.gmra.mxu0 %vm7659_vm3, %v7376_v26  ;;  %v8445_v60 = vmax.f32 %v8372_v37, 0.0  ;;  %v8441_v26 = vmax.f32 %v8360_v28, 0.0  ;;  %v16724_v46 = vld [vmem:[#allocation39_spill] sm:$0xff] }
 0xe24   : > { %v8253_v35 = vadd.f32 %v16296_v47, %v8140_v44  ;;  %v8438_v61 = vmax.f32 %v8351_v8, 0.0  ;;  %v16727_v8 = vld [vmem:[#allocation27_spill] sm:$0xff] }
 0xe25   : > { %8468 = vmatpush.msra.mxu2 %v8449_v24 }
 0xe26   : > { %v8366_v21 = vadd.f32 %v16324_v53, %v8253_v35 }
 0xe27   : > { %8469 = vmatpush.msra.mxu2 %v8448_v13  ;;  %v8190_v13 = vpop.f32.mrf.mxu1 }
 0xe28   : > { %v8386_v11 = vpop.f32.mrf.mxu0  ;;  %v8443_v1 = vmax.f32 %v8366_v21, 0.0 }
 0xe29   : > { %v16413_v7 = vadd.f32 %v8386_v11, %v8274_v43  ;;  %8470 = vmatpush.msra.mxu2 %v8447_v38  ;;  %v8442_v43 = vmax.f32 %v16316_v31, 0.0  ;;  %v8345_v31 = vadd.f32 %v16242_v45, %v16210_v54  ;;  %v8434_v45 = vmax.f32 %v8339_v58, 0.0 }
 0xe2a   : > { %v8282_v42 = vpop.f32.mrf.mxu3 }
 0xe2b   : > { %v8283_v23 = vadd.f32 %v8282_v42, %v16123_v52  ;;  %8471 = vmatpush.msra.mxu2 %v8446_v2  ;;  %v8354_v52 = vadd.f32 %v16281_v56, %v16249_v27  ;;  %v8342_v56 = vadd.f32 %v16229_v20, %v16194_v22  ;;  %v8436_v32 = vmax.f32 %v8345_v31, 0.0  ;;  %v16730_v31 = vld [vmem:[#allocation31_spill] sm:$0xff] }
 0xe2d   : > { %8472 = vmatpush.msra.mxu2 %v8445_v60  ;;  %v8439_v14 = vmax.f32 %v8354_v52, 0.0  ;;  %v8435_v48 = vmax.f32 %v8342_v56, 0.0  ;;  %v16725_v52 = vld [vmem:[#allocation32_spill] sm:$0xff] }
 0xe2f   : > { %8473 = vmatpush.msra.mxu2 %v8444_v25  ;;  %v8193_v11 = vpop.f32.mrf.mxu1 }
 0xe30   : > { %v8389_v47 = vpop.f32.mrf.mxu0 }
 0xe31   : > { %v16422_v5 = vadd.f32 %v8389_v47, %v8277_v59  ;;  %8474 = vmatpush.msra.mxu2 %v8443_v1 }
 0xe32   : > { %v8285_v53 = vpop.f32.mrf.mxu3 }
 0xe33   : > { %v8286_v29 = vadd.f32 %v8285_v53, %v16138_v34  ;;  %8475 = vmatpush.msra.mxu2 %v8442_v43 }
 0xe35   : > { %8476 = vmatpush.msra.mxu2 %v8441_v26  ;;  %v16726_v26 = vld [vmem:[#allocation33_spill] sm:$0xff] }
 0xe37   : > { %8477 = vmatpush.msra.mxu2 %v8440_v3  ;;  %v8196_v42 = vpop.f32.mrf.mxu1  ;;  %v16728_v3 = vld [vmem:[#allocation21_spill] sm:$0xff] }
 0xe38   : > { %v8392_v59 = vpop.f32.mrf.mxu0  ;;  %v7867_v9 = vadd.f32 %v16728_v3, %v16727_v8 }
 0xe39   : > { %v16433_v27 = vadd.f32 %v8392_v59, %v8280_v19  ;;  %8478 = vmatpush.msra.mxu2 %v8439_v14  ;;  %v16451_v19 = vpop.f32.mrf.mxu2  ;;  %v16729_v59 = vld [vmem:[#allocation45_spill] sm:$0xff] }
 0xe3a   : > { %v8288_v34 = vpop.f32.mrf.mxu3 }
 0xe3b   : > { %v8289_v41 = vadd.f32 %v8288_v34, %v16154_v55  ;;  %8479 = vmatpush.msra.mxu2 %v8438_v61  ;;  %v7861_v61 = vadd.f32 %v16730_v31, %v16729_v59  ;;  %v16731_v34 = vld [vmem:[#allocation23_spill] sm:$0xff]  ;;  %v16743_v59 = vld [vmem:[#allocation24_spill] sm:$0xff] }
 0xe3d   : > { %8480 = vmatpush.msra.mxu2 %v8437_v49  ;;  %v16732_v49 = vld [vmem:[#allocation25_spill] sm:$0xff] }
 0xe3f   : > { %8481 = vmatpush.msra.mxu2 %v8436_v32  ;;  %v8199_v25 = vpop.f32.mrf.mxu1  ;;  %v16733_v32 = vld [vmem:[#allocation43_spill] sm:$0xff] }
 0xe40   : > { %v8395_v54 = vpop.f32.mrf.mxu0 }
 0xe41   : > { %v16440_v10 = vadd.f32 %v8395_v54, %v8283_v23  ;;  %8482 = vmatpush.msra.mxu2 %v8435_v48  ;;  %v8077_v36 = vpop.f32.mrf.mxu2  ;;  %v16734_v48 = vld [vmem:[#allocation28_spill] sm:$0xff] }
 0xe42   : > { %v8291_v39 = vpop.f32.mrf.mxu3  ;;  %v7858_v54 = vadd.f32 %v16734_v48, %v16733_v32  ;;  %v16745_v32 = vld [vmem:[#allocation55_spill] sm:$0xff] }
 0xe43   : > { %v8292_v33 = vadd.f32 %v8291_v39, %v16172_v15  ;;  %8483 = vmatpush.msra.mxu2 %v8434_v45  ;;  %v16735_v45 = vld [vmem:[#allocation35_spill] sm:$0xff] }
 0xe44   : > { %v7974_v39 = vadd.f32 %v16735_v45, %v7861_v61  ;;  %v16744_v61 = vld [vmem:[#allocation56_spill] sm:$0xff] }
 0xe47   : > { %v8202_v51 = vpop.f32.mrf.mxu1 }
 0xe48   : > { %v8398_v22 = vpop.f32.mrf.mxu0 }
 0xe49   : > { %v16443_v20 = vadd.f32 %v8398_v22, %v8286_v29  ;;  %v8080_v37 = vpop.f32.mrf.mxu2  ;;  %v7864_v29 = vadd.f32 %v16726_v26, %v16725_v52  ;;  %v16741_v26 = vld [vmem:[#allocation19_spill] sm:$0xff] }
 0xe4a   : > { %v8294_v55 = vpop.f32.mrf.mxu3 }
 0xe4b   : > { %v8295_v40 = vadd.f32 %v8294_v55, %v16723_v62  ;;  %v7977_v56 = vadd.f32 %v16731_v34, %v7864_v29  ;;  %v16736_v62 = vld [vmem:[#allocation50_spill] sm:$0xff] }
 0xe4f   : > { %v8205_v55 = vpop.f32.mrf.mxu1 }
 0xe50   : > { %v8401_v4 = vpop.f32.mrf.mxu0 }
 0xe51   : > { %v16446_v57 = vadd.f32 %v8401_v4, %v8289_v41  ;;  %v8083_v30 = vpop.f32.mrf.mxu2  ;;  %v7980_v41 = vadd.f32 %v16732_v49, %v7867_v9 }
 0xe52   : > { %v8297_v16 = vpop.f32.mrf.mxu3 }
 0xe53   : > { %v8298_v50 = vadd.f32 %v8297_v16, %v16724_v46  ;;  %v16738_v16 = vld [vmem:[#allocation49_spill] sm:$0xff] }
 0xe54   : > { %v7971_v46 = vadd.f32 %v16738_v16, %v7858_v54 }
 0xe56   : > { %v8084_v8 = vadd.f32 %v8083_v30, %v7971_v46 }
 0xe58   : > { %v8404_v63 = vpop.f32.mrf.mxu0 }
 0xe59   : > { %v16449_v24 = vadd.f32 %v8404_v63, %v8292_v33  ;;  %v8086_v23 = vpop.f32.mrf.mxu2  ;;  %v16739_v63 = vld [vmem:[#allocation34_spill] sm:$0xff] }
 0xe5a   : > { %v16455_v15 = vpop.f32.mrf.mxu3 }
 0xe60   : > { %v8407_v12 = vpop.f32.mrf.mxu0 }
 0xe61   : > { %v16457_v6 = vadd.f32 %v8407_v12, %v8295_v40  ;;  %v8089_v47 = vpop.f32.mrf.mxu2  ;;  %v16737_v40 = vld [vmem:[#allocation26_spill] sm:$0xff] }
 0xe62   : > { %v16461_v17 = vpop.f32.mrf.mxu3  ;;  %v8090_v33 = vadd.f32 %v8089_v47, %v7977_v56  ;;  %v7855_v4 = vadd.f32 %v16737_v40, %v16736_v62  ;;  %v16740_v12 = vld [vmem:[#allocation54_spill] sm:$0xff]  ;;  %v8466_v47 = vld [vmem:[%s16534_s14] sm:$0xff] }
 0xe63   : > { %8484 = vmatmul.f32.vlgmr.msra.gmra.mxu2 %v8466_v47 }
 0xe64   : > { %v7968_v29 = vadd.f32 %v16741_v26, %v7855_v4  ;;  %v8203_v3 = vadd.f32 %v8202_v51, %v8090_v33  ;;  %v8197_v51 = vadd.f32 %v8196_v42, %v8084_v8 }
 0xe68   : > { %v8410_v18 = vpop.f32.mrf.mxu0 }
 0xe69   : > { %v16459_v44 = vadd.f32 %v8410_v18, %v8298_v50  ;;  %v8092_v14 = vpop.f32.mrf.mxu2  ;;  %v8087_v50 = vadd.f32 %v8086_v23, %v7974_v39  ;;  %v7852_v18 = vadd.f32 %v16740_v12, %v16739_v63  ;;  %v8081_v23 = vadd.f32 %v8080_v37, %v7968_v29 }
 0xe6a   : > { %v8306_v35 = vpop.f32.mrf.mxu3  ;;  %v8093_v22 = vadd.f32 %v8092_v14, %v7980_v41  ;;  %v16742_v14 = vld [vmem:[#allocation47_spill] sm:$0xff] }
 0xe6b   : > { %v7849_v31 = vadd.f32 %v16743_v59, %v16742_v14  ;;  %v7965_v34 = vadd.f32 %v16744_v61, %v7852_v18  ;;  %v8200_v56 = vadd.f32 %v8199_v25, %v8087_v50 }
 0xe6c   : > { %v8206_v9 = vadd.f32 %v8205_v55, %v8093_v22  ;;  %v8194_v55 = vadd.f32 %v8193_v11, %v8081_v23 }
 0xe6d   : > { %v7962_v48 = vadd.f32 %v16745_v32, %v7849_v31  ;;  %v8078_v54 = vadd.f32 %v8077_v36, %v7965_v34 }
 0xe6e   : > { %v8307_v46 = vadd.f32 %v8306_v35, %v8194_v55 }
 0xe6f   : > { %v8075_v22 = vadd.f32 %v16451_v19, %v7962_v48  ;;  %v8191_v16 = vadd.f32 %v8190_v13, %v8078_v54 }
 0xe70   : > { %v16463_v38 = vpop.f32.mrf.mxu0 }
 0xe71   : > { %v8304_v36 = vadd.f32 %v16461_v17, %v8191_v16  ;;  %v8457_v17 = vmax.f32 %v16457_v6, 0.0  ;;  %v8450_v6 = vmax.f32 %v16413_v7, 0.0 }
 0xe72   : > { %v8309_v21 = vpop.f32.mrf.mxu3 }
 0xe73   : > { %v8310_v62 = vadd.f32 %v8309_v21, %v8197_v51 }
 0xe78   : > { %v16465_v2 = vpop.f32.mrf.mxu0 }
 0xe79   : > { %v8417_v19 = vadd.f32 %v16465_v2, %v8304_v36  ;;  %v8455_v2 = vmax.f32 %v16446_v57, 0.0  ;;  %v8467_v57 = vld [vmem:[%s16534_s14 + $0x8] sm:$0xff] }
 0xe7a   : > { %v8312_v28 = vpop.f32.mrf.mxu3 }
 0xe7b   : > { %v8313_v45 = vadd.f32 %v8312_v28, %v8200_v56  ;;  %v8460_v35 = vmax.f32 %v8417_v19, 0.0 }
 0xe80   : > { %v8419_v60 = vpop.f32.mrf.mxu0 }
 0xe81   : > { %v8420_v50 = vadd.f32 %v8419_v60, %v8307_v46  ;;  %v8453_v60 = vmax.f32 %v16440_v10, 0.0 }
 0xe82   : > { %v8315_v53 = vpop.f32.mrf.mxu3 }
 0xe83   : > { %v8316_v49 = vadd.f32 %v8315_v53, %v8203_v3  ;;  %v8188_v53 = vadd.f32 %v16453_v0, %v8075_v22  ;;  %v8461_v13 = vmax.f32 %v8420_v50, 0.0  ;;  %v8458_v0 = vmax.f32 %v16459_v44, 0.0 }
 0xe84   : > { %v8451_v44 = vmax.f32 %v16422_v5, 0.0  ;;  %v8511_v5 = vld [vmem:[%s16535_s15] sm:$0xff] }
 0xe85   : > { %v8301_v28 = vadd.f32 %v16455_v15, %v8188_v53  ;;  %v8456_v15 = vmax.f32 %v16449_v24, 0.0 }
 0xe87   : > { %v8414_v21 = vadd.f32 %v16463_v38, %v8301_v28  ;;  %v8454_v38 = vmax.f32 %v16443_v20, 0.0 }
 0xe88   : > { %v8422_v1 = vpop.f32.mrf.mxu0 }
 0xe89   : > { %v8423_v37 = vadd.f32 %v8422_v1, %v8310_v62  ;;  %v8459_v1 = vmax.f32 %v8414_v21, 0.0 }
 0xe8a   : > { %v8318_v52 = vpop.f32.mrf.mxu3 }
 0xe8b   : > { %v8319_v41 = vadd.f32 %v8318_v52, %v8206_v9  ;;  %v8462_v11 = vmax.f32 %v8423_v37, 0.0 }
 0xe90   : > { %v8425_v43 = vpop.f32.mrf.mxu0 }
 0xe91   : > { %v8426_v40 = vadd.f32 %v8425_v43, %v8313_v45  ;;  %v8452_v43 = vmax.f32 %v16433_v27, 0.0 }
 0xe93   : > { %v8463_v42 = vmax.f32 %v8426_v40, 0.0 }
 0xe98   : > { %v8428_v58 = vpop.f32.mrf.mxu0 }
 0xe99   : > { %v8429_v39 = vadd.f32 %v8428_v58, %v8316_v49 }
 0xe9b   : > { %v8464_v25 = vmax.f32 %v8429_v39, 0.0 }
 0xea0   : > { %v8431_v30 = vpop.f32.mrf.mxu0 }
 0xea1   : > { %v8432_v33 = vadd.f32 %v8431_v30, %v8319_v41 }
 0xea3   : > { %v8465_v4 = vmax.f32 %v8432_v33, 0.0 }
 0xea5   : > { %8488 = vmatpush.msrb.mxu2 %v8465_v4 }
 0xea7   : > { %8489 = vmatpush.msrb.mxu2 %v8464_v25 }
 0xea9   : > { %8490 = vmatpush.msrb.mxu2 %v8463_v42 }
 0xeab   : > { %8491 = vmatpush.msrb.mxu2 %v8462_v11 }
 0xead   : > { %8492 = vmatpush.msrb.mxu2 %v8461_v13 }
 0xeaf   : > { %8493 = vmatpush.msrb.mxu2 %v8460_v35 }
 0xeb1   : > { %8494 = vmatpush.msrb.mxu2 %v8459_v1 }
 0xeb3   : > { %8495 = vmatpush.msrb.mxu2 %v8458_v0 }
 0xeb5   : > { %8496 = vmatpush.msrb.mxu2 %v8457_v17 }
 0xeb7   : > { %8497 = vmatpush.msrb.mxu2 %v8456_v15 }
 0xeb9   : > { %8498 = vmatpush.msrb.mxu2 %v8455_v2 }
 0xebb   : > { %8499 = vmatpush.msrb.mxu2 %v8454_v38 }
 0xebd   : > { %8500 = vmatpush.msrb.mxu2 %v8453_v60 }
 0xebf   : > { %8501 = vmatpush.msrb.mxu2 %v8452_v43 }
 0xec1   : > { %8502 = vmatpush.msrb.mxu2 %v8451_v44 }
 0xec3   : > { %8503 = vmatpush.msrb.mxu2 %v8450_v6 }
 0xec4   : > { %8504 = vmatmul.f32.vlgmr.msrb.gmra.mxu2 %v8467_v57 }
 0xee6   : > { %v8485_v20 = vpop.f32.mrf.mxu2 }
 0xf47   : > { %v8505_v24 = vpop.f32.mrf.mxu2 }
 0xf48   : > { %v8506_v10 = vadd.f32 %v8505_v24, %v8485_v20 }
 0xf4a   : > { %v8508_v58 = vsel %vm2362_vm0, %v8506_v10, 0.0 }
 0xf4b   : > { %8509 = vadd.xlane.f32.xlu2 %v8508_v58 }
 0xfbe   : > { %v8510_v7 = vpop.xlane.xlu2 %8509 }
 0xfbf   : > { %v8512_v27 = vadd.f32 %v8511_v5, %v8510_v7 }
 0xfc1   : > { %8514 = vst.msk [vmem:[%s553_s27] sm:$0xff] %vm8513_vm4, %v8512_v27 }
 0xfc2 PF: > { %s28_s21 = sadd.s32 1, %s9769_s21  }
 0xfc3   : > { %p25_p7 = scmp.ge.s32.totalorder %s28_s21, 4  }
 0xfc5   :  { %27 = sbr.rel (!%p25_p7) target bundleno = 4 (0x4), region = 147 }
 0xfca   :  { %8534 = vsyncpa [#allocation6], 1 }
 0xfcb   :  { %8536 = vsyncpa [#allocation6 + $0x1], 1 }
 0xfcc   :  { %8537 = vsyncpa [#allocation8], 1 }

</bundles_post_ra>
